<compile_context>
chip_gen: v7x
topology: tpu7x:2x2x1
jax: 0.10.0
libtpu: 0.0.40
codegen_flags: <defaults>
</compile_context>

<pallas_src>
import math

import jax
import jax.numpy as jnp
from jax.experimental import pallas as pl
from jax.experimental.pallas import tpu as pltpu


# ----------------------------------------------------------------------------
# tiling helpers
# ----------------------------------------------------------------------------
def _pick_channel_tile(cout):
    """Lane-dense output-channel tile: 256 on v6e/v7x-class MXUs, 128 on <=v5."""
    prefer_256 = True
    try:
        kind = jax.devices()[0].device_kind.lower()
        if any(t in kind for t in ("v2", "v3", "v4", "v5")):
            prefer_256 = False
    except Exception:
        pass
    if prefer_256 and cout % 256 == 0:
        return 256
    if cout % 128 == 0:
        return 128
    return cout  # lane-unaligned Cout: correct but slow (masked partial stores)


def _pick_row_tile(H, W, max_rows_x_cols=1024):
    """Largest even divisor TH of H with TH*W <= cap (bounds per-step VMEM)."""
    best = None
    for th in range(2, H + 1, 2):
        if H % th == 0 and th * W <= max_rows_x_cols:
            best = th
    if best is None:  # very wide images: fall back to the smallest even divisor
        for th in range(2, H + 1, 2):
            if H % th == 0:
                best = th
                break
    return best if best is not None else H


# ----------------------------------------------------------------------------
# in-kernel building blocks
# ----------------------------------------------------------------------------
def _assemble_halo_window(win_ref, main, up, dn, W):
    """Write a zero-padded (TH+2, W+2, C) conv window into the VMEM scratch.

    main: (TH, W, C) band; up/dn: (1, W, C) neighbour rows (already zeroed at
    the image boundary).  The column halo is written as zeros every step
    (cheap), so the scratch never carries stale data across grid steps.
    """
    TH = main.shape[0]
    C = main.shape[-1]
    zcol = jnp.zeros((TH + 2, 1, C), main.dtype)
    win_ref[:, 0:1, :] = zcol
    win_ref[:, W + 1:W + 2, :] = zcol
    win_ref[0:1, 1:W + 1, :] = up
    win_ref[1:TH + 1, 1:W + 1, :] = main
    win_ref[TH + 1:TH + 2, 1:W + 1, :] = dn


def _conv3x3_accumulate(win_ref, w_ref, TH, W, C):
    """3x3 'same' conv of the (TH+2, W+2, C) window against w_ref (3, 3C, TC).

    Returns a (TH*W, TC) float32 value.  Value-chained accumulation: the adds
    fuse with the MXU result drain instead of round-tripping a VMEM scratch.
    """
    lane_aligned = (C % 128 == 0)
    acc = None

    def add(a, b):
        return b if a is None else a + b

    for dy in range(3):
        slab = win_ref[dy:dy + TH]                   # (TH, W+2, C)
        w_dy = w_ref[dy]                             # (3C, TC)
        if lane_aligned:
            # per-dy im2col: one K = 3C contraction (lane-aligned channel concat),
            # operands stay in their (possibly bf16) storage dtype.
            patch = jnp.concatenate(
                [slab[:, dx:dx + W, :] for dx in range(3)], axis=-1)
            patch = patch.reshape(TH * W, 3 * C)
            acc = add(acc, jnp.dot(patch, w_dy,
                                   preferred_element_type=jnp.float32))
        else:
            # tiny / lane-unaligned C (e.g. RGB input): per-tap K = C dots.
            # TODO(synk): fuse into a single padded-K im2col dot per dy.
            for dx in range(3):
                patch = slab[:, dx:dx + W, :].reshape(TH * W, C)
                acc = add(acc, jnp.dot(patch, w_dy[dx * C:(dx + 1) * C, :],
                                       preferred_element_type=jnp.float32))
    return acc


# ----------------------------------------------------------------------------
# kernels
# ----------------------------------------------------------------------------
def make_conv1_relu_kernel(TH, W, Cin, TC, n_ht):
    """conv1 (3x3, pad 1) + bias + ReLU -> (bf16) hidden activation band."""

    def kernel(xm_ref, xu_ref, xd_ref, w_ref, b_ref, o_ref, win_ref):
        ht = pl.program_id(2)
        up = xu_ref[0]
        dn = xd_ref[0]
        up = jnp.where(ht == 0, jnp.zeros_like(up), up)
        dn = jnp.where(ht == n_ht - 1, jnp.zeros_like(dn), dn)
        _assemble_halo_window(win_ref, xm_ref[0], up, dn, W)

        acc = _conv3x3_accumulate(win_ref, w_ref, TH, W, Cin)   # (TH*W, TC) f32
        h = jnp.maximum(acc + b_ref[...], 0.0)                  # bias + ReLU in f32
        o_ref[0] = h.reshape(TH, W, TC).astype(o_ref.dtype)

    return kernel


def make_conv2_pool_add_kernel(TH, W, Ch, Cin_sc, TC, n_ht):
    """Fused block tail for one row band:
        conv2(relu'd h1) -> 2x2 window-sum pool (+ b2)
      + (2x2 window-sum pool of x) @ wsc (+ bsc)       [1/4 folded into w2, wsc]
      -> residual add -> f32 output.
    ReLU was applied in conv1's epilogue (exact: relu(0)=0 commutes with the
    zero halo)."""
    TH2, W2 = TH // 2, W // 2

    def kernel(hm_ref, hu_ref, hd_ref, xp_ref, w2_ref, b2_ref,
               wsc_ref, bsc_ref, o_ref, win_ref):
        ht = pl.program_id(2)
        up = hu_ref[0]
        dn = hd_ref[0]
        up = jnp.where(ht == 0, jnp.zeros_like(up), up)
        dn = jnp.where(ht == n_ht - 1, jnp.zeros_like(dn), dn)
        _assemble_halo_window(win_ref, hm_ref[0], up, dn, W)

        acc = _conv3x3_accumulate(win_ref, w2_ref, TH, W, Ch)   # (TH*W, TC) f32

        # 2x2 window-sum pool (the 1/4 is pre-folded into w2 on the host).
        pooled = acc.reshape(TH, W, TC).reshape(TH2, 2, W2, 2, TC).sum(axis=(1, 3))
        pooled = pooled.reshape(TH2 * W2, TC)

        # shortcut: (2x2 window-summed x) @ (0.25 * wsc) + bsc
        xp = xp_ref[0].reshape(TH2 * W2, Cin_sc)
        sc = jnp.dot(xp, wsc_ref[...], preferred_element_type=jnp.float32)

        out = pooled + b2_ref[...] + sc + bsc_ref[...]
        o_ref[0] = out.reshape(TH2, W2, TC).astype(o_ref.dtype)

    return kernel


# ----------------------------------------------------------------------------
# forward pass (NHWC core + NCHW wrapper)
# ----------------------------------------------------------------------------
def optimized_block_forward_nhwc(x, params, *, row_tile=None, channel_tile=None,
                                 vmem_limit_bytes=None):
    """x: (N, H, W, in_ch) -> (N, H/2, W/2, out_ch), all f32 at the boundary."""
    N, H, W, Cin = x.shape
    assert H % 2 == 0 and W % 2 == 0, "2x2 avg-pool needs even spatial dims"
    Cout = params["c1_w"].shape[-1]
    TC = channel_tile or _pick_channel_tile(Cout)
    assert Cout % TC == 0
    n_ct = Cout // TC
    TH = row_tile or _pick_row_tile(H, W)
    assert H % TH == 0 and TH % 2 == 0
    n_ht = H // TH
    Ho, Wo = H // 2, W // 2

    # bf16 MXU operands only when the contraction channels are lane-aligned.
    in_dtype = jnp.bfloat16 if Cin % 128 == 0 else jnp.float32
    mid_dtype = jnp.bfloat16 if Cout % 128 == 0 else jnp.float32
    sc_dtype = in_dtype

    x = x.astype(jnp.float32)
    # 2x2 *sum* pool of x for the shortcut (1/4 folded into wsc); computed once
    # per image instead of once per output-channel tile inside kernel 2.
    xpool = x.reshape(N, Ho, 2, Wo, 2, Cin).sum(axis=(2, 4)).astype(sc_dtype)
    x_in = x.astype(in_dtype)

    # weights flattened as (dy, dx*C + c, cout); avg-pool 1/4 folded into w2/wsc.
    w1r = params["c1_w"].reshape(3, 3 * Cin, Cout).astype(in_dtype)
    w2r = (params["c2_w"] * 0.25).reshape(3, 3 * Cout, Cout).astype(mid_dtype)
    wscr = (params["c_sc_w"] * 0.25).astype(sc_dtype)
    b1 = params["c1_b"].astype(jnp.float32)
    b2 = params["c2_b"].astype(jnp.float32)
    bsc = params["c_sc_b"].astype(jnp.float32)

    grid = (N, n_ct, n_ht)
    sem = ("parallel", "parallel", "parallel")

    # row-band specs: TH-row main band + 1 halo row above + 1 halo row below
    # (halo rows are zero-masked in-kernel at the image boundary).
    row_main = lambda n, j, ht: (n, ht, 0, 0)
    row_up = lambda n, j, ht: (n, jnp.maximum(ht * TH - 1, 0), 0, 0)
    row_dn = lambda n, j, ht: (n, jnp.minimum((ht + 1) * TH, H - 1), 0, 0)

    cparams = pltpu.CompilerParams(dimension_semantics=sem,
                                   vmem_limit_bytes=vmem_limit_bytes)

    # ---- kernel 1: conv1 + bias + ReLU -> hidden activation ------------------
    h1 = pl.pallas_call(
        make_conv1_relu_kernel(TH, W, Cin, TC, n_ht),
        out_shape=jax.ShapeDtypeStruct((N, H, W, Cout), mid_dtype),
        grid=grid,
        in_specs=[
            pl.BlockSpec((1, TH, W, Cin), row_main),
            pl.BlockSpec((1, 1, W, Cin), row_up),
            pl.BlockSpec((1, 1, W, Cin), row_dn),
            pl.BlockSpec((3, 3 * Cin, TC), lambda n, j, ht: (0, 0, j)),
            pl.BlockSpec((1, TC), lambda n, j, ht: (0, j)),
        ],
        out_specs=pl.BlockSpec((1, TH, W, TC), lambda n, j, ht: (n, ht, 0, j)),
        scratch_shapes=[pltpu.VMEM((TH + 2, W + 2, Cin), in_dtype)],
        compiler_params=cparams,
    )(x_in, x_in, x_in, w1r, b1)

    # ---- kernel 2: conv2 + 2x2 avg-pool + 1x1 shortcut + residual add --------
    out = pl.pallas_call(
        make_conv2_pool_add_kernel(TH, W, Cout, Cin, TC, n_ht),
        out_shape=jax.ShapeDtypeStruct((N, Ho, Wo, Cout), jnp.float32),
        grid=grid,
        in_specs=[
            pl.BlockSpec((1, TH, W, Cout), row_main),
            pl.BlockSpec((1, 1, W, Cout), row_up),
            pl.BlockSpec((1, 1, W, Cout), row_dn),
            pl.BlockSpec((1, TH // 2, Wo, Cin), lambda n, j, ht: (n, ht, 0, 0)),
            pl.BlockSpec((3, 3 * Cout, TC), lambda n, j, ht: (0, 0, j)),
            pl.BlockSpec((1, TC), lambda n, j, ht: (0, j)),
            pl.BlockSpec((Cin, TC), lambda n, j, ht: (0, j)),
            pl.BlockSpec((1, TC), lambda n, j, ht: (0, j)),
        ],
        out_specs=pl.BlockSpec((1, TH // 2, Wo, TC),
                               lambda n, j, ht: (n, ht, 0, j)),
        scratch_shapes=[pltpu.VMEM((TH + 2, W + 2, Cout), mid_dtype)],
        compiler_params=cparams,
    )(h1, h1, h1, xpool, w2r, b2, wscr, bsc)

    return out


def optimized_block_forward(x_nchw, params, **kw):
    """PyTorch-layout entry point: (N, in_ch, H, W) f32 -> (N, out_ch, H/2, W/2).

    In a full network keep activations NHWC end-to-end and call
    optimized_block_forward_nhwc directly; each layout transpose here is an
    extra HBM read+write pass done by XLA."""
    x = jnp.transpose(x_nchw, (0, 2, 3, 1))
    y = optimized_block_forward_nhwc(x, params, **kw)
    return jnp.transpose(y, (0, 3, 1, 2))


# ----------------------------------------------------------------------------
# deterministic parameter init (mirrors OptimizedBlock.__init__ / _initialize)
# ----------------------------------------------------------------------------
def init_params(key, in_ch, out_ch, ksize=3):
    k1, k2, k3, k4, k5, k6 = jax.random.split(key, 6)
    g2 = math.sqrt(2.0)

    def xavier_conv(k, cin, cout, ks, gain):
        fan_in, fan_out = cin * ks * ks, cout * ks * ks
        lim = gain * math.sqrt(6.0 / (fan_in + fan_out))
        return jax.random.uniform(k, (ks, ks, cin, cout), jnp.float32, -lim, lim)

    def conv_bias(k, cin, cout, ks):
        blim = 1.0 / math.sqrt(cin * ks * ks)
        return jax.random.uniform(k, (1, cout), jnp.float32, -blim, blim)

    return {
        "c1_w": xavier_conv(k1, in_ch, out_ch, ksize, g2),
        "c1_b": conv_bias(k2, in_ch, out_ch, ksize),
        "c2_w": xavier_conv(k3, out_ch, out_ch, ksize, g2),
        "c2_b": conv_bias(k4, out_ch, out_ch, ksize),
        "c_sc_w": xavier_conv(k5, in_ch, out_ch, 1, 1.0).reshape(in_ch, out_ch),
        "c_sc_b": conv_bias(k6, in_ch, out_ch, 1),
    }


# ----------------------------------------------------------------------------
# pure-JAX reference (f32, HIGHEST precision) for correctness check
# ----------------------------------------------------------------------------
def _reference_forward(x_nchw, params):
    x = jnp.transpose(x_nchw, (0, 2, 3, 1)).astype(jnp.float32)
    dn = jax.lax.conv_dimension_numbers(x.shape, params["c1_w"].shape,
                                        ("NHWC", "HWIO", "NHWC"))

    def conv3(v, w, b):
        y = jax.lax.conv_general_dilated(v, w, (1, 1), ((1, 1), (1, 1)),
                                         dimension_numbers=dn,
                                         precision=jax.lax.Precision.HIGHEST)
        return y + b.reshape(1, 1, 1, -1)

    def pool(v):
        n, h, w, c = v.shape
        return v.reshape(n, h // 2, 2, w // 2, 2, c).mean(axis=(2, 4))

    h = jnp.maximum(conv3(x, params["c1_w"], params["c1_b"]), 0.0)
    h = pool(conv3(h, params["c2_w"], params["c2_b"]))
    sc = jnp.einsum("nhwc,cd->nhwd", pool(x), params["c_sc_w"],
                    precision=jax.lax.Precision.HIGHEST)
    sc = sc + params["c_sc_b"].reshape(1, 1, 1, -1)
    return jnp.transpose(sc + h, (0, 3, 1, 2))


if __name__ == "__main__":
    key = jax.random.PRNGKey(0)
    k_params, k_x = jax.random.split(key)

    in_ch, out_ch = 3, 128          # out_ch lane-dense (multiple of 128)
    N, H, W = 2, 16, 16

    params = init_params(k_params, in_ch, out_ch)
    x = jax.random.normal(k_x, (N, in_ch, H, W), jnp.float32)   # NCHW input

    out = jax.jit(optimized_block_forward)(x, params)
    out = jax.block_until_ready(out)

    assert out.shape == (N, out_ch, H // 2, W // 2)
    assert bool(jnp.all(jnp.isfinite(out)))

    # numerical check against the pure-JAX reference (bf16 matmul tolerance)
    ref = _reference_forward(x, params)
    max_err = float(jnp.max(jnp.abs(out - ref)))
    max_ref = float(jnp.max(jnp.abs(ref)))
    assert max_err <= 0.05 * max_ref + 1e-3, (max_err, max_ref)

    print("KERNEL_OK")
</pallas_src>

<mosaic_0001>
module attributes {stable_mosaic.version = 11 : i64} {
  func.func @kernel(%arg0: i32, %arg1: i32, %arg2: i32, %arg3: memref<1x16x16x128xbf16, #tpu.memory_space<vmem>>, %arg4: memref<1x1x16x128xbf16, #tpu.memory_space<vmem>>, %arg5: memref<1x1x16x128xbf16, #tpu.memory_space<vmem>>, %arg6: memref<1x8x8x3xf32, #tpu.memory_space<vmem>>, %arg7: memref<3x384x128xbf16, #tpu.memory_space<vmem>>, %arg8: memref<1x128xf32, #tpu.memory_space<vmem>>, %arg9: memref<3x128xf32, #tpu.memory_space<vmem>>, %arg10: memref<1x128xf32, #tpu.memory_space<vmem>>, %arg11: memref<1x8x8x128xf32, #tpu.memory_space<vmem>>, %arg12: memref<18x18x128xbf16, #tpu.memory_space<vmem>>) attributes {dimension_semantics = [#tpu.dimension_semantics<parallel>, #tpu.dimension_semantics<parallel>, #tpu.dimension_semantics<parallel>], iteration_bounds = array<i64: 2, 1, 1>, scalar_prefetch = 0 : i64, scratch_operands = 1 : i64, tpu.core_type = #tpu.core_type<tc>, window_params = [{transform_indices = @transform_0, window_bounds = array<i64: 1, 16, 16, 128>}, {transform_indices = @transform_1, window_bounds = array<i64: 1, 1, 16, 128>}, {transform_indices = @transform_2, window_bounds = array<i64: 1, 1, 16, 128>}, {transform_indices = @transform_3, window_bounds = array<i64: 1, 8, 8, 3>}, {transform_indices = @transform_4, window_bounds = array<i64: 3, 384, 128>}, {transform_indices = @transform_5, window_bounds = array<i64: 1, 128>}, {transform_indices = @transform_6, window_bounds = array<i64: 3, 128>}, {transform_indices = @transform_7, window_bounds = array<i64: 1, 128>}, {transform_indices = @transform_8, window_bounds = array<i64: 1, 8, 8, 128>}]} {
    %c0 = arith.constant 0 : index
    %c0_0 = arith.constant 0 : index
    %c0_1 = arith.constant 0 : index
    %c0_2 = arith.constant 0 : index
    %0 = vector.load %arg4[%c0, %c0_0, %c0_1, %c0_2] : memref<1x1x16x128xbf16, #tpu.memory_space<vmem>>, vector<1x1x16x128xbf16>
    %1 = vector.shape_cast %0 : vector<1x1x16x128xbf16> to vector<1x16x128xbf16>
    %c0_3 = arith.constant 0 : index
    %c0_4 = arith.constant 0 : index
    %c0_5 = arith.constant 0 : index
    %c0_6 = arith.constant 0 : index
    %2 = vector.load %arg5[%c0_3, %c0_4, %c0_5, %c0_6] : memref<1x1x16x128xbf16, #tpu.memory_space<vmem>>, vector<1x1x16x128xbf16>
    %3 = vector.shape_cast %2 : vector<1x1x16x128xbf16> to vector<1x16x128xbf16>
    %c0_i32 = arith.constant 0 : i32
    %4 = arith.cmpi eq, %arg2, %c0_i32 : i32
    %cst = arith.constant 0.000000e+00 : bf16
    %5 = vector.broadcast %cst : bf16 to vector<1x16x128xbf16>
    %6 = arith.select %4, %5, %1 : vector<1x16x128xbf16>
    %c0_i32_7 = arith.constant 0 : i32
    %7 = arith.cmpi eq, %arg2, %c0_i32_7 : i32
    %cst_8 = arith.constant 0.000000e+00 : bf16
    %8 = vector.broadcast %cst_8 : bf16 to vector<1x16x128xbf16>
    %9 = arith.select %7, %8, %3 : vector<1x16x128xbf16>
    %c0_9 = arith.constant 0 : index
    %c0_10 = arith.constant 0 : index
    %c0_11 = arith.constant 0 : index
    %c0_12 = arith.constant 0 : index
    %10 = vector.load %arg3[%c0_9, %c0_10, %c0_11, %c0_12] : memref<1x16x16x128xbf16, #tpu.memory_space<vmem>>, vector<1x16x16x128xbf16>
    %11 = vector.shape_cast %10 : vector<1x16x16x128xbf16> to vector<16x16x128xbf16>
    %cst_13 = arith.constant 0.000000e+00 : bf16
    %12 = vector.broadcast %cst_13 : bf16 to vector<18x1x128xbf16>
    %c0_14 = arith.constant 0 : index
    %c0_15 = arith.constant 0 : index
    %c0_16 = arith.constant 0 : index
    %13 = vector.load %arg12[%c0_14, %c0_15, %c0_16] : memref<18x18x128xbf16, #tpu.memory_space<vmem>>, vector<18x1x128xbf16>
    tpu.vector_store %arg12[%c0_14, %c0_15, %c0_16], %12 {strides = array<i32>} : memref<18x18x128xbf16, #tpu.memory_space<vmem>>, vector<18x1x128xbf16>,
    %c0_17 = arith.constant 0 : index
    %c17 = arith.constant 17 : index
    %c0_18 = arith.constant 0 : index
    %14 = vector.load %arg12[%c0_17, %c17, %c0_18] : memref<18x18x128xbf16, #tpu.memory_space<vmem>>, vector<18x1x128xbf16>
    tpu.vector_store %arg12[%c0_17, %c17, %c0_18], %12 {strides = array<i32>} : memref<18x18x128xbf16, #tpu.memory_space<vmem>>, vector<18x1x128xbf16>,
    %c0_19 = arith.constant 0 : index
    %c1 = arith.constant 1 : index
    %c0_20 = arith.constant 0 : index
    %15 = vector.load %arg12[%c0_19, %c1, %c0_20] : memref<18x18x128xbf16, #tpu.memory_space<vmem>>, vector<1x16x128xbf16>
    tpu.vector_store %arg12[%c0_19, %c1, %c0_20], %6 {strides = array<i32>} : memref<18x18x128xbf16, #tpu.memory_space<vmem>>, vector<1x16x128xbf16>,
    %c1_21 = arith.constant 1 : index
    %c1_22 = arith.constant 1 : index
    %c0_23 = arith.constant 0 : index
    %16 = vector.load %arg12[%c1_21, %c1_22, %c0_23] : memref<18x18x128xbf16, #tpu.memory_space<vmem>>, vector<16x16x128xbf16>
    tpu.vector_store %arg12[%c1_21, %c1_22, %c0_23], %11 {strides = array<i32>} : memref<18x18x128xbf16, #tpu.memory_space<vmem>>, vector<16x16x128xbf16>,
    %c17_24 = arith.constant 17 : index
    %c1_25 = arith.constant 1 : index
    %c0_26 = arith.constant 0 : index
    %17 = vector.load %arg12[%c17_24, %c1_25, %c0_26] : memref<18x18x128xbf16, #tpu.memory_space<vmem>>, vector<1x16x128xbf16>
    tpu.vector_store %arg12[%c17_24, %c1_25, %c0_26], %9 {strides = array<i32>} : memref<18x18x128xbf16, #tpu.memory_space<vmem>>, vector<1x16x128xbf16>,
    %c0_27 = arith.constant 0 : index
    %c0_28 = arith.constant 0 : index
    %c0_29 = arith.constant 0 : index
    %18 = vector.load %arg12[%c0_27, %c0_28, %c0_29] : memref<18x18x128xbf16, #tpu.memory_space<vmem>>, vector<16x18x128xbf16>
    %c0_30 = arith.constant 0 : index
    %c0_31 = arith.constant 0 : index
    %c0_32 = arith.constant 0 : index
    %19 = vector.load %arg7[%c0_30, %c0_31, %c0_32] : memref<3x384x128xbf16, #tpu.memory_space<vmem>>, vector<1x384x128xbf16>
    %20 = vector.shape_cast %19 : vector<1x384x128xbf16> to vector<384x128xbf16>
    %21 = vector.extract_strided_slice %18 {offsets = [0, 0, 0], sizes = [16, 16, 128], strides = [1, 1, 1]} : vector<16x18x128xbf16> to vector<16x16x128xbf16>
    %22 = vector.extract_strided_slice %18 {offsets = [0, 1, 0], sizes = [16, 16, 128], strides = [1, 1, 1]} : vector<16x18x128xbf16> to vector<16x16x128xbf16>
    %23 = vector.extract_strided_slice %18 {offsets = [0, 2, 0], sizes = [16, 16, 128], strides = [1, 1, 1]} : vector<16x18x128xbf16> to vector<16x16x128xbf16>
    %24 = tpu.concatenate %21, %22, %23 in 2 : vector<16x16x128xbf16>, vector<16x16x128xbf16>, vector<16x16x128xbf16> -> vector<16x16x384xbf16>
    %25 = vector.shape_cast %24 : vector<16x16x384xbf16> to vector<256x384xbf16>
    %cst_33 = arith.constant dense<0.000000e+00> : vector<256x128xf32>
    %26 = tpu.matmul %25, %20, %cst_33 {dimension_numbers = #tpu.dot_dimension_numbers<[1], [0], [0], [1], [0, 0, 1, 1], [], []>} : vector<256x384xbf16>, vector<384x128xbf16>, vector<256x128xf32> -> vector<256x128xf32>
    %c1_34 = arith.constant 1 : index
    %c0_35 = arith.constant 0 : index
    %c0_36 = arith.constant 0 : index
    %27 = vector.load %arg12[%c1_34, %c0_35, %c0_36] : memref<18x18x128xbf16, #tpu.memory_space<vmem>>, vector<16x18x128xbf16>
    %c1_37 = arith.constant 1 : index
    %c0_38 = arith.constant 0 : index
    %c0_39 = arith.constant 0 : index
    %28 = vector.load %arg7[%c1_37, %c0_38, %c0_39] : memref<3x384x128xbf16, #tpu.memory_space<vmem>>, vector<1x384x128xbf16>
    %29 = vector.shape_cast %28 : vector<1x384x128xbf16> to vector<384x128xbf16>
    %30 = vector.extract_strided_slice %27 {offsets = [0, 0, 0], sizes = [16, 16, 128], strides = [1, 1, 1]} : vector<16x18x128xbf16> to vector<16x16x128xbf16>
    %31 = vector.extract_strided_slice %27 {offsets = [0, 1, 0], sizes = [16, 16, 128], strides = [1, 1, 1]} : vector<16x18x128xbf16> to vector<16x16x128xbf16>
    %32 = vector.extract_strided_slice %27 {offsets = [0, 2, 0], sizes = [16, 16, 128], strides = [1, 1, 1]} : vector<16x18x128xbf16> to vector<16x16x128xbf16>
    %33 = tpu.concatenate %30, %31, %32 in 2 : vector<16x16x128xbf16>, vector<16x16x128xbf16>, vector<16x16x128xbf16> -> vector<16x16x384xbf16>
    %34 = vector.shape_cast %33 : vector<16x16x384xbf16> to vector<256x384xbf16>
    %cst_40 = arith.constant dense<0.000000e+00> : vector<256x128xf32>
    %35 = tpu.matmul %34, %29, %cst_40 {dimension_numbers = #tpu.dot_dimension_numbers<[1], [0], [0], [1], [0, 0, 1, 1], [], []>} : vector<256x384xbf16>, vector<384x128xbf16>, vector<256x128xf32> -> vector<256x128xf32>
    %36 = arith.addf %26, %35 : vector<256x128xf32>
    %c2 = arith.constant 2 : index
    %c0_41 = arith.constant 0 : index
    %c0_42 = arith.constant 0 : index
    %37 = vector.load %arg12[%c2, %c0_41, %c0_42] : memref<18x18x128xbf16, #tpu.memory_space<vmem>>, vector<16x18x128xbf16>
    %c2_43 = arith.constant 2 : index
    %c0_44 = arith.constant 0 : index
    %c0_45 = arith.constant 0 : index
    %38 = vector.load %arg7[%c2_43, %c0_44, %c0_45] : memref<3x384x128xbf16, #tpu.memory_space<vmem>>, vector<1x384x128xbf16>
    %39 = vector.shape_cast %38 : vector<1x384x128xbf16> to vector<384x128xbf16>
    %40 = vector.extract_strided_slice %37 {offsets = [0, 0, 0], sizes = [16, 16, 128], strides = [1, 1, 1]} : vector<16x18x128xbf16> to vector<16x16x128xbf16>
    %41 = vector.extract_strided_slice %37 {offsets = [0, 1, 0], sizes = [16, 16, 128], strides = [1, 1, 1]} : vector<16x18x128xbf16> to vector<16x16x128xbf16>
    %42 = vector.extract_strided_slice %37 {offsets = [0, 2, 0], sizes = [16, 16, 128], strides = [1, 1, 1]} : vector<16x18x128xbf16> to vector<16x16x128xbf16>
    %43 = tpu.concatenate %40, %41, %42 in 2 : vector<16x16x128xbf16>, vector<16x16x128xbf16>, vector<16x16x128xbf16> -> vector<16x16x384xbf16>
    %44 = vector.shape_cast %43 : vector<16x16x384xbf16> to vector<256x384xbf16>
    %cst_46 = arith.constant dense<0.000000e+00> : vector<256x128xf32>
    %45 = tpu.matmul %44, %39, %cst_46 {dimension_numbers = #tpu.dot_dimension_numbers<[1], [0], [0], [1], [0, 0, 1, 1], [], []>} : vector<256x384xbf16>, vector<384x128xbf16>, vector<256x128xf32> -> vector<256x128xf32>
    %46 = arith.addf %36, %45 : vector<256x128xf32>
    %47 = vector.shape_cast %46 : vector<256x128xf32> to vector<16x16x128xf32>
    %48 = vector.shape_cast %47 : vector<16x16x128xf32> to vector<8x2x8x2x128xf32>
    %cst_47 = arith.constant dense<0.000000e+00> : vector<8x8x128xf32>
    %49 = vector.multi_reduction <add>, %48, %cst_47 [1, 3] : vector<8x2x8x2x128xf32> to vector<8x8x128xf32>
    %50 = vector.shape_cast %49 : vector<8x8x128xf32> to vector<64x128xf32>
    %c0_48 = arith.constant 0 : index
    %c0_49 = arith.constant 0 : index
    %c0_50 = arith.constant 0 : index
    %c0_51 = arith.constant 0 : index
    %51 = vector.load %arg6[%c0_48, %c0_49, %c0_50, %c0_51] : memref<1x8x8x3xf32, #tpu.memory_space<vmem>>, vector<1x8x8x3xf32>
    %52 = vector.shape_cast %51 : vector<1x8x8x3xf32> to vector<8x8x3xf32>
    %53 = vector.shape_cast %52 : vector<8x8x3xf32> to vector<64x3xf32>
    %c0_52 = arith.constant 0 : index
    %c0_53 = arith.constant 0 : index
    %54 = vector.load %arg9[%c0_52, %c0_53] : memref<3x128xf32, #tpu.memory_space<vmem>>, vector<3x128xf32>
    %cst_54 = arith.constant dense<0.000000e+00> : vector<64x128xf32>
    %55 = tpu.matmul %53, %54, %cst_54 {dimension_numbers = #tpu.dot_dimension_numbers<[1], [0], [0], [1], [0, 0, 1, 1], [], []>} : vector<64x3xf32>, vector<3x128xf32>, vector<64x128xf32> -> vector<64x128xf32>
    %c0_55 = arith.constant 0 : index
    %c0_56 = arith.constant 0 : index
    %56 = vector.load %arg8[%c0_55, %c0_56] : memref<1x128xf32, #tpu.memory_space<vmem>>, vector<1x128xf32>
    %57 = vector.broadcast %56 : vector<1x128xf32> to vector<64x128xf32>
    %58 = arith.addf %50, %57 : vector<64x128xf32>
    %59 = arith.addf %58, %55 : vector<64x128xf32>
    %c0_57 = arith.constant 0 : index
    %c0_58 = arith.constant 0 : index
    %60 = vector.load %arg10[%c0_57, %c0_58] : memref<1x128xf32, #tpu.memory_space<vmem>>, vector<1x128xf32>
    %61 = vector.broadcast %60 : vector<1x128xf32> to vector<64x128xf32>
    %62 = arith.addf %59, %61 : vector<64x128xf32>
    %63 = vector.shape_cast %62 : vector<64x128xf32> to vector<8x8x128xf32>
    %c0_59 = arith.constant 0 : index
    %c0_60 = arith.constant 0 : index
    %c0_61 = arith.constant 0 : index
    %c0_62 = arith.constant 0 : index
    %64 = vector.load %arg11[%c0_59, %c0_60, %c0_61, %c0_62] : memref<1x8x8x128xf32, #tpu.memory_space<vmem>>, vector<1x8x8x128xf32>
    %65 = vector.shape_cast %64 : vector<1x8x8x128xf32> to vector<8x8x128xf32>
    %66 = vector.shape_cast %63 : vector<8x8x128xf32> to vector<1x8x8x128xf32>
    tpu.vector_store %arg11[%c0_59, %c0_60, %c0_61, %c0_62], %66 {strides = array<i32>} : memref<1x8x8x128xf32, #tpu.memory_space<vmem>>, vector<1x8x8x128xf32>,
    return
  }
  func.func @transform_0(%arg0: i32, %arg1: i32, %arg2: i32) -> (i32, i32, i32, i32) {
    %c0_i32 = arith.constant 0 : i32
    %c0_i32_0 = arith.constant 0 : i32
    %c0_i32_1 = arith.constant 0 : i32
    return %arg0, %arg2, %c0_i32, %c0_i32_0 : i32, i32, i32, i32
  }
  func.func @transform_1(%arg0: i32, %arg1: i32, %arg2: i32) -> (i32, i32, i32, i32) {
    %c16_i32 = arith.constant 16 : i32
    %0 = arith.muli %arg2, %c16_i32 : i32
    %c1_i32 = arith.constant 1 : i32
    %1 = arith.subi %0, %c1_i32 : i32
    %c0_i32 = arith.constant 0 : i32
    %2 = arith.maxsi %1, %c0_i32 : i32
    %c0_i32_0 = arith.constant 0 : i32
    %c0_i32_1 = arith.constant 0 : i32
    %c0_i32_2 = arith.constant 0 : i32
    return %arg0, %2, %c0_i32_0, %c0_i32_1 : i32, i32, i32, i32
  }
  func.func @transform_2(%arg0: i32, %arg1: i32, %arg2: i32) -> (i32, i32, i32, i32) {
    %c1_i32 = arith.constant 1 : i32
    %0 = arith.addi %arg2, %c1_i32 : i32
    %c16_i32 = arith.constant 16 : i32
    %1 = arith.muli %0, %c16_i32 : i32
    %c15_i32 = arith.constant 15 : i32
    %2 = arith.minsi %1, %c15_i32 : i32
    %c0_i32 = arith.constant 0 : i32
    %c0_i32_0 = arith.constant 0 : i32
    %c0_i32_1 = arith.constant 0 : i32
    return %arg0, %2, %c0_i32, %c0_i32_0 : i32, i32, i32, i32
  }
  func.func @transform_3(%arg0: i32, %arg1: i32, %arg2: i32) -> (i32, i32, i32, i32) {
    %c0_i32 = arith.constant 0 : i32
    %c0_i32_0 = arith.constant 0 : i32
    %c0_i32_1 = arith.constant 0 : i32
    return %arg0, %arg2, %c0_i32, %c0_i32_0 : i32, i32, i32, i32
  }
  func.func @transform_4(%arg0: i32, %arg1: i32, %arg2: i32) -> (i32, i32, i32) {
    %c0_i32 = arith.constant 0 : i32
    %c0_i32_0 = arith.constant 0 : i32
    %c0_i32_1 = arith.constant 0 : i32
    return %c0_i32, %c0_i32_0, %arg1 : i32, i32, i32
  }
  func.func @transform_5(%arg0: i32, %arg1: i32, %arg2: i32) -> (i32, i32) {
    %c0_i32 = arith.constant 0 : i32
    %c0_i32_0 = arith.constant 0 : i32
    return %c0_i32, %arg1 : i32, i32
  }
  func.func @transform_6(%arg0: i32, %arg1: i32, %arg2: i32) -> (i32, i32) {
    %c0_i32 = arith.constant 0 : i32
    %c0_i32_0 = arith.constant 0 : i32
    return %c0_i32, %arg1 : i32, i32
  }
  func.func @transform_7(%arg0: i32, %arg1: i32, %arg2: i32) -> (i32, i32) {
    %c0_i32 = arith.constant 0 : i32
    %c0_i32_0 = arith.constant 0 : i32
    return %c0_i32, %arg1 : i32, i32
  }
  func.func @transform_8(%arg0: i32, %arg1: i32, %arg2: i32) -> (i32, i32, i32, i32) {
    %c0_i32 = arith.constant 0 : i32
    %c0_i32_0 = arith.constant 0 : i32
    return %arg0, %arg2, %c0_i32, %arg1 : i32, i32, i32, i32
  }
}

module attributes {stable_mosaic.version = 11 : i64} {
  func.func @kernel(%arg0: i32, %arg1: i32, %arg2: i32, %arg3: memref<1x16x16x3xf32, #tpu.memory_space<vmem>>, %arg4: memref<1x1x16x3xf32, #tpu.memory_space<vmem>>, %arg5: memref<1x1x16x3xf32, #tpu.memory_space<vmem>>, %arg6: memref<3x9x128xf32, #tpu.memory_space<vmem>>, %arg7: memref<1x128xf32, #tpu.memory_space<vmem>>, %arg8: memref<1x16x16x128xbf16, #tpu.memory_space<vmem>>, %arg9: memref<18x18x3xf32, #tpu.memory_space<vmem>>) attributes {dimension_semantics = [#tpu.dimension_semantics<parallel>, #tpu.dimension_semantics<parallel>, #tpu.dimension_semantics<parallel>], iteration_bounds = array<i64: 2, 1, 1>, scalar_prefetch = 0 : i64, scratch_operands = 1 : i64, tpu.core_type = #tpu.core_type<tc>, window_params = [{transform_indices = @transform_0, window_bounds = array<i64: 1, 16, 16, 3>}, {transform_indices = @transform_1, window_bounds = array<i64: 1, 1, 16, 3>}, {transform_indices = @transform_2, window_bounds = array<i64: 1, 1, 16, 3>}, {transform_indices = @transform_3, window_bounds = array<i64: 3, 9, 128>}, {transform_indices = @transform_4, window_bounds = array<i64: 1, 128>}, {transform_indices = @transform_5, window_bounds = array<i64: 1, 16, 16, 128>}]} {
    %c0 = arith.constant 0 : index
    %c0_0 = arith.constant 0 : index
    %c0_1 = arith.constant 0 : index
    %c0_2 = arith.constant 0 : index
    %0 = vector.load %arg4[%c0, %c0_0, %c0_1, %c0_2] : memref<1x1x16x3xf32, #tpu.memory_space<vmem>>, vector<1x1x16x3xf32>
    %1 = vector.shape_cast %0 : vector<1x1x16x3xf32> to vector<1x16x3xf32>
    %c0_3 = arith.constant 0 : index
    %c0_4 = arith.constant 0 : index
    %c0_5 = arith.constant 0 : index
    %c0_6 = arith.constant 0 : index
    %2 = vector.load %arg5[%c0_3, %c0_4, %c0_5, %c0_6] : memref<1x1x16x3xf32, #tpu.memory_space<vmem>>, vector<1x1x16x3xf32>
    %3 = vector.shape_cast %2 : vector<1x1x16x3xf32> to vector<1x16x3xf32>
    %c0_i32 = arith.constant 0 : i32
    %4 = arith.cmpi eq, %arg2, %c0_i32 : i32
    %cst = arith.constant 0.000000e+00 : f32
    %5 = vector.broadcast %cst : f32 to vector<1x16x3xf32>
    %6 = arith.select %4, %5, %1 : vector<1x16x3xf32>
    %c0_i32_7 = arith.constant 0 : i32
    %7 = arith.cmpi eq, %arg2, %c0_i32_7 : i32
    %cst_8 = arith.constant 0.000000e+00 : f32
    %8 = vector.broadcast %cst_8 : f32 to vector<1x16x3xf32>
    %9 = arith.select %7, %8, %3 : vector<1x16x3xf32>
    %c0_9 = arith.constant 0 : index
    %c0_10 = arith.constant 0 : index
    %c0_11 = arith.constant 0 : index
    %c0_12 = arith.constant 0 : index
    %10 = vector.load %arg3[%c0_9, %c0_10, %c0_11, %c0_12] : memref<1x16x16x3xf32, #tpu.memory_space<vmem>>, vector<1x16x16x3xf32>
    %11 = vector.shape_cast %10 : vector<1x16x16x3xf32> to vector<16x16x3xf32>
    %cst_13 = arith.constant 0.000000e+00 : f32
    %12 = vector.broadcast %cst_13 : f32 to vector<18x1x3xf32>
    %c0_14 = arith.constant 0 : index
    %c0_15 = arith.constant 0 : index
    %c0_16 = arith.constant 0 : index
    %13 = vector.load %arg9[%c0_14, %c0_15, %c0_16] : memref<18x18x3xf32, #tpu.memory_space<vmem>>, vector<18x1x3xf32>
    tpu.vector_store %arg9[%c0_14, %c0_15, %c0_16], %12 {strides = array<i32>} : memref<18x18x3xf32, #tpu.memory_space<vmem>>, vector<18x1x3xf32>,
    %c0_17 = arith.constant 0 : index
    %c17 = arith.constant 17 : index
    %c0_18 = arith.constant 0 : index
    %14 = vector.load %arg9[%c0_17, %c17, %c0_18] : memref<18x18x3xf32, #tpu.memory_space<vmem>>, vector<18x1x3xf32>
    tpu.vector_store %arg9[%c0_17, %c17, %c0_18], %12 {strides = array<i32>} : memref<18x18x3xf32, #tpu.memory_space<vmem>>, vector<18x1x3xf32>,
    %c0_19 = arith.constant 0 : index
    %c1 = arith.constant 1 : index
    %c0_20 = arith.constant 0 : index
    %15 = vector.load %arg9[%c0_19, %c1, %c0_20] : memref<18x18x3xf32, #tpu.memory_space<vmem>>, vector<1x16x3xf32>
    tpu.vector_store %arg9[%c0_19, %c1, %c0_20], %6 {strides = array<i32>} : memref<18x18x3xf32, #tpu.memory_space<vmem>>, vector<1x16x3xf32>,
    %c1_21 = arith.constant 1 : index
    %c1_22 = arith.constant 1 : index
    %c0_23 = arith.constant 0 : index
    %16 = vector.load %arg9[%c1_21, %c1_22, %c0_23] : memref<18x18x3xf32, #tpu.memory_space<vmem>>, vector<16x16x3xf32>
    tpu.vector_store %arg9[%c1_21, %c1_22, %c0_23], %11 {strides = array<i32>} : memref<18x18x3xf32, #tpu.memory_space<vmem>>, vector<16x16x3xf32>,
    %c17_24 = arith.constant 17 : index
    %c1_25 = arith.constant 1 : index
    %c0_26 = arith.constant 0 : index
    %17 = vector.load %arg9[%c17_24, %c1_25, %c0_26] : memref<18x18x3xf32, #tpu.memory_space<vmem>>, vector<1x16x3xf32>
    tpu.vector_store %arg9[%c17_24, %c1_25, %c0_26], %9 {strides = array<i32>} : memref<18x18x3xf32, #tpu.memory_space<vmem>>, vector<1x16x3xf32>,
    %c0_27 = arith.constant 0 : index
    %c0_28 = arith.constant 0 : index
    %c0_29 = arith.constant 0 : index
    %18 = vector.load %arg9[%c0_27, %c0_28, %c0_29] : memref<18x18x3xf32, #tpu.memory_space<vmem>>, vector<16x18x3xf32>
    %c0_30 = arith.constant 0 : index
    %c0_31 = arith.constant 0 : index
    %c0_32 = arith.constant 0 : index
    %19 = vector.load %arg6[%c0_30, %c0_31, %c0_32] : memref<3x9x128xf32, #tpu.memory_space<vmem>>, vector<1x9x128xf32>
    %20 = vector.shape_cast %19 : vector<1x9x128xf32> to vector<9x128xf32>
    %21 = vector.extract_strided_slice %18 {offsets = [0, 0, 0], sizes = [16, 16, 3], strides = [1, 1, 1]} : vector<16x18x3xf32> to vector<16x16x3xf32>
    %22 = vector.shape_cast %21 : vector<16x16x3xf32> to vector<256x3xf32>
    %23 = vector.extract_strided_slice %20 {offsets = [0, 0], sizes = [3, 128], strides = [1, 1]} : vector<9x128xf32> to vector<3x128xf32>
    %cst_33 = arith.constant dense<0.000000e+00> : vector<256x128xf32>
    %24 = tpu.matmul %22, %23, %cst_33 {dimension_numbers = #tpu.dot_dimension_numbers<[1], [0], [0], [1], [0, 0, 1, 1], [], []>} : vector<256x3xf32>, vector<3x128xf32>, vector<256x128xf32> -> vector<256x128xf32>
    %25 = vector.extract_strided_slice %18 {offsets = [0, 1, 0], sizes = [16, 16, 3], strides = [1, 1, 1]} : vector<16x18x3xf32> to vector<16x16x3xf32>
    %26 = vector.shape_cast %25 : vector<16x16x3xf32> to vector<256x3xf32>
    %27 = vector.extract_strided_slice %20 {offsets = [3, 0], sizes = [3, 128], strides = [1, 1]} : vector<9x128xf32> to vector<3x128xf32>
    %cst_34 = arith.constant dense<0.000000e+00> : vector<256x128xf32>
    %28 = tpu.matmul %26, %27, %cst_34 {dimension_numbers = #tpu.dot_dimension_numbers<[1], [0], [0], [1], [0, 0, 1, 1], [], []>} : vector<256x3xf32>, vector<3x128xf32>, vector<256x128xf32> -> vector<256x128xf32>
    %29 = arith.addf %24, %28 : vector<256x128xf32>
    %30 = vector.extract_strided_slice %18 {offsets = [0, 2, 0], sizes = [16, 16, 3], strides = [1, 1, 1]} : vector<16x18x3xf32> to vector<16x16x3xf32>
    %31 = vector.shape_cast %30 : vector<16x16x3xf32> to vector<256x3xf32>
    %32 = vector.extract_strided_slice %20 {offsets = [6, 0], sizes = [3, 128], strides = [1, 1]} : vector<9x128xf32> to vector<3x128xf32>
    %cst_35 = arith.constant dense<0.000000e+00> : vector<256x128xf32>
    %33 = tpu.matmul %31, %32, %cst_35 {dimension_numbers = #tpu.dot_dimension_numbers<[1], [0], [0], [1], [0, 0, 1, 1], [], []>} : vector<256x3xf32>, vector<3x128xf32>, vector<256x128xf32> -> vector<256x128xf32>
    %34 = arith.addf %29, %33 : vector<256x128xf32>
    %c1_36 = arith.constant 1 : index
    %c0_37 = arith.constant 0 : index
    %c0_38 = arith.constant 0 : index
    %35 = vector.load %arg9[%c1_36, %c0_37, %c0_38] : memref<18x18x3xf32, #tpu.memory_space<vmem>>, vector<16x18x3xf32>
    %c1_39 = arith.constant 1 : index
    %c0_40 = arith.constant 0 : index
    %c0_41 = arith.constant 0 : index
    %36 = vector.load %arg6[%c1_39, %c0_40, %c0_41] : memref<3x9x128xf32, #tpu.memory_space<vmem>>, vector<1x9x128xf32>
    %37 = vector.shape_cast %36 : vector<1x9x128xf32> to vector<9x128xf32>
    %38 = vector.extract_strided_slice %35 {offsets = [0, 0, 0], sizes = [16, 16, 3], strides = [1, 1, 1]} : vector<16x18x3xf32> to vector<16x16x3xf32>
    %39 = vector.shape_cast %38 : vector<16x16x3xf32> to vector<256x3xf32>
    %40 = vector.extract_strided_slice %37 {offsets = [0, 0], sizes = [3, 128], strides = [1, 1]} : vector<9x128xf32> to vector<3x128xf32>
    %cst_42 = arith.constant dense<0.000000e+00> : vector<256x128xf32>
    %41 = tpu.matmul %39, %40, %cst_42 {dimension_numbers = #tpu.dot_dimension_numbers<[1], [0], [0], [1], [0, 0, 1, 1], [], []>} : vector<256x3xf32>, vector<3x128xf32>, vector<256x128xf32> -> vector<256x128xf32>
    %42 = arith.addf %34, %41 : vector<256x128xf32>
    %43 = vector.extract_strided_slice %35 {offsets = [0, 1, 0], sizes = [16, 16, 3], strides = [1, 1, 1]} : vector<16x18x3xf32> to vector<16x16x3xf32>
    %44 = vector.shape_cast %43 : vector<16x16x3xf32> to vector<256x3xf32>
    %45 = vector.extract_strided_slice %37 {offsets = [3, 0], sizes = [3, 128], strides = [1, 1]} : vector<9x128xf32> to vector<3x128xf32>
    %cst_43 = arith.constant dense<0.000000e+00> : vector<256x128xf32>
    %46 = tpu.matmul %44, %45, %cst_43 {dimension_numbers = #tpu.dot_dimension_numbers<[1], [0], [0], [1], [0, 0, 1, 1], [], []>} : vector<256x3xf32>, vector<3x128xf32>, vector<256x128xf32> -> vector<256x128xf32>
    %47 = arith.addf %42, %46 : vector<256x128xf32>
    %48 = vector.extract_strided_slice %35 {offsets = [0, 2, 0], sizes = [16, 16, 3], strides = [1, 1, 1]} : vector<16x18x3xf32> to vector<16x16x3xf32>
    %49 = vector.shape_cast %48 : vector<16x16x3xf32> to vector<256x3xf32>
    %50 = vector.extract_strided_slice %37 {offsets = [6, 0], sizes = [3, 128], strides = [1, 1]} : vector<9x128xf32> to vector<3x128xf32>
    %cst_44 = arith.constant dense<0.000000e+00> : vector<256x128xf32>
    %51 = tpu.matmul %49, %50, %cst_44 {dimension_numbers = #tpu.dot_dimension_numbers<[1], [0], [0], [1], [0, 0, 1, 1], [], []>} : vector<256x3xf32>, vector<3x128xf32>, vector<256x128xf32> -> vector<256x128xf32>
    %52 = arith.addf %47, %51 : vector<256x128xf32>
    %c2 = arith.constant 2 : index
    %c0_45 = arith.constant 0 : index
    %c0_46 = arith.constant 0 : index
    %53 = vector.load %arg9[%c2, %c0_45, %c0_46] : memref<18x18x3xf32, #tpu.memory_space<vmem>>, vector<16x18x3xf32>
    %c2_47 = arith.constant 2 : index
    %c0_48 = arith.constant 0 : index
    %c0_49 = arith.constant 0 : index
    %54 = vector.load %arg6[%c2_47, %c0_48, %c0_49] : memref<3x9x128xf32, #tpu.memory_space<vmem>>, vector<1x9x128xf32>
    %55 = vector.shape_cast %54 : vector<1x9x128xf32> to vector<9x128xf32>
    %56 = vector.extract_strided_slice %53 {offsets = [0, 0, 0], sizes = [16, 16, 3], strides = [1, 1, 1]} : vector<16x18x3xf32> to vector<16x16x3xf32>
    %57 = vector.shape_cast %56 : vector<16x16x3xf32> to vector<256x3xf32>
    %58 = vector.extract_strided_slice %55 {offsets = [0, 0], sizes = [3, 128], strides = [1, 1]} : vector<9x128xf32> to vector<3x128xf32>
    %cst_50 = arith.constant dense<0.000000e+00> : vector<256x128xf32>
    %59 = tpu.matmul %57, %58, %cst_50 {dimension_numbers = #tpu.dot_dimension_numbers<[1], [0], [0], [1], [0, 0, 1, 1], [], []>} : vector<256x3xf32>, vector<3x128xf32>, vector<256x128xf32> -> vector<256x128xf32>
    %60 = arith.addf %52, %59 : vector<256x128xf32>
    %61 = vector.extract_strided_slice %53 {offsets = [0, 1, 0], sizes = [16, 16, 3], strides = [1, 1, 1]} : vector<16x18x3xf32> to vector<16x16x3xf32>
    %62 = vector.shape_cast %61 : vector<16x16x3xf32> to vector<256x3xf32>
    %63 = vector.extract_strided_slice %55 {offsets = [3, 0], sizes = [3, 128], strides = [1, 1]} : vector<9x128xf32> to vector<3x128xf32>
    %cst_51 = arith.constant dense<0.000000e+00> : vector<256x128xf32>
    %64 = tpu.matmul %62, %63, %cst_51 {dimension_numbers = #tpu.dot_dimension_numbers<[1], [0], [0], [1], [0, 0, 1, 1], [], []>} : vector<256x3xf32>, vector<3x128xf32>, vector<256x128xf32> -> vector<256x128xf32>
    %65 = arith.addf %60, %64 : vector<256x128xf32>
    %66 = vector.extract_strided_slice %53 {offsets = [0, 2, 0], sizes = [16, 16, 3], strides = [1, 1, 1]} : vector<16x18x3xf32> to vector<16x16x3xf32>
    %67 = vector.shape_cast %66 : vector<16x16x3xf32> to vector<256x3xf32>
    %68 = vector.extract_strided_slice %55 {offsets = [6, 0], sizes = [3, 128], strides = [1, 1]} : vector<9x128xf32> to vector<3x128xf32>
    %cst_52 = arith.constant dense<0.000000e+00> : vector<256x128xf32>
    %69 = tpu.matmul %67, %68, %cst_52 {dimension_numbers = #tpu.dot_dimension_numbers<[1], [0], [0], [1], [0, 0, 1, 1], [], []>} : vector<256x3xf32>, vector<3x128xf32>, vector<256x128xf32> -> vector<256x128xf32>
    %70 = arith.addf %65, %69 : vector<256x128xf32>
    %c0_53 = arith.constant 0 : index
    %c0_54 = arith.constant 0 : index
    %71 = vector.load %arg7[%c0_53, %c0_54] : memref<1x128xf32, #tpu.memory_space<vmem>>, vector<1x128xf32>
    %72 = vector.broadcast %71 : vector<1x128xf32> to vector<256x128xf32>
    %73 = arith.addf %70, %72 : vector<256x128xf32>
    %cst_55 = arith.constant 0.000000e+00 : f32
    %74 = vector.broadcast %cst_55 : f32 to vector<256x128xf32>
    %75 = arith.maximumf %73, %74 : vector<256x128xf32>
    %76 = vector.shape_cast %75 : vector<256x128xf32> to vector<16x16x128xf32>
    %77 = arith.truncf %76 : vector<16x16x128xf32> to vector<16x16x128xbf16>
    %c0_56 = arith.constant 0 : index
    %c0_57 = arith.constant 0 : index
    %c0_58 = arith.constant 0 : index
    %c0_59 = arith.constant 0 : index
    %78 = vector.load %arg8[%c0_56, %c0_57, %c0_58, %c0_59] : memref<1x16x16x128xbf16, #tpu.memory_space<vmem>>, vector<1x16x16x128xbf16>
    %79 = vector.shape_cast %78 : vector<1x16x16x128xbf16> to vector<16x16x128xbf16>
    %80 = vector.shape_cast %77 : vector<16x16x128xbf16> to vector<1x16x16x128xbf16>
    tpu.vector_store %arg8[%c0_56, %c0_57, %c0_58, %c0_59], %80 {strides = array<i32>} : memref<1x16x16x128xbf16, #tpu.memory_space<vmem>>, vector<1x16x16x128xbf16>,
    return
  }
  func.func @transform_0(%arg0: i32, %arg1: i32, %arg2: i32) -> (i32, i32, i32, i32) {
    %c0_i32 = arith.constant 0 : i32
    %c0_i32_0 = arith.constant 0 : i32
    %c0_i32_1 = arith.constant 0 : i32
    return %arg0, %arg2, %c0_i32, %c0_i32_0 : i32, i32, i32, i32
  }
  func.func @transform_1(%arg0: i32, %arg1: i32, %arg2: i32) -> (i32, i32, i32, i32) {
    %c16_i32 = arith.constant 16 : i32
    %0 = arith.muli %arg2, %c16_i32 : i32
    %c1_i32 = arith.constant 1 : i32
    %1 = arith.subi %0, %c1_i32 : i32
    %c0_i32 = arith.constant 0 : i32
    %2 = arith.maxsi %1, %c0_i32 : i32
    %c0_i32_0 = arith.constant 0 : i32
    %c0_i32_1 = arith.constant 0 : i32
    %c0_i32_2 = arith.constant 0 : i32
    return %arg0, %2, %c0_i32_0, %c0_i32_1 : i32, i32, i32, i32
  }
  func.func @transform_2(%arg0: i32, %arg1: i32, %arg2: i32) -> (i32, i32, i32, i32) {
    %c1_i32 = arith.constant 1 : i32
    %0 = arith.addi %arg2, %c1_i32 : i32
    %c16_i32 = arith.constant 16 : i32
    %1 = arith.muli %0, %c16_i32 : i32
    %c15_i32 = arith.constant 15 : i32
    %2 = arith.minsi %1, %c15_i32 : i32
    %c0_i32 = arith.constant 0 : i32
    %c0_i32_0 = arith.constant 0 : i32
    %c0_i32_1 = arith.constant 0 : i32
    return %arg0, %2, %c0_i32, %c0_i32_0 : i32, i32, i32, i32
  }
  func.func @transform_3(%arg0: i32, %arg1: i32, %arg2: i32) -> (i32, i32, i32) {
    %c0_i32 = arith.constant 0 : i32
    %c0_i32_0 = arith.constant 0 : i32
    %c0_i32_1 = arith.constant 0 : i32
    return %c0_i32, %c0_i32_0, %arg1 : i32, i32, i32
  }
  func.func @transform_4(%arg0: i32, %arg1: i32, %arg2: i32) -> (i32, i32) {
    %c0_i32 = arith.constant 0 : i32
    %c0_i32_0 = arith.constant 0 : i32
    return %c0_i32, %arg1 : i32, i32
  }
  func.func @transform_5(%arg0: i32, %arg1: i32, %arg2: i32) -> (i32, i32, i32, i32) {
    %c0_i32 = arith.constant 0 : i32
    %c0_i32_0 = arith.constant 0 : i32
    return %arg0, %arg2, %c0_i32, %arg1 : i32, i32, i32, i32
  }
}

</mosaic_0001>

<bundles_post_ra>
// kernel: optimized_block_forward.2
= control target key start
LH: loop header
LB: loop body
LE: loop exit
PB: predicated region body
PF: predicated region fallthrough
CT: control target
= control target key end

     0   :  { %s6196_s18 = smov 0   ;;  %s6198_s19 = smov 0   ;;  %s7678_s0 = inlined_call_operand.vmem [shape: f32[2,16,16,3], index: 0, kind: input, shape index: {}, may-alias: {0,1,2}]   ;;  %s7679_s1 = inlined_call_operand.vmem [shape: f32[2,16,16,3], index: 1, kind: input, shape index: {}, may-alias: {0,1,2}]   ;;  %s7680_s2 = inlined_call_operand.vmem [shape: f32[2,16,16,3], index: 2, kind: input, shape index: {}, may-alias: {0,1,2}]   ;;  %s7681_s3 = inlined_call_operand.vmem [shape: f32[3,9,128], index: 3, kind: input, shape index: {}]   ;;  %s7682_s4 = inlined_call_operand.vmem [shape: f32[1,128], index: 4, kind: input, shape index: {}]   ;;  %s7683_s5 = inlined_call_operand.vmem [shape: bf16[2,16,16,128], index: 5, kind: output, shape index: {}]  }
   0x1   :  { %s6200_s20 = smov 0  }
   0x2 LB: > { %s34_s1 = sadd.s32 1, %s6159_s19  ;;  %p4616_p0 = scmp.ge.s32.totalorder %s6163_s20, 1  ;;  %s6163_s20 = sphi %s6200_s20, %s15_s20   ;;  %s6159_s19 = sphi %s6198_s19, %s7931_s19   ;;  %s6155_s18 = sphi %s6196_s18, %s7930_s18  }
   0x3   : > { %p36_p1 = scmp.ge.s32.totalorder %s34_s1, 2  ;;  %p299_p2 = scmp.lt.s32.totalorder %s6163_s20, 3 }
   0x5   : > { %s7933_s1 = smov (%p36_p1, %s34_s1), 0  ;;  %p300_p3 = pnand %p4616_p0, %p299_p2 }
   0x7   : > { %303 = sbr.rel (%p300_p3) target bundleno = 554 (0x22a), region = 40 }
   0xe   : > { %v6219_v0 = vld [vmem:[%s7681_s3] sm:$0xff]  ;;  %vm804_vm0 = vcmask 1042432   ;;  %vm483_vm1 = vcmask 16384   ;;  %vm520_vm2 = vcmask 23552   ;;  %v6224_v1 = vld [vmem:[%s7681_s3 + $0x10] sm:$0xff]  ;;  %v6165_v3 = vmov 0.0  }
   0xf   : > { %v739_v2 = vrot.slane %v6219_v0, 3  ;;  %484 = vst.msk [vmem:[#allocation2] sm:$0x1] %vm483_vm1, %v6165_v3  ;;  %485 = vst.msk [vmem:[#allocation2 + $0x18] sm:$0x1] %vm483_vm1, %v6165_v3  ;;  %v6268_v4 = vrot.slane %v6224_v1, 3 }
  0x10   : > { %521 = vst.msk [vmem:[#allocation2 + $0x1] sm:$0xff] %vm520_vm2, %v6165_v3  ;;  %522 = vst.msk [vmem:[#allocation2 + $0x9] sm:$0xff] %vm520_vm2, %v6165_v3  ;;  %p374_p4 = scmp.lt.s32.totalorder %s6155_s18, 1  ;;  %vm1405_vm3 = vcmask 1041408   ;;  %v4725_v5 = vld [vmem:[%s7681_s3 + $0x18] sm:$0x1] }
  0x11   : > { %486 = vst.msk [vmem:[#allocation2 + $0x30] sm:$0x1] %vm483_vm1, %v6165_v3  ;;  %487 = vst.msk [vmem:[#allocation2 + $0x48] sm:$0x1] %vm483_vm1, %v6165_v3  ;;  %v2640_v6 = vrot.slane %v6224_v1, 6  ;;  %5390 = vmatprep.subr.msk.mxu1 %vm804_vm0, %v739_v2  ;;  %5590 = vmatprep.subr.msk.mxu0 %vm804_vm0, %v6268_v4  ;;  %v2641_v7 = vrot.slane %v4725_v5, 6 }
  0x12   : > { %488 = vst.msk [vmem:[#allocation2 + $0x60] sm:$0x1] %vm483_vm1, %v6165_v3  ;;  %489 = vst.msk [vmem:[#allocation2 + $0x78] sm:$0x1] %vm483_vm1, %v6165_v3  ;;  %s7935_s18 = smov (!%p374_p4, %s6155_s18), 1  ;;  %5391 = vmatpush3.msk.msra.mxu1 %vm804_vm0, %v739_v2  ;;  %5591 = vmatpush3.msk.msra.mxu0 %vm804_vm0, %v6268_v4  ;;  %vm657_vm4 = vcmask 1046528  }
  0x13   : > { %490 = vst.msk [vmem:[#allocation2 + $0x90] sm:$0x1] %vm483_vm1, %v6165_v3  ;;  %491 = vst.msk [vmem:[#allocation2 + $0xa8] sm:$0x1] %vm483_vm1, %v6165_v3  ;;  %s4961_s26 = sshll.u32 %s7935_s18, 8  ;;  %5440 = vmatprep.subr.msk.mxu1 %vm804_vm0, %v6219_v0  ;;  %v6288_v8 = vsel %vm1405_vm3, %v2640_v6, %v2641_v7  ;;  %v1406_v16 = vrot.slane %v6219_v0, 6 }
  0x14   : > { %492 = vst.msk [vmem:[#allocation2 + $0xc0] sm:$0x1] %vm483_vm1, %v6165_v3  ;;  %493 = vst.msk [vmem:[#allocation2 + $0xd8] sm:$0x1] %vm483_vm1, %v6165_v3  ;;  %v608_v9 = vld [vmem:[%s7681_s3 + $0x8] sm:$0x1]  ;;  %s6296_s6 = scalar_lea.vmem %s7678_s0, %s4961_s26  ;;  %5640 = vmatprep.subr.msk.mxu0 %vm804_vm0, %v6288_v8 }
  0x15   : > { %494 = vst.msk [vmem:[#allocation2 + $0xf0] sm:$0x1] %vm483_vm1, %v6165_v3  ;;  %495 = vst.msk [vmem:[#allocation2 + $0x108] sm:$0x1] %vm483_vm1, %v6165_v3  ;;  %v451_v10 = vld [vmem:[%s6296_s6] sm:$0xff]  ;;  %v452_v11 = vld [vmem:[%s6296_s6 + $0x8] sm:$0xff] }
  0x16   : > { %496 = vst.msk [vmem:[#allocation2 + $0x120] sm:$0x1] %vm483_vm1, %v6165_v3  ;;  %497 = vst.msk [vmem:[#allocation2 + $0x138] sm:$0x1] %vm483_vm1, %v6165_v3  ;;  %v453_v12 = vld [vmem:[%s6296_s6 + $0x10] sm:$0xff]  ;;  %v1407_v17 = vrot.slane %v608_v9, 6 }
  0x17   : > { %498 = vst.msk [vmem:[#allocation2 + $0x150] sm:$0x1] %vm483_vm1, %v6165_v3  ;;  %499 = vst.msk [vmem:[#allocation2 + $0x168] sm:$0x1] %vm483_vm1, %v6165_v3  ;;  %v6303_v13 = vld [vmem:[#allocation2] sm:$0xff]  ;;  %v6305_v14 = vld [vmem:[#allocation2 + $0x8] sm:$0xff] }
  0x18   : > { %500 = vst.msk [vmem:[#allocation2 + $0x180] sm:$0x1] %vm483_vm1, %v6165_v3  ;;  %501 = vst.msk [vmem:[#allocation2 + $0x198] sm:$0x1] %vm483_vm1, %v6165_v3  ;;  %v658_v18 = vrot.slane %v6303_v13, 1  ;;  %v659_v19 = vrot.slane %v6305_v14, 1  ;;  %v6339_v34 = vsel %vm1405_vm3, %v1406_v16, %v1407_v17 }
  0x19   : > { %502 = vst.msk [vmem:[#allocation2 + $0x11] sm:$0x1] %vm483_vm1, %v6165_v3  ;;  %503 = vst.msk [vmem:[#allocation2 + $0x29] sm:$0x1] %vm483_vm1, %v6165_v3  ;;  %v454_v21 = vld [vmem:[%s6296_s6 + $0x18] sm:$0xff]  ;;  %v455_v22 = vld [vmem:[%s6296_s6 + $0x20] sm:$0xff] }
  0x1a   : > { %504 = vst.msk [vmem:[#allocation2 + $0x41] sm:$0x1] %vm483_vm1, %v6165_v3  ;;  %505 = vst.msk [vmem:[#allocation2 + $0x59] sm:$0x1] %vm483_vm1, %v6165_v3  ;;  %v456_v23 = vld [vmem:[%s6296_s6 + $0x28] sm:$0xff]  ;;  %v457_v24 = vld [vmem:[%s6296_s6 + $0x30] sm:$0xff]  ;;  %v660_v26 = vsel %vm657_vm4, %v658_v18, %v659_v19 }
  0x1b   : > { %506 = vst.msk [vmem:[#allocation2 + $0x71] sm:$0x1] %vm483_vm1, %v6165_v3  ;;  %507 = vst.msk [vmem:[#allocation2 + $0x89] sm:$0x1] %vm483_vm1, %v6165_v3  ;;  %v458_v25 = vld [vmem:[%s6296_s6 + $0x38] sm:$0xff]  ;;  %v459_v28 = vld [vmem:[%s6296_s6 + $0x40] sm:$0xff]  ;;  %5392 = vmatprep.mubr.msk.f32.mxu1 %vm520_vm2, %v660_v26 }
  0x1c   : > { %508 = vst.msk [vmem:[#allocation2 + $0xa1] sm:$0x1] %vm483_vm1, %v6165_v3  ;;  %509 = vst.msk [vmem:[#allocation2 + $0xb9] sm:$0x1] %vm483_vm1, %v6165_v3  ;;  %v460_v29 = vld [vmem:[%s6296_s6 + $0x48] sm:$0xff]  ;;  %v461_v30 = vld [vmem:[%s6296_s6 + $0x50] sm:$0xff] }
  0x1d   : > { %510 = vst.msk [vmem:[#allocation2 + $0xd1] sm:$0x1] %vm483_vm1, %v6165_v3  ;;  %511 = vst.msk [vmem:[#allocation2 + $0xe9] sm:$0x1] %vm483_vm1, %v6165_v3  ;;  %v462_v31 = vld [vmem:[%s6296_s6 + $0x58] sm:$0xff]  ;;  %v463_v32 = vld [vmem:[%s6296_s6 + $0x60] sm:$0xff] }
  0x1e   : > { %512 = vst.msk [vmem:[#allocation2 + $0x101] sm:$0x1] %vm483_vm1, %v6165_v3  ;;  %513 = vst.msk [vmem:[#allocation2 + $0x119] sm:$0x1] %vm483_vm1, %v6165_v3  ;;  %v464_v33 = vld [vmem:[%s6296_s6 + $0x68] sm:$0xff]  ;;  %v465_v35 = vld [vmem:[%s6296_s6 + $0x70] sm:$0xff] }
  0x1f   : > { %514 = vst.msk [vmem:[#allocation2 + $0x131] sm:$0x1] %vm483_vm1, %v6165_v3  ;;  %515 = vst.msk [vmem:[#allocation2 + $0x149] sm:$0x1] %vm483_vm1, %v6165_v3  ;;  %v466_v36 = vld [vmem:[%s6296_s6 + $0x78] sm:$0xff]  ;;  %v467_v37 = vld [vmem:[%s6296_s6 + $0x80] sm:$0xff] }
  0x20   : > { %516 = vst.msk [vmem:[#allocation2 + $0x161] sm:$0x1] %vm483_vm1, %v6165_v3  ;;  %517 = vst.msk [vmem:[#allocation2 + $0x179] sm:$0x1] %vm483_vm1, %v6165_v3  ;;  %v6307_v15 = vld [vmem:[#allocation2 + $0x10] sm:$0x3] }
  0x21   : > { %518 = vst.msk [vmem:[#allocation2 + $0x191] sm:$0x1] %vm483_vm1, %v6165_v3  ;;  %519 = vst.msk [vmem:[#allocation2 + $0x1a9] sm:$0x1] %vm483_vm1, %v6165_v3  ;;  %v661_v20 = vrot.slane %v6307_v15, 1  ;;  %v468_v38 = vld [vmem:[%s6296_s6 + $0x88] sm:$0xff] }
  0x22   : > { %557 = vst.msk [vmem:[#allocation2 + $0x199] sm:$0xff] %vm520_vm2, %v6165_v3  ;;  %558 = vst.msk [vmem:[#allocation2 + $0x1a1] sm:$0xff] %vm520_vm2, %v6165_v3  ;;  %v469_v39 = vld [vmem:[%s6296_s6 + $0x90] sm:$0xff]  ;;  %v470_v40 = vld [vmem:[%s6296_s6 + $0x98] sm:$0xff]  ;;  %vm1323_vm5 = vcmask 1045504   ;;  %s4965_s15 = sshll.u32 %s7935_s18, 7 }
  0x23   : > { %524 = vst.msk [vmem:[#allocation2 + $0x19] sm:$0xff] %vm520_vm2, %v451_v10  ;;  %525 = vst.msk [vmem:[#allocation2 + $0x21] sm:$0xff] %vm520_vm2, %v452_v11  ;;  %v662_v27 = vsel %vm657_vm4, %v659_v19, %v661_v20  ;;  %v6383_v53 = vld [vmem:[%s7681_s3 + $0x20] sm:$0xff]  ;;  %s7617_s2 = scalar_lea.vmem %s7683_s5, %s4965_s15 }
  0x24   : > { %526 = vst.msk [vmem:[#allocation2 + $0x31] sm:$0xff] %vm520_vm2, %v453_v12  ;;  %527 = vst.msk [vmem:[#allocation2 + $0x39] sm:$0xff] %vm520_vm2, %v454_v21  ;;  %5393 = vmatmul.mubr.msk.f32.vlgmr.msra.gmra.mrb[0].mxu1 %vm520_vm2, %v662_v27 }
  0x25   : > { %528 = vst.msk [vmem:[#allocation2 + $0x49] sm:$0xff] %vm520_vm2, %v455_v22  ;;  %529 = vst.msk [vmem:[#allocation2 + $0x51] sm:$0xff] %vm520_vm2, %v456_v23  ;;  %5441 = vmatpush3.msk.msra.mxu1 %vm804_vm0, %v6219_v0 }
  0x26   : > { %530 = vst.msk [vmem:[#allocation2 + $0x61] sm:$0xff] %vm520_vm2, %v457_v24  ;;  %531 = vst.msk [vmem:[#allocation2 + $0x69] sm:$0xff] %vm520_vm2, %v458_v25  ;;  %5490 = vmatprep.subr.msk.mxu1 %vm804_vm0, %v6339_v34 }
  0x27   : > { %532 = vst.msk [vmem:[#allocation2 + $0x79] sm:$0xff] %vm520_vm2, %v459_v28  ;;  %533 = vst.msk [vmem:[#allocation2 + $0x81] sm:$0xff] %vm520_vm2, %v460_v29 }
  0x28   : > { %534 = vst.msk [vmem:[#allocation2 + $0x91] sm:$0xff] %vm520_vm2, %v461_v30  ;;  %535 = vst.msk [vmem:[#allocation2 + $0x99] sm:$0xff] %vm520_vm2, %v462_v31 }
  0x29   : > { %536 = vst.msk [vmem:[#allocation2 + $0xa9] sm:$0xff] %vm520_vm2, %v463_v32  ;;  %537 = vst.msk [vmem:[#allocation2 + $0xb1] sm:$0xff] %vm520_vm2, %v464_v33 }
  0x2a   : > { %538 = vst.msk [vmem:[#allocation2 + $0xc1] sm:$0xff] %vm520_vm2, %v465_v35  ;;  %539 = vst.msk [vmem:[#allocation2 + $0xc9] sm:$0xff] %vm520_vm2, %v466_v36  ;;  %v6356_v41 = vld [vmem:[#allocation2 + $0x18] sm:$0xff]  ;;  %v6358_v42 = vld [vmem:[#allocation2 + $0x20] sm:$0xff] }
  0x2b   : > { %540 = vst.msk [vmem:[#allocation2 + $0xd9] sm:$0xff] %vm520_vm2, %v467_v37  ;;  %v6360_v43 = vld [vmem:[#allocation2 + $0x28] sm:$0x3]  ;;  %541 = vst.msk [vmem:[#allocation2 + $0xe1] sm:$0xff] %vm520_vm2, %v468_v38  ;;  %v663_v44 = vrot.slane %v6356_v41, 1  ;;  %v664_v45 = vrot.slane %v6358_v42, 1 }
  0x2c   : > { %542 = vst.msk [vmem:[#allocation2 + $0xf1] sm:$0xff] %vm520_vm2, %v469_v39  ;;  %543 = vst.msk [vmem:[#allocation2 + $0xf9] sm:$0xff] %vm520_vm2, %v470_v40  ;;  %v666_v46 = vrot.slane %v6360_v43, 1  ;;  %v6370_v47 = vld [vmem:[#allocation2 + $0x28] sm:$0x3]  ;;  %v6372_v48 = vld [vmem:[#allocation2 + $0x30] sm:$0xff] }
  0x2d   : > { %v2158_v49 = vrot.slane %v6370_v47, 1  ;;  %v6375_v50 = vld [vmem:[#allocation2 + $0x38] sm:$0xff]  ;;  %v668_v51 = vrot.slane %v6372_v48, 1  ;;  %v6378_v52 = vld [vmem:[#allocation2 + $0x40] sm:$0x3]  ;;  %v665_v54 = vsel %vm657_vm4, %v663_v44, %v664_v45  ;;  %v6393_v59 = vld [vmem:[#allocation2 + $0x48] sm:$0xff] }
  0x2e   : > { %v667_v55 = vsel %vm657_vm4, %v664_v45, %v666_v46  ;;  %v6388_v56 = vrot.slane %v6375_v50, 1  ;;  %v671_v57 = vrot.slane %v6378_v52, 1  ;;  %v6391_v58 = vld [vmem:[#allocation2 + $0x40] sm:$0x3]  ;;  %v6395_v60 = vld [vmem:[#allocation2 + $0x50] sm:$0xff]  ;;  %5395 = vmatprep.mubr.msk.f32.mxu1 %vm520_vm2, %v665_v54  ;;  %5592 = vmatprep.mubr.msk.f32.mxu0 %vm520_vm2, %v665_v54  ;;  %v673_v63 = vrot.slane %v6393_v59, 1 }
  0x2f   : > { %v2159_v61 = vsel %vm657_vm4, %v664_v45, %v2158_v49  ;;  %v2163_v62 = vrot.slane %v6391_v58, 1  ;;  %v6403_v0 = vrot.slane %v6395_v60, 1  ;;  %v6405_v2 = vld [vmem:[#allocation2 + $0x58] sm:$0x3]  ;;  %v6407_v3 = vld [vmem:[#allocation2 + $0x60] sm:$0xff]  ;;  %5396 = vmatmul.mubr.msk.f32.gmra.mrb[2].mxu1 %vm520_vm2, %v667_v55  ;;  %v6417_v7 = vld [vmem:[#allocation2 + $0x68] sm:$0xff] }
  0x30   : > { %7774 = vst [vmem:[#allocation3_spill] sm:$0xff] %v6388_v56  ;;  %7776 = vst [vmem:[#allocation5_spill] sm:$0xff] %v6405_v2  ;;  %5593 = vmatmul.mubr.msk.f32.vlgmr.msra.gmra.mrb[0].mxu0 %vm520_vm2, %v2159_v61  ;;  %v6413_v5 = vsel %vm657_vm4, %v668_v51, %v6388_v56  ;;  %v6415_v6 = vld [vmem:[#allocation2 + $0x58] sm:$0x3]  ;;  %v672_v9 = vsel %vm657_vm4, %v6388_v56, %v671_v57  ;;  %v676_v11 = vrot.slane %v6405_v2, 1  ;;  %v6437_v17 = vrot.slane %v6417_v7, 1 }
  0x31   : > { %7775 = vst [vmem:[#allocation4_spill] sm:$0xff] %v6403_v0  ;;  %7777 = vst [vmem:[#allocation6_spill] sm:$0xff] %v6413_v5  ;;  %5641 = vmatpush3.msk.msra.mxu0 %vm804_vm0, %v6288_v8  ;;  %5398 = vmatprep.mubr.msk.f32.mxu1 %vm520_vm2, %v6413_v5  ;;  %v2164_v10 = vsel %vm657_vm4, %v6388_v56, %v2163_v62  ;;  %v2168_v12 = vrot.slane %v6415_v6, 1  ;;  %v6433_v16 = vsel %vm657_vm4, %v673_v63, %v6403_v0  ;;  %v6439_v18 = vld [vmem:[#allocation2 + $0x70] sm:$0x3]  ;;  %v6445_v20 = vld [vmem:[#allocation2 + $0x78] sm:$0xff] }
  0x32   : > { %5595 = vmatprep.mubr.msk.f32.mxu0 %vm520_vm2, %v6413_v5  ;;  %7778 = vst [vmem:[#allocation7_spill] sm:$0xff] %v6433_v16  ;;  %v678_v8 = vrot.slane %v6407_v3, 1  ;;  %7779 = vst [vmem:[#allocation8_spill] sm:$0xff] %v6437_v17  ;;  %v6441_v19 = vld [vmem:[#allocation2 + $0x70] sm:$0x3]  ;;  %5690 = vmatprep.subr.msk.mxu0 %vm804_vm0, %v6383_v53  ;;  %v6447_v21 = vld [vmem:[#allocation2 + $0x80] sm:$0xff]  ;;  %v677_v22 = vsel %vm657_vm4, %v6403_v0, %v676_v11 }
  0x33   : > { %7780 = vst [vmem:[#allocation9_spill] sm:$0xff] %v6439_v18  ;;  %5399 = vmatmul.mubr.msk.f32.gmra.mrb[4].mxu1 %vm520_vm2, %v672_v9  ;;  %v2169_v23 = vsel %vm657_vm4, %v6403_v0, %v2168_v12  ;;  %v681_v24 = vrot.slane %v6439_v18, 1  ;;  %v2173_v25 = vrot.slane %v6441_v19, 1  ;;  %v6461_v26 = vld [vmem:[#allocation2 + $0x88] sm:$0x3]  ;;  %v683_v28 = vrot.slane %v6445_v20, 1 }
  0x34   : > { %5596 = vmatmul.mubr.msk.f32.gmra.mrb[2].mxu0 %vm520_vm2, %v2164_v10  ;;  %5401 = vmatprep.mubr.msk.f32.mxu1 %vm520_vm2, %v6433_v16  ;;  %7781 = vst [vmem:[#allocation10_spill] sm:$0xff] %v6461_v26  ;;  %v6465_v27 = vsel %vm657_vm4, %v678_v8, %v6437_v17  ;;  %v6469_v29 = vrot.slane %v6447_v21, 1  ;;  %v6471_v30 = vld [vmem:[#allocation2 + $0x88] sm:$0x3]  ;;  %v6473_v31 = vld [vmem:[#allocation2 + $0x90] sm:$0xff]  ;;  %v6475_v32 = vld [vmem:[#allocation2 + $0x98] sm:$0xff] }
  0x35   : > { %5598 = vmatprep.mubr.msk.f32.mxu0 %vm520_vm2, %v6433_v16  ;;  %7782 = vst [vmem:[#allocation11_spill] sm:$0xff] %v6465_v27  ;;  %v686_v33 = vrot.slane %v6461_v26, 1  ;;  %v682_v35 = vsel %vm657_vm4, %v6437_v17, %v681_v24  ;;  %v2174_v36 = vsel %vm657_vm4, %v6437_v17, %v2173_v25  ;;  %v2178_v37 = vrot.slane %v6471_v30, 1  ;;  %v6489_v38 = vld [vmem:[#allocation2 + $0xa0] sm:$0x3]  ;;  %v6502_v49 = vld [vmem:[#allocation2 + $0xa8] sm:$0xff] }
  0x36   : > { %7783 = vst [vmem:[#allocation12_spill] sm:$0xff] %v6469_v29  ;;  %7784 = vst [vmem:[#allocation13_spill] sm:$0xff] %v6489_v38  ;;  %v6491_v39 = vld [vmem:[#allocation2 + $0xa0] sm:$0x3]  ;;  %v6496_v44 = vsel %vm657_vm4, %v683_v28, %v6469_v29  ;;  %v688_v45 = vrot.slane %v6473_v31, 1  ;;  %v6500_v46 = vrot.slane %v6475_v32, 1 }
  0x37   : > { %5402 = vmatmul.mubr.msk.f32.gmra.mrb[6].mxu1 %vm520_vm2, %v677_v22  ;;  %v471_v40 = vld [vmem:[%s6296_s6 + $0xa0] sm:$0xff]  ;;  %7785 = vst [vmem:[#allocation14_spill] sm:$0xff] %v6496_v44  ;;  %v6504_v51 = vld [vmem:[#allocation2 + $0xb0] sm:$0xff]  ;;  %v472_v54 = vld [vmem:[%s6296_s6 + $0xa8] sm:$0xff]  ;;  %v691_v63 = vrot.slane %v6489_v38, 1  ;;  %v687_v12 = vsel %vm657_vm4, %v6469_v29, %v686_v33  ;;  %v2179_v8 = vsel %vm657_vm4, %v6469_v29, %v2178_v37  ;;  %v2183_v22 = vrot.slane %v6491_v39, 1 }
  0x38   : > { %5599 = vmatmul.mubr.msk.f32.gmra.mrb[4].mxu0 %vm520_vm2, %v2169_v23  ;;  %5404 = vmatprep.mubr.msk.f32.mxu1 %vm520_vm2, %v6465_v27  ;;  %7786 = vst [vmem:[#allocation15_spill] sm:$0xff] %v6500_v46  ;;  %544 = vst.msk [vmem:[#allocation2 + $0x109] sm:$0xff] %vm520_vm2, %v471_v40  ;;  %v6508_v55 = vld [vmem:[#allocation2 + $0xb8] sm:$0x3]  ;;  %v473_v57 = vld [vmem:[%s6296_s6 + $0xb0] sm:$0xff]  ;;  %v6541_v28 = vsel %vm657_vm4, %v688_v45, %v6500_v46  ;;  %v693_v33 = vrot.slane %v6502_v49, 1 }
  0x39   : > { %5601 = vmatprep.mubr.msk.f32.mxu0 %vm520_vm2, %v6465_v27  ;;  %7787 = vst [vmem:[#allocation16_spill] sm:$0xff] %v6508_v55  ;;  %545 = vst.msk [vmem:[#allocation2 + $0x111] sm:$0xff] %vm520_vm2, %v472_v54  ;;  %v474_v61 = vld [vmem:[%s6296_s6 + $0xb8] sm:$0xff]  ;;  %v475_v62 = vld [vmem:[%s6296_s6 + $0xc0] sm:$0xff]  ;;  %v692_v45 = vsel %vm657_vm4, %v6500_v46, %v691_v63  ;;  %v6643_v27 = vrot.slane %v6375_v50, 2  ;;  %v2572_v56 = vrot.slane %v6415_v6, 2 }
  0x3a   : > { %546 = vst.msk [vmem:[#allocation2 + $0x121] sm:$0xff] %vm520_vm2, %v473_v57  ;;  %547 = vst.msk [vmem:[#allocation2 + $0x129] sm:$0xff] %vm520_vm2, %v474_v61  ;;  %v476_v9 = vld [vmem:[%s6296_s6 + $0xc8] sm:$0xff]  ;;  %v477_v10 = vld [vmem:[%s6296_s6 + $0xd0] sm:$0xff]  ;;  %v696_v57 = vrot.slane %v6508_v55, 1  ;;  %v2184_v61 = vsel %vm657_vm4, %v6500_v46, %v2183_v22  ;;  %v6609_v46 = vrot.slane %v6358_v42, 2 }
  0x3b   : > { %5405 = vmatmul.mubr.msk.f32.gmra.mrb[8].mxu1 %vm520_vm2, %v682_v35  ;;  %548 = vst.msk [vmem:[#allocation2 + $0x139] sm:$0xff] %vm520_vm2, %v475_v62  ;;  %v478_v11 = vld [vmem:[%s6296_s6 + $0xd8] sm:$0xff]  ;;  %549 = vst.msk [vmem:[#allocation2 + $0x141] sm:$0xff] %vm520_vm2, %v476_v9  ;;  %v479_v24 = vld [vmem:[%s6296_s6 + $0xe0] sm:$0xff]  ;;  %v6545_v35 = vrot.slane %v6504_v51, 1  ;;  %v2574_v5 = vrot.slane %v6407_v3, 2 }
  0x3c   : > { %5602 = vmatmul.mubr.msk.f32.gmra.mrb[6].mxu0 %vm520_vm2, %v2174_v36  ;;  %5407 = vmatprep.mubr.msk.f32.mxu1 %vm520_vm2, %v6496_v44  ;;  %v6532_v23 = vld [vmem:[#allocation2 + $0xb8] sm:$0x3]  ;;  %550 = vst.msk [vmem:[#allocation2 + $0x151] sm:$0xff] %vm520_vm2, %v477_v10  ;;  %551 = vst.msk [vmem:[#allocation2 + $0x159] sm:$0xff] %vm520_vm2, %v478_v11  ;;  %v480_v25 = vld [vmem:[%s6296_s6 + $0xe8] sm:$0xff]  ;;  %v2579_v38 = vrot.slane %v6445_v20, 2 }
  0x3d   : > { %5604 = vmatprep.mubr.msk.f32.mxu0 %vm520_vm2, %v6496_v44  ;;  %7788 = vst [vmem:[#allocation17_spill] sm:$0xff] %v6541_v28  ;;  %7789 = vst [vmem:[#allocation18_spill] sm:$0xff] %v6545_v35  ;;  %v6547_v36 = vld [vmem:[#allocation2 + $0xc0] sm:$0xff]  ;;  %v6549_v37 = vld [vmem:[#allocation2 + $0xc8] sm:$0xff]  ;;  %v2188_v62 = vrot.slane %v6532_v23, 1  ;;  %v6575_v63 = vsel %vm657_vm4, %v693_v33, %v6545_v35  ;;  %v697_v22 = vsel %vm657_vm4, %v6545_v35, %v696_v57 }
  0x3e   : > { %552 = vst.msk [vmem:[#allocation2 + $0x169] sm:$0xff] %vm520_vm2, %v479_v24  ;;  %553 = vst.msk [vmem:[#allocation2 + $0x171] sm:$0xff] %vm520_vm2, %v480_v25  ;;  %v481_v40 = vld [vmem:[%s6296_s6 + $0xf0] sm:$0xff]  ;;  %v482_v54 = vld [vmem:[%s6296_s6 + $0xf8] sm:$0xff]  ;;  %v698_v9 = vrot.slane %v6547_v36, 1  ;;  %v6571_v10 = vrot.slane %v6549_v37, 1 }
  0x3f   : > { %554 = vst.msk [vmem:[#allocation2 + $0x181] sm:$0xff] %vm520_vm2, %v481_v40  ;;  %5408 = vmatmul.mubr.msk.f32.gmra.mrb[10].mxu1 %vm520_vm2, %v687_v12  ;;  %555 = vst.msk [vmem:[#allocation2 + $0x189] sm:$0xff] %vm520_vm2, %v482_v54  ;;  %v6577_v11 = vld [vmem:[#allocation2 + $0xd0] sm:$0x3]  ;;  %v6583_v24 = vld [vmem:[#allocation2 + $0xe0] sm:$0xff]  ;;  %v2189_v25 = vsel %vm657_vm4, %v6545_v35, %v2188_v62  ;;  %v2562_v35 = vrot.slane %v6370_v47, 2 }
  0x40   : > { %5605 = vmatmul.mubr.msk.f32.gmra.mrb[8].mxu0 %vm520_vm2, %v2179_v8  ;;  %5410 = vmatprep.mubr.msk.f32.mxu1 %vm520_vm2, %v6541_v28  ;;  %7790 = vst [vmem:[#allocation19_spill] sm:$0xff] %v6571_v10  ;;  %7791 = vst [vmem:[#allocation20_spill] sm:$0xff] %v6575_v63  ;;  %v6579_v12 = vld [vmem:[#allocation2 + $0xd0] sm:$0x3]  ;;  %v6581_v8 = vld [vmem:[#allocation2 + $0xd8] sm:$0xff]  ;;  %v6597_v33 = vsel %vm657_vm4, %v698_v9, %v6571_v10  ;;  %v701_v40 = vrot.slane %v6577_v11, 1 }
  0x41   : > { %5607 = vmatprep.mubr.msk.f32.mxu0 %vm520_vm2, %v6541_v28  ;;  %7792 = vst [vmem:[#allocation21_spill] sm:$0xff] %v6577_v11  ;;  %7793 = vst [vmem:[#allocation22_spill] sm:$0xff] %v6597_v33  ;;  %v2193_v54 = vrot.slane %v6579_v12, 1  ;;  %v703_v57 = vrot.slane %v6581_v8, 1  ;;  %v6611_v62 = vld [vmem:[#allocation2 + $0xf0] sm:$0xff]  ;;  %v6613_v9 = vld [vmem:[#allocation2 + $0xf8] sm:$0xff] }
  0x42   : > { %v702_v29 = vsel %vm657_vm4, %v6571_v10, %v701_v40  ;;  %v708_v47 = vrot.slane %v6611_v62, 1  ;;  %v2563_v40 = vsel %vm1323_vm5, %v6609_v46, %v2562_v35  ;;  %v6674_v0 = vld [vmem:[#allocation2 + $0x118] sm:$0x3]  ;;  %v7803_v35 = vrot.slane %v6372_v48, 2  ;;  %v6723_v55 = vld [vmem:[#allocation2 + $0x140] sm:$0xff] }
  0x43   : > { %5411 = vmatmul.mubr.msk.f32.gmra.mrb[12].mxu1 %vm520_vm2, %v692_v45  ;;  %v6601_v45 = vld [vmem:[#allocation2 + $0xe8] sm:$0x3]  ;;  %v2194_v44 = vsel %vm657_vm4, %v6571_v10, %v2193_v54  ;;  %v6647_v10 = vld [vmem:[#allocation2 + $0x110] sm:$0xff]  ;;  %7802 = vst [vmem:[#allocation31_spill] sm:$0xff] %v6674_v0  ;;  %v6721_v11 = vld [vmem:[#allocation2 + $0x138] sm:$0xff]  ;;  %v6753_v18 = vrot.slane %v6723_v55, 1 }
  0x44   : > { %5608 = vmatmul.mubr.msk.f32.gmra.mrb[10].mxu0 %vm520_vm2, %v2184_v61  ;;  %5413 = vmatprep.mubr.msk.f32.mxu1 %vm520_vm2, %v6575_v63  ;;  %7794 = vst [vmem:[#allocation23_spill] sm:$0xff] %v6601_v45  ;;  %v6605_v61 = vrot.slane %v6583_v24, 1  ;;  %v706_v28 = vrot.slane %v6601_v45, 1  ;;  %v6645_v54 = vld [vmem:[#allocation2 + $0x108] sm:$0xff]  ;;  %v723_v26 = vrot.slane %v6721_v11, 1 }
  0x45   : > { %5610 = vmatprep.mubr.msk.f32.mxu0 %vm520_vm2, %v6575_v63  ;;  %v2559_v63 = vrot.slane %v6356_v41, 2  ;;  %7812 = vst [vmem:[#allocation39_spill] sm:$0xff] %v6753_v18 }
  0x46   : > { %7795 = vst [vmem:[#allocation24_spill] sm:$0xff] %v6605_v61 }
  0x47   : > { %5414 = vmatmul.mubr.msk.f32.gmra.mrb[14].mxu1 %vm520_vm2, %v697_v22  ;;  %v6629_v22 = vrot.slane %v6613_v9, 1  ;;  %v6637_v17 = vsel %vm1323_vm5, %v2559_v63, %v6609_v46  ;;  %v6668_v63 = vrot.slane %v6647_v10, 1 }
  0x48   : > { %5611 = vmatmul.mubr.msk.f32.gmra.mrb[12].mxu0 %vm520_vm2, %v2189_v25  ;;  %5416 = vmatprep.mubr.msk.f32.mxu1 %vm520_vm2, %v6597_v33  ;;  %v6633_v25 = vsel %vm657_vm4, %v703_v57, %v6605_v61  ;;  %v707_v57 = vsel %vm657_vm4, %v6605_v61, %v706_v28  ;;  %v713_v28 = vrot.slane %v6645_v54, 1  ;;  %v2569_v61 = vrot.slane %v6393_v59, 2 }
  0x49   : > { %5613 = vmatprep.mubr.msk.f32.mxu0 %vm520_vm2, %v6597_v33  ;;  %7796 = vst [vmem:[#allocation25_spill] sm:$0xff] %v6629_v22  ;;  %7797 = vst [vmem:[#allocation26_spill] sm:$0xff] %v6633_v25  ;;  %v6639_v33 = vld [vmem:[#allocation2 + $0x100] sm:$0x3]  ;;  %v6662_v16 = vsel %vm657_vm4, %v708_v47, %v6629_v22  ;;  %v6680_v47 = vsel %vm1323_vm5, %v7803_v35, %v6643_v27 }
  0x4a   : > { %7798 = vst [vmem:[#allocation27_spill] sm:$0xff] %v6639_v33  ;;  %7799 = vst [vmem:[#allocation28_spill] sm:$0xff] %v6662_v16  ;;  %v6706_v6 = vsel %vm657_vm4, %v713_v28, %v6668_v63  ;;  %v2577_v28 = vrot.slane %v6441_v19, 2  ;;  %v6745_v19 = vld [vmem:[#allocation2 + $0x148] sm:$0x3] }
  0x4b   : > { %5417 = vmatmul.mubr.msk.f32.gmra.mrb[16].mxu1 %vm520_vm2, %v702_v29  ;;  %v711_v29 = vrot.slane %v6639_v33, 1  ;;  %7800 = vst [vmem:[#allocation29_spill] sm:$0xff] %v6668_v63  ;;  %v6682_v33 = vld [vmem:[#allocation2 + $0x120] sm:$0xff]  ;;  %7805 = vst [vmem:[#allocation33_spill] sm:$0xff] %v6706_v6 }
  0x4c   : > { %5614 = vmatmul.mubr.msk.f32.gmra.mrb[14].mxu0 %vm520_vm2, %v2194_v44  ;;  %5419 = vmatprep.mubr.msk.f32.mxu1 %vm520_vm2, %v6633_v25  ;;  %v2567_v44 = vrot.slane %v6391_v58, 2  ;;  %v6672_v25 = vrot.slane %v6395_v60, 2  ;;  %v6684_v58 = vld [vmem:[#allocation2 + $0x128] sm:$0xff]  ;;  %7810 = vst [vmem:[#allocation37_spill] sm:$0xff] %v6745_v19 }
  0x4d   : > { %5642 = vmatprep.mubr.msk.f32.mxu0 %vm520_vm2, %v6637_v17  ;;  %v712_v35 = vsel %vm657_vm4, %v6629_v22, %v711_v29  ;;  %v718_v29 = vrot.slane %v6682_v33, 1  ;;  %v6716_v22 = vld [vmem:[#allocation2 + $0x130] sm:$0x3] }
  0x4e   : > { %7801 = vst [vmem:[#allocation30_spill] sm:$0xff] %v6672_v25  ;;  %v2568_v45 = vsel %vm1323_vm5, %v6643_v27, %v2567_v44  ;;  %v6714_v44 = vrot.slane %v6684_v58, 1  ;;  %7808 = vst [vmem:[#allocation36_spill] sm:$0xff] %v6716_v22 }
  0x4f   : > { %5420 = vmatmul.mubr.msk.f32.gmra.mrb[18].mxu1 %vm520_vm2, %v707_v57  ;;  %v716_v57 = vrot.slane %v6674_v0, 1  ;;  %v7809_v0 = vrot.slane %v6383_v53, 3 }
  0x50   : > { %5643 = vmatmul.mubr.msk.f32.vlgmr.msra.gmra.mrb[0].mxu0 %vm520_vm2, %v2563_v40  ;;  %5422 = vmatprep.mubr.msk.f32.mxu1 %vm520_vm2, %v6662_v16  ;;  %v6700_v40 = vrot.slane %v6417_v7, 2  ;;  %v6710_v16 = vsel %vm1323_vm5, %v2569_v61, %v6672_v25  ;;  %7807 = vst [vmem:[#allocation35_spill] sm:$0xff] %v6714_v44  ;;  %v2573_v61 = vsel %vm1323_vm5, %v6672_v25, %v2572_v56  ;;  %v6743_v56 = vrot.slane %v6447_v21, 2 }
  0x51   : > { %5691 = vmatpush3.msk.msra.mxu0 %vm804_vm0, %v6383_v53  ;;  %5645 = vmatprep.mubr.msk.f32.mxu0 %vm520_vm2, %v6680_v47  ;;  %7806 = vst [vmem:[#allocation34_spill] sm:$0xff] %v6710_v16  ;;  %v726_v25 = vrot.slane %v6745_v19, 1 }
  0x52   : > { %7804 = vst [vmem:[#allocation32_spill] sm:$0xff] %v6700_v40  ;;  %5740 = vmatprep.subr.msk.mxu0 %vm804_vm0, %v7809_v0  ;;  %v717_v0 = vsel %vm657_vm4, %v6668_v63, %v716_v57  ;;  %v6755_v57 = vld [vmem:[#allocation2 + $0x150] sm:$0xff]  ;;  %v1332_v63 = vrot.slane %v6360_v43, 2 }
  0x53   : > { %5423 = vmatmul.mubr.msk.f32.gmra.mrb[20].mxu1 %vm520_vm2, %v712_v35  ;;  %v6739_v35 = vsel %vm1323_vm5, %v2574_v5, %v6700_v40  ;;  %v6757_v5 = vld [vmem:[#allocation2 + $0x158] sm:$0xff] }
  0x54   : > { %5646 = vmatmul.mubr.msk.f32.gmra.mrb[2].mxu0 %vm520_vm2, %v2568_v45  ;;  %5425 = vmatprep.mubr.msk.f32.mxu1 %vm520_vm2, %v6706_v6  ;;  %v721_v45 = vrot.slane %v6716_v22, 1  ;;  %v6749_v6 = vsel %vm657_vm4, %v718_v29, %v6714_v44  ;;  %v1337_v22 = vrot.slane %v6378_v52, 2  ;;  %v2578_v29 = vsel %vm1323_vm5, %v6700_v40, %v2577_v28  ;;  %v6781_v28 = vld [vmem:[#allocation2 + $0x160] sm:$0x3] }
  0x55   : > { %5648 = vmatprep.mubr.msk.f32.mxu0 %vm520_vm2, %v6710_v16  ;;  %7811 = vst [vmem:[#allocation38_spill] sm:$0xff] %v6749_v6  ;;  %v2582_v16 = vrot.slane %v6471_v30, 2  ;;  %v6769_v2 = vsel %vm1323_vm5, %v6609_v46, %v1332_v63  ;;  %v728_v52 = vrot.slane %v6755_v57, 1  ;;  %7814 = vst [vmem:[#allocation41_spill] sm:$0xff] %v6781_v28  ;;  %v6789_v46 = vsel %vm657_vm4, %v723_v26, %v6753_v18 }
  0x56   : > { %v722_v43 = vsel %vm657_vm4, %v6714_v44, %v721_v45  ;;  %v6785_v30 = vsel %vm1323_vm5, %v6643_v27, %v1337_v22  ;;  %7815 = vst [vmem:[#allocation42_spill] sm:$0xff] %v6789_v46  ;;  %v6793_v63 = vsel %vm1323_vm5, %v2579_v38, %v6743_v56  ;;  %v6797_v45 = vrot.slane %v6475_v32, 2  ;;  %v6799_v44 = vld [vmem:[#allocation2 + $0x168] sm:$0xff] }
  0x57   : > { %5426 = vmatmul.mubr.msk.f32.gmra.mrb[22].mxu1 %vm520_vm2, %v717_v0  ;;  %v2584_v0 = vrot.slane %v6473_v31, 2  ;;  %v4826_v27 = vld [vmem:[%s7681_s3 + $0x28] sm:$0x1]  ;;  %v3875_v26 = vrot.slane %v6383_v53, 6  ;;  %v727_v38 = vsel %vm657_vm4, %v6753_v18, %v726_v25  ;;  %v2583_v22 = vsel %vm1323_vm5, %v6743_v56, %v2582_v16 }
  0x58   : > { %5649 = vmatmul.mubr.msk.f32.gmra.mrb[4].mxu0 %vm520_vm2, %v2573_v61  ;;  %5428 = vmatprep.mubr.msk.f32.mxu1 %vm520_vm2, %v6749_v6  ;;  %v6779_v61 = vrot.slane %v6757_v5, 1  ;;  %v6801_v6 = vld [vmem:[#allocation2 + $0x170] sm:$0xff]  ;;  %v731_v19 = vrot.slane %v6781_v28, 1  ;;  %v2587_v40 = vrot.slane %v6491_v39, 2  ;;  %v3876_v16 = vrot.slane %v4826_v27, 6 }
  0x59   : > { %5651 = vmatprep.mubr.msk.f32.mxu0 %vm520_vm2, %v6739_v35  ;;  %v6825_v25 = vrot.slane %v6801_v6, 1  ;;  %v6829_v18 = vsel %vm1323_vm5, %v2584_v0, %v6797_v45  ;;  %v2589_v39 = vrot.slane %v6502_v49, 2  ;;  %v6835_v28 = vld [vmem:[#allocation2 + $0x178] sm:$0x3] }
  0x5a   : > { %7813 = vst [vmem:[#allocation40_spill] sm:$0xff] %v6779_v61  ;;  %7818 = vst [vmem:[#allocation45_spill] sm:$0xff] %v6835_v28  ;;  %v732_v27 = vsel %vm657_vm4, %v6779_v61, %v731_v19  ;;  %v2588_v0 = vsel %vm1323_vm5, %v6797_v45, %v2587_v40  ;;  %v2594_v40 = vrot.slane %v6547_v36, 2 }
  0x5b   : > { %5429 = vmatmul.mubr.msk.f32.gmra.mrb[24].mxu1 %vm520_vm2, %v722_v43  ;;  %v6821_v43 = vsel %vm657_vm4, %v728_v52, %v6779_v61  ;;  %7817 = vst [vmem:[#allocation44_spill] sm:$0xff] %v6825_v25  ;;  %v6838_v52 = vsel %vm1405_vm3, %v3875_v26, %v3876_v16  ;;  %v6862_v16 = vrot.slane %v6549_v37, 2 }
  0x5c   : > { %5652 = vmatmul.mubr.msk.f32.gmra.mrb[6].mxu0 %vm520_vm2, %v2578_v29  ;;  %5431 = vmatprep.mubr.msk.f32.mxu1 %vm520_vm2, %v6789_v46  ;;  %7816 = vst [vmem:[#allocation43_spill] sm:$0xff] %v6821_v43  ;;  %v733_v29 = vrot.slane %v6799_v44, 1  ;;  %v6833_v46 = vrot.slane %v6504_v51, 2 }
  0x5d   : > { %5654 = vmatprep.mubr.msk.f32.mxu0 %vm520_vm2, %v6793_v63  ;;  %v6877_v61 = vsel %vm1323_vm5, %v2594_v40, %v6862_v16  ;;  %v2604_v40 = vrot.slane %v6611_v62, 2 }
  0x5e   : > { %v6852_v26 = vsel %vm657_vm4, %v733_v29, %v6825_v25  ;;  %v6858_v19 = vsel %vm1323_vm5, %v2589_v39, %v6833_v46  ;;  %v2597_v39 = vrot.slane %v6579_v12, 2 }
  0x5f   : > { %5432 = vmatmul.mubr.msk.f32.gmra.mrb[26].mxu1 %vm520_vm2, %v727_v38  ;;  %7819 = vst [vmem:[#allocation46_spill] sm:$0xff] %v6852_v26  ;;  %v736_v38 = vrot.slane %v6835_v28, 1  ;;  %v2624_v28 = vrot.slane %v6755_v57, 2 }
  0x60   : > { %5655 = vmatmul.mubr.msk.f32.gmra.mrb[8].mxu0 %vm520_vm2, %v2583_v22  ;;  %5434 = vmatprep.mubr.msk.f32.mxu1 %vm520_vm2, %v6821_v43  ;;  %v2592_v22 = vrot.slane %v6532_v23, 2  ;;  %v2598_v12 = vsel %vm1323_vm5, %v6862_v16, %v2597_v39  ;;  %v6964_v43 = vrot.slane %v6723_v55, 2 }
  0x61   : > { %5657 = vmatprep.mubr.msk.f32.mxu0 %vm520_vm2, %v6829_v18  ;;  %v737_v23 = vsel %vm657_vm4, %v6825_v25, %v736_v38  ;;  %v6922_v25 = vrot.slane %v6647_v10, 2 }
  0x62   : > { %v2593_v29 = vsel %vm1323_vm5, %v6833_v46, %v2592_v22  ;;  %7829 = vst [vmem:[#allocation56_spill] sm:$0xff] %v6964_v43 }
  0x63   : > { %5435 = vmatmul.mubr.msk.f32.gmra.mrb[28].mxu1 %vm520_vm2, %v732_v27  ;;  %v2599_v27 = vrot.slane %v6581_v8, 2  ;;  %7823 = vst [vmem:[#allocation50_spill] sm:$0xff] %v6922_v25 }
  0x64   : > { %5658 = vmatmul.mubr.msk.f32.gmra.mrb[10].mxu0 %vm520_vm2, %v2588_v0  ;;  %5437 = vmatprep.mubr.msk.f32.mxu1 %vm520_vm2, %v6852_v26  ;;  %v6881_v0 = vrot.slane %v6583_v24, 2  ;;  %v6883_v26 = vld [vmem:[#allocation2 + $0xe8] sm:$0x3] }
  0x65   : > { %5660 = vmatprep.mubr.msk.f32.mxu0 %vm520_vm2, %v6858_v19  ;;  %7820 = vst [vmem:[#allocation47_spill] sm:$0xff] %v6883_v26  ;;  %v2602_v38 = vrot.slane %v6883_v26, 2 }
  0x66   : > { %v6896_v22 = vsel %vm1323_vm5, %v2599_v27, %v6881_v0 }
  0x67   : > { %5438 = vmatmul.mubr.msk.f32.gmra.mrb[30].mxu1 %vm520_vm2, %v737_v23  ;;  %v6900_v23 = vrot.slane %v6613_v9, 2  ;;  %v2603_v39 = vsel %vm1323_vm5, %v6881_v0, %v2602_v38 }
  0x68   : > { %5661 = vmatmul.mubr.msk.f32.gmra.mrb[12].mxu0 %vm520_vm2, %v2593_v29  ;;  %5442 = vmatprep.mubr.msk.f32.mxu1 %vm520_vm2, %v6303_v13  ;;  %v6902_v29 = vld [vmem:[#allocation2 + $0x100] sm:$0x3] }
  0x69   : > { %5663 = vmatprep.mubr.msk.f32.mxu0 %vm520_vm2, %v6877_v61  ;;  %7821 = vst [vmem:[#allocation48_spill] sm:$0xff] %v6900_v23  ;;  %7822 = vst [vmem:[#allocation49_spill] sm:$0xff] %v6902_v29  ;;  %v2607_v27 = vrot.slane %v6902_v29, 2  ;;  %v6918_v26 = vsel %vm1323_vm5, %v2604_v40, %v6900_v23  ;;  %v2619_v29 = vrot.slane %v6721_v11, 2 }
  0x6b   : > { %5443 = vmatmul.mubr.msk.f32.vlgmr.msra.gmra.mrb[0].mxu1 %vm520_vm2, %v6305_v14 }
  0x6c   : > { %5664 = vmatmul.mubr.msk.f32.gmra.mrb[14].mxu0 %vm520_vm2, %v2598_v12  ;;  %5445 = vmatprep.mubr.msk.f32.mxu1 %vm520_vm2, %v6356_v41  ;;  %v2609_v12 = vrot.slane %v6645_v54, 2  ;;  %v6924_v41 = vld [vmem:[#allocation2 + $0x118] sm:$0x3] }
  0x6d   : > { %5666 = vmatprep.mubr.msk.f32.mxu0 %vm520_vm2, %v6896_v22  ;;  %5491 = vmatpush3.msk.msra.mxu1 %vm804_vm0, %v6339_v34  ;;  %7824 = vst [vmem:[#allocation51_spill] sm:$0xff] %v6924_v41  ;;  %v2608_v34 = vsel %vm1323_vm5, %v6900_v23, %v2607_v27  ;;  %v2612_v38 = vrot.slane %v6924_v41, 2  ;;  %v7010_v23 = vld [vmem:[#allocation2 + $0x188] sm:$0xff] }
  0x6e   : > { %5540 = vmatprep.subr.msk.mxu1 %vm804_vm0, %v6224_v1  ;;  %v6940_v40 = vsel %vm1323_vm5, %v2609_v12, %v6922_v25  ;;  %v2614_v1 = vrot.slane %v6682_v33, 2 }
  0x6f   : > { %5446 = vmatmul.mubr.msk.f32.gmra.mrb[2].mxu1 %vm520_vm2, %v6358_v42  ;;  %7825 = vst [vmem:[#allocation52_spill] sm:$0xff] %v6940_v40  ;;  %v6944_v42 = vrot.slane %v6684_v58, 2  ;;  %v2613_v27 = vsel %vm1323_vm5, %v6922_v25, %v2612_v38  ;;  %v6984_v25 = vrot.slane %v6757_v5, 2 }
  0x70   : > { %5667 = vmatmul.mubr.msk.f32.gmra.mrb[16].mxu0 %vm520_vm2, %v2603_v39  ;;  %5448 = vmatprep.mubr.msk.f32.mxu1 %vm520_vm2, %v6372_v48  ;;  %v6946_v39 = vld [vmem:[#allocation2 + $0x130] sm:$0x3] }
  0x71   : > { %5669 = vmatprep.mubr.msk.f32.mxu0 %vm520_vm2, %v6918_v26  ;;  %7826 = vst [vmem:[#allocation53_spill] sm:$0xff] %v6944_v42  ;;  %7827 = vst [vmem:[#allocation54_spill] sm:$0xff] %v6946_v39  ;;  %v2617_v12 = vrot.slane %v6946_v39, 2  ;;  %v6960_v41 = vsel %vm1323_vm5, %v2614_v1, %v6944_v42  ;;  %v6980_v39 = vsel %vm1323_vm5, %v2619_v29, %v6964_v43 }
  0x72   : > { %7828 = vst [vmem:[#allocation55_spill] sm:$0xff] %v6960_v41  ;;  %7831 = vst [vmem:[#allocation58_spill] sm:$0xff] %v6980_v39 }
  0x73   : > { %5449 = vmatmul.mubr.msk.f32.gmra.mrb[4].mxu1 %vm520_vm2, %v6375_v50  ;;  %v2618_v38 = vsel %vm1323_vm5, %v6944_v42, %v2617_v12  ;;  %7832 = vst [vmem:[#allocation59_spill] sm:$0xff] %v6984_v25  ;;  %v2629_v42 = vrot.slane %v6799_v44, 2 }
  0x74   : > { %5670 = vmatmul.mubr.msk.f32.gmra.mrb[18].mxu0 %vm520_vm2, %v2608_v34  ;;  %5451 = vmatprep.mubr.msk.f32.mxu1 %vm520_vm2, %v6393_v59  ;;  %v6966_v34 = vld [vmem:[#allocation2 + $0x148] sm:$0x3] }
  0x75   : > { %5672 = vmatprep.mubr.msk.f32.mxu0 %vm520_vm2, %v6940_v40  ;;  %7830 = vst [vmem:[#allocation57_spill] sm:$0xff] %v6966_v34  ;;  %v2622_v1 = vrot.slane %v6966_v34, 2  ;;  %v7000_v34 = vsel %vm1323_vm5, %v2624_v28, %v6984_v25  ;;  %v7008_v40 = vld [vmem:[#allocation2 + $0x180] sm:$0xff] }
  0x76   : > { %7834 = vst [vmem:[#allocation61_spill] sm:$0xff] %v7000_v34 }
  0x77   : > { %5452 = vmatmul.mubr.msk.f32.gmra.mrb[6].mxu1 %vm520_vm2, %v6395_v60  ;;  %v2623_v29 = vsel %vm1323_vm5, %v6964_v43, %v2622_v1  ;;  %v2634_v43 = vrot.slane %v7008_v40, 2 }
  0x78   : > { %5673 = vmatmul.mubr.msk.f32.gmra.mrb[20].mxu0 %vm520_vm2, %v2613_v27  ;;  %5454 = vmatprep.mubr.msk.f32.mxu1 %vm520_vm2, %v6407_v3  ;;  %v6986_v27 = vld [vmem:[#allocation2 + $0x160] sm:$0x3] }
  0x79   : > { %5675 = vmatprep.mubr.msk.f32.mxu0 %vm520_vm2, %v6960_v41  ;;  %7833 = vst [vmem:[#allocation60_spill] sm:$0xff] %v6986_v27  ;;  %v2627_v12 = vrot.slane %v6986_v27, 2  ;;  %v7004_v41 = vrot.slane %v6801_v6, 2 }
  0x7b   : > { %5455 = vmatmul.mubr.msk.f32.gmra.mrb[8].mxu1 %vm520_vm2, %v6417_v7  ;;  %7835 = vst [vmem:[#allocation62_spill] sm:$0xff] %v7004_v41  ;;  %v2628_v28 = vsel %vm1323_vm5, %v6984_v25, %v2627_v12  ;;  %v7024_v27 = vsel %vm1323_vm5, %v2629_v42, %v7004_v41 }
  0x7c   : > { %5676 = vmatmul.mubr.msk.f32.gmra.mrb[22].mxu0 %vm520_vm2, %v2618_v38  ;;  %5457 = vmatprep.mubr.msk.f32.mxu1 %vm520_vm2, %v6445_v20  ;;  %v7006_v38 = vld [vmem:[#allocation2 + $0x178] sm:$0x3]  ;;  %7837 = vst [vmem:[#allocation64_spill] sm:$0xff] %v7024_v27 }
  0x7d   : > { %5678 = vmatprep.mubr.msk.f32.mxu0 %vm520_vm2, %v6980_v39  ;;  %7836 = vst [vmem:[#allocation63_spill] sm:$0xff] %v7006_v38  ;;  %v2632_v1 = vrot.slane %v7006_v38, 2  ;;  %v7028_v39 = vrot.slane %v7010_v23, 2 }
  0x7f   : > { %5458 = vmatmul.mubr.msk.f32.gmra.mrb[10].mxu1 %vm520_vm2, %v6447_v21  ;;  %7838 = vst [vmem:[#allocation65_spill] sm:$0xff] %v7028_v39  ;;  %v2633_v42 = vsel %vm1323_vm5, %v7004_v41, %v2632_v1  ;;  %v7044_v38 = vsel %vm1323_vm5, %v2634_v43, %v7028_v39  ;;  %v7841_v43 = vrot.slane %v6383_v53, 3  ;;  %v1325_v53 = vrot.slane %v6305_v14, 2  ;;  %v6123_v14 = vld [vmem:[%s7681_s3 + $0x10] sm:$0xff]  ;;  %v7848_v1 = vld [vmem:[#allocation13_spill] sm:$0xff] }
  0x80   : > { %5679 = vmatmul.mubr.msk.f32.gmra.mrb[24].mxu0 %vm520_vm2, %v2623_v29  ;;  %5460 = vmatprep.mubr.msk.f32.mxu1 %vm520_vm2, %v6473_v31  ;;  %v7030_v29 = vld [vmem:[#allocation2 + $0x190] sm:$0x3]  ;;  %7840 = vst [vmem:[#allocation67_spill] sm:$0xff] %v7044_v38 }
  0x81   : > { %5681 = vmatprep.mubr.msk.f32.mxu0 %vm520_vm2, %v7000_v34  ;;  %7839 = vst [vmem:[#allocation66_spill] sm:$0xff] %v7030_v29  ;;  %v2637_v12 = vrot.slane %v7030_v29, 2  ;;  %v7276_v29 = vld [vmem:[#allocation2 + $0xb8] sm:$0x3] }
  0x83   : > { %5461 = vmatmul.mubr.msk.f32.gmra.mrb[12].mxu1 %vm520_vm2, %v6475_v32 }
  0x84   : > { %5682 = vmatmul.mubr.msk.f32.gmra.mrb[26].mxu0 %vm520_vm2, %v2628_v28  ;;  %5463 = vmatprep.mubr.msk.f32.mxu1 %vm520_vm2, %v6502_v49  ;;  %v2638_v28 = vsel %vm1323_vm5, %v7028_v39, %v2637_v12 }
  0x85   : > { %5684 = vmatprep.mubr.msk.f32.mxu0 %vm520_vm2, %v7024_v27 }
  0x87   : > { %5464 = vmatmul.mubr.msk.f32.gmra.mrb[14].mxu1 %vm520_vm2, %v6504_v51 }
  0x88   : > { %5685 = vmatmul.mubr.msk.f32.gmra.mrb[28].mxu0 %vm520_vm2, %v2633_v42  ;;  %5466 = vmatprep.mubr.msk.f32.mxu1 %vm520_vm2, %v6547_v36  ;;  %v1357_v42 = vrot.slane %v7848_v1, 2  ;;  %v7855_v1 = vld [vmem:[#allocation27_spill] sm:$0xff] }
  0x89   : > { %5687 = vmatprep.mubr.msk.f32.mxu0 %vm520_vm2, %v7044_v38 }
  0x8a   : > { %v1358_v12 = vsel %vm1323_vm5, %v6797_v45, %v1357_v42  ;;  %v1377_v42 = vrot.slane %v7855_v1, 2  ;;  %v7863_v1 = vld [vmem:[#allocation8_spill] sm:$0xff] }
  0x8b   : > { %5467 = vmatmul.mubr.msk.f32.gmra.mrb[16].mxu1 %vm520_vm2, %v6549_v37 }
  0x8c   : > { %5688 = vmatmul.mubr.msk.f32.gmra.mrb[30].mxu0 %vm520_vm2, %v2638_v28  ;;  %5469 = vmatprep.mubr.msk.f32.mxu1 %vm520_vm2, %v6581_v8  ;;  %v7849_v28 = vld [vmem:[#allocation16_spill] sm:$0xff] }
  0x8d   : > { %5692 = vmatprep.mubr.msk.f32.mxu0 %vm520_vm2, %v6372_v48 }
  0x8f   : > { %5470 = vmatmul.mubr.msk.f32.gmra.mrb[18].mxu1 %vm520_vm2, %v6583_v24 }
  0x90   : > { %5693 = vmatmul.mubr.msk.f32.vlgmr.msra.gmra.mrb[0].mxu0 %vm520_vm2, %v6375_v50  ;;  %5472 = vmatprep.mubr.msk.f32.mxu1 %vm520_vm2, %v6611_v62  ;;  %v1324_v50 = vrot.slane %v6303_v13, 2 }
  0x91   : > { %5741 = vmatpush3.msk.msra.mxu0 %vm804_vm0, %v7841_v43  ;;  %5695 = vmatprep.mubr.msk.f32.mxu0 %vm520_vm2, %v6393_v59  ;;  %v1327_v59 = vrot.slane %v6307_v15, 2  ;;  %v7842_v15 = vld [vmem:[#allocation5_spill] sm:$0xff]  ;;  %v1362_v43 = vrot.slane %v7849_v28, 2  ;;  %v7232_v28 = vld [vmem:[#allocation2 + $0x70] sm:$0x3] }
  0x92   : > { %5790 = vmatprep.subr.msk.mxu0 %vm804_vm0, %v6838_v52 }
  0x93   : > { %5473 = vmatmul.mubr.msk.f32.gmra.mrb[20].mxu1 %vm520_vm2, %v6613_v9  ;;  %v1328_v13 = vsel %vm1323_vm5, %v1325_v53, %v1327_v59 }
  0x94   : > { %5696 = vmatmul.mubr.msk.f32.gmra.mrb[2].mxu0 %vm520_vm2, %v6395_v60  ;;  %5475 = vmatprep.mubr.msk.f32.mxu1 %vm520_vm2, %v6645_v54  ;;  %v1326_v60 = vsel %vm1323_vm5, %v1324_v50, %v1325_v53  ;;  %v1363_v50 = vsel %vm1323_vm5, %v6833_v46, %v1362_v43  ;;  %v7850_v53 = vld [vmem:[#allocation21_spill] sm:$0xff]  ;;  %v7856_v43 = vld [vmem:[#allocation48_spill] sm:$0xff] }
  0x95   : > { %5698 = vmatprep.mubr.msk.f32.mxu0 %vm520_vm2, %v6407_v3  ;;  %v1342_v3 = vrot.slane %v7842_v15, 2  ;;  %v1367_v59 = vrot.slane %v7850_v53, 2  ;;  %v7213_v15 = vld [vmem:[#allocation2 + $0x1a0] sm:$0xff]  ;;  %v7857_v53 = vld [vmem:[#allocation4_spill] sm:$0xff] }
  0x96   : > { %7851 = vst [vmem:[#allocation5_spill] sm:$0xff] %v7213_v15 }
  0x97   : > { %5476 = vmatmul.mubr.msk.f32.gmra.mrb[22].mxu1 %vm520_vm2, %v6647_v10 }
  0x98   : > { %5699 = vmatmul.mubr.msk.f32.gmra.mrb[4].mxu0 %vm520_vm2, %v6417_v7  ;;  %5478 = vmatprep.mubr.msk.f32.mxu1 %vm520_vm2, %v6682_v33  ;;  %v7843_v7 = vld [vmem:[#allocation34_spill] sm:$0xff] }
  0x99   : > { %5701 = vmatprep.mubr.msk.f32.mxu0 %vm520_vm2, %v6445_v20  ;;  %v7845_v20 = vld [vmem:[#allocation9_spill] sm:$0xff] }
  0x9b   : > { %5479 = vmatmul.mubr.msk.f32.gmra.mrb[24].mxu1 %vm520_vm2, %v6684_v58 }
  0x9c   : > { %5702 = vmatmul.mubr.msk.f32.gmra.mrb[6].mxu0 %vm520_vm2, %v6447_v21  ;;  %5481 = vmatprep.mubr.msk.f32.mxu1 %vm520_vm2, %v6721_v11  ;;  %v1347_v21 = vrot.slane %v7845_v20, 2 }
  0x9d   : > { %5704 = vmatprep.mubr.msk.f32.mxu0 %vm520_vm2, %v6473_v31  ;;  %v7846_v31 = vld [vmem:[#allocation32_spill] sm:$0xff] }
  0x9f   : > { %5482 = vmatmul.mubr.msk.f32.gmra.mrb[26].mxu1 %vm520_vm2, %v6723_v55 }
  0xa0   : > { %5705 = vmatmul.mubr.msk.f32.gmra.mrb[8].mxu0 %vm520_vm2, %v6475_v32  ;;  %5484 = vmatprep.mubr.msk.f32.mxu1 %vm520_vm2, %v6755_v57  ;;  %v1348_v32 = vsel %vm1323_vm5, %v7846_v31, %v1347_v21  ;;  %v7217_v21 = vld [vmem:[#allocation2 + $0x58] sm:$0x3] }
  0xa1   : > { %5707 = vmatprep.mubr.msk.f32.mxu0 %vm520_vm2, %v6502_v49 }
  0xa3   : > { %5485 = vmatmul.mubr.msk.f32.gmra.mrb[28].mxu1 %vm520_vm2, %v6757_v5 }
  0xa4   : > { %5708 = vmatmul.mubr.msk.f32.gmra.mrb[10].mxu0 %vm520_vm2, %v6504_v51  ;;  %5487 = vmatprep.mubr.msk.f32.mxu1 %vm520_vm2, %v6799_v44  ;;  %v7847_v51 = vld [vmem:[#allocation10_spill] sm:$0xff] }
  0xa5   : > { %5710 = vmatprep.mubr.msk.f32.mxu0 %vm520_vm2, %v6547_v36 }
  0xa7   : > { %5488 = vmatmul.mubr.msk.f32.gmra.mrb[30].mxu1 %vm520_vm2, %v6801_v6 }
  0xa8   : > { %5711 = vmatmul.mubr.msk.f32.gmra.mrb[12].mxu0 %vm520_vm2, %v6549_v37  ;;  %5492 = vmatprep.mubr.msk.f32.mxu1 %vm520_vm2, %v1326_v60  ;;  %v7200_v60 = vld [vmem:[#allocation2 + $0x198] sm:$0xff] }
  0xa9   : > { %5713 = vmatprep.mubr.msk.f32.mxu0 %vm520_vm2, %v6581_v8 }
  0xab   : > { %5493 = vmatmul.mubr.msk.f32.vlgmr.msra.gmra.mrb[0].mxu1 %vm520_vm2, %v1328_v13  ;;  %v7202_v13 = vld [vmem:[#allocation2 + $0x40] sm:$0x3] }
  0xac   : > { %5714 = vmatmul.mubr.msk.f32.gmra.mrb[14].mxu0 %vm520_vm2, %v6583_v24  ;;  %5495 = vmatprep.mubr.msk.f32.mxu1 %vm520_vm2, %v6637_v17  ;;  %v3393_v20 = vrot.slane %v7202_v13, 1 }
  0xad   : > { %5716 = vmatprep.mubr.msk.f32.mxu0 %vm520_vm2, %v6611_v62  ;;  %5541 = vmatpush3.msk.msra.mxu1 %vm804_vm0, %v6123_v14  ;;  %v1368_v14 = vsel %vm1323_vm5, %v6862_v16, %v1367_v59 }
  0xae   : > { %5840 = vmatprep.subr.msk.mxu1 %vm804_vm0, %v6268_v4 }
  0xaf   : > { %5496 = vmatmul.mubr.msk.f32.gmra.mrb[2].mxu1 %vm520_vm2, %v6769_v2  ;;  %v7844_v2 = vld [vmem:[#allocation30_spill] sm:$0xff] }
  0xb0   : > { %5717 = vmatmul.mubr.msk.f32.gmra.mrb[16].mxu0 %vm520_vm2, %v6613_v9  ;;  %5498 = vmatprep.mubr.msk.f32.mxu1 %vm520_vm2, %v6680_v47  ;;  %v1343_v17 = vsel %vm1323_vm5, %v7844_v2, %v1342_v3  ;;  %v1352_v47 = vrot.slane %v7847_v51, 2  ;;  %v7852_v3 = vld [vmem:[#allocation23_spill] sm:$0xff] }
  0xb1   : > { %5719 = vmatprep.mubr.msk.f32.mxu0 %vm520_vm2, %v6645_v54 }
  0xb3   : > { %5499 = vmatmul.mubr.msk.f32.gmra.mrb[4].mxu1 %vm520_vm2, %v6785_v30  ;;  %v1353_v30 = vsel %vm1323_vm5, %v6743_v56, %v1352_v47  ;;  %v7854_v47 = vld [vmem:[#allocation3_spill] sm:$0xff] }
  0xb4   : > { %5720 = vmatmul.mubr.msk.f32.gmra.mrb[18].mxu0 %vm520_vm2, %v6647_v10  ;;  %5501 = vmatprep.mubr.msk.f32.mxu1 %vm520_vm2, %v7843_v7 }
  0xb5   : > { %5722 = vmatprep.mubr.msk.f32.mxu0 %vm520_vm2, %v6682_v33 }
  0xb7   : > { %5502 = vmatmul.mubr.msk.f32.gmra.mrb[6].mxu1 %vm520_vm2, %v1343_v17  ;;  %v1372_v17 = vrot.slane %v7852_v3, 2 }
  0xb8   : > { %5723 = vmatmul.mubr.msk.f32.gmra.mrb[20].mxu0 %vm520_vm2, %v6684_v58  ;;  %5504 = vmatprep.mubr.msk.f32.mxu1 %vm520_vm2, %v6739_v35 }
  0xb9   : > { %5725 = vmatprep.mubr.msk.f32.mxu0 %vm520_vm2, %v6721_v11  ;;  %v1373_v51 = vsel %vm1323_vm5, %v6881_v0, %v1372_v17  ;;  %v3403_v17 = vrot.slane %v7232_v28, 1 }
  0xbb   : > { %5505 = vmatmul.mubr.msk.f32.gmra.mrb[8].mxu1 %vm520_vm2, %v1348_v32  ;;  %v7853_v32 = vld [vmem:[#allocation6_spill] sm:$0xff] }
  0xbc   : > { %5726 = vmatmul.mubr.msk.f32.gmra.mrb[22].mxu0 %vm520_vm2, %v6723_v55  ;;  %5507 = vmatprep.mubr.msk.f32.mxu1 %vm520_vm2, %v6793_v63 }
  0xbd   : > { %5728 = vmatprep.mubr.msk.f32.mxu0 %vm520_vm2, %v6755_v57 }
  0xbf   : > { %5508 = vmatmul.mubr.msk.f32.gmra.mrb[10].mxu1 %vm520_vm2, %v1353_v30  ;;  %v3394_v30 = vsel %vm657_vm4, %v7854_v47, %v3393_v20  ;;  %v7859_v20 = vld [vmem:[#allocation7_spill] sm:$0xff]  ;;  %v7862_v47 = vld [vmem:[#allocation50_spill] sm:$0xff] }
  0xc0   : > { %5729 = vmatmul.mubr.msk.f32.gmra.mrb[24].mxu0 %vm520_vm2, %v6757_v5  ;;  %5510 = vmatprep.mubr.msk.f32.mxu1 %vm520_vm2, %v6829_v18 }
  0xc1   : > { %5731 = vmatprep.mubr.msk.f32.mxu0 %vm520_vm2, %v6799_v44 }
  0xc3   : > { %5511 = vmatmul.mubr.msk.f32.gmra.mrb[12].mxu1 %vm520_vm2, %v1358_v12  ;;  %v3398_v12 = vrot.slane %v7217_v21, 1 }
  0xc4   : > { %5732 = vmatmul.mubr.msk.f32.gmra.mrb[26].mxu0 %vm520_vm2, %v6801_v6  ;;  %5513 = vmatprep.mubr.msk.f32.mxu1 %vm520_vm2, %v6858_v19 }
  0xc5   : > { %5734 = vmatprep.mubr.msk.f32.mxu0 %vm520_vm2, %v7008_v40  ;;  %v3399_v59 = vsel %vm657_vm4, %v7857_v53, %v3398_v12  ;;  %v7864_v12 = vld [vmem:[#allocation36_spill] sm:$0xff] }
  0xc6   : > { %v1387_v53 = vrot.slane %v7864_v12, 2  ;;  %v7869_v12 = vld [vmem:[#allocation37_spill] sm:$0xff] }
  0xc7   : > { %5514 = vmatmul.mubr.msk.f32.gmra.mrb[14].mxu1 %vm520_vm2, %v1363_v50  ;;  %v1378_v50 = vsel %vm1323_vm5, %v7856_v43, %v1377_v42  ;;  %v3404_v42 = vsel %vm657_vm4, %v7863_v1, %v3403_v17  ;;  %v7868_v17 = vld [vmem:[#allocation12_spill] sm:$0xff]  ;;  %v1392_v39 = vrot.slane %v7869_v12, 2  ;;  %v7874_v12 = vld [vmem:[#allocation41_spill] sm:$0xff] }
  0xc8   : > { %5735 = vmatmul.mubr.msk.f32.gmra.mrb[28].mxu0 %vm520_vm2, %v7010_v23  ;;  %5516 = vmatprep.mubr.msk.f32.mxu1 %vm520_vm2, %v6877_v61 }
  0xc9   : > { %5737 = vmatprep.mubr.msk.f32.mxu0 %vm520_vm2, %v7200_v60 }
  0xcb   : > { %5517 = vmatmul.mubr.msk.f32.gmra.mrb[16].mxu1 %vm520_vm2, %v1368_v14  ;;  %v7858_v14 = vld [vmem:[#allocation31_spill] sm:$0xff] }
  0xcc   : > { %5738 = vmatmul.mubr.msk.f32.gmra.mrb[30].mxu0 %vm520_vm2, %v7213_v15  ;;  %5519 = vmatprep.mubr.msk.f32.mxu1 %vm520_vm2, %v6896_v22  ;;  %v1382_v3 = vrot.slane %v7858_v14, 2 }
  0xcd   : > { %5742 = vmatprep.mubr.msk.f32.mxu0 %vm520_vm2, %v7853_v32  ;;  %v7248_v32 = vld [vmem:[#allocation2 + $0x88] sm:$0x3] }
  0xce   : > { %v3408_v14 = vrot.slane %v7248_v32, 1 }
  0xcf   : > { %5520 = vmatmul.mubr.msk.f32.gmra.mrb[18].mxu1 %vm520_vm2, %v1373_v51  ;;  %v7861_v51 = vld [vmem:[#allocation11_spill] sm:$0xff] }
  0xd0   : > { %5743 = vmatmul.mubr.msk.f32.vlgmr.msra.gmra.mrb[0].mxu0 %vm520_vm2, %v3394_v30  ;;  %5522 = vmatprep.mubr.msk.f32.mxu1 %vm520_vm2, %v6918_v26  ;;  %v1383_v30 = vsel %vm1323_vm5, %v7862_v47, %v1382_v3  ;;  %v7867_v3 = vld [vmem:[#allocation53_spill] sm:$0xff]  ;;  %v3409_v1 = vsel %vm657_vm4, %v7868_v17, %v3408_v14  ;;  %v7873_v14 = vld [vmem:[#allocation15_spill] sm:$0xff] }
  0xd1   : > { %5791 = vmatpush3.msk.msra.mxu0 %vm804_vm0, %v6838_v52  ;;  %5745 = vmatprep.mubr.msk.f32.mxu0 %vm520_vm2, %v7859_v20  ;;  %v7860_v52 = vld [vmem:[#allocation52_spill] sm:$0xff]  ;;  %v7262_v20 = vld [vmem:[#allocation2 + $0xa0] sm:$0x3]  ;;  %v7290_v47 = vld [vmem:[#allocation2 + $0xd0] sm:$0x3] }
  0xd2   : > { %v3413_v38 = vrot.slane %v7262_v20, 1 }
  0xd3   : > { %5523 = vmatmul.mubr.msk.f32.gmra.mrb[20].mxu1 %vm520_vm2, %v1378_v50  ;;  %v7865_v50 = vld [vmem:[#allocation55_spill] sm:$0xff] }
  0xd4   : > { %5746 = vmatmul.mubr.msk.f32.gmra.mrb[2].mxu0 %vm520_vm2, %v3399_v59  ;;  %5525 = vmatprep.mubr.msk.f32.mxu1 %vm520_vm2, %v7860_v52  ;;  %v7866_v59 = vld [vmem:[#allocation14_spill] sm:$0xff]  ;;  %v3414_v17 = vsel %vm657_vm4, %v7873_v14, %v3413_v38 }
  0xd5   : > { %5748 = vmatprep.mubr.msk.f32.mxu0 %vm520_vm2, %v7861_v51  ;;  %v1388_v51 = vsel %vm1323_vm5, %v7867_v3, %v1387_v53  ;;  %v7872_v53 = vld [vmem:[#allocation56_spill] sm:$0xff]  ;;  %v1397_v3 = vrot.slane %v7874_v12, 2  ;;  %v7876_v38 = vld [vmem:[#allocation18_spill] sm:$0xff]  ;;  %v3423_v12 = vrot.slane %v7290_v47, 1 }
  0xd7   : > { %5526 = vmatmul.mubr.msk.f32.gmra.mrb[22].mxu1 %vm520_vm2, %v1383_v30  ;;  %v7870_v30 = vld [vmem:[#allocation58_spill] sm:$0xff] }
  0xd8   : > { %5749 = vmatmul.mubr.msk.f32.gmra.mrb[4].mxu0 %vm520_vm2, %v3404_v42  ;;  %5528 = vmatprep.mubr.msk.f32.mxu1 %vm520_vm2, %v7865_v50  ;;  %v7871_v42 = vld [vmem:[#allocation17_spill] sm:$0xff]  ;;  %v3418_v50 = vrot.slane %v7276_v29, 1 }
  0xd9   : > { %5751 = vmatprep.mubr.msk.f32.mxu0 %vm520_vm2, %v7866_v59  ;;  %v1393_v59 = vsel %vm1323_vm5, %v7872_v53, %v1392_v39  ;;  %v1398_v39 = vsel %vm1323_vm5, %v6984_v25, %v1397_v3  ;;  %v7304_v53 = vld [vmem:[#allocation2 + $0xe8] sm:$0x3] }
  0xdb   : > { %5529 = vmatmul.mubr.msk.f32.gmra.mrb[24].mxu1 %vm520_vm2, %v1388_v51  ;;  %v7875_v51 = vld [vmem:[#allocation20_spill] sm:$0xff] }
  0xdc   : > { %5752 = vmatmul.mubr.msk.f32.gmra.mrb[6].mxu0 %vm520_vm2, %v3409_v1  ;;  %5531 = vmatprep.mubr.msk.f32.mxu1 %vm520_vm2, %v7870_v30  ;;  %v3419_v1 = vsel %vm657_vm4, %v7876_v38, %v3418_v50  ;;  %v7879_v50 = vld [vmem:[#allocation19_spill] sm:$0xff]  ;;  %v7317_v38 = vld [vmem:[#allocation2 + $0x100] sm:$0x3]  ;;  %v6131_v30 = vld [vmem:[#allocation2 + $0x68] sm:$0xff] }
  0xdd   : > { %5754 = vmatprep.mubr.msk.f32.mxu0 %vm520_vm2, %v7871_v42  ;;  %v7877_v42 = vld [vmem:[#allocation45_spill] sm:$0xff] }
  0xde   : > { %v1402_v14 = vrot.slane %v7877_v42, 2  ;;  %v7881_v42 = vld [vmem:[#allocation24_spill] sm:$0xff] }
  0xdf   : > { %5532 = vmatmul.mubr.msk.f32.gmra.mrb[26].mxu1 %vm520_vm2, %v1393_v59  ;;  %v7878_v59 = vld [vmem:[#allocation22_spill] sm:$0xff] }
  0xe0   : > { %5755 = vmatmul.mubr.msk.f32.gmra.mrb[8].mxu0 %vm520_vm2, %v3414_v17  ;;  %5534 = vmatprep.mubr.msk.f32.mxu1 %vm520_vm2, %v7000_v34  ;;  %v1403_v3 = vsel %vm1323_vm5, %v7004_v41, %v1402_v14  ;;  %v3424_v17 = vsel %vm657_vm4, %v7879_v50, %v3423_v12  ;;  %v7327_v12 = vld [vmem:[#allocation2 + $0x118] sm:$0x3]  ;;  %v6125_v50 = vld [vmem:[#allocation2 + $0x20] sm:$0xff] }
  0xe1   : > { %5757 = vmatprep.mubr.msk.f32.mxu0 %vm520_vm2, %v7875_v51  ;;  %v3428_v51 = vrot.slane %v7304_v53, 1  ;;  %v7341_v41 = vld [vmem:[#allocation2 + $0x38] sm:$0xff]  ;;  %v7362_v34 = vld [vmem:[#allocation2 + $0x160] sm:$0x3] }
  0xe2   : > { %7890 = vst [vmem:[#allocation9_spill] sm:$0xff] %v7362_v34 }
  0xe3   : > { %5535 = vmatmul.mubr.msk.f32.gmra.mrb[28].mxu1 %vm520_vm2, %v1398_v39  ;;  %v6124_v39 = vld [vmem:[#allocation2 + $0x18] sm:$0xff]  ;;  %v3429_v14 = vsel %vm657_vm4, %v7881_v42, %v3428_v51  ;;  %v3438_v51 = vrot.slane %v7327_v12, 1  ;;  %v7339_v42 = vld [vmem:[#allocation2 + $0x130] sm:$0x3] }
  0xe4   : > { %5758 = vmatmul.mubr.msk.f32.gmra.mrb[10].mxu0 %vm520_vm2, %v3419_v1  ;;  %5537 = vmatprep.mubr.msk.f32.mxu1 %vm520_vm2, %v7024_v27  ;;  %v7880_v1 = vld [vmem:[#allocation26_spill] sm:$0xff]  ;;  %7884 = vst [vmem:[#allocation34_spill] sm:$0xff] %v7339_v42  ;;  %v6130_v27 = vld [vmem:[#allocation2 + $0x60] sm:$0xff] }
  0xe5   : > { %5760 = vmatprep.mubr.msk.f32.mxu0 %vm520_vm2, %v7878_v59  ;;  %v3433_v59 = vrot.slane %v7317_v38, 1 }
  0xe7   : > { %5538 = vmatmul.mubr.msk.f32.gmra.mrb[30].mxu1 %vm520_vm2, %v1403_v3  ;;  %v6126_v3 = vld [vmem:[#allocation2 + $0x30] sm:$0xff] }
  0xe8   : > { %5761 = vmatmul.mubr.msk.f32.gmra.mrb[12].mxu0 %vm520_vm2, %v3424_v17  ;;  %5542 = vmatprep.mubr.msk.f32.mxu1 %vm520_vm2, %v6124_v39  ;;  %v7882_v17 = vld [vmem:[#allocation28_spill] sm:$0xff]  ;;  %v7883_v39 = vld [vmem:[#allocation25_spill] sm:$0xff] }
  0xe9   : > { %5763 = vmatprep.mubr.msk.f32.mxu0 %vm520_vm2, %v7880_v1  ;;  %v3434_v1 = vsel %vm657_vm4, %v7883_v39, %v3433_v59  ;;  %v7886_v59 = vld [vmem:[#allocation29_spill] sm:$0xff]  ;;  %v6129_v39 = vld [vmem:[#allocation2 + $0x50] sm:$0xff] }
  0xeb   : > { %5543 = vmatmul.mubr.msk.f32.vlgmr.msra.gmra.mrb[0].mxu1 %vm520_vm2, %v6125_v50  ;;  %v7885_v50 = vld [vmem:[#allocation33_spill] sm:$0xff] }
  0xec   : > { %5764 = vmatmul.mubr.msk.f32.gmra.mrb[14].mxu0 %vm520_vm2, %v3429_v14  ;;  %5545 = vmatprep.mubr.msk.f32.mxu1 %vm520_vm2, %v6126_v3  ;;  %v6128_v14 = vld [vmem:[#allocation2 + $0x48] sm:$0xff]  ;;  %v3439_v3 = vsel %vm657_vm4, %v7886_v59, %v3438_v51  ;;  %v6136_v59 = vld [vmem:[#allocation2 + $0xb0] sm:$0xff] }
  0xed   : > { %5766 = vmatprep.mubr.msk.f32.mxu0 %vm520_vm2, %v7882_v17  ;;  %5841 = vmatpush3.msk.msra.mxu1 %vm804_vm0, %v6268_v4  ;;  %v3443_v4 = vrot.slane %v7339_v42, 1  ;;  %v7352_v17 = vld [vmem:[#allocation2 + $0x148] sm:$0x3]  ;;  %v7386_v42 = vld [vmem:[#allocation2 + $0x190] sm:$0x3] }
  0xee   : > { %7887 = vst [vmem:[#allocation30_spill] sm:$0xff] %v7352_v17  ;;  %v3448_v51 = vrot.slane %v7352_v17, 1  ;;  %v6133_v17 = vld [vmem:[#allocation2 + $0x80] sm:$0xff] }
  0xef   : > { %5546 = vmatmul.mubr.msk.f32.gmra.mrb[2].mxu1 %vm520_vm2, %v7341_v41 }
  0xf0   : > { %5767 = vmatmul.mubr.msk.f32.gmra.mrb[16].mxu0 %vm520_vm2, %v3434_v1  ;;  %5548 = vmatprep.mubr.msk.f32.mxu1 %vm520_vm2, %v6128_v14  ;;  %v7888_v1 = vld [vmem:[#allocation38_spill] sm:$0xff]  ;;  %v7889_v14 = vld [vmem:[#allocation35_spill] sm:$0xff] }
  0xf1   : > { %5769 = vmatprep.mubr.msk.f32.mxu0 %vm520_vm2, %v7885_v50  ;;  %v3444_v25 = vsel %vm657_vm4, %v7889_v14, %v3443_v4  ;;  %v3453_v4 = vrot.slane %v7362_v34, 1  ;;  %v7372_v14 = vld [vmem:[#allocation2 + $0x178] sm:$0x3]  ;;  %v3460_v34 = vrot.slane %v7008_v40, 1 }
  0xf2   : > { %7893 = vst [vmem:[#allocation32_spill] sm:$0xff] %v7372_v14 }
  0xf3   : > { %5549 = vmatmul.mubr.msk.f32.gmra.mrb[4].mxu1 %vm520_vm2, %v6129_v39  ;;  %v6132_v39 = vld [vmem:[#allocation2 + $0x78] sm:$0xff] }
  0xf4   : > { %5770 = vmatmul.mubr.msk.f32.gmra.mrb[18].mxu0 %vm520_vm2, %v3439_v3  ;;  %5551 = vmatprep.mubr.msk.f32.mxu1 %vm520_vm2, %v6130_v27  ;;  %v7891_v3 = vld [vmem:[#allocation42_spill] sm:$0xff]  ;;  %v7892_v27 = vld [vmem:[#allocation39_spill] sm:$0xff] }
  0xf5   : > { %5772 = vmatprep.mubr.msk.f32.mxu0 %vm520_vm2, %v7888_v1  ;;  %v3449_v1 = vsel %vm657_vm4, %v7892_v27, %v3448_v51  ;;  %v3458_v51 = vrot.slane %v7372_v14, 1  ;;  %v7384_v27 = vrot.slane %v7010_v23, 1  ;;  %v3463_v14 = vrot.slane %v7386_v42, 1 }
  0xf7   : > { %5552 = vmatmul.mubr.msk.f32.gmra.mrb[6].mxu1 %vm520_vm2, %v6131_v30  ;;  %v6134_v30 = vld [vmem:[#allocation2 + $0x90] sm:$0xff] }
  0xf8   : > { %5773 = vmatmul.mubr.msk.f32.gmra.mrb[20].mxu0 %vm520_vm2, %v3444_v25  ;;  %5554 = vmatprep.mubr.msk.f32.mxu1 %vm520_vm2, %v6132_v39  ;;  %v7894_v25 = vld [vmem:[#allocation43_spill] sm:$0xff]  ;;  %v7895_v39 = vld [vmem:[#allocation40_spill] sm:$0xff] }
  0xf9   : > { %5775 = vmatprep.mubr.msk.f32.mxu0 %vm520_vm2, %v7891_v3  ;;  %v3454_v3 = vsel %vm657_vm4, %v7895_v39, %v3453_v4  ;;  %v7897_v4 = vld [vmem:[#allocation44_spill] sm:$0xff]  ;;  %v3465_v39 = vrot.slane %v7200_v60, 1 }
  0xfb   : > { %5555 = vmatmul.mubr.msk.f32.gmra.mrb[8].mxu1 %vm520_vm2, %v6133_v17  ;;  %v6135_v17 = vld [vmem:[#allocation2 + $0x98] sm:$0xff] }
  0xfc   : > { %5776 = vmatmul.mubr.msk.f32.gmra.mrb[22].mxu0 %vm520_vm2, %v3449_v1  ;;  %5557 = vmatprep.mubr.msk.f32.mxu1 %vm520_vm2, %v6134_v30  ;;  %v7896_v1 = vld [vmem:[#allocation46_spill] sm:$0xff]  ;;  %v3459_v30 = vsel %vm657_vm4, %v7897_v4, %v3458_v51 }
  0xfd   : > { %5778 = vmatprep.mubr.msk.f32.mxu0 %vm520_vm2, %v7894_v25  ;;  %v3466_v25 = vrot.slane %v7213_v15, 1  ;;  %v3795_v15 = vrot.slane %v7341_v41, 2 }
  0xff   : > { %5558 = vmatmul.mubr.msk.f32.gmra.mrb[10].mxu1 %vm520_vm2, %v6135_v17  ;;  %v7401_v17 = vsel %vm657_vm4, %v3460_v34, %v7384_v27  ;;  %v3467_v34 = vsel %vm657_vm4, %v3465_v39, %v3466_v25 }
 0x100   : > { %5779 = vmatmul.mubr.msk.f32.gmra.mrb[24].mxu0 %vm520_vm2, %v3454_v3  ;;  %5560 = vmatprep.mubr.msk.f32.mxu1 %vm520_vm2, %v6502_v49  ;;  %v7403_v3 = vld [vmem:[#allocation2 + $0x1a8] sm:$0x3]  ;;  %v3464_v49 = vsel %vm657_vm4, %v7384_v27, %v3463_v14  ;;  %v7898_v14 = vrot.slane %v6372_v48, 2 }
 0x101   : > { %5781 = vmatprep.mubr.msk.f32.mxu0 %vm520_vm2, %v7896_v1  ;;  %v3468_v51 = vrot.slane %v7403_v3, 1 }
 0x102   : > { %v3796_v39 = vsel %vm1323_vm5, %v7898_v14, %v3795_v15  ;;  %v7913_v14 = vld [vmem:[#allocation58_spill] sm:$0xff] }
 0x103   : > { %5561 = vmatmul.mubr.msk.f32.gmra.mrb[12].mxu1 %vm520_vm2, %v6136_v59  ;;  %v3797_v59 = vrot.slane %v7202_v13, 2 }
 0x104   : > { %5782 = vmatmul.mubr.msk.f32.gmra.mrb[26].mxu0 %vm520_vm2, %v3459_v30  ;;  %5563 = vmatprep.mubr.msk.f32.mxu1 %vm520_vm2, %v6547_v36  ;;  %v3469_v36 = vsel %vm657_vm4, %v3466_v25, %v3468_v51  ;;  %v7909_v25 = vld [vmem:[#allocation53_spill] sm:$0xff] }
 0x105   : > { %5784 = vmatprep.mubr.msk.f32.mxu0 %vm520_vm2, %v7401_v17 }
 0x107   : > { %5564 = vmatmul.mubr.msk.f32.gmra.mrb[14].mxu1 %vm520_vm2, %v6549_v37  ;;  %v3798_v37 = vsel %vm1323_vm5, %v3795_v15, %v3797_v59  ;;  %v3842_v15 = vrot.slane %v7327_v12, 2  ;;  %v7907_v12 = vld [vmem:[#allocation55_spill] sm:$0xff]  ;;  %v7912_v59 = vld [vmem:[#allocation42_spill] sm:$0xff] }
 0x108   : > { %5785 = vmatmul.mubr.msk.f32.gmra.mrb[28].mxu0 %vm520_vm2, %v3464_v49  ;;  %5566 = vmatprep.mubr.msk.f32.mxu1 %vm520_vm2, %v6581_v8  ;;  %v3802_v8 = vrot.slane %v7217_v21, 2  ;;  %v7910_v49 = vld [vmem:[#allocation57_spill] sm:$0xff] }
 0x109   : > { %5787 = vmatprep.mubr.msk.f32.mxu0 %vm520_vm2, %v3467_v34  ;;  %v2218_v51 = vrot.slane %v7910_v49, 1  ;;  %v7911_v34 = vld [vmem:[#allocation30_spill] sm:$0xff] }
 0x10a   : > { %v3803_v48 = vsel %vm1323_vm5, %v7844_v2, %v3802_v8  ;;  %v3837_v2 = vrot.slane %v7317_v38, 2  ;;  %v7906_v38 = vld [vmem:[#allocation38_spill] sm:$0xff]  ;;  %v7915_v8 = vld [vmem:[#allocation56_spill] sm:$0xff] }
 0x10b   : > { %5567 = vmatmul.mubr.msk.f32.gmra.mrb[16].mxu1 %vm520_vm2, %v6583_v24  ;;  %v3807_v24 = vrot.slane %v7232_v28, 2  ;;  %v7903_v28 = vld [vmem:[#allocation50_spill] sm:$0xff] }
 0x10c   : > { %5788 = vmatmul.mubr.msk.f32.gmra.mrb[30].mxu0 %vm520_vm2, %v3469_v36  ;;  %5569 = vmatprep.mubr.msk.f32.mxu1 %vm520_vm2, %v6611_v62  ;;  %v3852_v36 = vrot.slane %v7911_v34, 2 }
 0x10d   : > { %5792 = vmatprep.mubr.msk.f32.mxu0 %vm520_vm2, %v3796_v39  ;;  %v3808_v62 = vsel %vm1323_vm5, %v7846_v31, %v3807_v24  ;;  %v7914_v39 = vld [vmem:[#allocation39_spill] sm:$0xff]  ;;  %v7916_v24 = vld [vmem:[#allocation60_spill] sm:$0xff] }
 0x10f   : > { %5570 = vmatmul.mubr.msk.f32.gmra.mrb[18].mxu1 %vm520_vm2, %v6613_v9  ;;  %v3812_v9 = vrot.slane %v7248_v32, 2  ;;  %v7904_v32 = vld [vmem:[#allocation54_spill] sm:$0xff] }
 0x110   : > { %5793 = vmatmul.mubr.msk.f32.vlgmr.msra.gmra.mrb[0].mxu0 %vm520_vm2, %v3798_v37  ;;  %5572 = vmatprep.mubr.msk.f32.mxu1 %vm520_vm2, %v6645_v54  ;;  %v3822_v54 = vrot.slane %v7276_v29, 2  ;;  %v2219_v37 = vsel %vm657_vm4, %v7914_v39, %v2218_v51 }
 0x111   : > { %5795 = vmatprep.mubr.msk.f32.mxu0 %vm520_vm2, %v7843_v7 }
 0x113   : > { %5573 = vmatmul.mubr.msk.f32.gmra.mrb[20].mxu1 %vm520_vm2, %v6647_v10  ;;  %v3813_v10 = vsel %vm1323_vm5, %v6743_v56, %v3812_v9  ;;  %v6138_v56 = vld [vmem:[#allocation2 + $0xe0] sm:$0xff] }
 0x114   : > { %5796 = vmatmul.mubr.msk.f32.gmra.mrb[2].mxu0 %vm520_vm2, %v3803_v48  ;;  %5575 = vmatprep.mubr.msk.f32.mxu1 %vm520_vm2, %v6682_v33  ;;  %v3817_v33 = vrot.slane %v7262_v20, 2  ;;  %v7905_v20 = vld [vmem:[#allocation34_spill] sm:$0xff]  ;;  %v3853_v48 = vsel %vm1323_vm5, %v7915_v8, %v3852_v36  ;;  %v7917_v9 = vld [vmem:[#allocation9_spill] sm:$0xff] }
 0x115   : > { %5798 = vmatprep.mubr.msk.f32.mxu0 %vm520_vm2, %v6739_v35 }
 0x117   : > { %5576 = vmatmul.mubr.msk.f32.gmra.mrb[22].mxu1 %vm520_vm2, %v6684_v58  ;;  %v6137_v58 = vld [vmem:[#allocation2 + $0xd8] sm:$0xff] }
 0x118   : > { %5799 = vmatmul.mubr.msk.f32.gmra.mrb[4].mxu0 %vm520_vm2, %v3808_v62  ;;  %5578 = vmatprep.mubr.msk.f32.mxu1 %vm520_vm2, %v6721_v11  ;;  %v3818_v11 = vsel %vm1323_vm5, %v6797_v45, %v3817_v33  ;;  %v2195_v35 = vrot.slane %v6137_v58, 1  ;;  %v2223_v62 = vrot.slane %v7916_v24, 1  ;;  %v7918_v33 = vld [vmem:[#allocation43_spill] sm:$0xff] }
 0x119   : > { %5801 = vmatprep.mubr.msk.f32.mxu0 %vm520_vm2, %v6793_v63 }
 0x11b   : > { %5579 = vmatmul.mubr.msk.f32.gmra.mrb[24].mxu1 %vm520_vm2, %v6723_v55  ;;  %v3823_v55 = vsel %vm1323_vm5, %v6833_v46, %v3822_v54  ;;  %v3832_v46 = vrot.slane %v7304_v53, 2  ;;  %v3847_v53 = vrot.slane %v7905_v20, 2  ;;  %v7920_v54 = vld [vmem:[#allocation40_spill] sm:$0xff] }
 0x11c   : > { %5802 = vmatmul.mubr.msk.f32.gmra.mrb[6].mxu0 %vm520_vm2, %v3813_v10  ;;  %5581 = vmatprep.mubr.msk.f32.mxu1 %vm520_vm2, %v6755_v57  ;;  %v2196_v57 = vrot.slane %v6138_v56, 1  ;;  %v3857_v10 = vrot.slane %v7917_v9, 2 }
 0x11d   : > { %5804 = vmatprep.mubr.msk.f32.mxu0 %vm520_vm2, %v6829_v18  ;;  %v3827_v18 = vrot.slane %v7290_v47, 2  ;;  %v2213_v47 = vrot.slane %v7904_v32, 1  ;;  %v3848_v30 = vsel %vm1323_vm5, %v7909_v25, %v3847_v53 }
 0x11e   : > { %v2197_v45 = vsel %vm657_vm4, %v2195_v35, %v2196_v57  ;;  %v7922_v35 = vld [vmem:[#allocation63_spill] sm:$0xff] }
 0x11f   : > { %5582 = vmatmul.mubr.msk.f32.gmra.mrb[26].mxu1 %vm520_vm2, %v6757_v5  ;;  %v7899_v5 = vld [vmem:[#allocation47_spill] sm:$0xff]  ;;  %v2228_v56 = vrot.slane %v7922_v35, 1 }
 0x120   : > { %5805 = vmatmul.mubr.msk.f32.gmra.mrb[8].mxu0 %vm520_vm2, %v3818_v11  ;;  %5584 = vmatprep.mubr.msk.f32.mxu1 %vm520_vm2, %v6799_v44  ;;  %v2198_v63 = vrot.slane %v7899_v5, 1  ;;  %v3828_v44 = vsel %vm1323_vm5, %v6862_v16, %v3827_v18  ;;  %v3833_v16 = vsel %vm1323_vm5, %v6881_v0, %v3832_v46  ;;  %v3838_v0 = vsel %vm1323_vm5, %v7856_v43, %v3837_v2  ;;  %v7919_v11 = vld [vmem:[#allocation61_spill] sm:$0xff]  ;;  %v7921_v18 = vld [vmem:[#allocation59_spill] sm:$0xff]  ;;  %v7925_v46 = vld [vmem:[#allocation62_spill] sm:$0xff] }
 0x121   : > { %5807 = vmatprep.mubr.msk.f32.mxu0 %vm520_vm2, %v6858_v19  ;;  %v6139_v19 = vld [vmem:[#allocation2 + $0xf0] sm:$0xff]  ;;  %v3843_v43 = vsel %vm1323_vm5, %v7903_v28, %v3842_v15  ;;  %v3858_v58 = vsel %vm1323_vm5, %v7921_v18, %v3857_v10 }
 0x122   : > { %v2200_v41 = vrot.slane %v6139_v19, 1  ;;  %v7926_v19 = vld [vmem:[#allocation66_spill] sm:$0xff] }
 0x123   : > { %5585 = vmatmul.mubr.msk.f32.gmra.mrb[28].mxu1 %vm520_vm2, %v6801_v6  ;;  %v6140_v6 = vld [vmem:[#allocation2 + $0xf8] sm:$0xff] }
 0x124   : > { %5808 = vmatmul.mubr.msk.f32.gmra.mrb[10].mxu0 %vm520_vm2, %v3823_v55  ;;  %5587 = vmatprep.mubr.msk.f32.mxu1 %vm520_vm2, %v7008_v40  ;;  %v2201_v29 = vrot.slane %v6140_v6, 1  ;;  %v7900_v40 = vld [vmem:[#allocation49_spill] sm:$0xff]  ;;  %v2224_v55 = vsel %vm657_vm4, %v7920_v54, %v2223_v62  ;;  %v3867_v6 = vrot.slane %v7386_v42, 2 }
 0x125   : > { %5810 = vmatprep.mubr.msk.f32.mxu0 %vm520_vm2, %v6877_v61  ;;  %v2199_v61 = vsel %vm657_vm4, %v2196_v57, %v2198_v63  ;;  %v2203_v7 = vrot.slane %v7900_v40, 1  ;;  %v7923_v57 = vld [vmem:[#allocation32_spill] sm:$0xff]  ;;  %v7929_v40 = vld [vmem:[#allocation65_spill] sm:$0xff] }
 0x126   : > { %v2202_v31 = vsel %vm657_vm4, %v2200_v41, %v2201_v29  ;;  %v3862_v5 = vrot.slane %v7923_v57, 2  ;;  %v7924_v63 = vld [vmem:[#allocation64_spill] sm:$0xff]  ;;  %v2233_v41 = vrot.slane %v7926_v19, 1  ;;  %v3868_v42 = vsel %vm1323_vm5, %v7929_v40, %v3867_v6 }
 0x127   : > { %5588 = vmatmul.mubr.msk.f32.gmra.mrb[30].mxu1 %vm520_vm2, %v7010_v23  ;;  %v7901_v23 = vld [vmem:[#allocation51_spill] sm:$0xff] }
 0x128   : > { %5811 = vmatmul.mubr.msk.f32.gmra.mrb[12].mxu0 %vm520_vm2, %v3828_v44  ;;  %5616 = vmatprep.mubr.msk.f32.mxu1 %vm520_vm2, %v2197_v45  ;;  %v2208_v13 = vrot.slane %v7901_v23, 1  ;;  %v2229_v44 = vsel %vm657_vm4, %v7897_v4, %v2228_v56  ;;  %v3863_v45 = vsel %vm1323_vm5, %v7925_v46, %v3862_v5  ;;  %v2234_v4 = vsel %vm657_vm4, %v7384_v27, %v2233_v41 }
 0x129   : > { %5813 = vmatprep.mubr.msk.f32.mxu0 %vm520_vm2, %v6896_v22  ;;  %v2204_v22 = vsel %vm657_vm4, %v2201_v29, %v2203_v7  ;;  %v3869_v29 = vrot.slane %v7200_v60, 2  ;;  %v3872_v60 = vrot.slane %v7403_v3, 2 }
 0x12b   : > { %5617 = vmatmul.mubr.msk.f32.vlgmr.msra.gmra.mrb[16].mxu1 %vm520_vm2, %v2199_v61  ;;  %v7927_v61 = vld [vmem:[#allocation5_spill] sm:$0xff] }
 0x12c   : > { %5814 = vmatmul.mubr.msk.f32.gmra.mrb[14].mxu0 %vm520_vm2, %v3833_v16  ;;  %5619 = vmatprep.mubr.msk.f32.mxu1 %vm520_vm2, %v2202_v31  ;;  %v3870_v16 = vrot.slane %v7927_v61, 2 }
 0x12d   : > { %5816 = vmatprep.mubr.msk.f32.mxu0 %vm520_vm2, %v6918_v26  ;;  %v7902_v26 = vld [vmem:[#allocation29_spill] sm:$0xff] }
 0x12e   : > { %v2209_v21 = vsel %vm657_vm4, %v7902_v26, %v2208_v13  ;;  %v3871_v7 = vsel %vm1323_vm5, %v3869_v29, %v3870_v16 }
 0x12f   : > { %5620 = vmatmul.mubr.msk.f32.gmra.mrb[18].mxu1 %vm520_vm2, %v2204_v22 }
 0x130   : > { %5817 = vmatmul.mubr.msk.f32.gmra.mrb[16].mxu0 %vm520_vm2, %v3838_v0  ;;  %5622 = vmatprep.mubr.msk.f32.mxu1 %vm520_vm2, %v7885_v50 }
 0x131   : > { %5819 = vmatprep.mubr.msk.f32.mxu0 %vm520_vm2, %v7860_v52  ;;  %v7908_v52 = vld [vmem:[#allocation35_spill] sm:$0xff] }
 0x132   : > { %v2214_v50 = vsel %vm657_vm4, %v7908_v52, %v2213_v47 }
 0x133   : > { %5623 = vmatmul.mubr.msk.f32.gmra.mrb[20].mxu1 %vm520_vm2, %v2209_v21 }
 0x134   : > { %5820 = vmatmul.mubr.msk.f32.gmra.mrb[18].mxu0 %vm520_vm2, %v3843_v43  ;;  %5625 = vmatprep.mubr.msk.f32.mxu1 %vm520_vm2, %v7906_v38  ;;  %v7609_v38 = vld [vmem:[%s7682_s4] ss:$0 sm:$0xff] }
 0x135   : > { %5822 = vmatprep.mubr.msk.f32.mxu0 %vm520_vm2, %v7907_v12 }
 0x137   : > { %5626 = vmatmul.mubr.msk.f32.gmra.mrb[22].mxu1 %vm520_vm2, %v2214_v50 }
 0x138   : > { %5823 = vmatmul.mubr.msk.f32.gmra.mrb[20].mxu0 %vm520_vm2, %v3848_v30  ;;  %5628 = vmatprep.mubr.msk.f32.mxu1 %vm520_vm2, %v7912_v59 }
 0x139   : > { %5825 = vmatprep.mubr.msk.f32.mxu0 %vm520_vm2, %v7913_v14 }
 0x13b   : > { %5629 = vmatmul.mubr.msk.f32.gmra.mrb[24].mxu1 %vm520_vm2, %v2219_v37 }
 0x13c   : > { %5826 = vmatmul.mubr.msk.f32.gmra.mrb[22].mxu0 %vm520_vm2, %v3853_v48  ;;  %5631 = vmatprep.mubr.msk.f32.mxu1 %vm520_vm2, %v7918_v33 }
 0x13d   : > { %5828 = vmatprep.mubr.msk.f32.mxu0 %vm520_vm2, %v7919_v11 }
 0x13f   : > { %5632 = vmatmul.mubr.msk.f32.gmra.mrb[26].mxu1 %vm520_vm2, %v2224_v55 }
 0x140   : > { %5829 = vmatmul.mubr.msk.f32.gmra.mrb[24].mxu0 %vm520_vm2, %v3858_v58  ;;  %5634 = vmatprep.mubr.msk.f32.mxu1 %vm520_vm2, %v7896_v1  ;;  %v7928_v1 = vld [vmem:[#allocation67_spill] sm:$0xff] }
 0x141   : > { %5831 = vmatprep.mubr.msk.f32.mxu0 %vm520_vm2, %v7924_v63 }
 0x143   : > { %5635 = vmatmul.mubr.msk.f32.gmra.mrb[28].mxu1 %vm520_vm2, %v2229_v44 }
 0x144   : > { %5832 = vmatmul.mubr.msk.f32.gmra.mrb[26].mxu0 %vm520_vm2, %v3863_v45  ;;  %5637 = vmatprep.mubr.msk.f32.mxu1 %vm520_vm2, %v7401_v17  ;;  %v3873_v17 = vsel %vm1323_vm5, %v3870_v16, %v3872_v60 }
 0x145   : > { %5834 = vmatprep.mubr.msk.f32.mxu0 %vm520_vm2, %v7928_v1 }
 0x147   : > { %5638 = vmatmul.mubr.msk.f32.gmra.mrb[30].mxu1 %vm520_vm2, %v2234_v4 }
 0x148   : > { %5835 = vmatmul.mubr.msk.f32.gmra.mrb[28].mxu0 %vm520_vm2, %v3868_v42 }
 0x149   : > { %5837 = vmatprep.mubr.msk.f32.mxu0 %vm520_vm2, %v3871_v7 }
 0x14c   : > { %5838 = vmatmul.mubr.msk.f32.gmra.mrb[30].mxu0 %vm520_vm2, %v3873_v17 }
 0x1be   : > { %v5544_v2 = vpop.f32.mrb[0].mxu1 }
 0x1bf   : > { %v1948_v31 = vpop.f32.mrb[1].mxu1 }
 0x1c2   : > { %v5547_v27 = vpop.f32.mrb[2].mxu1 }
 0x1c3   : > { %v1958_v22 = vpop.f32.mrb[3].mxu1 }
 0x1c6   : > { %v5550_v0 = vpop.f32.mrb[4].mxu1 }
 0x1c7   : > { %v1968_v23 = vpop.f32.mrb[5].mxu1 }
 0x1ca   : > { %v5553_v13 = vpop.f32.mrb[6].mxu1 }
 0x1cb   : > { %v1978_v3 = vpop.f32.mrb[7].mxu1 }
 0x1ce   : > { %v5556_v15 = vpop.f32.mrb[8].mxu1 }
 0x1cf   : > { %v1988_v26 = vpop.f32.mrb[9].mxu1 }
 0x1d2   : > { %v5559_v21 = vpop.f32.mrb[10].mxu1 }
 0x1d3   : > { %v1998_v28 = vpop.f32.mrb[11].mxu1 }
 0x1d6   : > { %v7598_v43 = vpop.f32.mrb[12].mxu1 }
 0x1d7   : > { %v7600_v32 = vpop.f32.mrb[13].mxu1 }
 0x1da   : > { %v7602_v47 = vpop.f32.mrb[14].mxu1 }
 0x1db   : > { %v7604_v20 = vpop.f32.mrb[15].mxu1 }
 0x1e3   : > { %v5794_v53 = vpop.f32.mrb[0].mxu0 }
 0x1e4   : > { %v5842_v12 = vadd.f32 %v5794_v53, %v5544_v2  ;;  %v4010_v52 = vpop.f32.mrb[1].mxu0 }
 0x1e5   : > { %v5843_v50 = vadd.f32 %v4010_v52, %v1948_v31 }
 0x1e6   : > { %v4209_v25 = vadd.f32 %v5842_v12, %v7609_v38 }
 0x1e7   : > { %v4208_v30 = vadd.f32 %v5843_v50, %v7609_v38  ;;  %v5797_v49 = vpop.f32.mrb[2].mxu0 }
 0x1e8   : > { %v4241_v51 = vmax.f32 %v4209_v25, 0.0  ;;  %v5844_v34 = vadd.f32 %v5797_v49, %v5547_v27  ;;  %v4020_v36 = vpop.f32.mrb[3].mxu0 }
 0x1e9   : > { %v4240_v59 = vmax.f32 %v4208_v30, 0.0  ;;  %v5845_v14 = vadd.f32 %v4020_v36, %v1958_v22 }
 0x1ea   : > { %v4211_v39 = vadd.f32 %v5844_v34, %v7609_v38 }
 0x1eb   : > { %v5001_v37 = vpack.c.bf16 %v4241_v51, %v4240_v59  ;;  %v4210_v8 = vadd.f32 %v5845_v14, %v7609_v38  ;;  %v5800_v48 = vpop.f32.mrb[4].mxu0 }
 0x1ec   : > { %v4243_v24 = vmax.f32 %v4211_v39, 0.0  ;;  %v5846_v62 = vadd.f32 %v5800_v48, %v5550_v0  ;;  %v4030_v9 = vpop.f32.mrb[5].mxu0 }
 0x1ed   : > { %5002 = vst [vmem:[%s7617_s2] sm:$0xff] %v5001_v37   ;;  %v4242_v10 = vmax.f32 %v4210_v8, 0.0  ;;  %v5847_v33 = vadd.f32 %v4030_v9, %v1968_v23 }
 0x1ee   : > { %v4213_v11 = vadd.f32 %v5846_v62, %v7609_v38 }
 0x1ef   : > { %v5006_v54 = vpack.c.bf16 %v4243_v24, %v4242_v10  ;;  %v4212_v55 = vadd.f32 %v5847_v33, %v7609_v38  ;;  %v5803_v18 = vpop.f32.mrb[6].mxu0 }
 0x1f0   : > { %v4245_v58 = vmax.f32 %v4213_v11, 0.0  ;;  %v5848_v35 = vadd.f32 %v5803_v18, %v5553_v13  ;;  %v4040_v56 = vpop.f32.mrb[7].mxu0 }
 0x1f1   : > { %5078 = vst [vmem:[%s7617_s2 + $0x8] sm:$0xff] %v5006_v54   ;;  %v4244_v57 = vmax.f32 %v4212_v55, 0.0  ;;  %v5849_v5 = vadd.f32 %v4040_v56, %v1978_v3 }
 0x1f2   : > { %v4215_v63 = vadd.f32 %v5848_v35, %v7609_v38 }
 0x1f3   : > { %v5011_v44 = vpack.c.bf16 %v4245_v58, %v4244_v57  ;;  %v4214_v46 = vadd.f32 %v5849_v5, %v7609_v38  ;;  %v5806_v45 = vpop.f32.mrb[8].mxu0 }
 0x1f4   : > { %v4247_v19 = vmax.f32 %v4215_v63, 0.0  ;;  %v5850_v41 = vadd.f32 %v5806_v45, %v5556_v15  ;;  %v4050_v6 = vpop.f32.mrb[9].mxu0 }
 0x1f5   : > { %5079 = vst [vmem:[%s7617_s2 + $0x10] sm:$0xff] %v5011_v44   ;;  %v4246_v29 = vmax.f32 %v4214_v46, 0.0  ;;  %v5851_v61 = vadd.f32 %v4050_v6, %v1988_v26 }
 0x1f6   : > { %v4217_v16 = vadd.f32 %v5850_v41, %v7609_v38 }
 0x1f7   : > { %v5016_v1 = vpack.c.bf16 %v4247_v19, %v4246_v29  ;;  %v4216_v4 = vadd.f32 %v5851_v61, %v7609_v38  ;;  %v5809_v40 = vpop.f32.mrb[10].mxu0 }
 0x1f8   : > { %v4249_v42 = vmax.f32 %v4217_v16, 0.0  ;;  %v5852_v60 = vadd.f32 %v5809_v40, %v5559_v21  ;;  %v4060_v7 = vpop.f32.mrb[11].mxu0 }
 0x1f9   : > { %5080 = vst [vmem:[%s7617_s2 + $0x18] sm:$0xff] %v5016_v1   ;;  %v4248_v17 = vmax.f32 %v4216_v4, 0.0  ;;  %v5853_v2 = vadd.f32 %v4060_v7, %v1998_v28 }
 0x1fa   : > { %v4219_v31 = vadd.f32 %v5852_v60, %v7609_v38 }
 0x1fb   : > { %v5021_v27 = vpack.c.bf16 %v4249_v42, %v4248_v17  ;;  %v4218_v22 = vadd.f32 %v5853_v2, %v7609_v38  ;;  %v5812_v0 = vpop.f32.mrb[12].mxu0 }
 0x1fc   : > { %v4251_v23 = vmax.f32 %v4219_v31, 0.0  ;;  %v5854_v13 = vadd.f32 %v5812_v0, %v7598_v43  ;;  %v4070_v3 = vpop.f32.mrb[13].mxu0 }
 0x1fd   : > { %5081 = vst [vmem:[%s7617_s2 + $0x20] sm:$0xff] %v5021_v27   ;;  %v4250_v15 = vmax.f32 %v4218_v22, 0.0  ;;  %v5855_v26 = vadd.f32 %v4070_v3, %v7600_v32 }
 0x1fe   : > { %v4221_v21 = vadd.f32 %v5854_v13, %v7609_v38  ;;  %v5618_v12 = vpop.f32.mrb[16].mxu1 }
 0x1ff   : > { %v5026_v53 = vpack.c.bf16 %v4251_v23, %v4250_v15  ;;  %v4220_v28 = vadd.f32 %v5855_v26, %v7609_v38  ;;  %v5815_v52 = vpop.f32.mrb[14].mxu0  ;;  %v2448_v30 = vpop.f32.mrb[17].mxu1 }
 0x200   : > { %v4253_v50 = vmax.f32 %v4221_v21, 0.0  ;;  %v5856_v25 = vadd.f32 %v5815_v52, %v7602_v47  ;;  %v4080_v49 = vpop.f32.mrb[15].mxu0 }
 0x201   : > { %5082 = vst [vmem:[%s7617_s2 + $0x28] sm:$0xff] %v5026_v53   ;;  %v4252_v43 = vmax.f32 %v4220_v28, 0.0  ;;  %v5857_v51 = vadd.f32 %v4080_v49, %v7604_v20 }
 0x202   : > { %v4223_v34 = vadd.f32 %v5856_v25, %v7609_v38  ;;  %v5621_v59 = vpop.f32.mrb[18].mxu1 }
 0x203   : > { %v5031_v32 = vpack.c.bf16 %v4253_v50, %v4252_v43  ;;  %v4222_v36 = vadd.f32 %v5857_v51, %v7609_v38  ;;  %v5818_v14 = vpop.f32.mrb[16].mxu0  ;;  %v2458_v8 = vpop.f32.mrb[19].mxu1 }
 0x204   : > { %v4255_v39 = vmax.f32 %v4223_v34, 0.0  ;;  %v5858_v37 = vadd.f32 %v5818_v14, %v5618_v12  ;;  %v4090_v48 = vpop.f32.mrb[17].mxu0 }
 0x205   : > { %5083 = vst [vmem:[%s7617_s2 + $0x30] sm:$0xff] %v5031_v32   ;;  %v4254_v47 = vmax.f32 %v4222_v36, 0.0  ;;  %v5859_v24 = vadd.f32 %v4090_v48, %v2448_v30 }
 0x206   : > { %v4225_v62 = vadd.f32 %v5858_v37, %v7609_v38  ;;  %v5624_v10 = vpop.f32.mrb[20].mxu1 }
 0x207   : > { %v5036_v9 = vpack.c.bf16 %v4255_v39, %v4254_v47  ;;  %v4224_v20 = vadd.f32 %v5859_v24, %v7609_v38  ;;  %v5821_v33 = vpop.f32.mrb[18].mxu0  ;;  %v2468_v55 = vpop.f32.mrb[21].mxu1 }
 0x208   : > { %v4257_v11 = vmax.f32 %v4225_v62, 0.0  ;;  %v5860_v54 = vadd.f32 %v5821_v33, %v5621_v59  ;;  %v4100_v18 = vpop.f32.mrb[19].mxu0 }
 0x209   : > { %5084 = vst [vmem:[%s7617_s2 + $0x38] sm:$0xff] %v5036_v9   ;;  %v4256_v58 = vmax.f32 %v4224_v20, 0.0  ;;  %v5861_v35 = vadd.f32 %v4100_v18, %v2458_v8 }
 0x20a   : > { %v4227_v56 = vadd.f32 %v5860_v54, %v7609_v38  ;;  %v5627_v63 = vpop.f32.mrb[22].mxu1 }
 0x20b   : > { %v5041_v57 = vpack.c.bf16 %v4257_v11, %v4256_v58  ;;  %v4226_v5 = vadd.f32 %v5861_v35, %v7609_v38  ;;  %v5824_v44 = vpop.f32.mrb[20].mxu0  ;;  %v2478_v19 = vpop.f32.mrb[23].mxu1 }
 0x20c   : > { %v4259_v46 = vmax.f32 %v4227_v56, 0.0  ;;  %v5862_v45 = vadd.f32 %v5824_v44, %v5624_v10  ;;  %v4110_v41 = vpop.f32.mrb[21].mxu0 }
 0x20d   : > { %5085 = vst [vmem:[%s7617_s2 + $0x40] sm:$0xff] %v5041_v57   ;;  %v4258_v6 = vmax.f32 %v4226_v5, 0.0  ;;  %v5863_v29 = vadd.f32 %v4110_v41, %v2468_v55 }
 0x20e   : > { %v4229_v61 = vadd.f32 %v5862_v45, %v7609_v38  ;;  %v5630_v4 = vpop.f32.mrb[24].mxu1 }
 0x20f   : > { %v5046_v16 = vpack.c.bf16 %v4259_v46, %v4258_v6  ;;  %v4228_v1 = vadd.f32 %v5863_v29, %v7609_v38  ;;  %v5827_v40 = vpop.f32.mrb[22].mxu0  ;;  %v2488_v7 = vpop.f32.mrb[25].mxu1 }
 0x210   : > { %v4261_v42 = vmax.f32 %v4229_v61, 0.0  ;;  %v5864_v60 = vadd.f32 %v5827_v40, %v5627_v63  ;;  %v4120_v17 = vpop.f32.mrb[23].mxu0 }
 0x211   : > { %5086 = vst [vmem:[%s7617_s2 + $0x48] sm:$0xff] %v5046_v16   ;;  %v4260_v2 = vmax.f32 %v4228_v1, 0.0  ;;  %v5865_v31 = vadd.f32 %v4120_v17, %v2478_v19 }
 0x212   : > { %v4231_v27 = vadd.f32 %v5864_v60, %v7609_v38  ;;  %v5633_v23 = vpop.f32.mrb[26].mxu1 }
 0x213   : > { %v5051_v22 = vpack.c.bf16 %v4261_v42, %v4260_v2  ;;  %v4230_v0 = vadd.f32 %v5865_v31, %v7609_v38  ;;  %v5830_v13 = vpop.f32.mrb[24].mxu0  ;;  %v2498_v26 = vpop.f32.mrb[27].mxu1 }
 0x214   : > { %v4263_v3 = vmax.f32 %v4231_v27, 0.0  ;;  %v5866_v15 = vadd.f32 %v5830_v13, %v5630_v4  ;;  %v4130_v21 = vpop.f32.mrb[25].mxu0 }
 0x215   : > { %5087 = vst [vmem:[%s7617_s2 + $0x50] sm:$0xff] %v5051_v22   ;;  %v4262_v53 = vmax.f32 %v4230_v0, 0.0  ;;  %v5867_v28 = vadd.f32 %v4130_v21, %v2488_v7 }
 0x216   : > { %v4233_v12 = vadd.f32 %v5866_v15, %v7609_v38  ;;  %v5636_v25 = vpop.f32.mrb[28].mxu1 }
 0x217   : > { %v5056_v52 = vpack.c.bf16 %v4263_v3, %v4262_v53  ;;  %v4232_v50 = vadd.f32 %v5867_v28, %v7609_v38  ;;  %v5833_v30 = vpop.f32.mrb[26].mxu0  ;;  %v2508_v51 = vpop.f32.mrb[29].mxu1 }
 0x218   : > { %v4265_v49 = vmax.f32 %v4233_v12, 0.0  ;;  %v5868_v43 = vadd.f32 %v5833_v30, %v5633_v23  ;;  %v4140_v34 = vpop.f32.mrb[27].mxu0 }
 0x219   : > { %5088 = vst [vmem:[%s7617_s2 + $0x58] sm:$0xff] %v5056_v52   ;;  %v4264_v32 = vmax.f32 %v4232_v50, 0.0  ;;  %v5869_v36 = vadd.f32 %v4140_v34, %v2498_v26 }
 0x21a   : > { %v4235_v59 = vadd.f32 %v5868_v43, %v7609_v38  ;;  %v5639_v37 = vpop.f32.mrb[30].mxu1 }
 0x21b   : > { %v5061_v14 = vpack.c.bf16 %v4265_v49, %v4264_v32  ;;  %v4234_v39 = vadd.f32 %v5869_v36, %v7609_v38  ;;  %v5836_v8 = vpop.f32.mrb[28].mxu0  ;;  %v2518_v24 = vpop.f32.mrb[31].mxu1 }
 0x21c   : > { %v4267_v48 = vmax.f32 %v4235_v59, 0.0  ;;  %v5870_v47 = vadd.f32 %v5836_v8, %v5636_v25  ;;  %v4150_v62 = vpop.f32.mrb[29].mxu0 }
 0x21d   : > { %5089 = vst [vmem:[%s7617_s2 + $0x60] sm:$0xff] %v5061_v14   ;;  %v4266_v9 = vmax.f32 %v4234_v39, 0.0  ;;  %v5871_v20 = vadd.f32 %v4150_v62, %v2508_v51 }
 0x21e   : > { %v4237_v10 = vadd.f32 %v5870_v47, %v7609_v38 }
 0x21f   : > { %v5066_v33 = vpack.c.bf16 %v4267_v48, %v4266_v9  ;;  %v4236_v11 = vadd.f32 %v5871_v20, %v7609_v38  ;;  %v5839_v54 = vpop.f32.mrb[30].mxu0 }
 0x220   : > { %v4269_v55 = vmax.f32 %v4237_v10, 0.0  ;;  %v5872_v18 = vadd.f32 %v5839_v54, %v5639_v37  ;;  %v4160_v58 = vpop.f32.mrb[31].mxu0 }
 0x221   : > { %5090 = vst [vmem:[%s7617_s2 + $0x68] sm:$0xff] %v5066_v33   ;;  %v4268_v35 = vmax.f32 %v4236_v11, 0.0  ;;  %v5873_v56 = vadd.f32 %v4160_v58, %v2518_v24 }
 0x222   : > { %v4239_v57 = vadd.f32 %v5872_v18, %v7609_v38 }
 0x223   : > { %v5071_v5 = vpack.c.bf16 %v4269_v55, %v4268_v35  ;;  %v4238_v63 = vadd.f32 %v5873_v56, %v7609_v38 }
 0x224   : > { %v4271_v44 = vmax.f32 %v4239_v57, 0.0 }
 0x225   : > { %5091 = vst [vmem:[%s7617_s2 + $0x70] sm:$0xff] %v5071_v5   ;;  %v4270_v46 = vmax.f32 %v4238_v63, 0.0 }
 0x227   : > { %v5076_v45 = vpack.c.bf16 %v4271_v44, %v4270_v46 }
 0x229   : > { %5092 = vst [vmem:[%s7617_s2 + $0x78] sm:$0xff] %v5076_v45  }
 0x22a PF: > { %s15_s20 = sadd.s32 1, %s6163_s20   ;;  %s7930_s18 = smov %s6159_s19 }
 0x22b   : > { %p12_p5 = scmp.ge.s32.totalorder %s15_s20, 4   ;;  %s7931_s19 = smov %s7933_s1 }
 0x22d   :  { %14 = sbr.rel (!%p12_p5) target bundleno = 2 (0x2), region = 87 }

// kernel: optimized_block_forward.3
= control target key start
LH: loop header
LB: loop body
LE: loop exit
PB: predicated region body
PF: predicated region fallthrough
CT: control target
= control target key end

     0   :  { %13 = vsyncpa [#allocation4], 0  ;;  %s10165_s0 = inlined_call_operand.vmem [shape: bf16[2,16,16,128], index: 0, kind: input, shape index: {}, may-alias: {0,1,2}]   ;;  %s10166_s1 = inlined_call_operand.vmem [shape: bf16[2,16,16,128], index: 1, kind: input, shape index: {}, may-alias: {0,1,2}]   ;;  %s10167_s2 = inlined_call_operand.vmem [shape: bf16[2,16,16,128], index: 2, kind: input, shape index: {}, may-alias: {0,1,2}]   ;;  %s10168_s3 = inlined_call_operand.vmem [shape: f32[2,8,8,3], index: 3, kind: input, shape index: {}]   ;;  %s10169_s4 = inlined_call_operand.vmem [shape: bf16[3,384,128], index: 4, kind: input, shape index: {}]   ;;  %s10170_s5 = inlined_call_operand.vmem [shape: f32[1,128], index: 5, kind: input, shape index: {}]   ;;  %s10171_s6 = inlined_call_operand.vmem [shape: f32[3,128], index: 6, kind: input, shape index: {}]   ;;  %s10172_s7 = inlined_call_operand.vmem [shape: f32[1,128], index: 7, kind: input, shape index: {}]   ;;  %s10173_s8 = inlined_call_operand.hbm [shape: f32[2,8,8,128], index: 8, kind: output, shape index: {}]  }
   0x1   :  { %15 = vsyncpa [#allocation4 + $0x1], 0  ;;  %s7795_s2 = smov 0   ;;  %s7797_s26 = smov 0  }
   0x2   :  { %s7799_s27 = smov 0   ;;  %s7801_s28 = smov 0  }
   0x3   :  { %s7803_s29 = smov 0   ;;  %s7805_s30 = smov 0  }
   0x4 LB: > { %s6364_s9 = sadd.s32 4294967295, %s7743_s30   ;;  %s6365_s10 = sadd.s32 4294967294, %s7743_s30   ;;  %s7743_s30 = sphi %s7805_s30, %s21_s30   ;;  %s7739_s29 = sphi %s7803_s29, %s10268_s29   ;;  %s7735_s28 = sphi %s7801_s28, %s10267_s28   ;;  %s7731_s27 = sphi %s7799_s27, %s10266_s27   ;;  %s7727_s26 = sphi %s7797_s26, %s10265_s26   ;;  %s7723_s2 = sphi %s7795_s2, %s10264_s2  }
   0x5   : > { %s40_s11 = sadd.s32 1, %s7739_s29  ;;  %s283_s12 = sadd.s32 1, %s7731_s27 }
   0x6   : > { %p42_p0 = scmp.ge.s32.totalorder %s40_s11, 2  ;;  %p293_p1 = scmp.ne.s32.totalorder %s7731_s27, %s7727_s26 }
   0x7   : > { %p294_p2 = scmp.eq.s32.totalorder %s6364_s9, 1  ;;  %p299_p3 = scmp.ne.s32.totalorder %s7727_s26, %s7723_s2 }
   0x8   : > { %s10270_s11 = smov (%p42_p0, %s40_s11), 0  ;;  %p300_p5 = scmp.eq.s32.totalorder %s6365_s10, 1 }
   0x9   : > { %p7835_p4 = por %p294_p2, %p293_p1  ;;  %s276_s14 = ssub.s32 %s7739_s29, %s10270_s11 }
   0xa   : > { %p6372_p6 = scmp.ge.s32.totalorder %s7743_s30, 1  ;;  %p281_p7 = scmp.eq.s32.totalorder %s276_s14, 0 }
   0xb   : > { %p7842_p8 = por %p300_p5, %p299_p3  ;;  %p411_p9 = scmp.lt.s32.totalorder %s7743_s30, 3 }
   0xc   : > { %s7848_s16 = scalar_select %p281_p7, %s7731_s27, %s283_s12  }
   0xd   : > { %p412_p10 = pnand %p6372_p6, %p411_p9 }
   0xf   : > { %415 = sbr.rel (%p412_p10) target bundleno = 853 (0x355), region = 52 }
  0x16   : > { %v7478_v0 = vld [vmem:[%s10169_s4 + $0x100] sm:$0xff]   ;;  %v7481_v3 = vld [vmem:[%s10169_s4 + $0x108] sm:$0xff]   ;;  %v7484_v6 = vld [vmem:[%s10169_s4 + $0x110] sm:$0xff]   ;;  %p500_p11 = scmp.lt.s32.totalorder %s7735_s28, 1  ;;  %v7745_v18 = vmov 0   ;;  %vm614_vm0 = vcmask 1040384  }
  0x17   : > { %v7479_v1 = vld [vmem:[%s10169_s4 + $0x140] sm:$0xff]   ;;  %6668 = vmatprep.subr.bf16.mxu0 %v7478_v0  ;;  %v7482_v4 = vld [vmem:[%s10169_s4 + $0x148] sm:$0xff]   ;;  %v7485_v7 = vld [vmem:[%s10169_s4 + $0x150] sm:$0xff]   ;;  %v7909_v19 = vrot.slane %v7745_v18, 7  ;;  %vm615_vm1 = vsmask.f32 256 }
  0x18   : > { %v7480_v2 = vld [vmem:[%s10169_s4 + $0xc0] sm:$0xff]   ;;  %7085 = vmatprep.subr.bf16.mxu1 %v7479_v1  ;;  %v7483_v5 = vld [vmem:[%s10169_s4 + $0xc8] sm:$0xff]   ;;  %v7486_v8 = vld [vmem:[%s10169_s4 + $0xd0] sm:$0xff]   ;;  %s7894_s17 = scalar_select %p500_p11, %s7735_s28, 1  ;;  %vm671_vm3 = vsmask.f32 7938 }
  0x19   : > { %6669 = vmatpush3.bf16.msra.mxu0 %v7480_v2  ;;  %7086 = vmatpush3.bf16.msra.mxu1 %v7479_v1  ;;  %v7487_v9 = vld [vmem:[%s10169_s4 + $0x118] sm:$0xff]   ;;  %v7490_v12 = vld [vmem:[%s10169_s4 + $0x120] sm:$0xff]   ;;  %v7493_v15 = vld [vmem:[%s10169_s4 + $0x128] sm:$0xff]   ;;  %v7932_v25 = vrot.slane %v7909_v19, 4  ;;  %vm727_vm5 = vsmask.f32 4368 }
  0x1a   : > { %6670 = vmatprep.subr.bf16.mxu0 %v7481_v3  ;;  %7087 = vmatprep.subr.bf16.mxu1 %v7482_v4  ;;  %v7488_v10 = vld [vmem:[%s10169_s4 + $0x158] sm:$0xff]   ;;  %v7491_v13 = vld [vmem:[%s10169_s4 + $0x160] sm:$0xff]   ;;  %v7494_v16 = vld [vmem:[%s10169_s4 + $0x168] sm:$0xff]   ;;  %s6662_s24 = sshll.u32 %s7894_s17, 7  ;;  %vm749_vm7 = vcmask 1043456   ;;  %vm1668_vm10 = vcmask 1046528  }
  0x1b   : > { %v7489_v11 = vld [vmem:[%s10169_s4 + $0xd8] sm:$0xff]   ;;  %v7492_v14 = vld [vmem:[%s10169_s4 + $0xe0] sm:$0xff]   ;;  %v7495_v17 = vld [vmem:[%s10169_s4 + $0xe8] sm:$0xff]   ;;  %s7920_s20 = scalar_lea.vmem %s10165_s0, %s6662_s24  ;;  %vm1459_vm9 = vsmask.f32 7424  ;;  %vm5505_vm11 = vcmask 1042432  }
  0x1c   : > { %v7496_v20 = vld [vmem:[%s10169_s4 + $0x130] sm:$0xff]   ;;  %v7499_v23 = vld [vmem:[%s10169_s4 + $0x138] sm:$0xff]   ;;  %v582_v26 = vld [vmem:[%s7920_s20] sm:$0xf]  ;;  %s6666_s24 = sshll.u32 %s7894_s17, 6  ;;  %vm5480_vm12 = vcmask 23552  }
  0x1d   : > { %6671 = vmatpush3.bf16.msra.mxu0 %v7483_v5  ;;  %7088 = vmatpush3.bf16.msra.mxu1 %v7482_v4  ;;  %v7497_v21 = vld [vmem:[%s10169_s4 + $0x170] sm:$0xff]   ;;  %v7500_v24 = vld [vmem:[%s10169_s4 + $0x178] sm:$0xff]   ;;  %v583_v27 = vld [vmem:[%s7920_s20 + $0x4] sm:$0xf]  ;;  %v759_v33 = vshrl.u32 %v582_v26, 16  ;;  %v762_v34 = vshll.u32 %v582_v26, 16  ;;  %s8991_s14 = scalar_lea.vmem %s10168_s3, %s6666_s24 }
  0x1e   : > { %6672 = vmatprep.subr.bf16.mxu0 %v7484_v6  ;;  %7089 = vmatprep.subr.bf16.mxu1 %v7485_v7  ;;  %v7498_v22 = vld [vmem:[%s10169_s4 + $0xf0] sm:$0xff]   ;;  %vm7938_vm2 = vmand %vm614_vm0, %vm615_vm1  ;;  %v620_v29 = vld [vmem:[#allocation2 + $0xc] sm:$0x1]  ;;  %v767_v38 = vshrl.u32 %v583_v27, 16  ;;  %v770_v39 = vshll.u32 %v583_v27, 16  ;;  %vm4894_vm13 = vcmask 1041408  }
  0x1f   : > { %v676_v30 = vld [vmem:[#allocation2 + $0x14] sm:$0x1]  ;;  %v621_v31 = vsel %vm7938_vm2, 0, %v620_v29  ;;  %vm7946_vm4 = vmand %vm614_vm0, %vm671_vm3  ;;  %v7501_v35 = vld [vmem:[%s10169_s4 + $0xf8] sm:$0xff]   ;;  %v761_v40 = vrot.slane %v759_v33, 7  ;;  %vm6013_vm14 = vcmask 1041409  }
  0x20   : > { %622 = vst [vmem:[#allocation2 + $0xc] sm:$0x1] %v621_v31  ;;  %v677_v36 = vsel %vm7946_vm4, 0, %v676_v30  ;;  %vm7956_vm6 = vmor %vm615_vm1, %vm727_vm5  ;;  %v584_v41 = vld [vmem:[%s7920_s20 + $0x8] sm:$0xf]  ;;  %v7506_v43 = vld [vmem:[%s10169_s4 + $0x40] sm:$0xff]  }
  0x21   : > { %6673 = vmatpush3.bf16.msra.mxu0 %v7486_v8  ;;  %7090 = vmatpush3.bf16.msra.mxu1 %v7485_v7  ;;  %678 = vst [vmem:[#allocation2 + $0x14] sm:$0x1] %v677_v36  ;;  %v585_v42 = vld [vmem:[%s7920_s20 + $0xc] sm:$0xf]  ;;  %v744_v44 = vsel %vm7956_vm6, %v7932_v25, %v7909_v19  ;;  %v769_v45 = vrot.slane %v767_v38, 7  ;;  %v776_v48 = vshrl.u32 %v584_v41, 16  ;;  %v764_v49 = vor.u32 %v762_v34, %v761_v40  ;;  %vm7975_vm8 = vmand %vm749_vm7, %vm671_vm3 }
  0x22   : > { %6674 = vmatprep.subr.bf16.mxu0 %v7487_v9  ;;  %7091 = vmatprep.subr.bf16.mxu1 %v7488_v10  ;;  %v623_v46 = vld [vmem:[#allocation2 + $0x18] sm:$0x1]  ;;  %v679_v47 = vld [vmem:[#allocation2 + $0x20] sm:$0x1]  ;;  %754 = vst [vmem:[#allocation2 + $0x4] sm:$0xf] %v744_v44 }
  0x23   : > { %1215 = vst [vmem:[#allocation2 + $0xd0] sm:$0xf] %v744_v44  ;;  %v765_v50 = vrot.slane %v761_v40, 4  ;;  %v624_v51 = vsel %vm7938_vm2, 0, %v623_v46  ;;  %v680_v52 = vsel %vm7946_vm4, 0, %v679_v47  ;;  %v772_v53 = vor.u32 %v770_v39, %v769_v45  ;;  %s496_s23 = sand.u32 1, %s7727_s26  }
  0x24   : > { %v774_v54 = vrot.slane %v769_v45, 4  ;;  %625 = vst [vmem:[#allocation2 + $0x18] sm:$0x1] %v624_v51  ;;  %681 = vst [vmem:[#allocation2 + $0x20] sm:$0x1] %v680_v52  ;;  %v778_v55 = vrot.slane %v776_v48, 7 }
  0x25   : > { %6675 = vmatpush3.bf16.msra.mxu0 %v7489_v11  ;;  %7092 = vmatpush3.bf16.msra.mxu1 %v7488_v10  ;;  %v779_v56 = vshll.u32 %v584_v41, 16  ;;  %v784_v58 = vshrl.u32 %v585_v42, 16  ;;  %v787_v59 = vshll.u32 %v585_v42, 16  ;;  %v773_v60 = vsel %vm7956_vm6, %v765_v50, %v772_v53  ;;  %v586_v62 = vld [vmem:[%s7920_s20 + $0x10] sm:$0xf]  ;;  %s6373_s25 = sshll.u32 %s496_s23, 6 }
  0x26   : > { %6676 = vmatprep.subr.bf16.mxu0 %v7490_v12  ;;  %7093 = vmatprep.subr.bf16.mxu1 %v7491_v13  ;;  %v782_v61 = vrot.slane %v778_v55, 4  ;;  %v587_v63 = vld [vmem:[%s7920_s20 + $0x14] sm:$0xf]  ;;  %1082 = vst [vmem:[#allocation2 + $0x10] sm:$0xf] %v773_v60  ;;  %v793_v3 = vshrl.u32 %v586_v62, 16 }
  0x27   : > { %v1079_v0 = vld [vmem:[#allocation2 + $0xc] sm:$0xf]  ;;  %v786_v1 = vrot.slane %v784_v58, 7  ;;  %v626_v2 = vld [vmem:[#allocation2 + $0x24] sm:$0x1]  ;;  %v781_v6 = vor.u32 %v779_v56, %v778_v55  ;;  %v796_v9 = vshll.u32 %v586_v62, 16 }
  0x28   : > { %v1080_v4 = vsel %vm7975_vm8, %v764_v49, %v1079_v0  ;;  %v1083_v5 = vld [vmem:[#allocation2 + $0x14] sm:$0x1]  ;;  %v627_v7 = vsel %vm7938_vm2, 0, %v626_v2  ;;  %v682_v8 = vld [vmem:[#allocation2 + $0x2c] sm:$0x1]  ;;  %v804_v18 = vshll.u32 %v587_v63, 16 }
  0x29   : > { %6677 = vmatpush3.bf16.msra.mxu0 %v7492_v14  ;;  %7094 = vmatpush3.bf16.msra.mxu1 %v7491_v13  ;;  %1081 = vst [vmem:[#allocation2 + $0xc] sm:$0xf] %v1080_v4  ;;  %v1084_v10 = vsel %vm7938_vm2, %v774_v54, %v1083_v5  ;;  %v789_v11 = vor.u32 %v787_v59, %v786_v1  ;;  %v791_v12 = vrot.slane %v786_v1, 4  ;;  %628 = vst [vmem:[#allocation2 + $0x24] sm:$0x1] %v627_v7  ;;  %vm6016_vm15 = vcmask 1042434  }
  0x2a   : > { %6678 = vmatprep.subr.bf16.mxu0 %v7493_v15  ;;  %7095 = vmatprep.subr.bf16.mxu1 %v7494_v16  ;;  %v683_v13 = vsel %vm7946_vm4, 0, %v682_v8  ;;  %v588_v14 = vld [vmem:[%s7920_s20 + $0x18] sm:$0xf]  ;;  %v589_v15 = vld [vmem:[%s7920_s20 + $0x1c] sm:$0xf]  ;;  %vm6019_vm0 = vcmask 1043459  }
  0x2b   : > { %1085 = vst [vmem:[#allocation2 + $0x14] sm:$0x1] %v1084_v10  ;;  %684 = vst [vmem:[#allocation2 + $0x2c] sm:$0x1] %v683_v13  ;;  %v813_v27 = vshll.u32 %v588_v14, 16  ;;  %v818_v40 = vshrl.u32 %v589_v15, 16 }
  0x2c   : > { %v685_v34 = vld [vmem:[#allocation2 + $0x38] sm:$0x1]  ;;  %v821_v41 = vshll.u32 %v589_v15, 16  ;;  %v8007_v45 = vld [vmem:[%s7920_s20 + $0x20] sm:$0xf]  ;;  %vm6022_vm1 = vcmask 1044484  }
  0x2d   : > { %6679 = vmatpush3.bf16.msra.mxu0 %v7495_v17  ;;  %7096 = vmatpush3.bf16.msra.mxu1 %v7494_v16  ;;  %v795_v16 = vrot.slane %v793_v3, 7  ;;  %v801_v17 = vshrl.u32 %v587_v63, 16  ;;  %v686_v38 = vsel %vm7946_vm4, 0, %v685_v34  ;;  %v820_v48 = vrot.slane %v818_v40, 7  ;;  %v7507_v13 = vld [vmem:[%s10169_s4] sm:$0xff]   ;;  %v7533_v40 = vld [vmem:[%s10169_s4 + $0x1c8] sm:$0xff]  }
  0x2e   : > { %6680 = vmatprep.subr.bf16.mxu0 %v7496_v20  ;;  %7097 = vmatprep.subr.bf16.mxu1 %v7497_v21  ;;  %v629_v20 = vld [vmem:[#allocation2 + $0x30] sm:$0x1]  ;;  %687 = vst [vmem:[#allocation2 + $0x38] sm:$0x1] %v686_v38  ;;  %v827_v53 = vshrl.u32 %v8007_v45, 16  ;;  %vm6028_vm3 = vcmask 1046534  }
  0x2f   : > { %v630_v26 = vsel %vm7938_vm2, 0, %v629_v20  ;;  %v798_v31 = vor.u32 %v796_v9, %v795_v16  ;;  %v799_v33 = vrot.slane %v795_v16, 4  ;;  %v803_v36 = vrot.slane %v801_v17, 7  ;;  %v632_v17 = vld [vmem:[#allocation2 + $0x3c] sm:$0x1]  ;;  %s9798_s1 = scalar_lea.vmem [#allocation3], %s6373_s25 }
  0x30   : > { %631 = vst [vmem:[#allocation2 + $0x30] sm:$0x1] %v630_v26  ;;  %v7502_v46 = vld [vmem:[#allocation2 + $0xc] sm:$0xff]   ;;  %v1093_v47 = vld [vmem:[#allocation2 + $0x24] sm:$0xf]  ;;  %v823_v59 = vor.u32 %v821_v41, %v820_v48  ;;  %v825_v63 = vrot.slane %v820_v48, 4 }
  0x31   : > { %6681 = vmatpush3.bf16.msra.mxu0 %v7498_v22  ;;  %7098 = vmatpush3.bf16.msra.mxu1 %v7497_v21  ;;  %v810_v21 = vshrl.u32 %v588_v14, 16  ;;  %v790_v22 = vsel %vm7956_vm6, %v782_v61, %v789_v11  ;;  %v806_v42 = vor.u32 %v804_v18, %v803_v36  ;;  %v1094_v51 = vsel %vm7975_vm8, %v798_v31, %v1093_v47  ;;  %v7521_v18 = vld [vmem:[%s10169_s4 + $0x180] sm:$0xff]   ;;  %v7518_v47 = vld [vmem:[%s10169_s4 + $0x50] sm:$0xff]   ;;  %s6667_s9 = sshll.u32 %s7735_s28, 10  ;;  %s6164_s24 = sshll.u32 %s9798_s1, 4  ;;  %s10111_s24 = int_to_ptr.vmem [resolvable:$true] %s6164_s24 }
  0x32   : > { %6682 = vmatprep.subr.bf16.mxu0 %v7499_v23  ;;  %7099 = vmatprep.subr.bf16.mxu1 %v7500_v24  ;;  %v1086_v23 = vld [vmem:[#allocation2 + $0x18] sm:$0xf]  ;;  %1089 = vst [vmem:[#allocation2 + $0x1c] sm:$0xf] %v790_v22  ;;  %v1975_v54 = vshrl.u32 %v7502_v46, 16  ;;  %v1977_v55 = vshll.u32 %v7502_v46, 16  ;;  %s10109_s12 = scalar_lea.hbm %s10173_s8, %s6667_s9 }
  0x33   : > { %v1087_v29 = vsel %vm7975_vm8, %v781_v6, %v1086_v23  ;;  %v812_v39 = vrot.slane %v810_v21, 7  ;;  %v7503_v49 = vld [vmem:[#allocation2 + $0x14] ss:$0 sps:$4 sm:$0x11]   ;;  %v807_v50 = vsel %vm7956_vm6, %v799_v33, %v806_v42  ;;  %v2182_v56 = vrot.slane %v7502_v46, 1  ;;  %v7512_v22 = vld [vmem:[%s10169_s4 + $0x48] sm:$0xff]  }
  0x34   : > { %1088 = vst [vmem:[#allocation2 + $0x18] sm:$0xf] %v1087_v29  ;;  %1095 = vst [vmem:[#allocation2 + $0x24] sm:$0xf] %v1094_v51  ;;  %v1097_v58 = vld [vmem:[#allocation2 + $0x2c] sm:$0x1] }
  0x35   : > { %6683 = vmatpush3.bf16.msra.mxu0 %v7501_v35  ;;  %7100 = vmatpush3.bf16.msra.mxu1 %v7500_v24  ;;  %v1090_v24 = vld [vmem:[#allocation2 + $0x20] sm:$0x1]  ;;  %v816_v44 = vrot.slane %v812_v39, 4  ;;  %v815_v52 = vor.u32 %v813_v27, %v812_v39  ;;  %1096 = vst [vmem:[#allocation2 + $0x28] sm:$0xf] %v807_v50  ;;  %v1982_v60 = vshll.u32 %v7503_v49, 16 }
  0x36   : > { %6804 = vmatprep.subr.bf16.mxu1 %v7506_v43  ;;  %v1091_v30 = vsel %vm7938_vm2, %v791_v12, %v1090_v24  ;;  %v7519_v35 = vld [vmem:[%s10169_s4 + $0x1c0] sm:$0xff]   ;;  %v808_v43 = vrot.slane %v803_v36, 4  ;;  %v2183_v61 = vrot.slane %v7503_v49, 1  ;;  %v1979_v0 = vrot.slane %v1977_v55, 1  ;;  %v1104_v11 = vld [vmem:[#allocation2 + $0x38] sm:$0x1] }
  0x37   : > { %1092 = vst [vmem:[#allocation2 + $0x20] sm:$0x1] %v1091_v30  ;;  %6940 = vmatprep.subr.bf16.mxu0 %v7519_v35  ;;  %v824_v2 = vsel %vm7956_vm6, %v816_v44, %v823_v59  ;;  %v1984_v3 = vrot.slane %v1982_v60, 1  ;;  %v1100_v6 = vld [vmem:[#allocation2 + $0x30] sm:$0xf]  ;;  %v1105_v16 = vsel %vm7938_vm2, %v825_v63, %v1104_v11  ;;  %v633_v24 = vsel %vm7938_vm2, 0, %v632_v17 }
  0x38   : > { %v1098_v62 = vsel %vm7938_vm2, %v808_v43, %v1097_v58  ;;  %v2184_v4 = vsel %vm1668_vm10, %v2182_v56, %v2183_v61  ;;  %1103 = vst [vmem:[#allocation2 + $0x34] sm:$0xf] %v824_v2  ;;  %v1980_v7 = vor.u32 %v1979_v0, %v1975_v54  ;;  %v1101_v15 = vsel %vm7975_vm8, %v815_v52, %v1100_v6  ;;  %v8039_v23 = vld [vmem:[%s7920_s20 + $0x24] sm:$0xf]  ;;  %v7513_v33 = vld [vmem:[%s10169_s4 + $0x8] sm:$0xff]   ;;  %v7526_v61 = vld [vmem:[%s10169_s4 + $0x58] sm:$0xff]  }
  0x39   : > { %1099 = vst [vmem:[#allocation2 + $0x2c] sm:$0x1] %v1098_v62  ;;  %7101 = vmatprep.mubr.bf16.mxu1 %v2184_v4  ;;  %1102 = vst [vmem:[#allocation2 + $0x30] sm:$0xf] %v1101_v15  ;;  %v688_v26 = vld [vmem:[#allocation2 + $0x44] sm:$0x1] }
  0x3a   : > { %v1985_v20 = vsel %vm1459_vm9, %v1980_v7, %v1984_v3  ;;  %1106 = vst [vmem:[#allocation2 + $0x38] sm:$0x1] %v1105_v16  ;;  %v8043_v27 = vrot.slane %v827_v53, 7  ;;  %634 = vst [vmem:[#allocation2 + $0x3c] sm:$0x1] %v633_v24  ;;  %v689_v35 = vsel %vm7946_vm4, 0, %v688_v26 }
  0x3b   : > { %v8016_v1 = vld [vmem:[#allocation2 + $0x18] sm:$0xff]   ;;  %2422 = vmatprep.mubr.bf16.mxu0 %v1985_v20  ;;  %v830_v36 = vshll.u32 %v8007_v45, 16  ;;  %v592_v39 = vld [vmem:[%s7920_s20 + $0x28] sm:$0xf]  ;;  %690 = vst [vmem:[#allocation2 + $0x44] sm:$0x1] %v689_v35 }
  0x3c   : > { %v2185_v8 = vrot.slane %v8016_v1, 1  ;;  %v1987_v9 = vshrl.u32 %v8016_v1, 16  ;;  %v1989_v10 = vshll.u32 %v8016_v1, 16  ;;  %v8046_v31 = vld [vmem:[#allocation2 + $0x24] sm:$0xff]   ;;  %2423 = vmatmul.mubr.bf16.vlgmr.msra.gmra.mrb[0].mxu0 %v7502_v46  ;;  %v833_v38 = vrot.slane %v8043_v27, 4  ;;  %v7520_v53 = vld [vmem:[%s10169_s4 + $0x10] sm:$0xff]  }
  0x3d   : > { %v2188_v42 = vrot.slane %v8046_v31, 1  ;;  %6941 = vmatpush3.bf16.msra.mxu0 %v7521_v18  ;;  %v1999_v44 = vshrl.u32 %v8046_v31, 16  ;;  %v2001_v45 = vshll.u32 %v8046_v31, 16  ;;  %v832_v46 = vor.u32 %v830_v36, %v8043_v27  ;;  %v635_v52 = vld [vmem:[#allocation2 + $0x48] sm:$0x1]  ;;  %v7532_v16 = vld [vmem:[%s10169_s4 + $0x60] sm:$0xff]  }
  0x3e   : > { %v7505_v5 = vld [vmem:[#allocation2 + $0x20] ss:$0 sps:$4 sm:$0x11]   ;;  %v1991_v21 = vrot.slane %v1989_v10, 1  ;;  %6942 = vmatprep.subr.bf16.mxu0 %v7533_v40  ;;  %v835_v50 = vshrl.u32 %v8039_v23, 16  ;;  %v838_v51 = vshll.u32 %v8039_v23, 16 }
  0x3f   : > { %v2186_v12 = vrot.slane %v7505_v5, 1  ;;  %v1994_v14 = vshll.u32 %v7505_v5, 16  ;;  %v2003_v54 = vrot.slane %v2001_v45, 1  ;;  %v593_v55 = vld [vmem:[%s7920_s20 + $0x2c] sm:$0xf]  ;;  %v636_v56 = vsel %vm7938_vm2, 0, %v635_v52 }
  0x40   : > { %v1992_v34 = vor.u32 %v1991_v21, %v1987_v9  ;;  %v7509_v41 = vld [vmem:[#allocation2 + $0x2c] ss:$0 sps:$4 sm:$0x11]   ;;  %v691_v58 = vld [vmem:[#allocation2 + $0x50] sm:$0x1]  ;;  %v844_v59 = vshrl.u32 %v592_v39, 16 }
  0x41   : > { %v2187_v29 = vsel %vm1668_vm10, %v2185_v8, %v2186_v12  ;;  %v1996_v30 = vrot.slane %v1994_v14, 1  ;;  %v2189_v48 = vrot.slane %v7509_v41, 1  ;;  %v2006_v49 = vshll.u32 %v7509_v41, 16  ;;  %v8079_v63 = vld [vmem:[#allocation2 + $0x30] sm:$0xff]   ;;  %637 = vst [vmem:[#allocation2 + $0x48] sm:$0x1] %v636_v56 }
  0x42   : > { %7102 = vmatmul.mubr.bf16.vlgmr.msra.gmra.mrb[0].mxu1 %v2187_v29  ;;  %v847_v60 = vshll.u32 %v592_v39, 16  ;;  %v7511_v2 = vld [vmem:[#allocation2 + $0x38] ss:$0 sps:$4 sm:$0x11]   ;;  %v2004_v3 = vor.u32 %v2003_v54, %v1999_v44  ;;  %v837_v4 = vrot.slane %v835_v50, 7  ;;  %v2191_v6 = vrot.slane %v8079_v63, 1 }
  0x43   : > { %6805 = vmatpush3.bf16.msra.mxu1 %v7507_v13  ;;  %v1997_v43 = vsel %vm1459_vm9, %v1992_v34, %v1996_v30  ;;  %v2190_v62 = vsel %vm1668_vm10, %v2188_v42, %v2189_v48  ;;  %v2008_v0 = vrot.slane %v2006_v49, 1  ;;  %v1107_v5 = vld [vmem:[#allocation2 + $0x3c] sm:$0xf]  ;;  %v692_v8 = vsel %vm7946_vm4, 0, %v691_v58  ;;  %v1111_v15 = vld [vmem:[#allocation2 + $0x44] sm:$0x1] }
  0x44   : > { %6806 = vmatprep.subr.bf16.mxu1 %v7512_v22  ;;  %2430 = vmatprep.mubr.bf16.mxu0 %v1997_v43  ;;  %v1108_v7 = vsel %vm7975_vm8, %v832_v46, %v1107_v5  ;;  %v846_v9 = vrot.slane %v844_v59, 7  ;;  %v7527_v10 = vld [vmem:[%s10169_s4 + $0x18] sm:$0xff]   ;;  %v2192_v11 = vrot.slane %v7511_v2, 1  ;;  %v840_v13 = vor.u32 %v838_v51, %v837_v4  ;;  %693 = vst [vmem:[#allocation2 + $0x50] sm:$0x1] %v692_v8  ;;  %v7534_v30 = vld [vmem:[%s10169_s4 + $0x20] sm:$0xff]  }
  0x45   : > { %7105 = vmatprep.mubr.bf16.mxu1 %v2190_v62  ;;  %2431 = vmatmul.mubr.bf16.gmra.mrb[4].mxu0 %v8016_v1  ;;  %v2009_v12 = vsel %vm1459_vm9, %v2004_v3, %v2008_v0  ;;  %v842_v14 = vrot.slane %v837_v4, 4  ;;  %1109 = vst [vmem:[#allocation2 + $0x3c] sm:$0xf] %v1108_v7  ;;  %v852_v20 = vshrl.u32 %v593_v55, 16  ;;  %v855_v21 = vshll.u32 %v593_v55, 16  ;;  %v7535_v1 = vld [vmem:[%s10169_s4 + $0x188] sm:$0xff]  }
  0x46   : > { %2438 = vmatprep.mubr.bf16.mxu0 %v2009_v12  ;;  %v849_v17 = vor.u32 %v847_v60, %v846_v9  ;;  %v850_v18 = vrot.slane %v846_v9, 4  ;;  %v2193_v22 = vsel %vm1668_vm10, %v2191_v6, %v2192_v11  ;;  %v841_v23 = vsel %vm7956_vm6, %v833_v38, %v840_v13  ;;  %6943 = vmatpush3.bf16.msra.mxu0 %v7535_v1  ;;  %v594_v35 = vld [vmem:[%s7920_s20 + $0x30] sm:$0xf]  ;;  %v595_v40 = vld [vmem:[%s7920_s20 + $0x34] sm:$0xf]  ;;  %v7540_v12 = vld [vmem:[%s10169_s4 + $0x68] sm:$0xff]  }
  0x47   : > { %6807 = vmatpush3.bf16.msra.mxu1 %v7513_v33  ;;  %v1112_v24 = vsel %vm7938_vm2, %v842_v14, %v1111_v15  ;;  %1110 = vst [vmem:[#allocation2 + $0x40] sm:$0xf] %v841_v23  ;;  %v854_v26 = vrot.slane %v852_v20, 7  ;;  %v2011_v29 = vshrl.u32 %v8079_v63, 16  ;;  %v2013_v33 = vshll.u32 %v8079_v63, 16  ;;  %s7665_s17 = scalar_lea.vmem %s10111_s24, 1024 }
  0x48   : > { %6808 = vmatprep.subr.bf16.mxu1 %v7518_v47  ;;  %1113 = vst [vmem:[#allocation2 + $0x44] sm:$0x1] %v1112_v24  ;;  %v1114_v27 = vld [vmem:[#allocation2 + $0x48] sm:$0xf]  ;;  %v2018_v34 = vshll.u32 %v7511_v2, 16  ;;  %v861_v42 = vshrl.u32 %v594_v35, 16  ;;  %p7666_p12 = scmp.ne.s32.totalorder %s10111_s24, %s7665_s17 }
  0x49   : > { %v857_v36 = vor.u32 %v855_v21, %v854_v26  ;;  %v859_v38 = vrot.slane %v854_v26, 4  ;;  %v1115_v39 = vsel %vm7975_vm8, %v849_v17, %v1114_v27  ;;  %v638_v41 = vld [vmem:[#allocation2 + $0x54] sm:$0x1]  ;;  %v2015_v43 = vrot.slane %v2013_v33, 1  ;;  %v694_v46 = vld [vmem:[#allocation2 + $0x5c] sm:$0x1] }
  0x4a   : > { %7106 = vmatmul.mubr.bf16.gmra.mrb[4].mxu1 %v2193_v22  ;;  %1116 = vst [vmem:[#allocation2 + $0x48] sm:$0xf] %v1115_v39  ;;  %v2020_v44 = vrot.slane %v2018_v34, 1  ;;  %v639_v45 = vsel %vm7938_vm2, 0, %v638_v41  ;;  %v864_v47 = vshll.u32 %v594_v35, 16  ;;  %v695_v50 = vsel %vm7946_vm4, 0, %v694_v46  ;;  %p7667_p13 = pnand %p7666_p12, %p7835_p4 }
  0x4b   : > { %6809 = vmatpush3.bf16.msra.mxu1 %v7520_v53  ;;  %v858_v48 = vsel %vm7956_vm6, %v850_v18, %v857_v36  ;;  %v1118_v49 = vld [vmem:[#allocation2 + $0x50] sm:$0x1]  ;;  %640 = vst [vmem:[#allocation2 + $0x54] sm:$0x1] %v639_v45  ;;  %v863_v51 = vrot.slane %v861_v42, 7  ;;  %v2016_v53 = vor.u32 %v2015_v43, %v2011_v29  ;;  %v869_v54 = vshrl.u32 %v595_v40, 16 }
  0x4c   : > { %6810 = vmatprep.subr.bf16.mxu1 %v7526_v61  ;;  %1117 = vst [vmem:[#allocation2 + $0x4c] sm:$0xf] %v858_v48  ;;  %v1119_v52 = vsel %vm7938_vm2, %v859_v38, %v1118_v49  ;;  %696 = vst [vmem:[#allocation2 + $0x5c] sm:$0x1] %v695_v50  ;;  %v872_v55 = vshll.u32 %v595_v40, 16  ;;  %v7541_v36 = vld [vmem:[%s10169_s4 + $0x28] sm:$0xff]   ;;  %p7668_p0 = pneg %p7667_p13 }
  0x4d   : > { %2439 = vmatmul.mubr.bf16.gmra.mrb[8].mxu0 %v8046_v31  ;;  %v596_v56 = vld [vmem:[%s7920_s20 + $0x38] sm:$0xf]  ;;  %v597_v58 = vld [vmem:[%s7920_s20 + $0x3c] sm:$0xf]  ;;  %1120 = vst [vmem:[#allocation2 + $0x50] sm:$0x1] %v1119_v52  ;;  %v2021_v31 = vsel %vm1459_vm9, %v2016_v53, %v2020_v44  ;;  %v866_v4 = vor.u32 %v864_v47, %v863_v51 }
  0x4e   : > { %v867_v59 = vrot.slane %v863_v51, 4  ;;  %v641_v60 = vld [vmem:[#allocation2 + $0x60] sm:$0x1]  ;;  %v697_v61 = vld [vmem:[#allocation2 + $0x68] sm:$0x1]  ;;  %v878_v62 = vshrl.u32 %v596_v56, 16  ;;  %2446 = vmatprep.mubr.bf16.mxu0 %v2021_v31 }
  0x4f   : > { %6811 = vmatpush3.bf16.msra.mxu1 %v7527_v10  ;;  %v8124_v0 = vld [vmem:[#allocation2 + $0x3c] sm:$0xff]   ;;  %v871_v2 = vrot.slane %v869_v54, 7  ;;  %v7515_v3 = vld [vmem:[#allocation2 + $0x44] ss:$0 sps:$4 sm:$0x11]   ;;  %v642_v5 = vsel %vm7938_vm2, 0, %v641_v60 }
  0x50   : > { %6812 = vmatprep.subr.bf16.mxu1 %v7532_v16  ;;  %v698_v6 = vsel %vm7946_vm4, 0, %v697_v61  ;;  %v880_v7 = vrot.slane %v878_v62, 7  ;;  %v2194_v8 = vrot.slane %v8124_v0, 1  ;;  %643 = vst [vmem:[#allocation2 + $0x60] sm:$0x1] %v642_v5  ;;  %v881_v11 = vshll.u32 %v596_v56, 16 }
  0x51   : > { %v874_v9 = vor.u32 %v872_v55, %v871_v2  ;;  %v876_v10 = vrot.slane %v871_v2, 4  ;;  %699 = vst [vmem:[#allocation2 + $0x68] sm:$0x1] %v698_v6  ;;  %v2195_v13 = vrot.slane %v7515_v3, 1  ;;  %v886_v15 = vshrl.u32 %v597_v58, 16  ;;  %v7546_v52 = vld [vmem:[%s10169_s4 + $0x70] sm:$0xff]  }
  0x52   : > { %v884_v14 = vrot.slane %v880_v7, 4  ;;  %v889_v16 = vshll.u32 %v597_v58, 16  ;;  %v1121_v18 = vld [vmem:[#allocation2 + $0x54] sm:$0xf]  ;;  %v883_v29 = vor.u32 %v881_v11, %v880_v7  ;;  %v2025_v35 = vshll.u32 %v8124_v0, 16 }
  0x53   : > { %6813 = vmatpush3.bf16.msra.mxu1 %v7534_v30  ;;  %v875_v17 = vsel %vm7956_vm6, %v867_v59, %v874_v9  ;;  %v2196_v20 = vsel %vm1668_vm10, %v2194_v8, %v2195_v13  ;;  %v8138_v21 = vld [vmem:[#allocation2 + $0x48] sm:$0xff]   ;;  %v1122_v1 = vsel %vm7975_vm8, %v866_v4, %v1121_v18  ;;  %v1125_v22 = vld [vmem:[#allocation2 + $0x5c] sm:$0x1]  ;;  %v888_v23 = vrot.slane %v886_v15, 7  ;;  %v598_v40 = vld [vmem:[%s7920_s20 + $0x40] sm:$0xf] }
  0x54   : > { %6814 = vmatprep.subr.bf16.mxu1 %v7540_v12  ;;  %1124 = vst [vmem:[#allocation2 + $0x58] sm:$0xf] %v875_v17  ;;  %7109 = vmatprep.mubr.bf16.mxu1 %v2196_v20  ;;  %v8142_v24 = vld [vmem:[#allocation2 + $0x50] ss:$0 sps:$4 sm:$0x11]   ;;  %v1126_v26 = vsel %vm7938_vm2, %v876_v10, %v1125_v22  ;;  %v2023_v30 = vshrl.u32 %v8124_v0, 16 }
  0x55   : > { %1123 = vst [vmem:[#allocation2 + $0x54] sm:$0xf] %v1122_v1  ;;  %2447 = vmatmul.mubr.bf16.gmra.mrb[12].mxu0 %v8079_v63  ;;  %v2197_v27 = vrot.slane %v8138_v21, 1  ;;  %1127 = vst [vmem:[#allocation2 + $0x5c] sm:$0x1] %v1126_v26  ;;  %v891_v33 = vor.u32 %v889_v16, %v888_v23  ;;  %v893_v34 = vrot.slane %v888_v23, 4 }
  0x56   : > { %v2198_v38 = vrot.slane %v8142_v24, 1  ;;  %v2030_v39 = vshll.u32 %v7515_v3, 16  ;;  %v599_v41 = vld [vmem:[%s7920_s20 + $0x44] sm:$0xf]  ;;  %v2027_v44 = vrot.slane %v2025_v35, 1  ;;  %v895_v45 = vshrl.u32 %v598_v40, 16 }
  0x57   : > { %v892_v63 = vsel %vm7956_vm6, %v884_v14, %v891_v33  ;;  %v1128_v42 = vld [vmem:[#allocation2 + $0x60] sm:$0xf]  ;;  %6815 = vmatpush3.bf16.msra.mxu1 %v7541_v36  ;;  %v644_v50 = vld [vmem:[#allocation2 + $0x6c] sm:$0x1]  ;;  %v700_v51 = vld [vmem:[#allocation2 + $0x74] sm:$0x1] }
  0x58   : > { %v1132_v43 = vld [vmem:[#allocation2 + $0x68] sm:$0x1]  ;;  %v2199_v46 = vsel %vm1668_vm10, %v2197_v27, %v2198_v38  ;;  %v1129_v47 = vsel %vm7975_vm8, %v883_v29, %v1128_v42  ;;  %1131 = vst [vmem:[#allocation2 + $0x64] sm:$0xf] %v892_v63  ;;  %v2032_v49 = vrot.slane %v2030_v39, 1  ;;  %v2028_v53 = vor.u32 %v2027_v44, %v2023_v30  ;;  %v7547_v59 = vld [vmem:[%s10169_s4 + $0x1d0] sm:$0xff]   ;;  %6816 = vmatprep.subr.bf16.mxu1 %v7546_v52 }
  0x59   : > { %v1133_v48 = vsel %vm7938_vm2, %v893_v34, %v1132_v43  ;;  %7110 = vmatmul.mubr.bf16.gmra.mrb[8].mxu1 %v2199_v46  ;;  %1130 = vst [vmem:[#allocation2 + $0x60] sm:$0xf] %v1129_v47  ;;  %v645_v54 = vsel %vm7938_vm2, 0, %v644_v50  ;;  %v701_v55 = vsel %vm7946_vm4, 0, %v700_v51  ;;  %v897_v56 = vrot.slane %v895_v45, 7  ;;  %6944 = vmatprep.subr.bf16.mxu0 %v7547_v59  ;;  %v7548_v17 = vld [vmem:[%s10169_s4 + $0x30] sm:$0xff]  }
  0x5a   : > { %1134 = vst [vmem:[#allocation2 + $0x68] sm:$0x1] %v1133_v48  ;;  %v600_v58 = vld [vmem:[%s7920_s20 + $0x48] sm:$0xf]  ;;  %646 = vst [vmem:[#allocation2 + $0x6c] sm:$0x1] %v645_v54  ;;  %v2033_v3 = vsel %vm1459_vm9, %v2028_v53, %v2032_v49 }
  0x5b   : > { %702 = vst [vmem:[#allocation2 + $0x74] sm:$0x1] %v701_v55  ;;  %v898_v60 = vshll.u32 %v598_v40, 16  ;;  %v903_v61 = vshrl.u32 %v599_v41, 16  ;;  %v906_v62 = vshll.u32 %v599_v41, 16  ;;  %v912_v31 = vshrl.u32 %v600_v58, 16  ;;  %2454 = vmatprep.mubr.bf16.mxu0 %v2033_v3  ;;  %6817 = vmatpush3.bf16.msra.mxu1 %v7548_v17 }
  0x5c   : > { %v8174_v2 = vld [vmem:[#allocation2 + $0x54] sm:$0xff]   ;;  %v901_v4 = vrot.slane %v897_v56, 4  ;;  %v601_v5 = vld [vmem:[%s7920_s20 + $0x4c] sm:$0xf]  ;;  %v703_v11 = vld [vmem:[#allocation2 + $0x80] sm:$0x1] }
  0x5d   : > { %v8178_v6 = vld [vmem:[#allocation2 + $0x5c] ss:$0 sps:$4 sm:$0x11]   ;;  %v905_v7 = vrot.slane %v903_v61, 7  ;;  %v2200_v8 = vrot.slane %v8174_v2, 1  ;;  %v900_v9 = vor.u32 %v898_v60, %v897_v56  ;;  %2455 = vmatmul.mubr.bf16.gmra.mrb[16].mxu0 %v8124_v0  ;;  %v914_v12 = vrot.slane %v912_v31, 7 }
  0x5e   : > { %v647_v10 = vld [vmem:[#allocation2 + $0x78] sm:$0x1]  ;;  %v2201_v13 = vrot.slane %v8178_v6, 1  ;;  %v704_v18 = vsel %vm7946_vm4, 0, %v703_v11  ;;  %v915_v20 = vshll.u32 %v600_v58, 16  ;;  %v920_v1 = vshrl.u32 %v601_v5, 16 }
  0x5f   : > { %v908_v14 = vor.u32 %v906_v62, %v905_v7  ;;  %v910_v15 = vrot.slane %v905_v7, 4  ;;  %v648_v16 = vsel %vm7938_vm2, 0, %v647_v10  ;;  %v918_v0 = vrot.slane %v914_v12, 4  ;;  %705 = vst [vmem:[#allocation2 + $0x80] sm:$0x1] %v704_v18 }
  0x60   : > { %649 = vst [vmem:[#allocation2 + $0x78] sm:$0x1] %v648_v16  ;;  %v2202_v22 = vsel %vm1668_vm10, %v2200_v8, %v2201_v13  ;;  %v8191_v23 = vld [vmem:[#allocation2 + $0x60] sm:$0xff]   ;;  %v923_v29 = vshll.u32 %v601_v5, 16  ;;  %v922_v33 = vrot.slane %v920_v1, 7  ;;  %v917_v38 = vor.u32 %v915_v20, %v914_v12  ;;  %v7554_v5 = vld [vmem:[%s10169_s4 + $0x78] sm:$0xff]  }
  0x61   : > { %v909_v26 = vsel %vm7956_vm6, %v901_v4, %v908_v14  ;;  %7113 = vmatprep.mubr.bf16.mxu1 %v2202_v22  ;;  %v8195_v30 = vld [vmem:[#allocation2 + $0x68] ss:$0 sps:$4 sm:$0x11]   ;;  %v1135_v27 = vld [vmem:[#allocation2 + $0x6c] sm:$0xf]  ;;  %v2203_v34 = vrot.slane %v8191_v23, 1  ;;  %6818 = vmatprep.subr.bf16.mxu1 %v7554_v5 }
  0x62   : > { %1138 = vst [vmem:[#allocation2 + $0x70] sm:$0xf] %v909_v26  ;;  %v1136_v35 = vsel %vm7975_vm8, %v900_v9, %v1135_v27  ;;  %v1139_v36 = vld [vmem:[#allocation2 + $0x74] sm:$0x1]  ;;  %v2035_v39 = vshrl.u32 %v8138_v21, 16  ;;  %v2204_v40 = vrot.slane %v8195_v30, 1  ;;  %v925_v63 = vor.u32 %v923_v29, %v922_v33 }
  0x63   : > { %1137 = vst [vmem:[#allocation2 + $0x6c] sm:$0xf] %v1136_v35  ;;  %v1140_v41 = vsel %vm7938_vm2, %v910_v15, %v1139_v36  ;;  %v927_v42 = vrot.slane %v922_v33, 4  ;;  %v2037_v45 = vshll.u32 %v8138_v21, 16  ;;  %v2042_v46 = vshll.u32 %v8142_v24, 16  ;;  %v7549_v24 = vld [vmem:[%s10169_s4 + $0x190] sm:$0xff]  }
  0x64   : > { %1141 = vst [vmem:[#allocation2 + $0x74] sm:$0x1] %v1140_v41  ;;  %v2205_v43 = vsel %vm1668_vm10, %v2203_v34, %v2204_v40  ;;  %v926_v44 = vsel %vm7956_vm6, %v918_v0, %v925_v63  ;;  %v602_v47 = vld [vmem:[%s7920_s20 + $0x50] sm:$0xf]  ;;  %v603_v49 = vld [vmem:[%s7920_s20 + $0x54] sm:$0xf]  ;;  %6945 = vmatpush3.bf16.msra.mxu0 %v7549_v24 }
  0x65   : > { %7114 = vmatmul.mubr.bf16.gmra.mrb[12].mxu1 %v2205_v43  ;;  %1145 = vst [vmem:[#allocation2 + $0x7c] sm:$0xf] %v926_v44  ;;  %v650_v50 = vld [vmem:[#allocation2 + $0x84] sm:$0x1]  ;;  %v2039_v53 = vrot.slane %v2037_v45, 1  ;;  %v2044_v54 = vrot.slane %v2042_v46, 1 }
  0x66   : > { %v1146_v52 = vld [vmem:[#allocation2 + $0x80] sm:$0x1]  ;;  %v651_v55 = vsel %vm7938_vm2, 0, %v650_v50  ;;  %v706_v58 = vld [vmem:[#allocation2 + $0x8c] sm:$0x1]  ;;  %v929_v59 = vshrl.u32 %v602_v47, 16 }
  0x67   : > { %v1142_v48 = vld [vmem:[#allocation2 + $0x78] sm:$0xf]  ;;  %v1147_v56 = vsel %vm7938_vm2, %v927_v42, %v1146_v52  ;;  %652 = vst [vmem:[#allocation2 + $0x84] sm:$0x1] %v651_v55  ;;  %v932_v60 = vshll.u32 %v602_v47, 16  ;;  %v2040_v61 = vor.u32 %v2039_v53, %v2035_v39  ;;  %v707_v62 = vsel %vm7946_vm4, 0, %v706_v58 }
  0x68   : > { %v1143_v51 = vsel %vm7975_vm8, %v917_v38, %v1142_v48  ;;  %1148 = vst [vmem:[#allocation2 + $0x80] sm:$0x1] %v1147_v56  ;;  %v937_v31 = vshrl.u32 %v603_v49, 16  ;;  %v940_v3 = vshll.u32 %v603_v49, 16  ;;  %v604_v4 = vld [vmem:[%s7920_s20 + $0x58] sm:$0xf] }
  0x69   : > { %1144 = vst [vmem:[#allocation2 + $0x78] sm:$0xf] %v1143_v51  ;;  %708 = vst [vmem:[#allocation2 + $0x8c] sm:$0x1] %v707_v62  ;;  %v931_v8 = vrot.slane %v929_v59, 7  ;;  %v2045_v11 = vsel %vm1459_vm9, %v2040_v61, %v2044_v54  ;;  %v7555_v22 = vld [vmem:[%s10169_s4 + $0x38] sm:$0xff]  }
  0x6a   : > { %v8226_v7 = vld [vmem:[#allocation2 + $0x6c] sm:$0xff]   ;;  %v605_v9 = vld [vmem:[%s7920_s20 + $0x5c] sm:$0xf]  ;;  %v939_v12 = vrot.slane %v937_v31, 7  ;;  %2462 = vmatprep.mubr.bf16.mxu0 %v2045_v11  ;;  %v709_v17 = vld [vmem:[#allocation2 + $0x98] sm:$0x1]  ;;  %6819 = vmatpush3.bf16.msra.mxu1 %v7555_v22 }
  0x6b   : > { %v8229_v10 = vld [vmem:[#allocation2 + $0x74] ss:$0 sps:$4 sm:$0x11]   ;;  %v2206_v13 = vrot.slane %v8226_v7, 1  ;;  %v934_v14 = vor.u32 %v932_v60, %v931_v8  ;;  %v935_v15 = vrot.slane %v931_v8, 4  ;;  %2463 = vmatmul.mubr.bf16.gmra.mrb[20].mxu0 %v8138_v21  ;;  %v710_v26 = vsel %vm7946_vm4, 0, %v709_v17 }
  0x6c   : > { %v653_v16 = vld [vmem:[#allocation2 + $0x90] sm:$0x1]  ;;  %v2207_v18 = vrot.slane %v8229_v10, 1  ;;  %v942_v20 = vor.u32 %v940_v3, %v939_v12  ;;  %v944_v0 = vrot.slane %v939_v12, 4  ;;  %v946_v29 = vshrl.u32 %v604_v4, 16  ;;  %v8261_v53 = vld [vmem:[%s10169_s4 + $0x80] sm:$0xff]  }
  0x6d   : > { %v654_v1 = vsel %vm7938_vm2, 0, %v653_v16  ;;  %v949_v27 = vshll.u32 %v604_v4, 16  ;;  %v954_v33 = vshrl.u32 %v605_v9, 16  ;;  %711 = vst [vmem:[#allocation2 + $0x98] sm:$0x1] %v710_v26  ;;  %v957_v38 = vshll.u32 %v605_v9, 16  ;;  %7133 = vmatprep.subr.bf16.mxu1 %v8261_v53 }
  0x6e   : > { %655 = vst [vmem:[#allocation2 + $0x90] sm:$0x1] %v654_v1  ;;  %v2208_v34 = vsel %vm1668_vm10, %v2206_v13, %v2207_v18  ;;  %v943_v21 = vsel %vm7956_vm6, %v935_v15, %v942_v20  ;;  %v1149_v36 = vld [vmem:[#allocation2 + $0x84] sm:$0xf]  ;;  %v948_v41 = vrot.slane %v946_v29, 7  ;;  %v2047_v50 = vshrl.u32 %v8174_v2, 16 }
  0x6f   : > { %7117 = vmatprep.mubr.bf16.mxu1 %v2208_v34  ;;  %v8247_v39 = vld [vmem:[#allocation2 + $0x80] ss:$0 sps:$4 sm:$0x11]   ;;  %v1150_v40 = vsel %vm7975_vm8, %v934_v14, %v1149_v36  ;;  %1152 = vst [vmem:[#allocation2 + $0x88] sm:$0xf] %v943_v21  ;;  %v956_v43 = vrot.slane %v954_v33, 7 }
  0x70   : > { %v8243_v35 = vld [vmem:[#allocation2 + $0x78] sm:$0xff]   ;;  %1151 = vst [vmem:[#allocation2 + $0x84] sm:$0xf] %v1150_v40  ;;  %v1153_v42 = vld [vmem:[#allocation2 + $0x8c] sm:$0x1]  ;;  %v2210_v44 = vrot.slane %v8247_v39, 1  ;;  %v951_v46 = vor.u32 %v949_v27, %v948_v41 }
  0x71   : > { %v2209_v63 = vrot.slane %v8243_v35, 1  ;;  %v1154_v45 = vsel %vm7938_vm2, %v944_v0, %v1153_v42  ;;  %v952_v47 = vrot.slane %v948_v41, 4  ;;  %v959_v48 = vor.u32 %v957_v38, %v956_v43  ;;  %v606_v52 = vld [vmem:[%s7920_s20 + $0x60] sm:$0xf]  ;;  %v607_v24 = vld [vmem:[%s7920_s20 + $0x64] sm:$0xf] }
  0x72   : > { %1155 = vst [vmem:[#allocation2 + $0x8c] sm:$0x1] %v1154_v45  ;;  %v961_v49 = vrot.slane %v956_v43, 4  ;;  %v2049_v51 = vshll.u32 %v8174_v2, 16  ;;  %v2054_v55 = vshll.u32 %v8178_v6, 16  ;;  %v963_v58 = vshrl.u32 %v606_v52, 16 }
  0x73   : > { %v2211_v54 = vsel %vm1668_vm10, %v2209_v63, %v2210_v44  ;;  %v656_v56 = vld [vmem:[#allocation2 + $0x9c] sm:$0x1]  ;;  %v960_v59 = vsel %vm7956_vm6, %v952_v47, %v959_v48  ;;  %v712_v31 = vld [vmem:[#allocation2 + $0xa4] sm:$0x1]  ;;  %v966_v13 = vshll.u32 %v606_v52, 16  ;;  %v971_v14 = vshrl.u32 %v607_v24, 16 }
  0x74   : > { %7118 = vmatmul.mubr.bf16.gmra.mrb[16].mxu1 %v2211_v54  ;;  %v2051_v61 = vrot.slane %v2049_v51, 1  ;;  %v657_v62 = vsel %vm7938_vm2, 0, %v656_v56  ;;  %1159 = vst [vmem:[#allocation2 + $0x94] sm:$0xf] %v960_v59  ;;  %v1160_v6 = vld [vmem:[#allocation2 + $0x98] sm:$0x1] }
  0x75   : > { %v1156_v60 = vld [vmem:[#allocation2 + $0x90] sm:$0xf]  ;;  %v2056_v4 = vrot.slane %v2054_v55, 1  ;;  %658 = vst [vmem:[#allocation2 + $0x9c] sm:$0x1] %v657_v62  ;;  %v713_v5 = vsel %vm7946_vm4, 0, %v712_v31  ;;  %v1161_v11 = vsel %vm7938_vm2, %v961_v49, %v1160_v6 }
  0x76   : > { %v1157_v3 = vsel %vm7975_vm8, %v951_v46, %v1156_v60  ;;  %v965_v8 = vrot.slane %v963_v58, 7  ;;  %v7559_v9 = vld [vmem:[%s10169_s4 + $0x1d8] sm:$0xff]   ;;  %v2052_v12 = vor.u32 %v2051_v61, %v2047_v50  ;;  %714 = vst [vmem:[#allocation2 + $0xa4] sm:$0x1] %v713_v5  ;;  %v608_v15 = vld [vmem:[%s7920_s20 + $0x68] sm:$0xf] }
  0x77   : > { %1158 = vst [vmem:[#allocation2 + $0x90] sm:$0xf] %v1157_v3  ;;  %v8281_v16 = vld [vmem:[#allocation2 + $0x84] sm:$0xff]   ;;  %1162 = vst [vmem:[#allocation2 + $0x98] sm:$0x1] %v1161_v11  ;;  %v974_v18 = vshll.u32 %v607_v24, 16  ;;  %6946 = vmatprep.subr.bf16.mxu0 %v7559_v9 }
  0x78   : > { %v969_v17 = vrot.slane %v965_v8, 4  ;;  %v980_v20 = vshrl.u32 %v608_v15, 16  ;;  %v2057_v0 = vsel %vm1459_vm9, %v2052_v12, %v2056_v4  ;;  %v973_v1 = vrot.slane %v971_v14, 7  ;;  %v609_v22 = vld [vmem:[%s7920_s20 + $0x6c] sm:$0xf]  ;;  %v7560_v63 = vld [vmem:[%s10169_s4 + $0x198] sm:$0xff]  }
  0x79   : > { %v659_v26 = vld [vmem:[#allocation2 + $0xa8] sm:$0x1]  ;;  %v983_v29 = vshll.u32 %v608_v15, 16  ;;  %v8285_v27 = vld [vmem:[#allocation2 + $0x8c] ss:$0 sps:$4 sm:$0x11]   ;;  %2470 = vmatprep.mubr.bf16.mxu0 %v2057_v0  ;;  %v968_v34 = vor.u32 %v966_v13, %v965_v8  ;;  %6947 = vmatpush3.bf16.msra.mxu0 %v7560_v63 }
  0x7a   : > { %v2212_v33 = vrot.slane %v8281_v16, 1  ;;  %v976_v21 = vor.u32 %v974_v18, %v973_v1  ;;  %v978_v36 = vrot.slane %v973_v1, 4  ;;  %2471 = vmatmul.mubr.bf16.gmra.mrb[24].mxu0 %v8174_v2  ;;  %v660_v38 = vsel %vm7938_vm2, 0, %v659_v26  ;;  %v715_v40 = vld [vmem:[#allocation2 + $0xb0] sm:$0x1] }
  0x7b   : > { %v982_v41 = vrot.slane %v980_v20, 7  ;;  %v2213_v42 = vrot.slane %v8285_v27, 1  ;;  %661 = vst [vmem:[#allocation2 + $0xa8] sm:$0x1] %v660_v38  ;;  %v716_v43 = vsel %vm7946_vm4, 0, %v715_v40  ;;  %v988_v44 = vshrl.u32 %v609_v22, 16 }
  0x7c   : > { %v991_v45 = vshll.u32 %v609_v22, 16  ;;  %v977_v2 = vsel %vm7956_vm6, %v969_v17, %v976_v21  ;;  %v1163_v46 = vld [vmem:[#allocation2 + $0x9c] sm:$0xf]  ;;  %717 = vst [vmem:[#allocation2 + $0xb0] sm:$0x1] %v716_v43  ;;  %v2059_v48 = vshrl.u32 %v8191_v23, 16 }
  0x7d   : > { %v986_v47 = vrot.slane %v982_v41, 4  ;;  %v2214_v49 = vsel %vm1668_vm10, %v2212_v33, %v2213_v42  ;;  %v1164_v51 = vsel %vm7975_vm8, %v968_v34, %v1163_v46  ;;  %1166 = vst [vmem:[#allocation2 + $0xa0] sm:$0xf] %v977_v2  ;;  %v1167_v52 = vld [vmem:[#allocation2 + $0xa4] sm:$0x1]  ;;  %v990_v54 = vrot.slane %v988_v44, 7 }
  0x7e   : > { %v8301_v50 = vld [vmem:[#allocation2 + $0x90] sm:$0xff]   ;;  %7121 = vmatprep.mubr.bf16.mxu1 %v2214_v49  ;;  %v8305_v55 = vld [vmem:[#allocation2 + $0x98] ss:$0 sps:$4 sm:$0x11]   ;;  %1165 = vst [vmem:[#allocation2 + $0x9c] sm:$0xf] %v1164_v51  ;;  %v1168_v24 = vsel %vm7938_vm2, %v978_v36, %v1167_v52  ;;  %v985_v59 = vor.u32 %v983_v29, %v982_v41 }
  0x7f   : > { %v2061_v56 = vshll.u32 %v8191_v23, 16  ;;  %v2215_v58 = vrot.slane %v8301_v50, 1  ;;  %1169 = vst [vmem:[#allocation2 + $0xa4] sm:$0x1] %v1168_v24  ;;  %v993_v60 = vor.u32 %v991_v45, %v990_v54  ;;  %v995_v61 = vrot.slane %v990_v54, 4 }
  0x80   : > { %v2216_v62 = vrot.slane %v8305_v55, 1  ;;  %v2066_v8 = vshll.u32 %v8195_v30, 16  ;;  %v610_v9 = vld [vmem:[%s7920_s20 + $0x70] sm:$0xf]  ;;  %v2071_v11 = vshrl.u32 %v8226_v7, 16  ;;  %v2073_v41 = vshll.u32 %v8226_v7, 16 }
  0x81   : > { %v2063_v31 = vrot.slane %v2061_v56, 1  ;;  %v994_v3 = vsel %vm7956_vm6, %v986_v47, %v993_v60  ;;  %v611_v14 = vld [vmem:[%s7920_s20 + $0x74] sm:$0xf]  ;;  %v718_v30 = vld [vmem:[#allocation2 + $0xbc] sm:$0x1]  ;;  %v997_v22 = vshrl.u32 %v610_v9, 16 }
  0x82   : > { %v2217_v6 = vsel %vm1668_vm10, %v2215_v58, %v2216_v62  ;;  %v1170_v4 = vld [vmem:[#allocation2 + $0xa8] sm:$0xf]  ;;  %1173 = vst [vmem:[#allocation2 + $0xac] sm:$0xf] %v994_v3  ;;  %v662_v15 = vld [vmem:[#allocation2 + $0xb4] sm:$0x1] }
  0x83   : > { %v2064_v5 = vor.u32 %v2063_v31, %v2059_v48  ;;  %7122 = vmatmul.mubr.bf16.gmra.mrb[20].mxu1 %v2217_v6  ;;  %v1171_v12 = vsel %vm7975_vm8, %v985_v59, %v1170_v4  ;;  %v1174_v13 = vld [vmem:[#allocation2 + $0xb0] sm:$0x1]  ;;  %v2068_v18 = vrot.slane %v2066_v8, 1  ;;  %v663_v20 = vsel %vm7938_vm2, 0, %v662_v15  ;;  %v612_v40 = vld [vmem:[%s7920_s20 + $0x78] sm:$0xf] }
  0x84   : > { %1172 = vst [vmem:[#allocation2 + $0xa8] sm:$0xf] %v1171_v12  ;;  %v1175_v17 = vsel %vm7938_vm2, %v995_v61, %v1174_v13  ;;  %664 = vst [vmem:[#allocation2 + $0xb4] sm:$0x1] %v663_v20  ;;  %v719_v1 = vsel %vm7946_vm4, 0, %v718_v30  ;;  %v1000_v26 = vshll.u32 %v610_v9, 16 }
  0x85   : > { %v8325_v0 = vld [vmem:[#allocation2 + $0x9c] sm:$0xff]   ;;  %1176 = vst [vmem:[#allocation2 + $0xb0] sm:$0x1] %v1175_v17  ;;  %v2069_v33 = vsel %vm1459_vm9, %v2064_v5, %v2068_v18  ;;  %720 = vst [vmem:[#allocation2 + $0xbc] sm:$0x1] %v719_v1  ;;  %v1005_v34 = vshrl.u32 %v611_v14, 16 }
  0x86   : > { %v8329_v29 = vld [vmem:[#allocation2 + $0xa4] ss:$0 sps:$4 sm:$0x11]   ;;  %v2218_v21 = vrot.slane %v8325_v0, 1  ;;  %2478 = vmatprep.mubr.bf16.mxu0 %v2069_v33  ;;  %v999_v36 = vrot.slane %v997_v22, 7  ;;  %v1008_v38 = vshll.u32 %v611_v14, 16 }
  0x87   : > { %v2219_v63 = vrot.slane %v8329_v29, 1  ;;  %v1007_v42 = vrot.slane %v1005_v34, 7  ;;  %2479 = vmatmul.mubr.bf16.gmra.mrb[28].mxu0 %v8191_v23  ;;  %v613_v43 = vld [vmem:[%s7920_s20 + $0x7c] sm:$0xf]  ;;  %v665_v44 = vld [vmem:[#allocation2 + $0xc0] sm:$0x1] }
  0x88   : > { %v1002_v45 = vor.u32 %v1000_v26, %v999_v36  ;;  %v1003_v2 = vrot.slane %v999_v36, 4  ;;  %v666_v46 = vsel %vm7938_vm2, 0, %v665_v44  ;;  %v721_v47 = vld [vmem:[#allocation2 + $0xc8] sm:$0x1]  ;;  %v1014_v23 = vshrl.u32 %v612_v40, 16  ;;  %s7747_s20 = smov [#allocation3]  }
  0x89   : > { %v2220_v48 = vsel %vm1668_vm10, %v2218_v21, %v2219_v63  ;;  %v1010_v49 = vor.u32 %v1008_v38, %v1007_v42  ;;  %v1012_v51 = vrot.slane %v1007_v42, 4  ;;  %667 = vst [vmem:[#allocation2 + $0xc0] sm:$0x1] %v666_v46  ;;  %v722_v52 = vsel %vm7946_vm4, 0, %v721_v47  ;;  %v617_v15 = vld [vmem:[#allocation2] sm:$0x1] }
  0x8a   : > { %7125 = vmatprep.mubr.bf16.mxu1 %v2220_v48  ;;  %723 = vst [vmem:[#allocation2 + $0xc8] sm:$0x1] %v722_v52  ;;  %v1017_v24 = vshll.u32 %v612_v40, 16  ;;  %v1022_v56 = vshrl.u32 %v613_v43, 16  ;;  %v1025_v60 = vshll.u32 %v613_v43, 16  ;;  %v1016_v3 = vrot.slane %v1014_v23, 7 }
  0x8b   : > { %v8343_v54 = vld [vmem:[#allocation2 + $0xa8] sm:$0xff]   ;;  %v1011_v59 = vsel %vm7956_vm6, %v1003_v2, %v1010_v49  ;;  %v1177_v62 = vld [vmem:[#allocation2 + $0xb4] sm:$0xf]  ;;  %v2075_v13 = vrot.slane %v2073_v41, 1  ;;  %v2078_v14 = vshll.u32 %v8229_v10, 16  ;;  %v618_v30 = vsel %vm7938_vm2, 0, %v617_v15 }
  0x8c   : > { %v8345_v58 = vld [vmem:[#allocation2 + $0xb0] ss:$0 sps:$4 sm:$0x11]   ;;  %v2221_v61 = vrot.slane %v8343_v54, 1  ;;  %1180 = vst [vmem:[#allocation2 + $0xb8] sm:$0xf] %v1011_v59  ;;  %v1178_v4 = vsel %vm7975_vm8, %v1002_v45, %v1177_v62  ;;  %v1019_v9 = vor.u32 %v1017_v24, %v1016_v3 }
  0x8d   : > { %v1181_v31 = vld [vmem:[#allocation2 + $0xbc] sm:$0x1]  ;;  %v2222_v6 = vrot.slane %v8345_v58, 1  ;;  %v1024_v8 = vrot.slane %v1022_v56, 7  ;;  %1179 = vst [vmem:[#allocation2 + $0xb4] sm:$0xf] %v1178_v4  ;;  %v2076_v26 = vor.u32 %v2075_v13, %v2071_v11 }
  0x8e   : > { %v1182_v5 = vsel %vm7938_vm2, %v1012_v51, %v1181_v31  ;;  %v1020_v12 = vrot.slane %v1016_v3, 4  ;;  %v673_v1 = vld [vmem:[#allocation2 + $0x8] sm:$0x1]  ;;  %v2080_v33 = vrot.slane %v2078_v14, 1  ;;  %619 = vst [vmem:[#allocation2] sm:$0x1] %v618_v30 }
  0x8f   : > { %1183 = vst [vmem:[#allocation2 + $0xbc] sm:$0x1] %v1182_v5  ;;  %v2223_v17 = vsel %vm1668_vm10, %v2221_v61, %v2222_v6  ;;  %v1027_v18 = vor.u32 %v1025_v60, %v1024_v8  ;;  %v1029_v20 = vrot.slane %v1024_v8, 4  ;;  %v674_v34 = vsel %vm7946_vm4, 0, %v673_v1  ;;  %v8373_v63 = vld [vmem:[#allocation2 + $0xc] sm:$0xff]   ;;  %v8403_v13 = vld [vmem:[#allocation2 + $0x18] sm:$0xff]  }
  0x90   : > { %7126 = vmatmul.mubr.bf16.gmra.mrb[24].mxu1 %v2223_v17  ;;  %v1184_v22 = vld [vmem:[#allocation2 + $0xc0] sm:$0xf]  ;;  %675 = vst [vmem:[#allocation2 + $0x8] sm:$0x1] %v674_v34  ;;  %v2081_v11 = vsel %vm1459_vm9, %v2076_v26, %v2080_v33  ;;  %v2083_v40 = vshrl.u32 %v8243_v35, 16  ;;  %v2085_v41 = vshll.u32 %v8243_v35, 16 }
  0x91   : > { %v1028_v10 = vsel %vm7956_vm6, %v1020_v12, %v1027_v18  ;;  %v1185_v21 = vsel %vm7975_vm8, %v1019_v9, %v1184_v22  ;;  %v1188_v36 = vld [vmem:[#allocation2 + $0xc8] sm:$0x1]  ;;  %2486 = vmatprep.mubr.bf16.mxu0 %v2081_v11  ;;  %v2090_v37 = vshll.u32 %v8247_v39, 16  ;;  %v2095_v51 = vshrl.u32 %v8281_v16, 16  ;;  %v7567_v22 = vld [vmem:[%s10169_s4 + $0x1a0] sm:$0xff]   ;;  %s7669_s18 = sshll.u32 %s7747_s20, 4  ;;  %s7670_s18 = int_to_ptr.vmem [resolvable:$false] %s7669_s18 }
  0x92   : > { %1186 = vst [vmem:[#allocation2 + $0xc0] sm:$0xf] %v1185_v21  ;;  %1187 = vst [vmem:[#allocation2 + $0xc4] sm:$0xf] %v1028_v10  ;;  %v1189_v38 = vsel %vm7938_vm2, %v1029_v20, %v1188_v36  ;;  %2487 = vmatmul.mubr.bf16.gmra.mrb[32].mxu0 %v8226_v7  ;;  %v2087_v43 = vrot.slane %v2085_v41, 1  ;;  %v2097_v7 = vshll.u32 %v8281_v16, 16  ;;  %p7672_p1 = scmp.lt.s32.totalorder %s10111_s24, %s7670_s18 }
  0x93   : > { %1190 = vst [vmem:[#allocation2 + $0xc8] sm:$0x1] %v1189_v38  ;;  %v2092_v45 = vrot.slane %v2090_v37, 1  ;;  %v7562_v56 = vld [vmem:[#allocation2 + $0x14] ss:$0 sps:$4 sm:$0x11]  }
  0x94   : > { %v8376_v42 = vld [vmem:[#allocation2 + $0xb4] sm:$0xff]   ;;  %v2088_v47 = vor.u32 %v2087_v43, %v2083_v40  ;;  %v1475_v59 = vshll.u32 %v8373_v63, 16  ;;  %v2099_v62 = vrot.slane %v2097_v7, 1  ;;  %v2102_v3 = vshll.u32 %v8285_v27, 16  ;;  %v7566_v27 = vld [vmem:[%s10169_s4 + $0x1e0] sm:$0xff]   ;;  %v7565_v7 = vld [vmem:[%s10169_s4 + $0x88] sm:$0xff]  }
  0x95   : > { %v2224_v2 = vrot.slane %v8376_v42, 1  ;;  %v751_v46 = vld [vmem:[#allocation2] sm:$0xf]  ;;  %v1473_v5 = vshrl.u32 %v8373_v63, 16  ;;  %v1480_v14 = vshll.u32 %v7562_v56, 16  ;;  %6948 = vmatprep.subr.bf16.mxu0 %v7566_v27  ;;  %v2107_v20 = vshrl.u32 %v8301_v50, 16 }
  0x96   : > { %v8378_v44 = vld [vmem:[#allocation2 + $0xbc] ss:$0 sps:$4 sm:$0x11]   ;;  %v752_v39 = vsel %vm7975_vm8, %v7909_v19, %v751_v46  ;;  %v2093_v24 = vsel %vm1459_vm9, %v2088_v47, %v2092_v45  ;;  %v2100_v4 = vor.u32 %v2099_v62, %v2095_v51  ;;  %v2104_v8 = vrot.slane %v2102_v3, 1  ;;  %6949 = vmatpush3.bf16.msra.mxu0 %v7567_v22  ;;  %v8447_v27 = vld [vmem:[#allocation2 + $0x30] sm:$0xff]   ;;  %s7671_s19 = scalar_lea.vmem %s7670_s18, 2048 }
  0x97   : > { %v2225_v48 = vrot.slane %v8378_v44, 1  ;;  %v755_v49 = vld [vmem:[#allocation2 + $0x8] sm:$0x1]  ;;  %753 = vst [vmem:[#allocation2] sm:$0xf] %v752_v39  ;;  %2494 = vmatprep.mubr.bf16.mxu0 %v2093_v24  ;;  %v1477_v12 = vrot.slane %v1475_v59, 1  ;;  %p7673_p2 = scmp.lt.s32.totalorder %s7671_s19, %s7665_s17 }
  0x98   : > { %v756_v23 = vsel %vm7938_vm2, %v7932_v25, %v755_v49  ;;  %v2105_v15 = vsel %vm1459_vm9, %v2100_v4, %v2104_v8  ;;  %v7564_v18 = vld [vmem:[#allocation2 + $0x20] ss:$0 sps:$4 sm:$0x11]   ;;  %v2109_v26 = vshll.u32 %v8301_v50, 16  ;;  %v2114_v33 = vshll.u32 %v8305_v55, 16  ;;  %v8422_v39 = vld [vmem:[#allocation2 + $0x24] sm:$0xff]  }
  0x99   : > { %v8387_v52 = vld [vmem:[#allocation2 + $0xc0] sm:$0xff]   ;;  %v2226_v60 = vsel %vm1668_vm10, %v2224_v2, %v2225_v48  ;;  %757 = vst [vmem:[#allocation2 + $0x8] sm:$0x1] %v756_v23  ;;  %v1478_v10 = vor.u32 %v1477_v12, %v1473_v5  ;;  %v1482_v21 = vrot.slane %v1480_v14, 1  ;;  %v1487_v38 = vshll.u32 %v8403_v13, 16  ;;  %v7572_v4 = vld [vmem:[%s10169_s4 + $0x90] sm:$0xff]   ;;  %p7674_p3 = por %p7673_p2, %p7672_p1 }
  0x9a   : > { %v8395_v61 = vld [vmem:[#allocation2 + $0xc8] ss:$0 sps:$4 sm:$0x11]   ;;  %7129 = vmatprep.mubr.bf16.mxu1 %v2226_v60  ;;  %v2227_v31 = vrot.slane %v8387_v52, 1  ;;  %2495 = vmatmul.mubr.bf16.gmra.mrb[36].mxu0 %v8243_v35  ;;  %v2111_v11 = vrot.slane %v2109_v26, 1  ;;  %v2116_v40 = vrot.slane %v2114_v33, 1 }
  0x9b   : > { %v2228_v6 = vrot.slane %v8395_v61, 1  ;;  %2502 = vmatprep.mubr.bf16.mxu0 %v2105_v15  ;;  %v2119_v37 = vshrl.u32 %v8325_v0, 16  ;;  %v2121_v43 = vshll.u32 %v8325_v0, 16  ;;  %v2126_v55 = vshll.u32 %v8329_v29, 16  ;;  %v7573_v29 = vld [vmem:[%s10169_s4 + $0x1e8] sm:$0xff]   ;;  %p7675_p5 = pnand %p7674_p3, %p7668_p0 }
  0x9c   : > { %v2112_v2 = vor.u32 %v2111_v11, %v2107_v20  ;;  %v1483_v46 = vsel %vm1459_vm9, %v1478_v10, %v1482_v21  ;;  %v1485_v47 = vshrl.u32 %v8403_v13, 16  ;;  %v1492_v48 = vshll.u32 %v7564_v18, 16  ;;  %v7569_v59 = vld [vmem:[#allocation2 + $0x2c] ss:$0 sps:$4 sm:$0x11]   ;;  %6950 = vmatprep.subr.bf16.mxu0 %v7573_v29  ;;  %v7584_v11 = vld [vmem:[%s10169_s4 + $0x1f8] sm:$0xff]  }
  0x9d   : > { %v2229_v9 = vsel %vm1668_vm10, %v2227_v31, %v2228_v6  ;;  %v1489_v51 = vrot.slane %v1487_v38, 1  ;;  %v2128_v24 = vrot.slane %v2126_v55, 1  ;;  %v7574_v60 = vld [vmem:[%s10169_s4 + $0x1a8] sm:$0xff]   ;;  %v1499_v31 = vshll.u32 %v8422_v39, 16 }
  0x9e   : > { %7130 = vmatmul.mubr.bf16.gmra.mrb[28].mxu1 %v2229_v9  ;;  %v7556_v17 = vld [vmem:[#allocation2] sm:$0xff]   ;;  %v2117_v23 = vsel %vm1459_vm9, %v2112_v2, %v2116_v40  ;;  %v1494_v62 = vrot.slane %v1492_v48, 1  ;;  %v2131_v5 = vshrl.u32 %v8343_v54, 16  ;;  %v2133_v8 = vshll.u32 %v8343_v54, 16  ;;  %6951 = vmatpush3.bf16.msra.mxu0 %v7574_v60  ;;  %v7585_v2 = vld [vmem:[%s10169_s4 + $0x1b8] sm:$0xff]  }
  0x9f   : > { %v1461_v30 = vshrl.u32 %v7556_v17, 16  ;;  %v1463_v1 = vshll.u32 %v7556_v17, 16  ;;  %v1490_v6 = vor.u32 %v1489_v51, %v1485_v47  ;;  %v2145_v14 = vshll.u32 %v8376_v42, 16  ;;  %v7571_v20 = vld [vmem:[#allocation2 + $0x38] ss:$0 sps:$4 sm:$0x11]  }
  0xa0   : > { %v7557_v35 = vld [vmem:[#allocation2 + $0x8] ss:$0 sps:$4 sm:$0x11]   ;;  %v2135_v9 = vrot.slane %v2133_v8, 1  ;;  %v1497_v15 = vshrl.u32 %v8422_v39, 16  ;;  %v2150_v26 = vshll.u32 %v8378_v44, 16 }
  0xa1   : > { %v1468_v34 = vshll.u32 %v7557_v35, 16  ;;  %v1465_v36 = vrot.slane %v1463_v1, 1  ;;  %v1504_v35 = vshll.u32 %v7569_v59, 16  ;;  %v2147_v22 = vrot.slane %v2145_v14, 1  ;;  %v8481_v51 = vld [vmem:[#allocation2 + $0x18] sm:$0xff]   ;;  %v7590_v59 = vld [vmem:[%s10169_s4 + $0xa0] sm:$0xff]  }
  0xa2   : > { %2503 = vmatmul.mubr.bf16.gmra.mrb[40].mxu0 %v8281_v16  ;;  %v2123_v16 = vrot.slane %v2121_v43, 1  ;;  %v2136_v18 = vor.u32 %v2135_v9, %v2131_v5  ;;  %v1511_v33 = vshll.u32 %v8447_v27, 16  ;;  %v2157_v44 = vshll.u32 %v8387_v52, 16  ;;  %v7578_v5 = vld [vmem:[#allocation2 + $0x50] ss:$0 sps:$4 sm:$0x11]  }
  0xa3   : > { %v1470_v41 = vrot.slane %v1468_v34, 1  ;;  %v1466_v45 = vor.u32 %v1465_v36, %v1461_v30  ;;  %2510 = vmatprep.mubr.bf16.mxu0 %v2117_v23  ;;  %v2143_v30 = vshrl.u32 %v8376_v42, 16  ;;  %v7580_v34 = vld [vmem:[%s10169_s4 + $0x1f0] sm:$0xff]   ;;  %v1506_v21 = vrot.slane %v1504_v35, 1  ;;  %v8495_v8 = vld [vmem:[#allocation2 + $0x24] sm:$0xff]  }
  0xa4   : > { %v2124_v56 = vor.u32 %v2123_v16, %v2119_v37  ;;  %6952 = vmatprep.subr.bf16.mxu0 %v7580_v34  ;;  %v2152_v38 = vrot.slane %v2150_v26, 1  ;;  %v1509_v40 = vshrl.u32 %v8447_v27, 16  ;;  %v8470_v37 = vld [vmem:[#allocation2 + $0x3c] sm:$0xff]   ;;  %v2159_v55 = vrot.slane %v2157_v44, 1  ;;  %v8502_v35 = vld [vmem:[#allocation2 + $0x54] sm:$0xff]  }
  0xa5   : > { %v1471_v49 = vsel %vm1459_vm9, %v1466_v45, %v1470_v41  ;;  %v2148_v36 = vor.u32 %v2147_v22, %v2143_v30  ;;  %v1513_v41 = vrot.slane %v1511_v33, 1  ;;  %v2155_v45 = vshrl.u32 %v8387_v52, 16  ;;  %v7576_v16 = vld [vmem:[#allocation2 + $0x44] ss:$0 sps:$4 sm:$0x11]   ;;  %v7599_v30 = vld [vmem:[%s10169_s4 + $0xa8] sm:$0xff]  }
  0xa6   : > { %2888 = vmatprep.mubr.bf16.mxu1 %v1471_v49  ;;  %v2129_v3 = vsel %vm1459_vm9, %v2124_v56, %v2128_v24  ;;  %v1523_v49 = vshll.u32 %v8470_v37, 16  ;;  %v7589_v23 = vld [vmem:[#allocation2 + $0x20] ss:$0 sps:$4 sm:$0x11]   ;;  %v8486_v56 = vld [vmem:[#allocation2 + $0x48] sm:$0xff]  }
  0xa7   : > { %2889 = vmatmul.mubr.bf16.vlgmr.msra.gmra.mrb[32].mxu1 %v7556_v17  ;;  %v1495_v17 = vsel %vm1459_vm9, %v1490_v6, %v1494_v62  ;;  %v2153_v47 = vsel %vm1459_vm9, %v2148_v36, %v2152_v38  ;;  %v2160_v24 = vor.u32 %v2159_v55, %v2155_v45  ;;  %v8515_v22 = vld [vmem:[%s10169_s4 + $0x200] sm:$0xff]   ;;  %v8518_v26 = vld [vmem:[#allocation2 + $0x5c] ss:$0 sps:$4 sm:$0x11]  }
  0xa8   : > { %7134 = vmatpush3.bf16.msra.mxu1 %v8261_v53  ;;  %2896 = vmatprep.mubr.bf16.mxu1 %v1483_v46  ;;  %v2138_v53 = vshll.u32 %v8345_v58, 16  ;;  %v7579_v58 = vld [vmem:[%s10169_s4 + $0x98] sm:$0xff]   ;;  %v2162_v46 = vshll.u32 %v8395_v61, 16  ;;  %v3423_v61 = vshll.u32 %v8481_v51, 16  ;;  %v1525_v62 = vrot.slane %v1523_v49, 1  ;;  %v8529_v45 = vld [vmem:[#allocation2 + $0x60] sm:$0xff]  }
  0xa9   : > { %7135 = vmatprep.subr.bf16.mxu1 %v7565_v7  ;;  %v8831_v57 = vld [vmem:[#allocation2 + $0xb0] ss:$0 sps:$4 sm:$0x11]  }
  0xaa   : > { %2511 = vmatmul.mubr.bf16.gmra.mrb[44].mxu0 %v8301_v50  ;;  %v2140_v12 = vrot.slane %v2138_v53, 1  ;;  %v1501_v50 = vrot.slane %v1499_v31, 1  ;;  %v2164_v29 = vrot.slane %v2162_v46, 1  ;;  %v1528_v31 = vshll.u32 %v7576_v16, 16  ;;  %v7609_v16 = vld [vmem:[%s10169_s4 + $0xb0] sm:$0xff]  }
  0xab   : > { %2518 = vmatprep.mubr.bf16.mxu0 %v2129_v3  ;;  %v3425_v6 = vrot.slane %v3423_v61, 1 }
  0xac   : > { %7136 = vmatpush3.bf16.msra.mxu1 %v7565_v7  ;;  %v2141_v1 = vsel %vm1459_vm9, %v2136_v18, %v2140_v12  ;;  %v1502_v10 = vor.u32 %v1501_v50, %v1497_v15  ;;  %v1514_v7 = vor.u32 %v1513_v41, %v1509_v40  ;;  %v2165_v3 = vsel %vm1459_vm9, %v2160_v24, %v2164_v29  ;;  %v8499_v50 = vld [vmem:[#allocation2 + $0x2c] ss:$0 sps:$4 sm:$0x11]   ;;  %v8549_v24 = vld [vmem:[#allocation2 + $0x44] ss:$0 sps:$4 sm:$0x11]  }
  0xad   : > { %7137 = vmatprep.subr.bf16.mxu1 %v7572_v4  ;;  %v1530_v9 = vrot.slane %v1528_v31, 1  ;;  %v1535_v12 = vshll.u32 %v8486_v56, 16  ;;  %v1545_v40 = vshrl.u32 %v8502_v35, 16 }
  0xae   : > { %v1507_v43 = vsel %vm1459_vm9, %v1502_v10, %v1506_v21  ;;  %v3440_v10 = vshll.u32 %v8499_v50, 16 }
  0xaf   : > { %2897 = vmatmul.mubr.bf16.gmra.mrb[36].mxu1 %v8373_v63  ;;  %v7581_v63 = vld [vmem:[%s10169_s4 + $0x1b0] sm:$0xff]  }
  0xb0   : > { %2904 = vmatprep.mubr.bf16.mxu1 %v1495_v17  ;;  %7138 = vmatpush3.bf16.msra.mxu1 %v7572_v4  ;;  %v3428_v4 = vshll.u32 %v7589_v23, 16  ;;  %v1540_v17 = vshll.u32 %v7578_v5, 16  ;;  %v3442_v38 = vrot.slane %v3440_v10, 1  ;;  %v1559_v23 = vshll.u32 %v8529_v45, 16  ;;  %v8563_v5 = vld [vmem:[#allocation2 + $0x48] sm:$0xff]  }
  0xb1   : > { %7139 = vmatprep.subr.bf16.mxu1 %v7579_v58  ;;  %6953 = vmatpush3.bf16.msra.mxu0 %v7581_v63  ;;  %v1547_v63 = vshll.u32 %v8502_v35, 16  ;;  %v3469_v10 = vshrl.u32 %v8563_v5, 16 }
  0xb2   : > { %2519 = vmatmul.mubr.bf16.gmra.mrb[48].mxu0 %v8325_v0  ;;  %v1516_v0 = vshll.u32 %v7571_v20, 16  ;;  %6954 = vmatprep.subr.bf16.mxu0 %v7584_v11  ;;  %v3430_v15 = vrot.slane %v3428_v4, 1  ;;  %v1537_v20 = vrot.slane %v1535_v12, 1  ;;  %v1542_v21 = vrot.slane %v1540_v17, 1 }
  0xb3   : > { %2526 = vmatprep.mubr.bf16.mxu0 %v2141_v1  ;;  %v8510_v1 = vld [vmem:[#allocation2 + $0x30] sm:$0xff]   ;;  %v1549_v41 = vrot.slane %v1547_v63, 1  ;;  %v1561_v31 = vrot.slane %v1559_v23, 1 }
  0xb4   : > { %7140 = vmatpush3.bf16.msra.mxu1 %v7579_v58  ;;  %v1518_v48 = vrot.slane %v1516_v0, 1  ;;  %v1533_v58 = vshrl.u32 %v8486_v56, 16  ;;  %v3447_v11 = vshll.u32 %v8510_v1, 16  ;;  %v3445_v55 = vshrl.u32 %v8510_v1, 16  ;;  %v8587_v63 = vld [vmem:[%s10169_s4 + $0x210] sm:$0xff]  }
  0xb5   : > { %6955 = vmatpush3.bf16.msra.mxu0 %v7585_v2  ;;  %7141 = vmatprep.subr.bf16.mxu1 %v7590_v59  ;;  %v8531_v2 = vld [vmem:[#allocation2 + $0x68] ss:$0 sps:$4 sm:$0x11]   ;;  %v1550_v49 = vor.u32 %v1549_v41, %v1545_v40 }
  0xb6   : > { %v1519_v60 = vsel %vm1459_vm9, %v1514_v7, %v1518_v48  ;;  %7181 = vmatprep.subr.bf16.mxu0 %v8515_v22  ;;  %v1538_v44 = vor.u32 %v1537_v20, %v1533_v58  ;;  %v3449_v46 = vrot.slane %v3447_v11, 1  ;;  %v8536_v48 = vld [vmem:[#allocation2 + $0x3c] sm:$0xff]  }
  0xb7   : > { %2905 = vmatmul.mubr.bf16.gmra.mrb[40].mxu1 %v8403_v13  ;;  %v1521_v13 = vshrl.u32 %v8470_v37, 16  ;;  %v8574_v20 = vld [vmem:[#allocation2 + $0x78] sm:$0xff]  }
  0xb8   : > { %2912 = vmatprep.mubr.bf16.mxu1 %v1507_v43  ;;  %7142 = vmatpush3.bf16.msra.mxu1 %v7590_v59  ;;  %v1543_v0 = vsel %vm1459_vm9, %v1538_v44, %v1542_v21  ;;  %v1552_v43 = vshll.u32 %v8518_v26, 16  ;;  %v3450_v29 = vor.u32 %v3449_v46, %v3445_v55  ;;  %v8554_v59 = vld [vmem:[#allocation2 + $0x6c] sm:$0xff]   ;;  %v1583_v41 = vshll.u32 %v8574_v20, 16  ;;  %v8601_v46 = vld [vmem:[#allocation2 + $0x5c] ss:$0 sps:$4 sm:$0x11]  }
  0xb9   : > { %v1526_v53 = vor.u32 %v1525_v62, %v1521_v13  ;;  %7143 = vmatprep.subr.bf16.mxu1 %v7599_v30  ;;  %v3459_v13 = vshll.u32 %v8536_v48, 16  ;;  %v1557_v62 = vshrl.u32 %v8529_v45, 16  ;;  %v1571_v12 = vshll.u32 %v8554_v59, 16 }
  0xba   : > { %2527 = vmatmul.mubr.bf16.gmra.mrb[52].mxu0 %v8343_v54  ;;  %v3421_v54 = vshrl.u32 %v8481_v51, 16  ;;  %v1554_v7 = vrot.slane %v1552_v43, 1  ;;  %v1581_v43 = vshrl.u32 %v8574_v20, 16 }
  0xbb   : > { %2534 = vmatprep.mubr.bf16.mxu0 %v2153_v47  ;;  %v1531_v18 = vsel %vm1459_vm9, %v1526_v53, %v1530_v9  ;;  %v3461_v4 = vrot.slane %v3459_v13, 1  ;;  %v8565_v9 = vld [vmem:[#allocation2 + $0x74] ss:$0 sps:$4 sm:$0x11]  }
  0xbc   : > { %v3426_v14 = vor.u32 %v3425_v6, %v3421_v54  ;;  %7144 = vmatpush3.bf16.msra.mxu1 %v7599_v30  ;;  %v3457_v54 = vshrl.u32 %v8536_v48, 16  ;;  %v1576_v58 = vshll.u32 %v8565_v9, 16  ;;  %v7619_v30 = vld [vmem:[%s10169_s4 + $0xb8] sm:$0xff]  }
  0xbd   : > { %7145 = vmatprep.subr.bf16.mxu1 %v7609_v16  ;;  %v8612_v13 = vld [vmem:[#allocation2 + $0x98] ss:$0 sps:$4 sm:$0x11]  }
  0xbe   : > { %v3431_v33 = vsel %vm1459_vm9, %v3426_v14, %v3430_v15  ;;  %v1562_v14 = vor.u32 %v1561_v31, %v1557_v62  ;;  %v8569_v15 = vld [vmem:[#allocation2 + $0x50] ss:$0 sps:$4 sm:$0x11]   ;;  %v1578_v40 = vrot.slane %v1576_v58, 1 }
  0xbf   : > { %2913 = vmatmul.mubr.bf16.gmra.mrb[44].mxu1 %v8422_v39  ;;  %v3435_v39 = vshll.u32 %v8495_v8, 16  ;;  %v3476_v21 = vshll.u32 %v8569_v15, 16 }
  0xc0   : > { %2920 = vmatprep.mubr.bf16.mxu1 %v1519_v60  ;;  %7146 = vmatpush3.bf16.msra.mxu1 %v7609_v16  ;;  %v1555_v60 = vsel %vm1459_vm9, %v1550_v49, %v1554_v7  ;;  %v8605_v16 = vld [vmem:[#allocation2 + $0x8c] ss:$0 sps:$4 sm:$0x11]   ;;  %v1585_v7 = vrot.slane %v1583_v41, 1  ;;  %v8647_v41 = vld [vmem:[%s10169_s4 + $0x220] sm:$0xff]  }
  0xc1   : > { %v3437_v34 = vrot.slane %v3435_v39, 1  ;;  %v3462_v39 = vor.u32 %v3461_v4, %v3457_v54  ;;  %7147 = vmatprep.subr.bf16.mxu1 %v7619_v30  ;;  %v3488_v54 = vshll.u32 %v8601_v46, 16  ;;  %v8625_v4 = vld [vmem:[#allocation2 + $0x9c] sm:$0xff]  }
  0xc2   : > { %2535 = vmatmul.mubr.bf16.gmra.mrb[56].mxu0 %v8376_v42  ;;  %v3433_v42 = vshrl.u32 %v8495_v8, 16 }
  0xc3   : > { %2542 = vmatprep.mubr.bf16.mxu0 %v2165_v3  ;;  %v3464_v3 = vshll.u32 %v8549_v24, 16  ;;  %v3490_v58 = vrot.slane %v3488_v54, 1 }
  0xc4   : > { %v3438_v36 = vor.u32 %v3437_v34, %v3433_v42  ;;  %v8580_v34 = vld [vmem:[#allocation2 + $0x80] ss:$0 sps:$4 sm:$0x11]   ;;  %7148 = vmatpush3.bf16.msra.mxu1 %v7619_v30  ;;  %v1612_v30 = vshll.u32 %v8612_v13, 16 }
  0xc5   : > { %v3466_v17 = vrot.slane %v3464_v3, 1  ;;  %7243 = vmatprep.subr.bf16.mxu1 %v8515_v22  ;;  %v8623_v3 = vld [vmem:[%s10169_s4 + $0x218] sm:$0xff]  }
  0xc7   : > { %2921 = vmatmul.mubr.bf16.gmra.mrb[48].mxu1 %v8447_v27  ;;  %v7598_v27 = vld [vmem:[#allocation2 + $0x38] ss:$0 sps:$4 sm:$0x11]   ;;  %v3467_v44 = vsel %vm1459_vm9, %v3462_v39, %v3466_v17  ;;  %v8632_v39 = vld [vmem:[#allocation2 + $0x68] ss:$0 sps:$4 sm:$0x11]  }
  0xc8   : > { %2928 = vmatprep.mubr.bf16.mxu1 %v1531_v18  ;;  %v3452_v47 = vshll.u32 %v7598_v27, 16  ;;  %v1569_v18 = vshrl.u32 %v8554_v59, 16 }
  0xca   : > { %2543 = vmatmul.mubr.bf16.gmra.mrb[60].mxu0 %v8387_v52  ;;  %v3443_v52 = vsel %vm1459_vm9, %v3438_v36, %v3442_v38  ;;  %v3454_v61 = vrot.slane %v3452_v47, 1  ;;  %v8591_v36 = vld [vmem:[#allocation2 + $0x54] sm:$0xff]   ;;  %v8593_v38 = vld [vmem:[#allocation2 + $0x84] sm:$0xff]  }
  0xcb   : > { %3868 = vmatprep.mubr.bf16.mxu0 %v3431_v33  ;;  %v1573_v33 = vrot.slane %v1571_v12, 1  ;;  %v3483_v47 = vshll.u32 %v8591_v36, 16  ;;  %v1595_v49 = vshll.u32 %v8593_v38, 16  ;;  %v3481_v62 = vshrl.u32 %v8591_v36, 16 }
  0xcc   : > { %v3455_v6 = vsel %vm1459_vm9, %v3450_v29, %v3454_v61  ;;  %v1593_v29 = vshrl.u32 %v8593_v38, 16  ;;  %v8610_v61 = vld [vmem:[#allocation2 + $0x90] sm:$0xff]   ;;  %v1600_v12 = vshll.u32 %v8605_v16, 16 }
  0xcd   : > { %v1574_v11 = vor.u32 %v1573_v33, %v1569_v18  ;;  %v3485_v31 = vrot.slane %v3483_v47, 1  ;;  %v1614_v47 = vrot.slane %v1612_v30, 1  ;;  %v1693_v30 = vrot.slane %v8529_v45, 1 }
  0xcf   : > { %2929 = vmatmul.mubr.bf16.gmra.mrb[52].mxu1 %v8470_v37  ;;  %v8546_v37 = vld [vmem:[%s10169_s4 + $0x208] sm:$0xff]   ;;  %v3486_v18 = vor.u32 %v3485_v31, %v3481_v62  ;;  %v8660_v31 = vld [vmem:[#allocation2 + $0x74] ss:$0 sps:$4 sm:$0x11]  }
  0xd0   : > { %2936 = vmatprep.mubr.bf16.mxu1 %v1543_v0  ;;  %v1588_v0 = vshll.u32 %v8580_v34, 16 }
  0xd2   : > { %3869 = vmatmul.mubr.bf16.vlgmr.msra.gmra.mrb[64].mxu0 %v8481_v51  ;;  %v1564_v51 = vshll.u32 %v8531_v2, 16  ;;  %v1590_v23 = vrot.slane %v1588_v0, 1 }
  0xd3   : > { %3876 = vmatprep.mubr.bf16.mxu0 %v3443_v52  ;;  %7182 = vmatpush3.bf16.msra.mxu0 %v8515_v22  ;;  %v3478_v52 = vrot.slane %v3476_v21, 1  ;;  %v1605_v21 = vshrl.u32 %v8610_v61, 16 }
  0xd4   : > { %7183 = vmatprep.subr.bf16.mxu0 %v8546_v37  ;;  %v1566_v53 = vrot.slane %v1564_v51, 1  ;;  %v8614_v51 = vld [vmem:[#allocation2 + $0x60] sm:$0xff]  }
  0xd5   : > { %v3495_v17 = vshll.u32 %v8614_v51, 16 }
  0xd6   : > { %v1567_v42 = vsel %vm1459_vm9, %v1562_v14, %v1566_v53  ;;  %v1586_v53 = vor.u32 %v1585_v7, %v1581_v43  ;;  %v8629_v14 = vld [vmem:[#allocation2 + $0xa4] ss:$0 sps:$4 sm:$0x11]   ;;  %v8654_v7 = vld [vmem:[#allocation2 + $0xa8] sm:$0xff]  }
  0xd7   : > { %7184 = vmatpush3.bf16.msra.mxu0 %v8546_v37  ;;  %2937 = vmatmul.mubr.bf16.gmra.mrb[56].mxu1 %v8486_v56  ;;  %v3471_v56 = vshll.u32 %v8563_v5, 16 }
  0xd8   : > { %2944 = vmatprep.mubr.bf16.mxu1 %v1555_v60  ;;  %7185 = vmatprep.subr.bf16.mxu0 %v8587_v63  ;;  %v1591_v33 = vsel %vm1459_vm9, %v1586_v53, %v1590_v23  ;;  %v1690_v53 = vrot.slane %v8502_v35, 1 }
  0xd9   : > { %v3473_v27 = vrot.slane %v3471_v56, 1  ;;  %v1607_v56 = vshll.u32 %v8610_v61, 16 }
  0xda   : > { %3877 = vmatmul.mubr.bf16.gmra.mrb[68].mxu0 %v8495_v8 }
  0xdb   : > { %3884 = vmatprep.mubr.bf16.mxu0 %v3455_v6  ;;  %7186 = vmatpush3.bf16.msra.mxu0 %v8587_v63  ;;  %v3474_v55 = vor.u32 %v3473_v27, %v3469_v10  ;;  %v1597_v6 = vrot.slane %v1595_v49, 1  ;;  %v1602_v10 = vrot.slane %v1600_v12, 1  ;;  %v3493_v27 = vshrl.u32 %v8614_v51, 16 }
  0xdc   : > { %7187 = vmatprep.subr.bf16.mxu0 %v8623_v3  ;;  %v1609_v43 = vrot.slane %v1607_v56, 1  ;;  %v1617_v49 = vshrl.u32 %v8625_v4, 16  ;;  %v1691_v12 = vrot.slane %v8518_v26, 1 }
  0xdd   : > { %v3479_v60 = vsel %vm1459_vm9, %v3474_v55, %v3478_v52  ;;  %v1598_v0 = vor.u32 %v1597_v6, %v1593_v29  ;;  %v3491_v52 = vsel %vm1459_vm9, %v3486_v18, %v3490_v58  ;;  %v8651_v55 = vld [vmem:[#allocation2 + $0x6c] sm:$0xff]   ;;  %v1631_v18 = vshll.u32 %v8654_v7, 16  ;;  %v8673_v58 = vld [vmem:[#allocation2 + $0x78] sm:$0xff]  }
  0xde   : > { %v3507_v6 = vshll.u32 %v8651_v55, 16  ;;  %v1610_v56 = vor.u32 %v1609_v43, %v1605_v21  ;;  %v3505_v26 = vshrl.u32 %v8651_v55, 16  ;;  %v1700_v43 = vrot.slane %v8580_v34, 1  ;;  %v8709_v34 = vld [vmem:[#allocation2 + $0x84] sm:$0xff]  }
  0xdf   : > { %2945 = vmatmul.mubr.bf16.gmra.mrb[60].mxu1 %v8502_v35  ;;  %7188 = vmatpush3.bf16.msra.mxu0 %v8623_v3  ;;  %v1603_v54 = vsel %vm1459_vm9, %v1598_v0, %v1602_v10  ;;  %v8680_v10 = vld [vmem:[#allocation2 + $0x80] ss:$0 sps:$4 sm:$0x11]   ;;  %v1699_v0 = vrot.slane %v8574_v20, 1 }
  0xe0   : > { %2952 = vmatprep.mubr.bf16.mxu1 %v1567_v42  ;;  %v1619_v42 = vshll.u32 %v8625_v4, 16  ;;  %7189 = vmatprep.subr.bf16.mxu0 %v8647_v41 }
  0xe2   : > { %3885 = vmatmul.mubr.bf16.gmra.mrb[72].mxu0 %v8510_v1  ;;  %v1579_v1 = vsel %vm1459_vm9, %v1574_v11, %v1578_v40  ;;  %v3497_v11 = vrot.slane %v3495_v17, 1  ;;  %v3500_v40 = vshll.u32 %v8632_v39, 16  ;;  %v8670_v17 = vld [vmem:[%s10169_s4 + $0x228] sm:$0xff]  }
  0xe3   : > { %3892 = vmatprep.mubr.bf16.mxu0 %v3467_v44  ;;  %v1624_v44 = vshll.u32 %v8629_v14, 16  ;;  %7190 = vmatpush3.bf16.msra.mxu0 %v8647_v41 }
  0xe4   : > { %v3498_v29 = vor.u32 %v3497_v11, %v3493_v27  ;;  %v3502_v62 = vrot.slane %v3500_v40, 1  ;;  %7191 = vmatprep.subr.bf16.mxu0 %v8670_v17  ;;  %v3509_v11 = vrot.slane %v3507_v6, 1  ;;  %v3512_v40 = vshll.u32 %v8660_v31, 16 }
  0xe5   : > { %v1626_v23 = vrot.slane %v1624_v44, 1  ;;  %v8683_v44 = vsel %vm1668_vm10, %v1690_v53, %v1691_v12  ;;  %v3524_v6 = vshll.u32 %v8680_v10, 16  ;;  %v8706_v53 = vsel %vm1668_vm10, %v1699_v0, %v1700_v43  ;;  %v8727_v0 = vld [vmem:[#allocation2 + $0xb4] sm:$0xff]  }
  0xe6   : > { %v3503_v21 = vsel %vm1459_vm9, %v3498_v29, %v3502_v62  ;;  %v1633_v29 = vrot.slane %v1631_v18, 1  ;;  %v3519_v62 = vshll.u32 %v8673_v58, 16  ;;  %v3510_v12 = vor.u32 %v3509_v11, %v3505_v26 }
  0xe7   : > { %2953 = vmatmul.mubr.bf16.gmra.mrb[64].mxu1 %v8529_v45  ;;  %v1696_v45 = vrot.slane %v8554_v59, 1  ;;  %7192 = vmatpush3.bf16.msra.mxu0 %v8670_v17  ;;  %v3514_v18 = vrot.slane %v3512_v40, 1  ;;  %v1708_v26 = vrot.slane %v8625_v4, 1  ;;  %v1709_v11 = vrot.slane %v8629_v14, 1  ;;  %v8736_v40 = vld [vmem:[%s10169_s4 + $0x230] sm:$0xff]  }
  0xe8   : > { %2960 = vmatprep.mubr.bf16.mxu1 %v1579_v1  ;;  %v1621_v1 = vrot.slane %v1619_v42, 1  ;;  %v1694_v42 = vrot.slane %v8531_v2, 1  ;;  %v1697_v2 = vrot.slane %v8565_v9, 1  ;;  %v3526_v43 = vrot.slane %v3524_v6, 1  ;;  %7193 = vmatprep.subr.bf16.mxu0 %v8736_v40  ;;  %v724_v6 = vld [vmem:[#allocation2 + $0xd4] sm:$0x1] }
  0xea   : > { %3893 = vmatmul.mubr.bf16.gmra.mrb[76].mxu0 %v8536_v48  ;;  %v8688_v27 = vsel %vm1668_vm10, %v1693_v30, %v1694_v42  ;;  %v3517_v30 = vshrl.u32 %v8673_v58, 16  ;;  %v3521_v42 = vrot.slane %v3519_v62, 1  ;;  %v3531_v62 = vshll.u32 %v8709_v34, 16 }
  0xeb   : > { %3900 = vmatprep.mubr.bf16.mxu0 %v3479_v60  ;;  %v8658_v60 = vld [vmem:[#allocation2 + $0xb0] ss:$0 sps:$4 sm:$0x11]   ;;  %7194 = vmatpush3.bf16.msra.mxu0 %v8736_v40 }
  0xec   : > { %v1636_v35 = vshll.u32 %v8658_v60, 16  ;;  %v3533_v32 = vrot.slane %v3531_v62, 1 }
  0xee   : > { %v8702_v9 = vrot.slane %v1636_v35, 1  ;;  %v8715_v35 = vld [vmem:[#allocation2 + $0x8c] ss:$0 sps:$4 sm:$0x11]  }
  0xef   : > { %2961 = vmatmul.mubr.bf16.gmra.mrb[68].mxu1 %v8554_v59  ;;  %v8699_v59 = vsel %vm1668_vm10, %v1696_v45, %v1697_v2  ;;  %v1615_v2 = vsel %vm1459_vm9, %v1610_v56, %v1614_v47  ;;  %v1711_v47 = vrot.slane %v8654_v7, 1  ;;  %v668_v56 = vld [vmem:[#allocation2 + $0xcc] sm:$0x1] }
  0xf0   : > { %2968 = vmatprep.mubr.bf16.mxu1 %v1591_v33  ;;  %v1629_v33 = vshrl.u32 %v8654_v7, 16  ;;  %v669_v14 = vsel %vm7938_vm2, 0, %v668_v56  ;;  %v3650_v56 = vrot.slane %v8660_v31, 1  ;;  %v3652_v31 = vrot.slane %v8673_v58, 1 }
  0xf1   : > { %670 = vst [vmem:[#allocation2 + $0xcc] sm:$0x1] %v669_v14 }
  0xf2   : > { %3901 = vmatmul.mubr.bf16.gmra.mrb[80].mxu0 %v8563_v5 }
  0xf3   : > { %3908 = vmatprep.mubr.bf16.mxu0 %v3491_v52  ;;  %v1622_v52 = vor.u32 %v1621_v1, %v1617_v49  ;;  %v1703_v49 = vrot.slane %v8605_v16, 1  ;;  %v1705_v1 = vrot.slane %v8610_v61, 1 }
  0xf5   : > { %v8725_v16 = vsel %vm1459_vm9, %v1622_v52, %v1626_v23  ;;  %v1712_v23 = vrot.slane %v8658_v60, 1  ;;  %v3515_v52 = vsel %vm1459_vm9, %v3510_v12, %v3514_v18  ;;  %v3536_v60 = vshll.u32 %v8715_v35, 16 }
  0xf6   : > { %v8759_v12 = vor.u32 %v1633_v29, %v1629_v33  ;;  %v3529_v18 = vshrl.u32 %v8709_v34, 16  ;;  %v3631_v33 = vrot.slane %v8495_v8, 1  ;;  %v3632_v29 = vrot.slane %v8499_v50, 1 }
  0xf7   : > { %2969 = vmatmul.mubr.bf16.gmra.mrb[72].mxu1 %v8574_v20  ;;  %v1702_v20 = vrot.slane %v8593_v38, 1  ;;  %v3538_v62 = vrot.slane %v3536_v60, 1  ;;  %v3638_v60 = vrot.slane %v8549_v24, 1 }
  0xf8   : > { %2976 = vmatprep.mubr.bf16.mxu1 %v1603_v54  ;;  %v1706_v54 = vrot.slane %v8612_v13, 1  ;;  %v8729_v13 = vld [vmem:[#allocation2 + $0xbc] ss:$0 sps:$4 sm:$0x11]   ;;  %v8788_v50 = vsel %vm1668_vm10, %v3631_v33, %v3632_v29  ;;  %v3640_v33 = vrot.slane %v8563_v5, 1 }
  0xf9   : > { %v8718_v45 = vsel %vm1668_vm10, %v1702_v20, %v1703_v49  ;;  %v8744_v20 = vsel %vm1668_vm10, %v1708_v26, %v1709_v11  ;;  %v1714_v49 = vrot.slane %v8727_v0, 1  ;;  %v3647_v26 = vrot.slane %v8632_v39, 1  ;;  %v8790_v39 = vld [vmem:[#allocation2 + $0x98] ss:$0 sps:$4 sm:$0x11]  }
  0xfa   : > { %3909 = vmatmul.mubr.bf16.gmra.mrb[84].mxu0 %v8591_v36  ;;  %v1643_v11 = vshll.u32 %v8727_v0, 16  ;;  %v3659_v5 = vrot.slane %v8790_v39, 1 }
  0xfb   : > { %3916 = vmatprep.mubr.bf16.mxu0 %v3503_v21  ;;  %v8721_v21 = vsel %vm1668_vm10, %v1705_v1, %v1706_v54  ;;  %v3522_v1 = vor.u32 %v3521_v42, %v3517_v30  ;;  %v725_v54 = vsel %vm7946_vm4, 0, %v724_v6  ;;  %v1715_v30 = vrot.slane %v8729_v13, 1  ;;  %v8767_v42 = vld [vmem:[%s10169_s4 + $0x238] sm:$0xff]  }
  0xfc   : > { %726 = vst [vmem:[#allocation2 + $0xd4] sm:$0x1] %v725_v54  ;;  %7195 = vmatprep.subr.bf16.mxu0 %v8767_v42  ;;  %v3637_v6 = vrot.slane %v8536_v48, 1  ;;  %v3655_v54 = vrot.slane %v8709_v34, 1  ;;  %vm6031_vm4 = vcmask 1047559  }
  0xfd   : > { %7196 = vmatpush3.bf16.msra.mxu0 %v8767_v42 }
  0xff   : > { %2977 = vmatmul.mubr.bf16.gmra.mrb[76].mxu1 %v8593_v38  ;;  %v8753_v38 = vsel %vm1668_vm10, %v1711_v47, %v1712_v23  ;;  %v8775_v47 = vsel %vm1668_vm10, %v1714_v49, %v1715_v30  ;;  %v3649_v23 = vrot.slane %v8651_v55, 1  ;;  %v3534_v49 = vor.u32 %v3533_v32, %v3529_v18  ;;  %v8811_v18 = vld [vmem:[#allocation2 + $0x9c] sm:$0xff]  }
 0x100   : > { %2984 = vmatprep.mubr.bf16.mxu1 %v1615_v2  ;;  %v3646_v2 = vrot.slane %v8614_v51, 1  ;;  %v3656_v30 = vrot.slane %v8715_v35, 1 }
 0x101   : > { %v8793_v14 = vsel %vm1668_vm10, %v3649_v23, %v3650_v56  ;;  %v3643_v23 = vrot.slane %v8591_v36, 1  ;;  %v3644_v56 = vrot.slane %v8601_v46, 1  ;;  %v3665_v46 = vrot.slane %v8831_v57, 1 }
 0x102   : > { %3917 = vmatmul.mubr.bf16.gmra.mrb[88].mxu0 %v8614_v51  ;;  %v3527_v51 = vsel %vm1459_vm9, %v3522_v1, %v3526_v43  ;;  %v8785_v8 = vsel %vm1668_vm10, %v3646_v2, %v3647_v26  ;;  %v3653_v43 = vrot.slane %v8680_v10, 1  ;;  %v8798_v1 = vld [vmem:[#allocation2 + $0xa4] ss:$0 sps:$4 sm:$0x11]   ;;  %v1212_v2 = vld [vmem:[#allocation2 + $0xcc] sm:$0xf]  ;;  %v8820_v32 = vsel %vm1668_vm10, %v3655_v54, %v3656_v30 }
 0x103   : > { %3924 = vmatprep.mubr.bf16.mxu0 %v3515_v52  ;;  %v8781_v52 = vld [vmem:[#allocation2 + $0x90] sm:$0xff]   ;;  %v3641_v10 = vrot.slane %v8569_v15, 1  ;;  %v1213_v24 = vsel %vm7975_vm8, %v7909_v19, %v1212_v2  ;;  %v8826_v15 = vld [vmem:[%s10171_s6] sm:$0x7] }
 0x104   : > { %v8805_v26 = vsel %vm1668_vm10, %v3652_v31, %v3653_v43  ;;  %v3658_v48 = vrot.slane %v8781_v52, 1  ;;  %v1216_v35 = vld [vmem:[#allocation2 + $0xd4] sm:$0x1]  ;;  %1214 = vst [vmem:[#allocation2 + $0xcc] sm:$0xf] %v1213_v24  ;;  %v3661_v43 = vrot.slane %v8811_v18, 1  ;;  %7229 = vmatprep.subr.msk.mxu0 %vm5505_vm11, %v8826_v15 }
 0x105   : > { %v1217_v19 = vsel %vm7938_vm2, %v7932_v25, %v1216_v35  ;;  %v8837_v29 = vsel %vm1668_vm10, %v3640_v33, %v3641_v10  ;;  %v3543_v25 = vshll.u32 %v8781_v52, 16  ;;  %v1641_v33 = vshrl.u32 %v8727_v0, 16 }
 0x106   : > { %1218 = vst [vmem:[#allocation2 + $0xd4] sm:$0x1] %v1217_v19  ;;  %v1645_v10 = vrot.slane %v1643_v11, 1  ;;  %vm6025_vm2 = vcmask 1045509  }
 0x107   : > { %2985 = vmatmul.mubr.bf16.gmra.mrb[80].mxu1 %v8610_v61  ;;  %v8817_v61 = vsel %vm1668_vm10, %v3637_v6, %v3638_v60  ;;  %v3662_v6 = vrot.slane %v8798_v1, 1  ;;  %v8848_v60 = vsel %vm1668_vm10, %v3643_v23, %v3644_v56  ;;  %v3545_v19 = vrot.slane %v3543_v25, 1 }
 0x108   : > { %2992 = vmatprep.mubr.bf16.mxu1 %v8725_v16  ;;  %v8829_v16 = vld [vmem:[#allocation2 + $0xa8] sm:$0xff]   ;;  %v3548_v23 = vshll.u32 %v8790_v39, 16  ;;  %v1646_v11 = vor.u32 %v1645_v10, %v1641_v33  ;;  %v3553_v10 = vshrl.u32 %v8811_v18, 16 }
 0x109   : > { %v3664_v36 = vrot.slane %v8829_v16, 1  ;;  %v8860_v2 = vsel %vm1668_vm10, %v3661_v43, %v3662_v6 }
 0x10a   : > { %3925 = vmatmul.mubr.bf16.gmra.mrb[92].mxu0 %v8651_v55  ;;  %v8842_v55 = vsel %vm1668_vm10, %v3658_v48, %v3659_v5  ;;  %v1648_v48 = vshll.u32 %v8729_v13, 16 }
 0x10b   : > { %3932 = vmatprep.mubr.bf16.mxu0 %v3527_v51  ;;  %v1639_v51 = vsel %vm1459_vm9, %v8759_v12, %v8702_v9  ;;  %v8865_v35 = vsel %vm1668_vm10, %v3664_v36, %v3665_v46  ;;  %v3539_v9 = vsel %vm1459_vm9, %v3534_v49, %v3538_v62  ;;  %v3541_v12 = vshrl.u32 %v8781_v52, 16  ;;  %v8873_v56 = vld [vmem:[#allocation2 + $0xcc] sm:$0xff]  }
 0x10c   : > { %v1650_v13 = vrot.slane %v1648_v48, 1  ;;  %v3550_v62 = vrot.slane %v3548_v23, 1  ;;  %v3555_v49 = vshll.u32 %v8811_v18, 16 }
 0x10d   : > { %v3546_v6 = vor.u32 %v3545_v19, %v3541_v12  ;;  %v7647_v19 = vld [vmem:[#allocation2 + $0x8] ss:$0 sps:$4 sm:$0x11]  }
 0x10e   : > { %v1651_v46 = vsel %vm1459_vm9, %v1646_v11, %v1650_v13  ;;  %v3557_v48 = vrot.slane %v3555_v49, 1  ;;  %v1670_v23 = vrot.slane %v7647_v19, 1  ;;  %v7651_v19 = vld [vmem:[#allocation2 + $0x20] ss:$0 sps:$4 sm:$0x11]  }
 0x10f   : > { %v6684_v31 = vpop.f32.mrb[0].mxu0  ;;  %2993 = vmatmul.mubr.bf16.gmra.mrb[84].mxu1 %v8625_v4  ;;  %v3673_v4 = vrot.slane %v8873_v56, 1  ;;  %v3551_v33 = vsel %vm1459_vm9, %v3546_v6, %v3550_v62 }
 0x110   : > { %v6685_v28 = vpop.f32.mrb[1].mxu0  ;;  %3000 = vmatprep.mubr.bf16.mxu1 %v1639_v51  ;;  %v3558_v13 = vor.u32 %v3557_v48, %v3553_v10  ;;  %v7649_v48 = vld [vmem:[#allocation2 + $0x14] ss:$0 sps:$4 sm:$0x11]  }
 0x111   : > { %v8857_v54 = vadd.f32 %v6685_v28, %v6684_v31  ;;  %v6687_v30 = vpop.f32.mrb[2].mxu0  ;;  %v8876_v31 = vld [vmem:[#allocation2 + $0xd4] ss:$0 sps:$4 sm:$0x11]  }
 0x112   : > { %v6688_v24 = vpop.f32.mrb[3].mxu0  ;;  %3933 = vmatmul.mubr.bf16.gmra.mrb[96].mxu0 %v8673_v58  ;;  %v3674_v39 = vrot.slane %v8876_v31, 1 }
 0x113   : > { %v8867_v5 = vadd.f32 %v6688_v24, %v6687_v30  ;;  %3940 = vmatprep.mubr.bf16.mxu0 %v3539_v9  ;;  %v3560_v24 = vshll.u32 %v8798_v1, 16  ;;  %v7646_v9 = vld [vmem:[#allocation2] sm:$0xff]  }
 0x114   : > { %v8885_v58 = vsel %vm1668_vm10, %v3673_v4, %v3674_v39  ;;  %v1669_v12 = vrot.slane %v7646_v9, 1  ;;  %v7650_v9 = vld [vmem:[#allocation2 + $0x18] sm:$0xff]  }
 0x116   : > { %v1671_v49 = vsel %vm1668_vm10, %v1669_v12, %v1670_v23  ;;  %v1675_v12 = vrot.slane %v7650_v9, 1  ;;  %v1676_v23 = vrot.slane %v7651_v19, 1  ;;  %v7653_v9 = vld [vmem:[#allocation2 + $0x2c] ss:$0 sps:$4 sm:$0x11]   ;;  %v7654_v19 = vld [vmem:[#allocation2 + $0x30] sm:$0xff]  }
 0x117   : > { %3001 = vmatmul.mubr.bf16.gmra.mrb[88].mxu1 %v8654_v7  ;;  %v3567_v7 = vshll.u32 %v8829_v16, 16 }
 0x118   : > { %v6690_v43 = vpop.f32.mrb[4].mxu0  ;;  %3008 = vmatprep.mubr.bf16.mxu1 %v1651_v46  ;;  %v3572_v46 = vshll.u32 %v8831_v57, 16 }
 0x119   : > { %v6691_v25 = vpop.f32.mrb[5].mxu0 }
 0x11a   : > { %v8881_v28 = vadd.f32 %v6691_v25, %v6690_v43  ;;  %v6693_v36 = vpop.f32.mrb[6].mxu0  ;;  %3941 = vmatmul.mubr.bf16.gmra.mrb[100].mxu0 %v8709_v34  ;;  %v3562_v43 = vrot.slane %v3560_v24, 1  ;;  %v3565_v34 = vshrl.u32 %v8829_v16, 16  ;;  %v1673_v24 = vrot.slane %v7649_v48, 1 }
 0x11b   : > { %v6694_v51 = vpop.f32.mrb[7].mxu0  ;;  %3948 = vmatprep.mubr.bf16.mxu0 %v3551_v33  ;;  %v7648_v33 = vld [vmem:[#allocation2 + $0xc] sm:$0xff]  }
 0x11c   : > { %v8887_v30 = vadd.f32 %v6694_v51, %v6693_v36  ;;  %v3563_v39 = vsel %vm1459_vm9, %v3558_v13, %v3562_v43  ;;  %v3569_v36 = vrot.slane %v3567_v7, 1  ;;  %v8904_v51 = vld [vmem:[#allocation2 + $0xb4] sm:$0xff]   ;;  %v1672_v10 = vrot.slane %v7648_v33, 1  ;;  %v8907_v43 = vld [vmem:[#allocation2 + $0xbc] ss:$0 sps:$4 sm:$0x11]  }
 0x11d   : > { %v3574_v13 = vrot.slane %v3572_v46, 1  ;;  %v3579_v57 = vshll.u32 %v8904_v51, 16  ;;  %v8919_v46 = vld [vmem:[#allocation2 + $0xc0] sm:$0xff]  }
 0x11f   : > { %3009 = vmatmul.mubr.bf16.gmra.mrb[92].mxu1 %v8727_v0 }
 0x120   : > { %v6696_v11 = vpop.f32.mrb[8].mxu0  ;;  %7149 = vmatprep.mubr.bf16.mxu1 %v1671_v49 }
 0x121   : > { %v6697_v4 = vpop.f32.mrb[9].mxu0 }
 0x122   : > { %v8895_v6 = vadd.f32 %v6697_v4, %v6696_v11  ;;  %v6699_v62 = vpop.f32.mrb[10].mxu0  ;;  %3949 = vmatmul.mubr.bf16.gmra.mrb[104].mxu0 %v8781_v52  ;;  %v3570_v11 = vor.u32 %v3569_v36, %v3565_v34  ;;  %v1674_v4 = vsel %vm1668_vm10, %v1672_v10, %v1673_v24  ;;  %v3581_v34 = vrot.slane %v3579_v57, 1  ;;  %v7652_v10 = vld [vmem:[#allocation2 + $0x24] sm:$0xff]  }
 0x123   : > { %v6700_v1 = vpop.f32.mrb[11].mxu0  ;;  %3956 = vmatprep.mubr.bf16.mxu0 %v3563_v39  ;;  %v3577_v39 = vshrl.u32 %v8904_v51, 16  ;;  %v3584_v36 = vshll.u32 %v8907_v43, 16  ;;  %v1678_v24 = vrot.slane %v7652_v10, 1 }
 0x124   : > { %v8898_v25 = vadd.f32 %v6700_v1, %v6699_v62  ;;  %v1677_v1 = vsel %vm1668_vm10, %v1675_v12, %v1676_v23  ;;  %v3575_v52 = vsel %vm1459_vm9, %v3570_v11, %v3574_v13  ;;  %v1679_v12 = vrot.slane %v7653_v9, 1 }
 0x125   : > { %v1681_v23 = vrot.slane %v7654_v19, 1  ;;  %v3582_v13 = vor.u32 %v3581_v34, %v3577_v39  ;;  %v3586_v57 = vrot.slane %v3584_v36, 1  ;;  %v7657_v19 = vld [vmem:[#allocation2 + $0x44] ss:$0 sps:$4 sm:$0x11]  }
 0x127   : > { %7150 = vmatmul.mubr.bf16.vlgmr.msra.gmra.mrb[0].mxu1 %v1674_v4  ;;  %v3587_v34 = vsel %vm1459_vm9, %v3582_v13, %v3586_v57 }
 0x128   : > { %v6702_v0 = vpop.f32.mrb[12].mxu0  ;;  %7251 = vmatpush3.bf16.msra.mxu1 %v8515_v22  ;;  %7153 = vmatprep.mubr.bf16.mxu1 %v1677_v1  ;;  %v3591_v22 = vshll.u32 %v8919_v46, 16 }
 0x129   : > { %v6703_v7 = vpop.f32.mrb[13].mxu0  ;;  %7244 = vmatprep.subr.bf16.mxu1 %v8546_v37 }
 0x12a   : > { %v8911_v62 = vadd.f32 %v6703_v7, %v6702_v0  ;;  %v6705_v49 = vpop.f32.mrb[14].mxu0  ;;  %v7655_v0 = vld [vmem:[#allocation2 + $0x38] ss:$0 sps:$4 sm:$0x11]   ;;  %3957 = vmatmul.mubr.bf16.gmra.mrb[108].mxu0 %v8811_v18  ;;  %v3593_v36 = vrot.slane %v3591_v22, 1  ;;  %v3603_v22 = vshll.u32 %v8873_v56, 16 }
 0x12b   : > { %v6706_v33 = vpop.f32.mrb[15].mxu0  ;;  %v1682_v11 = vrot.slane %v7655_v0, 1  ;;  %3964 = vmatprep.mubr.bf16.mxu0 %v3575_v52  ;;  %v8924_v7 = vld [vmem:[#allocation2 + $0xc8] ss:$0 sps:$4 sm:$0x11]   ;;  %v3589_v52 = vshrl.u32 %v8919_v46, 16 }
 0x12c   : > { %v8914_v48 = vadd.f32 %v6706_v33, %v6705_v49  ;;  %v1680_v49 = vsel %vm1668_vm10, %v1678_v24, %v1679_v12  ;;  %7252 = vmatpush3.bf16.msra.mxu1 %v8546_v37  ;;  %v3596_v9 = vshll.u32 %v8924_v7, 16  ;;  %v7656_v37 = vld [vmem:[#allocation2 + $0x3c] sm:$0xff]   ;;  %v7658_v0 = vld [vmem:[#allocation2 + $0x48] sm:$0xff]  }
 0x12d   : > { %v1683_v33 = vsel %vm1668_vm10, %v1681_v23, %v1682_v11  ;;  %7245 = vmatprep.subr.bf16.mxu1 %v8587_v63  ;;  %v1684_v12 = vrot.slane %v7656_v37, 1  ;;  %v1685_v23 = vrot.slane %v7657_v19, 1  ;;  %v1687_v11 = vrot.slane %v7658_v0, 1 }
 0x12e   : > { %v3594_v13 = vor.u32 %v3593_v36, %v3589_v52  ;;  %v3598_v57 = vrot.slane %v3596_v9, 1 }
 0x12f   : > { %7154 = vmatmul.mubr.bf16.gmra.mrb[4].mxu1 %v1680_v49  ;;  %v1686_v49 = vsel %vm1668_vm10, %v1684_v12, %v1685_v23  ;;  %v7661_v23 = vld [vmem:[#allocation2 + $0x20] ss:$0 sps:$4 sm:$0x11]  }
 0x130   : > { %v6708_v4 = vpop.f32.mrb[16].mxu0  ;;  %7157 = vmatprep.mubr.bf16.mxu1 %v1683_v33  ;;  %7253 = vmatpush3.bf16.msra.mxu1 %v8587_v63  ;;  %v3599_v63 = vsel %vm1459_vm9, %v3594_v13, %v3598_v57  ;;  %v3629_v0 = vrot.slane %v7661_v23, 1 }
 0x131   : > { %v6709_v1 = vpop.f32.mrb[17].mxu0  ;;  %7246 = vmatprep.subr.bf16.mxu1 %v8623_v3 }
 0x132   : > { %v8931_v10 = vadd.f32 %v6709_v1, %v6708_v4  ;;  %v6711_v18 = vpop.f32.mrb[18].mxu0  ;;  %v7659_v4 = vld [vmem:[#allocation2 + $0x50] ss:$0 sps:$4 sm:$0x11]   ;;  %3965 = vmatmul.mubr.bf16.gmra.mrb[112].mxu0 %v8829_v16  ;;  %v3608_v16 = vshll.u32 %v8876_v31, 16 }
 0x133   : > { %v6712_v39 = vpop.f32.mrb[19].mxu0  ;;  %v1688_v1 = vrot.slane %v7659_v4, 1  ;;  %3972 = vmatprep.mubr.bf16.mxu0 %v3587_v34 }
 0x134   : > { %v8936_v24 = vadd.f32 %v6712_v39, %v6711_v18  ;;  %7254 = vmatpush3.bf16.msra.mxu1 %v8623_v3  ;;  %v3601_v18 = vshrl.u32 %v8873_v56, 16  ;;  %v3605_v39 = vrot.slane %v3603_v22, 1  ;;  %v3610_v52 = vrot.slane %v3608_v16, 1 }
 0x135   : > { %v1689_v33 = vsel %vm1668_vm10, %v1687_v11, %v1688_v1  ;;  %7247 = vmatprep.subr.bf16.mxu1 %v8647_v41  ;;  %v7662_v11 = vld [vmem:[#allocation2 + $0x30] sm:$0xff]   ;;  %v7663_v1 = vld [vmem:[#allocation2 + $0x38] ss:$0 sps:$4 sm:$0x11]  }
 0x136   : > { %v3606_v3 = vor.u32 %v3605_v39, %v3601_v18  ;;  %v3634_v4 = vrot.slane %v7662_v11, 1  ;;  %v3635_v13 = vrot.slane %v7663_v1, 1  ;;  %v5475_v39 = vld [vmem:[%s8991_s14 + $0x20] sm:$0xff] }
 0x137   : > { %7158 = vmatmul.mubr.bf16.gmra.mrb[8].mxu1 %v1686_v49 }
 0x138   : > { %7161 = vmatprep.mubr.bf16.mxu1 %v1689_v33  ;;  %7255 = vmatpush3.bf16.msra.mxu1 %v8647_v41  ;;  %v3611_v41 = vsel %vm1459_vm9, %v3606_v3, %v3610_v52 }
 0x139   : > { %7248 = vmatprep.subr.bf16.mxu1 %v8670_v17 }
 0x13a   : > { %3973 = vmatmul.mubr.bf16.gmra.mrb[116].mxu0 %v8904_v51 }
 0x13b   : > { %3980 = vmatprep.mubr.bf16.mxu0 %v3599_v63 }
 0x13c   : > { %7256 = vmatpush3.bf16.msra.mxu1 %v8670_v17  ;;  %v7660_v17 = vld [vmem:[#allocation2 + $0x18] sm:$0xff]  }
 0x13d   : > { %7249 = vmatprep.subr.bf16.mxu1 %v8736_v40  ;;  %v3628_v19 = vrot.slane %v7660_v17, 1 }
 0x13e   : > { %v6714_v34 = vpop.f32.mrb[20].mxu0 }
 0x13f   : > { %v6715_v36 = vpop.f32.mrb[21].mxu0  ;;  %7162 = vmatmul.mubr.bf16.gmra.mrb[12].mxu1 %v8683_v44  ;;  %v3630_v44 = vsel %vm1668_vm10, %v3628_v19, %v3629_v0  ;;  %v3668_v0 = vrot.slane %v8907_v43, 1 }
 0x140   : > { %v8954_v9 = vadd.f32 %v6715_v36, %v6714_v34  ;;  %v6717_v37 = vpop.f32.mrb[22].mxu0  ;;  %7165 = vmatprep.mubr.bf16.mxu1 %v8688_v27  ;;  %7257 = vmatpush3.bf16.msra.mxu1 %v8736_v40  ;;  %v5477_v36 = vld [vmem:[%s8991_s14 + $0x30] sm:$0xff] }
 0x141   : > { %v6718_v31 = vpop.f32.mrb[23].mxu0  ;;  %7250 = vmatprep.subr.bf16.mxu1 %v8767_v42 }
 0x142   : > { %v8958_v12 = vadd.f32 %v6718_v31, %v6717_v37  ;;  %3981 = vmatmul.mubr.bf16.gmra.mrb[120].mxu0 %v8919_v46  ;;  %v5478_v31 = vld [vmem:[%s8991_s14 + $0x38] sm:$0xff] }
 0x143   : > { %3988 = vmatprep.mubr.bf16.mxu0 %v3611_v41 }
 0x144   : > { %7258 = vmatpush3.bf16.msra.mxu1 %v8767_v42 }
 0x147   : > { %7166 = vmatmul.mubr.bf16.gmra.mrb[16].mxu1 %v8699_v59  ;;  %v3636_v59 = vsel %vm1668_vm10, %v3634_v4, %v3635_v13 }
 0x148   : > { %7169 = vmatprep.mubr.bf16.mxu1 %v8706_v53 }
 0x14a   : > { %3989 = vmatmul.mubr.bf16.gmra.mrb[124].mxu0 %v8873_v56 }
 0x14b   : > { %7197 = vmatprep.mubr.bf16.mxu0 %v3630_v44 }
 0x14d   : > { %v6720_v27 = vpop.f32.mrb[24].mxu0 }
 0x14e   : > { %v6721_v40 = vpop.f32.mrb[25].mxu0 }
 0x14f   : > { %v8969_v57 = vadd.f32 %v6721_v40, %v6720_v27  ;;  %v6723_v22 = vpop.f32.mrb[26].mxu0  ;;  %7170 = vmatmul.mubr.bf16.gmra.mrb[20].mxu1 %v8718_v45  ;;  %v3670_v27 = vrot.slane %v8919_v46, 1  ;;  %v3671_v40 = vrot.slane %v8924_v7, 1 }
 0x150   : > { %v6724_v42 = vpop.f32.mrb[27].mxu0  ;;  %7173 = vmatprep.mubr.bf16.mxu1 %v8721_v21 }
 0x151   : > { %v8971_v49 = vadd.f32 %v6724_v42, %v6723_v22 }
 0x152   : > { %7198 = vmatmul.mubr.bf16.vlgmr.msra.gmra.mrb[128].mxu0 %v8788_v50 }
 0x153   : > { %7201 = vmatprep.mubr.bf16.mxu0 %v3636_v59  ;;  %7230 = vmatpush3.msk.msra.mxu0 %vm5505_vm11, %v8826_v15  ;;  %v5472_v15 = vld [vmem:[%s8991_s14 + $0x8] sm:$0xff] }
 0x157   : > { %7174 = vmatmul.mubr.bf16.gmra.mrb[24].mxu1 %v8744_v20  ;;  %v5471_v20 = vld [vmem:[%s8991_s14] sm:$0xff] }
 0x158   : > { %7177 = vmatprep.mubr.bf16.mxu1 %v8753_v38 }
 0x15a   : > { %v6726_v53 = vpop.f32.mrb[28].mxu0  ;;  %7202 = vmatmul.mubr.bf16.gmra.mrb[132].mxu0 %v8817_v61 }
 0x15b   : > { %v6727_v56 = vpop.f32.mrb[29].mxu0  ;;  %7205 = vmatprep.mubr.bf16.mxu0 %v8837_v29 }
 0x15c   : > { %v8983_v45 = vadd.f32 %v6727_v56, %v6726_v53  ;;  %v6729_v33 = vpop.f32.mrb[30].mxu0 }
 0x15d   : > { %v6730_v21 = vpop.f32.mrb[31].mxu0 }
 0x15e   : > { %v8986_v50 = vadd.f32 %v6730_v21, %v6729_v33 }
 0x15f   : > { %7178 = vmatmul.mubr.bf16.gmra.mrb[28].mxu1 %v8775_v47  ;;  %v5473_v47 = vld [vmem:[%s8991_s14 + $0x10] sm:$0xff] }
 0x160   : > { %7209 = vmatprep.mubr.bf16.mxu1 %v8785_v8 }
 0x162   : > { %7206 = vmatmul.mubr.bf16.gmra.mrb[136].mxu0 %v8848_v60  ;;  %v5474_v60 = vld [vmem:[%s8991_s14 + $0x18] sm:$0xff] }
 0x163   : > { %7231 = vmatprep.mubr.msk.f32.mxu0 %vm5480_vm12, %v5471_v20 }
 0x165   : > { %v6732_v38 = vpop.f32.mrb[32].mxu0 }
 0x166   : > { %v6733_v61 = vpop.f32.mrb[33].mxu0 }
 0x167   : > { %v8999_v29 = vadd.f32 %v6733_v61, %v6732_v38  ;;  %v6735_v63 = vpop.f32.mrb[34].mxu0  ;;  %7210 = vmatmul.mubr.bf16.vlgmr.msra.gmra.mrb[12].mxu1 %v8793_v14  ;;  %v5476_v14 = vld [vmem:[%s8991_s14 + $0x28] sm:$0xff]  ;;  %s10119_s14 = scalar_lea.sflag [#allocation4], %s496_s23 }
 0x168   : > { %v6736_v18 = vpop.f32.mrb[35].mxu0  ;;  %7213 = vmatprep.mubr.bf16.mxu1 %v8805_v26 }
 0x169   : > { %v9004_v8 = vadd.f32 %v6736_v18, %v6735_v63 }
 0x16a   : > { %7232 = vmatmul.mubr.msk.f32.vlgmr.msra.gmra.mrb[140].mxu0 %vm5480_vm12, %v5472_v15 }
 0x16b   : > { %7234 = vmatprep.mubr.msk.f32.mxu0 %vm5480_vm12, %v5473_v47 }
 0x16d   : > { %v6738_v16 = vpop.f32.mrb[36].mxu0 }
 0x16e   : > { %7235 = vmatmul.mubr.msk.f32.gmra.mrb[142].mxu0 %vm5480_vm12, %v5474_v60  ;;  %v6739_v3 = vpop.f32.mrb[37].mxu0 }
 0x16f   : > { %7237 = vmatprep.mubr.msk.f32.mxu0 %vm5480_vm12, %v5475_v39  ;;  %v9013_v52 = vadd.f32 %v6739_v3, %v6738_v16  ;;  %v6741_v34 = vpop.f32.mrb[38].mxu0  ;;  %7214 = vmatmul.mubr.bf16.gmra.mrb[16].mxu1 %v8820_v32 }
 0x170   : > { %v6742_v26 = vpop.f32.mrb[39].mxu0  ;;  %7217 = vmatprep.mubr.bf16.mxu1 %v8842_v55  ;;  %v3667_v55 = vrot.slane %v8904_v51, 1 }
 0x171   : > { %v9018_v37 = vadd.f32 %v6742_v26, %v6741_v34 }
 0x172   : > { %7238 = vmatmul.mubr.msk.f32.gmra.mrb[144].mxu0 %vm5480_vm12, %v5476_v14  ;;  %v3669_v22 = vsel %vm1668_vm10, %v3667_v55, %v3668_v0 }
 0x173   : > { %7240 = vmatprep.mubr.msk.f32.mxu0 %vm5480_vm12, %v5477_v36 }
 0x175   : > { %v6744_v41 = vpop.f32.mrb[40].mxu0 }
 0x176   : > { %7241 = vmatmul.mubr.msk.f32.gmra.mrb[146].mxu0 %vm5480_vm12, %v5478_v31  ;;  %v6745_v17 = vpop.f32.mrb[41].mxu0 }
 0x177   : > { %v9024_v19 = vadd.f32 %v6745_v17, %v6744_v41  ;;  %v6747_v23 = vpop.f32.mrb[42].mxu0  ;;  %7218 = vmatmul.mubr.bf16.gmra.mrb[20].mxu1 %v8860_v2 }
 0x178   : > { %v6748_v32 = vpop.f32.mrb[43].mxu0  ;;  %7221 = vmatprep.mubr.bf16.mxu1 %v8865_v35  ;;  %v3672_v35 = vsel %vm1668_vm10, %v3670_v27, %v3671_v40 }
 0x179   : > { %v9030_v44 = vadd.f32 %v6748_v32, %v6747_v23 }
 0x17a   : > { %v6820_v11 = vpop.f32.mrb[32].mxu1 }
 0x17b   : > { %v6821_v4 = vpop.f32.mrb[33].mxu1 }
 0x17c   : > { %v6822_v1 = vadd.f32 %v6821_v4, %v6820_v11  ;;  %v6823_v13 = vpop.f32.mrb[34].mxu1 }
 0x17d   : > { %v6750_v2 = vpop.f32.mrb[44].mxu0  ;;  %v6824_v42 = vpop.f32.mrb[35].mxu1 }
 0x17e   : > { %v6751_v59 = vpop.f32.mrb[45].mxu0  ;;  %v6825_v51 = vadd.f32 %v6824_v42, %v6823_v13  ;;  %v9039_v56 = vadd.f32 %v6822_v1, %v8857_v54 }
 0x17f   : > { %v9036_v53 = vadd.f32 %v6751_v59, %v6750_v2  ;;  %v6753_v43 = vpop.f32.mrb[46].mxu0  ;;  %7222 = vmatmul.mubr.bf16.gmra.mrb[24].mxu1 %v3669_v22 }
 0x180   : > { %v6754_v46 = vpop.f32.mrb[47].mxu0  ;;  %7225 = vmatprep.mubr.bf16.mxu1 %v3672_v35  ;;  %v9044_v33 = vadd.f32 %v6825_v51, %v8867_v5 }
 0x181   : > { %v9041_v7 = vadd.f32 %v6754_v46, %v6753_v43 }
 0x182   : > { %v6826_v21 = vpop.f32.mrb[36].mxu1 }
 0x183   : > { %v6827_v20 = vpop.f32.mrb[37].mxu1 }
 0x184   : > { %v6828_v38 = vadd.f32 %v6827_v20, %v6826_v21  ;;  %v6829_v61 = vpop.f32.mrb[38].mxu1 }
 0x185   : > { %v6756_v15 = vpop.f32.mrb[48].mxu0  ;;  %v6830_v63 = vpop.f32.mrb[39].mxu1 }
 0x186   : > { %v6757_v47 = vpop.f32.mrb[49].mxu0  ;;  %v6831_v18 = vadd.f32 %v6830_v63, %v6829_v61  ;;  %v9049_v39 = vadd.f32 %v6828_v38, %v8881_v28 }
 0x187   : > { %v9046_v60 = vadd.f32 %v6757_v47, %v6756_v15  ;;  %v6759_v54 = vpop.f32.mrb[50].mxu0  ;;  %7226 = vmatmul.mubr.bf16.gmra.mrb[28].mxu1 %v8885_v58 }
 0x188   : > { %v6760_v16 = vpop.f32.mrb[51].mxu0  ;;  %v9055_v5 = vadd.f32 %v6831_v18, %v8887_v30 }
 0x189   : > { %v9052_v3 = vadd.f32 %v6760_v16, %v6759_v54 }
 0x18a   : > { %v6832_v14 = vpop.f32.mrb[40].mxu1 }
 0x18b   : > { %v6833_v34 = vpop.f32.mrb[41].mxu1 }
 0x18c   : > { %v6834_v26 = vadd.f32 %v6833_v34, %v6832_v14  ;;  %v6835_v36 = vpop.f32.mrb[42].mxu1 }
 0x18d   : > { %v6762_v31 = vpop.f32.mrb[52].mxu0  ;;  %v6836_v41 = vpop.f32.mrb[43].mxu1 }
 0x18e   : > { %v6763_v17 = vpop.f32.mrb[53].mxu0  ;;  %v6837_v23 = vadd.f32 %v6836_v41, %v6835_v36  ;;  %v9060_v55 = vadd.f32 %v6834_v26, %v8895_v6 }
 0x18f   : > { %v9057_v32 = vadd.f32 %v6763_v17, %v6762_v31  ;;  %v6765_v28 = vpop.f32.mrb[54].mxu0 }
 0x190   : > { %v6766_v58 = vpop.f32.mrb[55].mxu0  ;;  %v9065_v30 = vadd.f32 %v6837_v23, %v8898_v25 }
 0x191   : > { %v9062_v0 = vadd.f32 %v6766_v58, %v6765_v28 }
 0x192   : > { %v6838_v27 = vpop.f32.mrb[44].mxu1 }
 0x193   : > { %v6839_v40 = vpop.f32.mrb[45].mxu1 }
 0x194   : > { %v6840_v11 = vadd.f32 %v6839_v40, %v6838_v27  ;;  %v6841_v4 = vpop.f32.mrb[46].mxu1 }
 0x195   : > { %v6768_v1 = vpop.f32.mrb[56].mxu0  ;;  %v6842_v13 = vpop.f32.mrb[47].mxu1 }
 0x196   : > { %v6769_v22 = vpop.f32.mrb[57].mxu0  ;;  %v6843_v2 = vadd.f32 %v6842_v13, %v6841_v4  ;;  %v9070_v6 = vadd.f32 %v6840_v11, %v8911_v62 }
 0x197   : > { %v9067_v42 = vadd.f32 %v6769_v22, %v6768_v1  ;;  %v6771_v35 = vpop.f32.mrb[58].mxu0 }
 0x198   : > { %v6772_v59 = vpop.f32.mrb[59].mxu0  ;;  %v9075_v25 = vadd.f32 %v6843_v2, %v8914_v48 }
 0x199   : > { %v9072_v51 = vadd.f32 %v6772_v59, %v6771_v35 }
 0x19a   : > { %v6844_v43 = vpop.f32.mrb[48].mxu1 }
 0x19b   : > { %v6845_v46 = vpop.f32.mrb[49].mxu1 }
 0x19c   : > { %v6846_v21 = vadd.f32 %v6845_v46, %v6844_v43  ;;  %v6847_v20 = vpop.f32.mrb[50].mxu1 }
 0x19d   : > { %v6774_v38 = vpop.f32.mrb[60].mxu0  ;;  %v6848_v61 = vpop.f32.mrb[51].mxu1 }
 0x19e   : > { %v6775_v15 = vpop.f32.mrb[61].mxu0  ;;  %v6849_v63 = vadd.f32 %v6848_v61, %v6847_v20  ;;  %v9080_v62 = vadd.f32 %v6846_v21, %v8931_v10 }
 0x19f   : > { %v9077_v47 = vadd.f32 %v6775_v15, %v6774_v38  ;;  %v6777_v18 = vpop.f32.mrb[62].mxu0 }
 0x1a0   : > { %v6778_v54 = vpop.f32.mrb[63].mxu0  ;;  %v9085_v48 = vadd.f32 %v6849_v63, %v8936_v24 }
 0x1a1   : > { %v9082_v16 = vadd.f32 %v6778_v54, %v6777_v18 }
 0x1a2   : > { %v6850_v14 = vpop.f32.mrb[52].mxu1 }
 0x1a3   : > { %v6851_v34 = vpop.f32.mrb[53].mxu1 }
 0x1a4   : > { %v6852_v26 = vadd.f32 %v6851_v34, %v6850_v14  ;;  %v6853_v36 = vpop.f32.mrb[54].mxu1 }
 0x1a5   : > { %v6956_v31 = vpop.f32.mrb[64].mxu0  ;;  %v6854_v41 = vpop.f32.mrb[55].mxu1 }
 0x1a6   : > { %v6957_v17 = vpop.f32.mrb[65].mxu0  ;;  %v6855_v23 = vadd.f32 %v6854_v41, %v6853_v36  ;;  %v9090_v10 = vadd.f32 %v6852_v26, %v8954_v9 }
 0x1a7   : > { %v9087_v28 = vadd.f32 %v6957_v17, %v6956_v31  ;;  %v6959_v58 = vpop.f32.mrb[66].mxu0 }
 0x1a8   : > { %v6960_v27 = vpop.f32.mrb[67].mxu0  ;;  %v9095_v24 = vadd.f32 %v6855_v23, %v8958_v12 }
 0x1a9   : > { %v9092_v40 = vadd.f32 %v6960_v27, %v6959_v58 }
 0x1aa   : > { %v6856_v11 = vpop.f32.mrb[56].mxu1 }
 0x1ab   : > { %v6857_v4 = vpop.f32.mrb[57].mxu1 }
 0x1ac   : > { %v6858_v1 = vadd.f32 %v6857_v4, %v6856_v11  ;;  %v6859_v13 = vpop.f32.mrb[58].mxu1 }
 0x1ad   : > { %v6962_v22 = vpop.f32.mrb[68].mxu0  ;;  %v6860_v2 = vpop.f32.mrb[59].mxu1 }
 0x1ae   : > { %v6963_v35 = vpop.f32.mrb[69].mxu0  ;;  %v9098_v59 = vadd.f32 %v6858_v1, %v8969_v57  ;;  %v6861_v43 = vadd.f32 %v6860_v2, %v6859_v13 }
 0x1af   : > { %v9100_v46 = vadd.f32 %v6963_v35, %v6962_v22  ;;  %v6965_v9 = vpop.f32.mrb[70].mxu0 }
 0x1b0   : > { %v6966_v21 = vpop.f32.mrb[71].mxu0  ;;  %v9103_v20 = vadd.f32 %v6861_v43, %v8971_v49 }
 0x1b1   : > { %v9105_v12 = vadd.f32 %v6966_v21, %v6965_v9 }
 0x1b2   : > { %v6862_v38 = vpop.f32.mrb[60].mxu1 }
 0x1b3   : > { %v6863_v61 = vpop.f32.mrb[61].mxu1 }
 0x1b4   : > { %v6864_v15 = vadd.f32 %v6863_v61, %v6862_v38  ;;  %v6865_v63 = vpop.f32.mrb[62].mxu1 }
 0x1b5   : > { %v6968_v18 = vpop.f32.mrb[72].mxu0  ;;  %v6866_v54 = vpop.f32.mrb[63].mxu1 }
 0x1b6   : > { %v6969_v14 = vpop.f32.mrb[73].mxu0  ;;  %v9108_v57 = vadd.f32 %v6864_v15, %v8983_v45  ;;  %v6867_v34 = vadd.f32 %v6866_v54, %v6865_v63 }
 0x1b7   : > { %v9110_v26 = vadd.f32 %v6969_v14, %v6968_v18  ;;  %v6971_v36 = vpop.f32.mrb[74].mxu0 }
 0x1b8   : > { %v6972_v31 = vpop.f32.mrb[75].mxu0  ;;  %v9113_v49 = vadd.f32 %v6867_v34, %v8986_v50 }
 0x1b9   : > { %v9115_v41 = vadd.f32 %v6972_v31, %v6971_v36 }
 0x1ba   : > { %v6868_v17 = vpop.f32.mrb[64].mxu1 }
 0x1bb   : > { %v6869_v23 = vpop.f32.mrb[65].mxu1 }
 0x1bc   : > { %v6870_v58 = vadd.f32 %v6869_v23, %v6868_v17  ;;  %v6871_v27 = vpop.f32.mrb[66].mxu1 }
 0x1bd   : > { %v6974_v11 = vpop.f32.mrb[76].mxu0  ;;  %v6872_v4 = vpop.f32.mrb[67].mxu1 }
 0x1be   : > { %v6975_v1 = vpop.f32.mrb[77].mxu0  ;;  %v9118_v45 = vadd.f32 %v6870_v58, %v8999_v29  ;;  %v6873_v13 = vadd.f32 %v6872_v4, %v6871_v27 }
 0x1bf   : > { %v9120_v22 = vadd.f32 %v6975_v1, %v6974_v11  ;;  %v6977_v2 = vpop.f32.mrb[78].mxu0 }
 0x1c0   : > { %v6978_v35 = vpop.f32.mrb[79].mxu0  ;;  %v9123_v50 = vadd.f32 %v6873_v13, %v9004_v8 }
 0x1c1   : > { %v9125_v43 = vadd.f32 %v6978_v35, %v6977_v2 }
 0x1c2   : > { %v6874_v9 = vpop.f32.mrb[68].mxu1 }
 0x1c3   : > { %v6875_v21 = vpop.f32.mrb[69].mxu1 }
 0x1c4   : > { %v6876_v38 = vadd.f32 %v6875_v21, %v6874_v9  ;;  %v6877_v61 = vpop.f32.mrb[70].mxu1 }
 0x1c5   : > { %v6980_v15 = vpop.f32.mrb[80].mxu0  ;;  %v6878_v63 = vpop.f32.mrb[71].mxu1 }
 0x1c6   : > { %v6981_v18 = vpop.f32.mrb[81].mxu0  ;;  %v9128_v29 = vadd.f32 %v6876_v38, %v9013_v52  ;;  %v6879_v54 = vadd.f32 %v6878_v63, %v6877_v61 }
 0x1c7   : > { %v9130_v14 = vadd.f32 %v6981_v18, %v6980_v15  ;;  %v6983_v34 = vpop.f32.mrb[82].mxu0 }
 0x1c8   : > { %v6984_v36 = vpop.f32.mrb[83].mxu0  ;;  %v9133_v8 = vadd.f32 %v6879_v54, %v9018_v37 }
 0x1c9   : > { %v9135_v31 = vadd.f32 %v6984_v36, %v6983_v34 }
 0x1ca   : > { %v6880_v17 = vpop.f32.mrb[72].mxu1 }
 0x1cb   : > { %v6881_v23 = vpop.f32.mrb[73].mxu1 }
 0x1cc   : > { %v6882_v58 = vadd.f32 %v6881_v23, %v6880_v17  ;;  %v6883_v27 = vpop.f32.mrb[74].mxu1 }
 0x1cd   : > { %v6986_v11 = vpop.f32.mrb[84].mxu0  ;;  %v6884_v4 = vpop.f32.mrb[75].mxu1 }
 0x1ce   : > { %v6987_v1 = vpop.f32.mrb[85].mxu0  ;;  %v9138_v52 = vadd.f32 %v6882_v58, %v9024_v19  ;;  %v6885_v13 = vadd.f32 %v6884_v4, %v6883_v27 }
 0x1cf   : > { %v9140_v2 = vadd.f32 %v6987_v1, %v6986_v11  ;;  %v6989_v35 = vpop.f32.mrb[86].mxu0 }
 0x1d0   : > { %v6990_v9 = vpop.f32.mrb[87].mxu0  ;;  %v9143_v37 = vadd.f32 %v6885_v13, %v9030_v44 }
 0x1d1   : > { %v9145_v21 = vadd.f32 %v6990_v9, %v6989_v35 }
 0x1d2   : > { %v6886_v38 = vpop.f32.mrb[76].mxu1 }
 0x1d3   : > { %v6887_v61 = vpop.f32.mrb[77].mxu1 }
 0x1d4   : > { %v6888_v15 = vadd.f32 %v6887_v61, %v6886_v38  ;;  %v6889_v63 = vpop.f32.mrb[78].mxu1 }
 0x1d5   : > { %v6992_v18 = vpop.f32.mrb[88].mxu0  ;;  %v6890_v54 = vpop.f32.mrb[79].mxu1 }
 0x1d6   : > { %v6993_v34 = vpop.f32.mrb[89].mxu0  ;;  %v9148_v19 = vadd.f32 %v6888_v15, %v9036_v53  ;;  %v6891_v36 = vadd.f32 %v6890_v54, %v6889_v63 }
 0x1d7   : > { %v6994_v17 = vadd.f32 %v6993_v34, %v6992_v18  ;;  %v6995_v23 = vpop.f32.mrb[90].mxu0 }
 0x1d8   : > { %v6996_v58 = vpop.f32.mrb[91].mxu0  ;;  %v9151_v27 = vadd.f32 %v6891_v36, %v9041_v7 }
 0x1d9   : > { %v6997_v44 = vadd.f32 %v6996_v58, %v6995_v23  ;;  %v9154_v11 = vadd.f32 %v9098_v59, %v6994_v17 }
 0x1da   : > { %v6892_v4 = vpop.f32.mrb[80].mxu1 }
 0x1db   : > { %v9157_v1 = vadd.f32 %v9103_v20, %v6997_v44  ;;  %v6893_v13 = vpop.f32.mrb[81].mxu1 }
 0x1dc   : > { %v6894_v35 = vadd.f32 %v6893_v13, %v6892_v4  ;;  %v6895_v9 = vpop.f32.mrb[82].mxu1 }
 0x1dd   : > { %v6998_v53 = vpop.f32.mrb[92].mxu0  ;;  %v6896_v38 = vpop.f32.mrb[83].mxu1 }
 0x1de   : > { %v6999_v61 = vpop.f32.mrb[93].mxu0  ;;  %v9160_v15 = vadd.f32 %v6894_v35, %v9046_v60  ;;  %v6897_v63 = vadd.f32 %v6896_v38, %v6895_v9 }
 0x1df   : > { %v7000_v7 = vadd.f32 %v6999_v61, %v6998_v53  ;;  %v7001_v18 = vpop.f32.mrb[94].mxu0 }
 0x1e0   : > { %v7002_v54 = vpop.f32.mrb[95].mxu0  ;;  %v9163_v59 = vadd.f32 %v6897_v63, %v9052_v3 }
 0x1e1   : > { %v7003_v34 = vadd.f32 %v7002_v54, %v7001_v18  ;;  %v9166_v20 = vadd.f32 %v9108_v57, %v7000_v7 }
 0x1e2   : > { %10186 = vst [vmem:[#allocation6_spill] sm:$0xff] %v9163_v59  ;;  %v6898_v36 = vpop.f32.mrb[84].mxu1 }
 0x1e3   : > { %v9169_v17 = vadd.f32 %v9113_v49, %v7003_v34  ;;  %v6899_v23 = vpop.f32.mrb[85].mxu1 }
 0x1e4   : > { %v6900_v58 = vadd.f32 %v6899_v23, %v6898_v36  ;;  %v6901_v44 = vpop.f32.mrb[86].mxu1 }
 0x1e5   : > { %v7004_v60 = vpop.f32.mrb[96].mxu0  ;;  %v6902_v4 = vpop.f32.mrb[87].mxu1 }
 0x1e6   : > { %v7005_v13 = vpop.f32.mrb[97].mxu0  ;;  %v9172_v35 = vadd.f32 %v6900_v58, %v9057_v32  ;;  %v6903_v9 = vadd.f32 %v6902_v4, %v6901_v44 }
 0x1e7   : > { %v7006_v3 = vadd.f32 %v7005_v13, %v7004_v60  ;;  %v7007_v53 = vpop.f32.mrb[98].mxu0 }
 0x1e8   : > { %v7008_v38 = vpop.f32.mrb[99].mxu0  ;;  %v9175_v57 = vadd.f32 %v6903_v9, %v9062_v0 }
 0x1e9   : > { %v7009_v61 = vadd.f32 %v7008_v38, %v7007_v53  ;;  %v9178_v49 = vadd.f32 %v9118_v45, %v7006_v3 }
 0x1ea   : > { %10187 = vst [vmem:[#allocation7_spill] sm:$0xff] %v9175_v57  ;;  %v6904_v63 = vpop.f32.mrb[88].mxu1 }
 0x1eb   : > { %v9181_v7 = vadd.f32 %v9123_v50, %v7009_v61  ;;  %v6905_v18 = vpop.f32.mrb[89].mxu1 }
 0x1ec   : > { %v6906_v54 = vadd.f32 %v6905_v18, %v6904_v63  ;;  %v6907_v34 = vpop.f32.mrb[90].mxu1 }
 0x1ed   : > { %v7010_v32 = vpop.f32.mrb[100].mxu0  ;;  %v6908_v36 = vpop.f32.mrb[91].mxu1 }
 0x1ee   : > { %v7011_v23 = vpop.f32.mrb[101].mxu0  ;;  %v9184_v58 = vadd.f32 %v6906_v54, %v9067_v42  ;;  %v6909_v44 = vadd.f32 %v6908_v36, %v6907_v34 }
 0x1ef   : > { %v7012_v0 = vadd.f32 %v7011_v23, %v7010_v32  ;;  %v7013_v60 = vpop.f32.mrb[102].mxu0 }
 0x1f0   : > { %10188 = vst [vmem:[#allocation8_spill] sm:$0xff] %v9184_v58  ;;  %v7014_v4 = vpop.f32.mrb[103].mxu0  ;;  %v9187_v45 = vadd.f32 %v6909_v44, %v9072_v51 }
 0x1f1   : > { %v7015_v13 = vadd.f32 %v7014_v4, %v7013_v60  ;;  %v9190_v50 = vadd.f32 %v9128_v29, %v7012_v0 }
 0x1f2   : > { %10189 = vst [vmem:[#allocation9_spill] sm:$0xff] %v9187_v45  ;;  %v6910_v9 = vpop.f32.mrb[92].mxu1 }
 0x1f3   : > { %v9193_v3 = vadd.f32 %v9133_v8, %v7015_v13  ;;  %v6911_v53 = vpop.f32.mrb[93].mxu1 }
 0x1f4   : > { %v6912_v38 = vadd.f32 %v6911_v53, %v6910_v9  ;;  %v6913_v61 = vpop.f32.mrb[94].mxu1 }
 0x1f5   : > { %v7016_v42 = vpop.f32.mrb[104].mxu0  ;;  %v6914_v63 = vpop.f32.mrb[95].mxu1 }
 0x1f6   : > { %v7017_v18 = vpop.f32.mrb[105].mxu0  ;;  %v9196_v54 = vadd.f32 %v6912_v38, %v9077_v47  ;;  %v6915_v34 = vadd.f32 %v6914_v63, %v6913_v61 }
 0x1f7   : > { %v7018_v51 = vadd.f32 %v7017_v18, %v7016_v42  ;;  %v7019_v32 = vpop.f32.mrb[106].mxu0 }
 0x1f8   : > { %10190 = vst [vmem:[#allocation10_spill] sm:$0xff] %v9196_v54  ;;  %v7020_v36 = vpop.f32.mrb[107].mxu0  ;;  %v9199_v29 = vadd.f32 %v6915_v34, %v9082_v16 }
 0x1f9   : > { %v7021_v23 = vadd.f32 %v7020_v36, %v7019_v32  ;;  %v9202_v8 = vadd.f32 %v9138_v52, %v7018_v51 }
 0x1fa   : > { %10191 = vst [vmem:[#allocation11_spill] sm:$0xff] %v9199_v29  ;;  %v7151_v44 = vpop.f32.mrb[0].mxu1 }
 0x1fb   : > { %v9205_v0 = vadd.f32 %v9143_v37, %v7021_v23  ;;  %v7260_v60 = vadd.f32 %v9049_v39, %v7151_v44  ;;  %v3051_v4 = vpop.f32.mrb[1].mxu1 }
 0x1fc   : > { %v7264_v47 = vadd.f32 %v9039_v56, %v3051_v4  ;;  %v7152_v13 = vpop.f32.mrb[2].mxu1 }
 0x1fd   : > { %10192 = vst [vmem:[#allocation12_spill] sm:$0xff] %v9205_v0  ;;  %v7022_v9 = vpop.f32.mrb[108].mxu0  ;;  %v7268_v53 = vadd.f32 %v9055_v5, %v7152_v13  ;;  %v3054_v38 = vpop.f32.mrb[3].mxu1  ;;  %v9211_v61 = vadd.f32 %v7260_v60, %v9100_v46 }
 0x1fe   : > { %v7023_v16 = vpop.f32.mrb[109].mxu0  ;;  %v7272_v52 = vadd.f32 %v9044_v33, %v3054_v38  ;;  %v9215_v37 = vadd.f32 %v7264_v47, %v9087_v28 }
 0x1ff   : > { %v7024_v42 = vadd.f32 %v7023_v16, %v7022_v9  ;;  %v7025_v63 = vpop.f32.mrb[110].mxu0  ;;  %v9218_v18 = vadd.f32 %v7268_v53, %v9105_v12 }
 0x200   : > { %v7026_v39 = vpop.f32.mrb[111].mxu0  ;;  %v9221_v34 = vadd.f32 %v7272_v52, %v9092_v40 }
 0x201   : > { %v7027_v56 = vadd.f32 %v7026_v39, %v7025_v63  ;;  %v9224_v5 = vadd.f32 %v9148_v19, %v7024_v42 }
 0x202   : > { %v7155_v46 = vpop.f32.mrb[4].mxu1 }
 0x203   : > { %v9227_v51 = vadd.f32 %v9151_v27, %v7027_v56  ;;  %v7276_v33 = vadd.f32 %v9070_v6, %v7155_v46  ;;  %v3067_v32 = vpop.f32.mrb[5].mxu1 }
 0x204   : > { %v7280_v28 = vadd.f32 %v9060_v55, %v3067_v32  ;;  %v7156_v36 = vpop.f32.mrb[6].mxu1 }
 0x205   : > { %v7028_v23 = vpop.f32.mrb[112].mxu0  ;;  %v7284_v12 = vadd.f32 %v9075_v25, %v7156_v36  ;;  %v3070_v44 = vpop.f32.mrb[7].mxu1  ;;  %v9233_v40 = vadd.f32 %v7276_v33, %v9120_v22 }
 0x206   : > { %v7029_v60 = vpop.f32.mrb[113].mxu0  ;;  %v7288_v19 = vadd.f32 %v9065_v30, %v3070_v44  ;;  %v9237_v27 = vadd.f32 %v7280_v28, %v9110_v26 }
 0x207   : > { %v7030_v4 = vadd.f32 %v7029_v60, %v7028_v23  ;;  %v7031_v47 = vpop.f32.mrb[114].mxu0  ;;  %v9240_v13 = vadd.f32 %v7284_v12, %v9125_v43  ;;  %v7746_v23 = vmov 1983009808  }
 0x208   : > { %v7032_v6 = vpop.f32.mrb[115].mxu0  ;;  %v9245_v25 = vadd.f32 %v7288_v19, %v9115_v41  ;;  %v4224_v12 = vunpack.c.l.s4 %v7746_v23 }
 0x209   : > { %v9242_v55 = vadd.f32 %v7032_v6, %v7031_v47 }
 0x20a   : > { %v7159_v9 = vpop.f32.mrb[8].mxu1  ;;  %v4225_v47 = vunpack.c.0.s8 %v4224_v12 }
 0x20b   : > { %10193 = vst [vmem:[#allocation13_spill] sm:$0xff] %v9242_v55  ;;  %v7292_v22 = vadd.f32 %v9090_v10, %v7159_v9  ;;  %v3083_v53 = vpop.f32.mrb[9].mxu1  ;;  %v9258_v10 = vadd.f32 %v9160_v15, %v7030_v4 }
 0x20c   : > { %v7296_v30 = vadd.f32 %v9080_v62, %v3083_v53  ;;  %v7160_v38 = vpop.f32.mrb[10].mxu1 }
 0x20d   : > { %v7034_v16 = vpop.f32.mrb[116].mxu0  ;;  %v7300_v26 = vadd.f32 %v9095_v24, %v7160_v38  ;;  %v3086_v52 = vpop.f32.mrb[11].mxu1  ;;  %v9251_v43 = vadd.f32 %v7292_v22, %v9140_v2  ;;  %10194 = vst [vmem:[#allocation14_spill] sm:$0xff] %v9258_v10 }
 0x20e   : > { %v7035_v42 = vpop.f32.mrb[117].mxu0  ;;  %v7304_v63 = vadd.f32 %v9085_v48, %v3086_v52  ;;  %v9255_v56 = vadd.f32 %v7296_v30, %v9130_v14 }
 0x20f   : > { %v7036_v39 = vadd.f32 %v7035_v42, %v7034_v16  ;;  %v7037_v41 = vpop.f32.mrb[118].mxu0  ;;  %v9261_v46 = vadd.f32 %v7300_v26, %v9145_v21  ;;  %v4226_v21 = vlaneseq }
 0x210   : > { %v7038_v62 = vpop.f32.mrb[119].mxu0  ;;  %v9266_v33 = vadd.f32 %v7304_v63, %v9135_v31 }
 0x211   : > { %v9263_v24 = vadd.f32 %v7038_v62, %v7037_v41  ;;  %v9269_v2 = vadd.f32 %v9172_v35, %v7036_v39  ;;  %v4227_v35 = vshrl.u32 %v4226_v21, 7 }
 0x213   : > { %10195 = vst [vmem:[#allocation15_spill] sm:$0xff] %v9263_v24  ;;  %10196 = vst [vmem:[#allocation16_spill] sm:$0xff] %v9269_v2  ;;  %v9279_v9 = vsub.s32 %v4225_v47, %v4227_v35 }
 0x215   : > { %v7040_v48 = vpop.f32.mrb[120].mxu0 }
 0x216   : > { %v7041_v32 = vpop.f32.mrb[121].mxu0 }
 0x217   : > { %v9271_v28 = vadd.f32 %v7041_v32, %v7040_v48  ;;  %v7043_v14 = vpop.f32.mrb[122].mxu0 }
 0x218   : > { %v7044_v36 = vpop.f32.mrb[123].mxu0 }
 0x219   : > { %10197 = vst [vmem:[#allocation17_spill] sm:$0xff] %v9271_v28  ;;  %v9273_v15 = vadd.f32 %v7044_v36, %v7043_v14 }
 0x21b   : > { %10198 = vst [vmem:[#allocation18_spill] sm:$0xff] %v9273_v15 }
 0x21d   : > { %v7046_v44 = vpop.f32.mrb[124].mxu0 }
 0x21e   : > { %v7047_v60 = vpop.f32.mrb[125].mxu0 }
 0x21f   : > { %v9275_v19 = vadd.f32 %v7047_v60, %v7046_v44  ;;  %v7049_v31 = vpop.f32.mrb[126].mxu0 }
 0x220   : > { %v7050_v4 = vpop.f32.mrb[127].mxu0 }
 0x221   : > { %10199 = vst [vmem:[#allocation19_spill] sm:$0xff] %v9275_v19  ;;  %v9277_v6 = vadd.f32 %v7050_v4, %v7049_v31 }
 0x223   : > { %10200 = vst [vmem:[#allocation20_spill] sm:$0xff] %v9277_v6 }
 0x225   : > { %v7199_v22 = vpop.f32.mrb[128].mxu0 }
 0x226   : > { %v7262_v53 = vadd.f32 %v9211_v61, %v7199_v22  ;;  %v4031_v30 = vpop.f32.mrb[129].mxu0 }
 0x227   : > { %v7266_v38 = vadd.f32 %v9215_v37, %v4031_v30  ;;  %v7200_v16 = vpop.f32.mrb[130].mxu0 }
 0x228   : > { %v4256_v26 = vcombine.high %v7262_v53, %v7262_v53  ;;  %v4263_v52 = vrot.slane %v7262_v53, %v9279_v9  ;;  %v7270_v42 = vadd.f32 %v9218_v18, %v7200_v16  ;;  %v4034_v63 = vpop.f32.mrb[131].mxu0 }
 0x229   : > { %v4222_v39 = vcombine.high %v7266_v38, %v7266_v38  ;;  %v4229_v41 = vrot.slane %v7266_v38, %v9279_v9  ;;  %v7274_v62 = vadd.f32 %v9221_v34, %v4034_v63 }
 0x22a   : > { %v4270_v48 = vrot.slane %v4256_v26, %v9279_v9  ;;  %v4271_v32 = vcombine.high %v4263_v52, %v4263_v52  ;;  %v4896_v61 = vsel %vm4894_vm13, %v4263_v52, 0.0  ;;  %v4273_v14 = vcombine.high %v7270_v42, %v7270_v42 }
 0x22b   : > { %v4236_v37 = vrot.slane %v4222_v39, %v9279_v9  ;;  %v4237_v36 = vcombine.high %v4229_v41, %v4229_v41  ;;  %v4895_v23 = vsel %vm4894_vm13, %v4229_v41, 0.0  ;;  %v4280_v12 = vrot.slane %v7270_v42, %v9279_v9 }
 0x22c   : > { %v4272_v18 = vcombine.high %v4270_v48, %v4270_v48  ;;  %v4905_v21 = vsel %vm4894_vm13, %v4271_v32, 0.0  ;;  %v4914_v44 = vsel %vm4894_vm13, %v4270_v48, 0.0  ;;  %v4897_v60 = vadd.f32 %v4896_v61, %v4895_v23 }
 0x22d   : > { %v4238_v34 = vcombine.high %v4236_v37, %v4236_v37  ;;  %v4904_v31 = vsel %vm4894_vm13, %v4237_v36, 0.0  ;;  %v4913_v4 = vsel %vm4894_vm13, %v4236_v37, 0.0  ;;  %v4287_v47 = vrot.slane %v4273_v14, %v9279_v9  ;;  %v7203_v35 = vpop.f32.mrb[132].mxu0 }
 0x22e   : > { %v4923_v22 = vsel %vm4894_vm13, %v4272_v18, 0.0  ;;  %v4898_v53 = vrot.slane %v4897_v60, 4  ;;  %v4906_v30 = vadd.f32 %v4905_v21, %v4904_v31  ;;  %v4915_v38 = vadd.f32 %v4914_v44, %v4913_v4  ;;  %v4047_v16 = vpop.f32.mrb[133].mxu0 }
 0x22f   : > { %v4922_v26 = vsel %vm4894_vm13, %v4238_v34, 0.0  ;;  %v4288_v52 = vcombine.high %v4280_v12, %v4280_v12  ;;  %v4289_v42 = vcombine.high %v4287_v47, %v4287_v47  ;;  %v4932_v63 = vsel %vm4894_vm13, %v4280_v12, 0.0  ;;  %v9300_v39 = vpop.f32.mrb[134].mxu0 }
 0x230   : > { %v4899_v41 = vadd.f32 %v4898_v53, %v4897_v60  ;;  %v4907_v48 = vrot.slane %v4906_v30, 4  ;;  %v4916_v32 = vrot.slane %v4915_v38, 4  ;;  %v4924_v61 = vadd.f32 %v4923_v22, %v4922_v26  ;;  %v9302_v14 = vpop.f32.mrb[135].mxu0 }
 0x231   : > { %v4941_v37 = vsel %vm4894_vm13, %v4288_v52, 0.0  ;;  %v4950_v36 = vsel %vm4894_vm13, %v4287_v47, 0.0  ;;  %v4959_v23 = vsel %vm4894_vm13, %v4289_v42, 0.0  ;;  %v4239_v18 = vcombine.high %v7274_v62, %v7274_v62 }
 0x232   : > { %v4900_v21 = vrot.slane %v4899_v41, 2  ;;  %v4908_v44 = vadd.f32 %v4907_v48, %v4906_v30  ;;  %v4917_v34 = vadd.f32 %v4916_v32, %v4915_v38  ;;  %v4925_v31 = vrot.slane %v4924_v61, 4 }
 0x233   : > { %v4246_v12 = vrot.slane %v7274_v62, %v9279_v9  ;;  %v4253_v60 = vrot.slane %v4239_v18, %v9279_v9  ;;  %v9310_v4 = vadd.f32 %v9233_v40, %v7203_v35  ;;  %v9313_v22 = vadd.f32 %v9237_v27, %v4047_v16 }
 0x234   : > { %v4901_v53 = vadd.f32 %v4900_v21, %v4899_v41  ;;  %v4909_v26 = vrot.slane %v4908_v44, 2  ;;  %v4918_v47 = vrot.slane %v4917_v34, 2  ;;  %v4926_v52 = vadd.f32 %v4925_v31, %v4924_v61 }
 0x235   : > { %v4254_v42 = vcombine.high %v4246_v12, %v4246_v12  ;;  %v4255_v45 = vcombine.high %v4253_v60, %v4253_v60  ;;  %v4931_v30 = vsel %vm4894_vm13, %v4246_v12, 0.0  ;;  %v4949_v38 = vsel %vm4894_vm13, %v4253_v60, 0.0  ;;  %v9317_v48 = vpop.f32.mrb[136].mxu0 }
 0x236   : > { %v4902_v62 = vrot.slane %v4901_v53, 1  ;;  %v4910_v32 = vadd.f32 %v4909_v26, %v4908_v44  ;;  %v4919_v18 = vadd.f32 %v4918_v47, %v4917_v34  ;;  %v4927_v40 = vrot.slane %v4926_v52, 2  ;;  %v9319_v35 = vpop.f32.mrb[137].mxu0  ;;  %v9328_v44 = vld [vmem:[%s10170_s5] ss:$0 sm:$0xff] }
 0x237   : > { %v4933_v27 = vadd.f32 %v4932_v63, %v4931_v30  ;;  %v4940_v16 = vsel %vm4894_vm13, %v4254_v42, 0.0  ;;  %v4951_v41 = vadd.f32 %v4950_v36, %v4949_v38  ;;  %v4958_v61 = vsel %vm4894_vm13, %v4255_v45, 0.0  ;;  %v9323_v21 = vpop.f32.mrb[138].mxu0 }
 0x238   : > { %v4903_v31 = vadd.f32 %v4902_v62, %v4901_v53  ;;  %v4911_v12 = vrot.slane %v4910_v32, 1  ;;  %v4920_v15 = vrot.slane %v4919_v18, 1  ;;  %v4928_v60 = vadd.f32 %v4927_v40, %v4926_v52  ;;  %v9330_v34 = vpop.f32.mrb[139].mxu0 }
 0x239   : > { %v4934_v26 = vrot.slane %v4933_v27, 4  ;;  %v4942_v63 = vadd.f32 %v4941_v37, %v4940_v16  ;;  %v4952_v47 = vrot.slane %v4951_v41, 4  ;;  %v9332_v42 = vadd.f32 %v4959_v23, %v4958_v61 }
 0x23a   : > { %v4912_v36 = vadd.f32 %v4911_v12, %v4910_v32  ;;  %v4921_v45 = vadd.f32 %v4920_v15, %v4919_v18  ;;  %v4929_v30 = vrot.slane %v4928_v60, 1  ;;  %v7211_v38 = vpop.f32.mrb[12].mxu1  ;;  %v9335_v53 = vadd.f32 %v9328_v44, %v4903_v31 }
 0x23b   : > { %v4935_v52 = vadd.f32 %v4934_v26, %v4933_v27  ;;  %v4943_v62 = vrot.slane %v4942_v63, 4  ;;  %v9337_v40 = vadd.f32 %v4952_v47, %v4951_v41  ;;  %v7309_v29 = vadd.f32 %v9166_v20, %v7211_v38  ;;  %v4079_v37 = vpop.f32.mrb[13].mxu1 }
 0x23c   : > { %10201 = vst [vmem:[#allocation21_spill] sm:$0xff] %v9335_v53  ;;  %v4930_v6 = vadd.f32 %v4929_v30, %v4928_v60  ;;  %v9341_v58 = vadd.f32 %v9328_v44, %v4912_v36  ;;  %v4961_v23 = vrot.slane %v9332_v42, 4  ;;  %v9345_v15 = vadd.f32 %v9328_v44, %v4921_v45  ;;  %v7212_v18 = vpop.f32.mrb[14].mxu1 }
 0x23d   : > { %v7312_v32 = vadd.f32 %v9154_v11, %v4079_v37  ;;  %v4936_v16 = vrot.slane %v4935_v52, 2  ;;  %v4944_v27 = vadd.f32 %v4943_v62, %v4942_v63  ;;  %v4460_v61 = vcombine.high %v7309_v29, %v7309_v29  ;;  %v9351_v12 = vpop.f32.mrb[15].mxu1  ;;  %v9353_v60 = vpop.f32.mrb[140].mxu0 }
 0x23e   : > { %10202 = vst [vmem:[#allocation22_spill] sm:$0xff] %v9341_v58  ;;  %10203 = vst [vmem:[#allocation23_spill] sm:$0xff] %v9345_v15  ;;  %v4467_v41 = vrot.slane %v7309_v29, %v9279_v9  ;;  %v7315_v20 = vadd.f32 %v9169_v17, %v7212_v18  ;;  %v4954_v31 = vrot.slane %v9337_v40, 2  ;;  %v9356_v26 = vadd.f32 %v9328_v44, %v4930_v6 }
 0x23f   : > { %10204 = vst [vmem:[#allocation24_spill] sm:$0xff] %v9353_v60  ;;  %v4426_v47 = vcombine.high %v7312_v32, %v7312_v32  ;;  %v4433_v11 = vrot.slane %v7312_v32, %v9279_v9  ;;  %v4937_v36 = vadd.f32 %v4936_v16, %v4935_v52  ;;  %v4474_v63 = vrot.slane %v4460_v61, %v9279_v9 }
 0x240   : > { %10205 = vst [vmem:[#allocation25_spill] sm:$0xff] %v9356_v26  ;;  %v4475_v45 = vcombine.high %v4467_v41, %v4467_v41  ;;  %v5112_v29 = vsel %vm4894_vm13, %v4467_v41, 0.0  ;;  %v4477_v30 = vcombine.high %v7315_v20, %v7315_v20  ;;  %v4484_v37 = vrot.slane %v7315_v20, %v9279_v9 }
 0x241   : > { %v4440_v17 = vrot.slane %v4426_v47, %v9279_v9  ;;  %v4441_v38 = vcombine.high %v4433_v11, %v4433_v11  ;;  %v5111_v62 = vsel %vm4894_vm13, %v4433_v11, 0.0  ;;  %v4476_v18 = vcombine.high %v4474_v63, %v4474_v63 }
 0x242   : > { %v5121_v6 = vsel %vm4894_vm13, %v4475_v45, 0.0  ;;  %v5130_v28 = vsel %vm4894_vm13, %v4474_v63, 0.0  ;;  %v5113_v32 = vadd.f32 %v5112_v29, %v5111_v62  ;;  %v4491_v41 = vrot.slane %v4477_v30, %v9279_v9  ;;  %v9369_v54 = vpop.f32.mrb[16].mxu1 }
 0x243   : > { %v4442_v52 = vcombine.high %v4440_v17, %v4440_v17  ;;  %v5120_v16 = vsel %vm4894_vm13, %v4441_v38, 0.0  ;;  %v5129_v61 = vsel %vm4894_vm13, %v4440_v17, 0.0  ;;  %v5139_v47 = vsel %vm4894_vm13, %v4476_v18, 0.0  ;;  %v9372_v59 = vpop.f32.mrb[17].mxu1 }
 0x244   : > { %v5114_v11 = vrot.slane %v5113_v32, 4  ;;  %v5122_v19 = vadd.f32 %v5121_v6, %v5120_v16  ;;  %v5131_v20 = vadd.f32 %v5130_v28, %v5129_v61  ;;  %v4492_v63 = vcombine.high %v4484_v37, %v4484_v37  ;;  %v9375_v55 = vpop.f32.mrb[18].mxu1 }
 0x245   : > { %v5138_v45 = vsel %vm4894_vm13, %v4442_v52, 0.0  ;;  %v4493_v29 = vcombine.high %v4491_v41, %v4491_v41  ;;  %v4945_v62 = vrot.slane %v4944_v27, 2  ;;  %v9377_v24 = vpop.f32.mrb[19].mxu1  ;;  %v5148_v18 = vsel %vm4894_vm13, %v4484_v37, 0.0 }
 0x246   : > { %v5115_v38 = vadd.f32 %v5114_v11, %v5113_v32  ;;  %v5123_v17 = vrot.slane %v5122_v19, 4  ;;  %v5132_v57 = vrot.slane %v5131_v20, 4  ;;  %v5140_v30 = vadd.f32 %v5139_v47, %v5138_v45 }
 0x247   : > { %v9381_v6 = vsel %vm4894_vm13, %v4492_v63, 0.0  ;;  %v5166_v28 = vsel %vm4894_vm13, %v4491_v41, 0.0  ;;  %v4938_v16 = vrot.slane %v4937_v36, 1  ;;  %v5175_v58 = vsel %vm4894_vm13, %v4493_v29, 0.0 }
 0x248   : > { %v5116_v52 = vrot.slane %v5115_v38, 2  ;;  %v5124_v61 = vadd.f32 %v5123_v17, %v5122_v19  ;;  %v5133_v26 = vadd.f32 %v5132_v57, %v5131_v20  ;;  %v5141_v15 = vrot.slane %v5140_v30, 4 }
 0x249   : > { %v4946_v32 = vadd.f32 %v4945_v62, %v4944_v27  ;;  %v4955_v11 = vadd.f32 %v4954_v31, %v9337_v40  ;;  %v4962_v47 = vadd.f32 %v4961_v23, %v9332_v42  ;;  %v4939_v63 = vadd.f32 %v4938_v16, %v4937_v36  ;;  %v9397_v16 = vpop.f32.mrb[141].mxu0 }
 0x24a   : > { %v5117_v45 = vadd.f32 %v5116_v52, %v5115_v38  ;;  %v5125_v53 = vrot.slane %v5124_v61, 2  ;;  %v5134_v37 = vrot.slane %v5133_v26, 2  ;;  %v5142_v10 = vadd.f32 %v5141_v15, %v5140_v30  ;;  %v9387_v0 = vpop.f32.mrb[20].mxu1 }
 0x24b   : > { %v4947_v60 = vrot.slane %v4946_v32, 1  ;;  %v4956_v2 = vrot.slane %v4955_v11, 1  ;;  %v4963_v41 = vrot.slane %v4962_v47, 2  ;;  %v9389_v29 = vpop.f32.mrb[21].mxu1  ;;  %v7318_v42 = vadd.f32 %v9157_v1, %v9351_v12 }
 0x24c   : > { %v5118_v19 = vrot.slane %v5117_v45, 1  ;;  %v5126_v57 = vadd.f32 %v5125_v53, %v5124_v61  ;;  %v5135_v20 = vadd.f32 %v5134_v37, %v5133_v26  ;;  %v5143_v17 = vrot.slane %v5142_v10, 2  ;;  %v9393_v23 = vpop.f32.mrb[22].mxu1 }
 0x24d   : > { %v4948_v27 = vadd.f32 %v4947_v60, %v4946_v32  ;;  %v4957_v40 = vadd.f32 %v4956_v2, %v4955_v11  ;;  %v4964_v31 = vadd.f32 %v4963_v41, %v4962_v47  ;;  %v9395_v30 = vpop.f32.mrb[23].mxu1  ;;  %v9400_v26 = vadd.f32 %v9328_v44, %v4939_v63 }
 0x24e   : > { %v5119_v15 = vadd.f32 %v5118_v19, %v5117_v45  ;;  %v5127_v36 = vrot.slane %v5126_v57, 1  ;;  %v5136_v62 = vrot.slane %v5135_v20, 1  ;;  %v5144_v38 = vadd.f32 %v5143_v17, %v5142_v10 }
 0x24f   : > { %v4965_v53 = vrot.slane %v4964_v31, 1  ;;  %v9403_v2 = vadd.f32 %v9328_v44, %v4948_v27  ;;  %v4443_v60 = vcombine.high %v7318_v42, %v7318_v42  ;;  %v9406_v61 = vadd.f32 %v9328_v44, %v4957_v40 }
 0x250   : > { %v5128_v52 = vadd.f32 %v5127_v36, %v5126_v57  ;;  %v5137_v1 = vadd.f32 %v5136_v62, %v5135_v20  ;;  %v5145_v12 = vrot.slane %v5144_v38, 1  ;;  %v4450_v10 = vrot.slane %v7318_v42, %v9279_v9 }
 0x251   : > { %v4966_v32 = vadd.f32 %v4965_v53, %v4964_v31  ;;  %v4457_v11 = vrot.slane %v4443_v60, %v9279_v9  ;;  %v4324_v47 = vcombine.high %v9310_v4, %v9310_v4  ;;  %v9413_v37 = vadd.f32 %v9328_v44, %v5119_v15 }
 0x252   : > { %v5146_v45 = vadd.f32 %v5145_v12, %v5144_v38  ;;  %v9416_v63 = vadd.f32 %v9328_v44, %v5128_v52  ;;  %v4331_v41 = vrot.slane %v9310_v4, %v9279_v9  ;;  %v9421_v19 = vadd.f32 %v9328_v44, %v5137_v1  ;;  %v9424_v27 = vpop.f32.mrb[24].mxu1 }
 0x253   : > { %10206 = vst [vmem:[#allocation26_spill] sm:$0xff] %v9413_v37  ;;  %v4458_v57 = vcombine.high %v4450_v10, %v4450_v10  ;;  %v4459_v20 = vcombine.high %v4457_v11, %v4457_v11  ;;  %v5147_v17 = vsel %vm4894_vm13, %v4450_v10, 0.0  ;;  %v9427_v40 = vadd.f32 %v9328_v44, %v4966_v32  ;;  %v9431_v36 = vpop.f32.mrb[25].mxu1 }
 0x254   : > { %10207 = vst [vmem:[#allocation27_spill] sm:$0xff] %v9416_v63  ;;  %10208 = vst [vmem:[#allocation28_spill] sm:$0xff] %v9421_v19  ;;  %v5149_v31 = vadd.f32 %v5148_v18, %v5147_v17  ;;  %v5165_v42 = vsel %vm4894_vm13, %v4457_v11, 0.0  ;;  %v4338_v15 = vrot.slane %v4324_v47, %v9279_v9  ;;  %v4339_v53 = vcombine.high %v4331_v41, %v4331_v41 }
 0x255   : > { %10209 = vst [vmem:[#allocation29_spill] sm:$0xff] %v9427_v40  ;;  %v5156_v4 = vsel %vm4894_vm13, %v4458_v57, 0.0  ;;  %v5167_v62 = vadd.f32 %v5166_v28, %v5165_v42  ;;  %v5174_v38 = vsel %vm4894_vm13, %v4459_v20, 0.0  ;;  %v9436_v60 = vadd.f32 %v9328_v44, %v5146_v45 }
 0x256   : > { %v5150_v52 = vrot.slane %v5149_v31, 4  ;;  %v5158_v1 = vadd.f32 %v9381_v6, %v5156_v4  ;;  %v5176_v12 = vadd.f32 %v5175_v58, %v5174_v38  ;;  %v4340_v32 = vcombine.high %v4338_v15, %v4338_v15 }
 0x257   : > { %10210 = vst [vmem:[#allocation30_spill] sm:$0xff] %v9436_v60  ;;  %v5168_v18 = vrot.slane %v5167_v62, 4  ;;  %v4968_v10 = vsel %vm4894_vm13, %v4331_v41, 0.0  ;;  %v4977_v11 = vsel %vm4894_vm13, %v4339_v53, 0.0  ;;  %v4986_v28 = vsel %vm4894_vm13, %v4338_v15, 0.0 }
 0x258   : > { %v5151_v47 = vadd.f32 %v5150_v52, %v5149_v31  ;;  %v5159_v17 = vrot.slane %v5158_v1, 4  ;;  %v5177_v57 = vrot.slane %v5176_v12, 4  ;;  %v7321_v45 = vadd.f32 %v9190_v50, %v9369_v54  ;;  %v9452_v52 = vpop.f32.mrb[26].mxu1 }
 0x259   : > { %v5169_v20 = vadd.f32 %v5168_v18, %v5167_v62  ;;  %v4290_v42 = vcombine.high %v9313_v22, %v9313_v22  ;;  %v4297_v58 = vrot.slane %v9313_v22, %v9279_v9  ;;  %v7324_v31 = vadd.f32 %v9178_v49, %v9372_v59  ;;  %10211 = vst [vmem:[#allocation31_spill] sm:$0xff] %v9452_v52 }
 0x25a   : > { %v5152_v6 = vrot.slane %v5151_v47, 2  ;;  %v5160_v4 = vadd.f32 %v5159_v17, %v5158_v1  ;;  %v5178_v41 = vadd.f32 %v5177_v57, %v5176_v12  ;;  %v4528_v53 = vcombine.high %v7321_v45, %v7321_v45 }
 0x25b   : > { %v5170_v38 = vrot.slane %v5169_v20, 2  ;;  %v4535_v15 = vrot.slane %v7321_v45, %v9279_v9  ;;  %v4304_v62 = vrot.slane %v4290_v42, %v9279_v9  ;;  %v4995_v60 = vsel %vm4894_vm13, %v4340_v32, 0.0 }
 0x25c   : > { %v5153_v50 = vadd.f32 %v5152_v6, %v5151_v47  ;;  %v5161_v54 = vrot.slane %v5160_v4, 2  ;;  %v5179_v18 = vrot.slane %v5178_v41, 2  ;;  %v4542_v1 = vrot.slane %v4528_v53, %v9279_v9 }
 0x25d   : > { %v5171_v22 = vadd.f32 %v5170_v38, %v5169_v20  ;;  %v4543_v12 = vcombine.high %v4535_v15, %v4535_v15  ;;  %v4305_v17 = vcombine.high %v4297_v58, %v4297_v58  ;;  %v5184_v19 = vsel %vm4894_vm13, %v4535_v15, 0.0 }
 0x25e   : > { %v5154_v57 = vrot.slane %v5153_v50, 1  ;;  %v5162_v59 = vadd.f32 %v5161_v54, %v5160_v4  ;;  %v5180_v49 = vadd.f32 %v5179_v18, %v5178_v41  ;;  %v4544_v63 = vcombine.high %v4542_v1, %v4542_v1 }
 0x25f   : > { %v5172_v45 = vrot.slane %v5171_v22, 1  ;;  %v5193_v42 = vsel %vm4894_vm13, %v4543_v12, 0.0  ;;  %v4306_v37 = vcombine.high %v4304_v62, %v4304_v62  ;;  %v4967_v32 = vsel %vm4894_vm13, %v4297_v58, 0.0 }
 0x260   : > { %v5155_v47 = vadd.f32 %v5154_v57, %v5153_v50  ;;  %v5163_v6 = vrot.slane %v5162_v59, 1  ;;  %v5181_v52 = vrot.slane %v5180_v49, 1  ;;  %v5202_v38 = vsel %vm4894_vm13, %v4542_v1, 0.0 }
 0x261   : > { %v5173_v20 = vadd.f32 %v5172_v45, %v5171_v22  ;;  %v4969_v53 = vadd.f32 %v4968_v10, %v4967_v32  ;;  %v4976_v40 = vsel %vm4894_vm13, %v4305_v17, 0.0  ;;  %v5211_v15 = vsel %vm4894_vm13, %v4544_v63, 0.0 }
 0x262   : > { %v5164_v4 = vadd.f32 %v5163_v6, %v5162_v59  ;;  %v5182_v41 = vadd.f32 %v5181_v52, %v5180_v49  ;;  %v4978_v54 = vadd.f32 %v4977_v11, %v4976_v40  ;;  %v9463_v18 = vadd.f32 %v9328_v44, %v5155_v47 }
 0x263   : > { %v4970_v12 = vrot.slane %v4969_v53, 4  ;;  %v4985_v50 = vsel %vm4894_vm13, %v4304_v62, 0.0  ;;  %v4994_v57 = vsel %vm4894_vm13, %v4306_v37, 0.0  ;;  %v9471_v10 = vadd.f32 %v9328_v44, %v5173_v20 }
 0x264   : > { %v9468_v58 = vadd.f32 %v9328_v44, %v5164_v4  ;;  %v4979_v22 = vrot.slane %v4978_v54, 4  ;;  %v4987_v1 = vadd.f32 %v4986_v28, %v4985_v50  ;;  %v4996_v17 = vadd.f32 %v4995_v60, %v4994_v57 }
 0x265   : > { %10213 = vst [vmem:[#allocation33_spill] sm:$0xff] %v9471_v10  ;;  %v4971_v52 = vadd.f32 %v4970_v12, %v4969_v53  ;;  %v4494_v63 = vcombine.high %v7324_v31, %v7324_v31  ;;  %v4501_v40 = vrot.slane %v7324_v31, %v9279_v9  ;;  %v7286_v62 = vadd.f32 %v9240_v13, %v9300_v39 }
 0x266   : > { %10212 = vst [vmem:[#allocation32_spill] sm:$0xff] %v9468_v58  ;;  %v4980_v11 = vadd.f32 %v4979_v22, %v4978_v54  ;;  %v4988_v59 = vrot.slane %v4987_v1, 4  ;;  %v9478_v37 = vadd.f32 %v9193_v3, %v9375_v55  ;;  %v4997_v45 = vrot.slane %v4996_v17, 4 }
 0x267   : > { %v4972_v49 = vrot.slane %v4971_v52, 2  ;;  %v4508_v47 = vrot.slane %v4494_v63, %v9279_v9  ;;  %v4509_v6 = vcombine.high %v4501_v40, %v4501_v40  ;;  %v5183_v60 = vsel %vm4894_vm13, %v4501_v40, 0.0 }
 0x268   : > { %v4981_v28 = vrot.slane %v4980_v11, 2  ;;  %v4989_v32 = vadd.f32 %v4988_v59, %v4987_v1  ;;  %v4341_v20 = vcombine.high %v7286_v62, %v7286_v62  ;;  %v4998_v53 = vadd.f32 %v4997_v45, %v4996_v17 }
 0x269   : > { %v4973_v31 = vadd.f32 %v4972_v49, %v4971_v52  ;;  %v4510_v4 = vcombine.high %v4508_v47, %v4508_v47  ;;  %v5185_v54 = vadd.f32 %v5184_v19, %v5183_v60  ;;  %v5192_v39 = vsel %vm4894_vm13, %v4509_v6, 0.0  ;;  %v9485_v19 = vpop.f32.mrb[27].mxu1 }
 0x26a   : > { %v4982_v12 = vadd.f32 %v4981_v28, %v4980_v11  ;;  %v4990_v13 = vrot.slane %v4989_v32, 2  ;;  %v5201_v3 = vsel %vm4894_vm13, %v4508_v47, 0.0  ;;  %v4999_v50 = vrot.slane %v4998_v53, 2 }
 0x26b   : > { %v4974_v55 = vrot.slane %v4973_v31, 1  ;;  %v5186_v57 = vrot.slane %v5185_v54, 4  ;;  %v5194_v22 = vadd.f32 %v5193_v42, %v5192_v39  ;;  %v5203_v1 = vadd.f32 %v5202_v38, %v5201_v3 }
 0x26c   : > { %v4983_v63 = vrot.slane %v4982_v12, 1  ;;  %v4991_v10 = vadd.f32 %v4990_v13, %v4989_v32  ;;  %v5210_v40 = vsel %vm4894_vm13, %v4510_v4, 0.0  ;;  %v5000_v52 = vadd.f32 %v4999_v50, %v4998_v53 }
 0x26d   : > { %v4975_v59 = vadd.f32 %v4974_v55, %v4973_v31  ;;  %v5187_v17 = vadd.f32 %v5186_v57, %v5185_v54  ;;  %v5195_v49 = vrot.slane %v5194_v22, 4  ;;  %v5204_v6 = vrot.slane %v5203_v1, 4 }
 0x26e   : > { %v4984_v11 = vadd.f32 %v4983_v63, %v4982_v12  ;;  %v4992_v45 = vrot.slane %v4991_v10, 1  ;;  %v5212_v28 = vadd.f32 %v5211_v15, %v5210_v40  ;;  %v9488_v47 = vadd.f32 %v9328_v44, %v5182_v41 }
 0x26f   : > { %v5001_v60 = vrot.slane %v5000_v52, 1  ;;  %v5188_v42 = vrot.slane %v5187_v17, 2  ;;  %v5196_v39 = vadd.f32 %v5195_v49, %v5194_v22  ;;  %v9491_v38 = vadd.f32 %v9328_v44, %v4975_v59 }
 0x270   : > { %10214 = vst [vmem:[#allocation34_spill] sm:$0xff] %v9488_v47  ;;  %v4993_v32 = vadd.f32 %v4992_v45, %v4991_v10  ;;  %v5205_v31 = vadd.f32 %v5204_v6, %v5203_v1  ;;  %v5213_v53 = vrot.slane %v5212_v28, 4  ;;  %v4348_v12 = vrot.slane %v7286_v62, %v9279_v9 }
 0x271   : > { %v5002_v4 = vadd.f32 %v5001_v60, %v5000_v52  ;;  %v5189_v54 = vadd.f32 %v5188_v42, %v5187_v17  ;;  %v5197_v13 = vrot.slane %v5196_v39, 2  ;;  %v9495_v3 = vadd.f32 %v9328_v44, %v4984_v11 }
 0x272   : > { %v5206_v15 = vrot.slane %v5205_v31, 2  ;;  %v5214_v41 = vadd.f32 %v5213_v53, %v5212_v28  ;;  %v4355_v55 = vrot.slane %v4341_v20, %v9279_v9  ;;  %v9499_v50 = vadd.f32 %v9328_v44, %v4993_v32 }
 0x273   : > { %v5190_v10 = vrot.slane %v5189_v54, 1  ;;  %v5198_v57 = vadd.f32 %v5197_v13, %v5196_v39  ;;  %v4356_v22 = vcombine.high %v4348_v12, %v4348_v12  ;;  %v9502_v63 = vadd.f32 %v9328_v44, %v5002_v4 }
 0x274   : > { %v5207_v1 = vadd.f32 %v5206_v15, %v5205_v31  ;;  %v5215_v40 = vrot.slane %v5214_v41, 2  ;;  %v4357_v59 = vcombine.high %v4355_v55, %v4355_v55  ;;  %v5004_v17 = vsel %vm4894_vm13, %v4348_v12, 0.0 }
 0x275   : > { %v5191_v62 = vadd.f32 %v5190_v10, %v5189_v54  ;;  %v5199_v52 = vrot.slane %v5198_v57, 1  ;;  %v5013_v49 = vsel %vm4894_vm13, %v4356_v22, 0.0  ;;  %v5022_v45 = vsel %vm4894_vm13, %v4355_v55, 0.0 }
 0x276   : > { %v5208_v11 = vrot.slane %v5207_v1, 1  ;;  %v5216_v20 = vadd.f32 %v5215_v40, %v5214_v41  ;;  %v4545_v6 = vcombine.high %v9478_v37, %v9478_v37  ;;  %v5031_v60 = vsel %vm4894_vm13, %v4357_v59, 0.0  ;;  %v9539_v59 = vpop.f32.mrb[142].mxu0 }
 0x277   : > { %v5200_v28 = vadd.f32 %v5199_v52, %v5198_v57  ;;  %v4552_v42 = vrot.slane %v9478_v37, %v9279_v9  ;;  %v7290_v39 = vadd.f32 %v9245_v25, %v9302_v14  ;;  %v7330_v4 = vadd.f32 %v9181_v7, %v9377_v24 }
 0x278   : > { %v5209_v32 = vadd.f32 %v5208_v11, %v5207_v1  ;;  %v5217_v31 = vrot.slane %v5216_v20, 1  ;;  %v4559_v53 = vrot.slane %v4545_v6, %v9279_v9  ;;  %v9518_v54 = vadd.f32 %v9328_v44, %v5191_v62  ;;  %v9543_v6 = vpop.f32.mrb[143].mxu0 }
 0x279   : > { %v9521_v13 = vadd.f32 %v9328_v44, %v5200_v28  ;;  %v4560_v12 = vcombine.high %v4552_v42, %v4552_v42  ;;  %v4307_v15 = vcombine.high %v7290_v39, %v7290_v39  ;;  %v5220_v14 = vsel %vm4894_vm13, %v4552_v42, 0.0  ;;  %10218 = vst [vmem:[#allocation38_spill] sm:$0xff] %v9543_v6 }
 0x27a   : > { %10215 = vst [vmem:[#allocation35_spill] sm:$0xff] %v9518_v54  ;;  %v9523_v41 = vadd.f32 %v5217_v31, %v5216_v20  ;;  %v9526_v37 = vadd.f32 %v9328_v44, %v5209_v32  ;;  %v4561_v25 = vcombine.high %v4559_v53, %v4559_v53  ;;  %v5238_v55 = vsel %vm4894_vm13, %v4559_v53, 0.0 }
 0x27b   : > { %10216 = vst [vmem:[#allocation36_spill] sm:$0xff] %v9521_v13  ;;  %v4314_v7 = vrot.slane %v7290_v39, %v9279_v9  ;;  %v4321_v24 = vrot.slane %v4307_v15, %v9279_v9  ;;  %v4511_v10 = vcombine.high %v7330_v4, %v7330_v4  ;;  %v5229_v57 = vsel %vm4894_vm13, %v4560_v12, 0.0 }
 0x27c   : > { %10217 = vst [vmem:[#allocation37_spill] sm:$0xff] %v9526_v37  ;;  %v5247_v22 = vsel %vm4894_vm13, %v4561_v25, 0.0  ;;  %v4518_v1 = vrot.slane %v7330_v4, %v9279_v9  ;;  %v9537_v40 = vadd.f32 %v9251_v43, %v9317_v48 }
 0x27d   : > { %v4322_v62 = vcombine.high %v4314_v7, %v4314_v7  ;;  %v4323_v52 = vcombine.high %v4321_v24, %v4321_v24  ;;  %v5003_v11 = vsel %vm4894_vm13, %v4314_v7, 0.0  ;;  %v5021_v20 = vsel %vm4894_vm13, %v4321_v24, 0.0 }
 0x27e   : > { %v5005_v28 = vadd.f32 %v5004_v17, %v5003_v11  ;;  %v5023_v42 = vadd.f32 %v5022_v45, %v5021_v20  ;;  %v4525_v39 = vrot.slane %v4511_v10, %v9279_v9  ;;  %v4526_v32 = vcombine.high %v4518_v1, %v4518_v1 }
 0x27f   : > { %v5012_v31 = vsel %vm4894_vm13, %v4322_v62, 0.0  ;;  %v5030_v43 = vsel %vm4894_vm13, %v4323_v52, 0.0  ;;  %v5219_v48 = vsel %vm4894_vm13, %v4518_v1, 0.0  ;;  %v4392_v53 = vcombine.high %v9537_v40, %v9537_v40 }
 0x280   : > { %v5006_v4 = vrot.slane %v5005_v28, 4  ;;  %v5014_v12 = vadd.f32 %v5013_v49, %v5012_v31  ;;  %v5024_v15 = vrot.slane %v5023_v42, 4  ;;  %v5032_v25 = vadd.f32 %v5031_v60, %v5030_v43 }
 0x281   : > { %v4527_v7 = vcombine.high %v4525_v39, %v4525_v39  ;;  %v5221_v24 = vadd.f32 %v5220_v14, %v5219_v48  ;;  %v5228_v17 = vsel %vm4894_vm13, %v4526_v32, 0.0  ;;  %v5237_v45 = vsel %vm4894_vm13, %v4525_v39, 0.0 }
 0x282   : > { %v5007_v10 = vadd.f32 %v5006_v4, %v5005_v28  ;;  %v5015_v11 = vrot.slane %v5014_v12, 4  ;;  %v5025_v62 = vadd.f32 %v5024_v15, %v5023_v42  ;;  %v5033_v20 = vrot.slane %v5032_v25, 4 }
 0x283   : > { %v5222_v52 = vrot.slane %v5221_v24, 4  ;;  %v5230_v37 = vadd.f32 %v5229_v57, %v5228_v17  ;;  %v5239_v1 = vadd.f32 %v5238_v55, %v5237_v45  ;;  %v5246_v13 = vsel %vm4894_vm13, %v4527_v7, 0.0 }
 0x284   : > { %v5008_v54 = vrot.slane %v5007_v10, 2  ;;  %v5016_v6 = vadd.f32 %v5015_v11, %v5014_v12  ;;  %v5026_v49 = vrot.slane %v5025_v62, 2  ;;  %v5034_v31 = vadd.f32 %v5033_v20, %v5032_v25 }
 0x285   : > { %v5223_v60 = vadd.f32 %v5222_v52, %v5221_v24  ;;  %v5231_v43 = vrot.slane %v5230_v37, 4  ;;  %v5240_v14 = vrot.slane %v5239_v1, 4  ;;  %v5248_v48 = vadd.f32 %v5247_v22, %v5246_v13 }
 0x286   : > { %v5009_v32 = vadd.f32 %v5008_v54, %v5007_v10  ;;  %v5017_v47 = vrot.slane %v5016_v6, 2  ;;  %v5027_v39 = vadd.f32 %v5026_v49, %v5025_v62  ;;  %v5035_v28 = vrot.slane %v5034_v31, 2  ;;  %v9554_v49 = vpop.f32.mrb[28].mxu1 }
 0x287   : > { %v5224_v4 = vrot.slane %v5223_v60, 2  ;;  %v5232_v42 = vadd.f32 %v5231_v43, %v5230_v37  ;;  %v5241_v15 = vadd.f32 %v5240_v14, %v5239_v1  ;;  %v5249_v58 = vrot.slane %v5248_v48, 4  ;;  %v9556_v37 = vpop.f32.mrb[144].mxu0 }
 0x288   : > { %v5010_v57 = vrot.slane %v5009_v32, 1  ;;  %v5018_v55 = vadd.f32 %v5017_v47, %v5016_v6  ;;  %v5028_v17 = vrot.slane %v5027_v39, 1  ;;  %v5036_v7 = vadd.f32 %v5035_v28, %v5034_v31 }
 0x289   : > { %v5225_v45 = vadd.f32 %v5224_v4, %v5223_v60  ;;  %v5233_v12 = vrot.slane %v5232_v42, 2  ;;  %v5242_v11 = vrot.slane %v5241_v15, 2  ;;  %v5250_v25 = vadd.f32 %v5249_v58, %v5248_v48 }
 0x28a   : > { %v5011_v24 = vadd.f32 %v5010_v57, %v5009_v32  ;;  %v5019_v20 = vrot.slane %v5018_v55, 1  ;;  %v5029_v52 = vadd.f32 %v5028_v17, %v5027_v39  ;;  %v5037_v13 = vrot.slane %v5036_v7, 1 }
 0x28b   : > { %v5226_v54 = vrot.slane %v5225_v45, 1  ;;  %v5234_v22 = vadd.f32 %v5233_v12, %v5232_v42  ;;  %v5243_v10 = vadd.f32 %v5242_v11, %v5241_v15  ;;  %v5251_v62 = vrot.slane %v5250_v25, 2 }
 0x28c   : > { %v9560_v47 = vadd.f32 %v9328_v44, %v9523_v41  ;;  %v5020_v6 = vadd.f32 %v5019_v20, %v5018_v55  ;;  %v5038_v1 = vadd.f32 %v5037_v13, %v5036_v7  ;;  %v9563_v58 = vadd.f32 %v9328_v44, %v5011_v24 }
 0x28d   : > { %v5227_v31 = vadd.f32 %v5226_v54, %v5225_v45  ;;  %v5235_v60 = vrot.slane %v5234_v22, 1  ;;  %v5244_v43 = vrot.slane %v5243_v10, 1  ;;  %v5252_v14 = vadd.f32 %v5251_v62, %v5250_v25 }
 0x28e   : > { %v9566_v48 = vadd.f32 %v9328_v44, %v5020_v6  ;;  %v9569_v32 = vadd.f32 %v9328_v44, %v5029_v52  ;;  %v4399_v39 = vrot.slane %v9537_v40, %v9279_v9  ;;  %v4406_v41 = vrot.slane %v4392_v53, %v9279_v9 }
 0x28f   : > { %v9575_v28 = vadd.f32 %v9328_v44, %v5038_v1  ;;  %v5236_v4 = vadd.f32 %v5235_v60, %v5234_v22  ;;  %v5245_v42 = vadd.f32 %v5244_v43, %v5243_v10  ;;  %v5253_v15 = vrot.slane %v5252_v14, 1 }
 0x290   : > { %v9578_v57 = vadd.f32 %v9328_v44, %v5227_v31  ;;  %v4407_v55 = vcombine.high %v4399_v39, %v4399_v39  ;;  %v4408_v17 = vcombine.high %v4406_v41, %v4406_v41  ;;  %v5040_v7 = vsel %vm4894_vm13, %v4399_v39, 0.0  ;;  %v9613_v39 = vpop.f32.mrb[29].mxu1 }
 0x291   : > { %v5254_v45 = vadd.f32 %v5253_v15, %v5252_v14  ;;  %v9582_v12 = vadd.f32 %v9328_v44, %v5236_v4  ;;  %v5058_v40 = vsel %vm4894_vm13, %v4406_v41, 0.0  ;;  %v7333_v53 = vadd.f32 %v9224_v5, %v9387_v0 }
 0x292   : > { %10219 = vst [vmem:[#allocation39_spill] sm:$0xff] %v9578_v57  ;;  %v9588_v11 = vadd.f32 %v9328_v44, %v5245_v42  ;;  %v5049_v25 = vsel %vm4894_vm13, %v4407_v55, 0.0  ;;  %v7298_v24 = vadd.f32 %v9255_v56, %v9319_v35  ;;  %v7336_v20 = vadd.f32 %v9202_v8, %v9389_v29 }
 0x293   : > { %10220 = vst [vmem:[#allocation40_spill] sm:$0xff] %v9582_v12  ;;  %v5067_v52 = vsel %vm4894_vm13, %v4408_v17, 0.0  ;;  %v4596_v13 = vcombine.high %v7333_v53, %v7333_v53  ;;  %v4603_v54 = vrot.slane %v7333_v53, %v9279_v9  ;;  %v9599_v22 = vadd.f32 %v9261_v46, %v9323_v21 }
 0x294   : > { %10221 = vst [vmem:[#allocation41_spill] sm:$0xff] %v9588_v11  ;;  %v4358_v0 = vcombine.high %v7298_v24, %v7298_v24  ;;  %v4365_v5 = vrot.slane %v7298_v24, %v9279_v9  ;;  %v4562_v10 = vcombine.high %v7336_v20, %v7336_v20  ;;  %v4569_v62 = vrot.slane %v7336_v20, %v9279_v9 }
 0x295   : > { %v9604_v56 = vadd.f32 %v9328_v44, %v5254_v45  ;;  %v4610_v8 = vrot.slane %v4596_v13, %v9279_v9  ;;  %v4611_v35 = vcombine.high %v4603_v54, %v4603_v54  ;;  %v5256_v29 = vsel %vm4894_vm13, %v4603_v54, 0.0 }
 0x296   : > { %v4372_v6 = vrot.slane %v4358_v0, %v9279_v9  ;;  %v4373_v1 = vcombine.high %v4365_v5, %v4365_v5  ;;  %v5039_v46 = vsel %vm4894_vm13, %v4365_v5, 0.0  ;;  %v4576_v21 = vrot.slane %v4562_v10, %v9279_v9 }
 0x297   : > { %10222 = vst [vmem:[#allocation42_spill] sm:$0xff] %v9604_v56  ;;  %v4612_v31 = vcombine.high %v4610_v8, %v4610_v8  ;;  %v5265_v60 = vsel %vm4894_vm13, %v4611_v35, 0.0  ;;  %v5274_v43 = vsel %vm4894_vm13, %v4610_v8, 0.0  ;;  %v5041_v14 = vadd.f32 %v5040_v7, %v5039_v46 }
 0x298   : > { %v4374_v41 = vcombine.high %v4372_v6, %v4372_v6  ;;  %v5048_v4 = vsel %vm4894_vm13, %v4373_v1, 0.0  ;;  %v5057_v42 = vsel %vm4894_vm13, %v4372_v6, 0.0  ;;  %v4577_v15 = vcombine.high %v4569_v62, %v4569_v62 }
 0x299   : > { %v5283_v55 = vsel %vm4894_vm13, %v4612_v31, 0.0  ;;  %v5042_v17 = vrot.slane %v5041_v14, 4  ;;  %v5050_v45 = vadd.f32 %v5049_v25, %v5048_v4  ;;  %v5059_v53 = vadd.f32 %v5058_v40, %v5057_v42 }
 0x29a   : > { %v5066_v24 = vsel %vm4894_vm13, %v4374_v41, 0.0  ;;  %v4578_v20 = vcombine.high %v4576_v21, %v4576_v21  ;;  %v5255_v13 = vsel %vm4894_vm13, %v4569_v62, 0.0  ;;  %v5264_v7 = vsel %vm4894_vm13, %v4577_v15, 0.0 }
 0x29b   : > { %v5043_v54 = vadd.f32 %v5042_v17, %v5041_v14  ;;  %v5051_v0 = vrot.slane %v5050_v45, 4  ;;  %v5060_v5 = vrot.slane %v5059_v53, 4  ;;  %v5068_v10 = vadd.f32 %v5067_v52, %v5066_v24 }
 0x29c   : > { %v5257_v8 = vadd.f32 %v5256_v29, %v5255_v13  ;;  %v5266_v35 = vadd.f32 %v5265_v60, %v5264_v7  ;;  %v5273_v6 = vsel %vm4894_vm13, %v4576_v21, 0.0  ;;  %v5282_v1 = vsel %vm4894_vm13, %v4578_v20, 0.0 }
 0x29d   : > { %v5044_v46 = vrot.slane %v5043_v54, 2  ;;  %v5052_v25 = vadd.f32 %v5051_v0, %v5050_v45  ;;  %v5061_v40 = vadd.f32 %v5060_v5, %v5059_v53  ;;  %v5069_v31 = vrot.slane %v5068_v10, 4 }
 0x29e   : > { %v5258_v41 = vrot.slane %v5257_v8, 4  ;;  %v5267_v4 = vrot.slane %v5266_v35, 4  ;;  %v5275_v42 = vadd.f32 %v5274_v43, %v5273_v6  ;;  %v5284_v62 = vadd.f32 %v5283_v55, %v5282_v1 }
 0x29f   : > { %v5045_v56 = vadd.f32 %v5044_v46, %v5043_v54  ;;  %v5053_v15 = vrot.slane %v5052_v25, 2  ;;  %v5062_v14 = vrot.slane %v5061_v40, 2  ;;  %v5070_v17 = vadd.f32 %v5069_v31, %v5068_v10 }
 0x2a0   : > { %v5259_v11 = vadd.f32 %v5258_v41, %v5257_v8  ;;  %v5268_v52 = vadd.f32 %v5267_v4, %v5266_v35  ;;  %v5276_v29 = vrot.slane %v5275_v42, 4  ;;  %v5285_v60 = vrot.slane %v5284_v62, 4 }
 0x2a1   : > { %v5046_v24 = vrot.slane %v5045_v56, 1  ;;  %v5054_v21 = vadd.f32 %v5053_v15, %v5052_v25  ;;  %v5063_v13 = vadd.f32 %v5062_v14, %v5061_v40  ;;  %v5071_v20 = vrot.slane %v5070_v17, 2 }
 0x2a2   : > { %v5260_v7 = vrot.slane %v5259_v11, 2  ;;  %v5269_v45 = vrot.slane %v5268_v52, 2  ;;  %v5277_v53 = vadd.f32 %v5276_v29, %v5275_v42  ;;  %v5286_v0 = vadd.f32 %v5285_v60, %v5284_v62  ;;  %v9625_v42 = vpop.f32.mrb[145].mxu0  ;;  %v9635_v29 = vpop.f32.mrb[30].mxu1 }
 0x2a3   : > { %v5047_v5 = vadd.f32 %v5046_v24, %v5045_v56  ;;  %v5055_v12 = vrot.slane %v5054_v21, 1  ;;  %v5064_v43 = vrot.slane %v5063_v13, 1  ;;  %v5072_v55 = vadd.f32 %v5071_v20, %v5070_v17  ;;  %10223 = vst [vmem:[#allocation43_spill] sm:$0xff] %v9635_v29 }
 0x2a4   : > { %v5261_v54 = vadd.f32 %v5260_v7, %v5259_v11  ;;  %v5270_v6 = vadd.f32 %v5269_v45, %v5268_v52  ;;  %v5278_v1 = vrot.slane %v5277_v53, 2  ;;  %v5287_v10 = vrot.slane %v5286_v0, 2 }
 0x2a5   : > { %v5056_v8 = vadd.f32 %v5055_v12, %v5054_v21  ;;  %v5065_v35 = vadd.f32 %v5064_v43, %v5063_v13  ;;  %v5073_v46 = vrot.slane %v5072_v55, 1  ;;  %v4409_v25 = vcombine.high %v9599_v22, %v9599_v22 }
 0x2a6   : > { %v5262_v40 = vrot.slane %v5261_v54, 1  ;;  %v5271_v31 = vrot.slane %v5270_v6, 1  ;;  %v5279_v41 = vadd.f32 %v5278_v1, %v5277_v53  ;;  %v5288_v4 = vadd.f32 %v5287_v10, %v5286_v0  ;;  %v10224_v1 = vld [vmem:[#allocation12_spill] sm:$0xff] }
 0x2a7   : > { %v5074_v56 = vadd.f32 %v5073_v46, %v5072_v55  ;;  %v9628_v62 = vadd.f32 %v9328_v44, %v5047_v5  ;;  %v9631_v11 = vadd.f32 %v9328_v44, %v5056_v8  ;;  %v4416_v12 = vrot.slane %v9599_v22, %v9279_v9 }
 0x2a8   : > { %v5263_v15 = vadd.f32 %v5262_v40, %v5261_v54  ;;  %v5272_v14 = vadd.f32 %v5271_v31, %v5270_v6  ;;  %v5280_v17 = vrot.slane %v5279_v41, 1  ;;  %v5289_v52 = vrot.slane %v5288_v4, 1 }
 0x2a9   : > { %v9638_v60 = vadd.f32 %v9328_v44, %v5065_v35  ;;  %v9641_v24 = vadd.f32 %v9328_v44, %v5074_v56  ;;  %v4423_v21 = vrot.slane %v4409_v25, %v9279_v9  ;;  %v4424_v13 = vcombine.high %v4416_v12, %v4416_v12  ;;  %v10225_v25 = vld [vmem:[#allocation16_spill] sm:$0xff] }
 0x2aa   : > { %v5281_v20 = vadd.f32 %v5280_v17, %v5279_v41  ;;  %v5290_v7 = vadd.f32 %v5289_v52, %v5288_v4  ;;  %v9645_v45 = vadd.f32 %v9328_v44, %v5263_v15  ;;  %v5076_v22 = vsel %vm4894_vm13, %v4416_v12, 0.0 }
 0x2ab   : > { %v9649_v53 = vadd.f32 %v9328_v44, %v5272_v14  ;;  %v4425_v0 = vcombine.high %v4423_v21, %v4423_v21  ;;  %v5085_v5 = vsel %vm4894_vm13, %v4424_v13, 0.0  ;;  %v7339_v43 = vadd.f32 %v9227_v51, %v9393_v23  ;;  %v9670_v23 = vpop.f32.mrb[31].mxu1 }
 0x2ac   : > { %v9655_v55 = vadd.f32 %v9328_v44, %v5281_v20  ;;  %v5094_v54 = vsel %vm4894_vm13, %v4423_v21, 0.0  ;;  %v7306_v6 = vadd.f32 %v9266_v33, %v9330_v34  ;;  %v7342_v10 = vadd.f32 %v10224_v1, %v9395_v30  ;;  %10226 = vst [vmem:[#allocation12_spill] sm:$0xff] %v9670_v23 }
 0x2ad   : > { %v9663_v8 = vadd.f32 %v9328_v44, %v5290_v7  ;;  %v4613_v35 = vcombine.high %v7339_v43, %v7339_v43  ;;  %v4620_v46 = vrot.slane %v7339_v43, %v9279_v9  ;;  %v9668_v51 = vadd.f32 %v10225_v25, %v9424_v27 }
 0x2ae   : > { %v4375_v40 = vcombine.high %v7306_v6, %v7306_v6  ;;  %v4382_v31 = vrot.slane %v7306_v6, %v9279_v9  ;;  %v4579_v41 = vcombine.high %v7342_v10, %v7342_v10  ;;  %v4586_v33 = vrot.slane %v7342_v10, %v9279_v9 }
 0x2af   : > { %v5103_v34 = vsel %vm4894_vm13, %v4425_v0, 0.0  ;;  %v4627_v44 = vrot.slane %v4613_v35, %v9279_v9  ;;  %v4628_v30 = vcombine.high %v4620_v46, %v4620_v46  ;;  %v5292_v4 = vsel %vm4894_vm13, %v4620_v46, 0.0 }
 0x2b0   : > { %v4389_v56 = vrot.slane %v4375_v40, %v9279_v9  ;;  %v4390_v12 = vcombine.high %v4382_v31, %v4382_v31  ;;  %v5075_v27 = vsel %vm4894_vm13, %v4382_v31, 0.0  ;;  %v4593_v15 = vrot.slane %v4579_v41, %v9279_v9 }
 0x2b1   : > { %v4629_v14 = vcombine.high %v4627_v44, %v4627_v44  ;;  %v5301_v17 = vsel %vm4894_vm13, %v4628_v30, 0.0  ;;  %v5310_v52 = vsel %vm4894_vm13, %v4627_v44, 0.0  ;;  %v5077_v21 = vadd.f32 %v5076_v22, %v5075_v27 }
 0x2b2   : > { %v4391_v13 = vcombine.high %v4389_v56, %v4389_v56  ;;  %v5084_v20 = vsel %vm4894_vm13, %v4390_v12, 0.0  ;;  %v5093_v7 = vsel %vm4894_vm13, %v4389_v56, 0.0  ;;  %v4594_v0 = vcombine.high %v4586_v33, %v4586_v33 }
 0x2b3   : > { %v5319_v43 = vsel %vm4894_vm13, %v4629_v14, 0.0  ;;  %v5078_v6 = vrot.slane %v5077_v21, 4  ;;  %v5086_v1 = vadd.f32 %v5085_v5, %v5084_v20  ;;  %v5095_v10 = vadd.f32 %v5094_v54, %v5093_v7 }
 0x2b4   : > { %v5102_v35 = vsel %vm4894_vm13, %v4391_v13, 0.0  ;;  %v4595_v46 = vcombine.high %v4593_v15, %v4593_v15  ;;  %v5291_v25 = vsel %vm4894_vm13, %v4586_v33, 0.0  ;;  %v5300_v40 = vsel %vm4894_vm13, %v4594_v0, 0.0 }
 0x2b5   : > { %v5079_v31 = vadd.f32 %v5078_v6, %v5077_v21  ;;  %v5087_v22 = vrot.slane %v5086_v1, 4  ;;  %v5096_v41 = vrot.slane %v5095_v10, 4  ;;  %v5104_v44 = vadd.f32 %v5103_v34, %v5102_v35 }
 0x2b6   : > { %v5293_v30 = vadd.f32 %v5292_v4, %v5291_v25  ;;  %v5302_v12 = vadd.f32 %v5301_v17, %v5300_v40  ;;  %v5309_v56 = vsel %vm4894_vm13, %v4593_v15, 0.0  ;;  %v5318_v27 = vsel %vm4894_vm13, %v4595_v46, 0.0 }
 0x2b7   : > { %v5080_v14 = vrot.slane %v5079_v31, 2  ;;  %v5088_v5 = vadd.f32 %v5087_v22, %v5086_v1  ;;  %v5097_v54 = vadd.f32 %v5096_v41, %v5095_v10  ;;  %v5105_v20 = vrot.slane %v5104_v44, 4  ;;  %v9690_v41 = vpop.f32.mrb[146].mxu0 }
 0x2b8   : > { %v5294_v13 = vrot.slane %v5293_v30, 4  ;;  %v5303_v7 = vrot.slane %v5302_v12, 4  ;;  %v5311_v23 = vadd.f32 %v5310_v52, %v5309_v56  ;;  %v5320_v33 = vadd.f32 %v5319_v43, %v5318_v27 }
 0x2b9   : > { %v5081_v29 = vadd.f32 %v5080_v14, %v5079_v31  ;;  %v5089_v0 = vrot.slane %v5088_v5, 2  ;;  %v5098_v21 = vrot.slane %v5097_v54, 2  ;;  %v5106_v6 = vadd.f32 %v5105_v20, %v5104_v44 }
 0x2ba   : > { %v5295_v57 = vadd.f32 %v5294_v13, %v5293_v30  ;;  %v5304_v34 = vadd.f32 %v5303_v7, %v5302_v12  ;;  %v5312_v4 = vrot.slane %v5311_v23, 4  ;;  %v5321_v17 = vrot.slane %v5320_v33, 4 }
 0x2bb   : > { %v5082_v35 = vrot.slane %v5081_v29, 1  ;;  %v5090_v15 = vadd.f32 %v5089_v0, %v5088_v5  ;;  %v5099_v25 = vadd.f32 %v5098_v21, %v5097_v54  ;;  %v5107_v46 = vrot.slane %v5106_v6, 2 }
 0x2bc   : > { %v5296_v40 = vrot.slane %v5295_v57, 2  ;;  %v5305_v1 = vrot.slane %v5304_v34, 2  ;;  %v5313_v10 = vadd.f32 %v5312_v4, %v5311_v23  ;;  %v5322_v22 = vadd.f32 %v5321_v17, %v5320_v33 }
 0x2bd   : > { %v5083_v52 = vadd.f32 %v5082_v35, %v5081_v29  ;;  %v5091_v43 = vrot.slane %v5090_v15, 1  ;;  %v5100_v31 = vrot.slane %v5099_v25, 1  ;;  %v5108_v56 = vadd.f32 %v5107_v46, %v5106_v6  ;;  %v9697_v29 = vld [vmem:[%s10170_s5] ss:$0 sm:$0xff] }
 0x2be   : > { %v5297_v27 = vadd.f32 %v5296_v40, %v5295_v57  ;;  %v5306_v44 = vadd.f32 %v5305_v1, %v5304_v34  ;;  %v5314_v30 = vrot.slane %v5313_v10, 2  ;;  %v5323_v12 = vrot.slane %v5322_v22, 2 }
 0x2bf   : > { %v5092_v14 = vadd.f32 %v5091_v43, %v5090_v15  ;;  %v5101_v20 = vadd.f32 %v5100_v31, %v5099_v25  ;;  %v5109_v13 = vrot.slane %v5108_v56, 1  ;;  %v4664_v5 = vcombine.high %v9668_v51, %v9668_v51 }
 0x2c0   : > { %v5298_v54 = vrot.slane %v5297_v27, 1  ;;  %v5307_v7 = vrot.slane %v5306_v44, 1  ;;  %v5315_v23 = vadd.f32 %v5314_v30, %v5313_v10  ;;  %v5324_v33 = vadd.f32 %v5323_v12, %v5322_v22 }
 0x2c1   : > { %v5110_v0 = vadd.f32 %v5109_v13, %v5108_v56  ;;  %v9700_v57 = vadd.f32 %v9697_v29, %v5083_v52  ;;  %v9703_v21 = vadd.f32 %v9697_v29, %v5092_v14  ;;  %v4671_v6 = vrot.slane %v9668_v51, %v9279_v9  ;;  %v10227_v56 = vld [vmem:[#allocation24_spill] sm:$0xff] }
 0x2c2   : > { %v5299_v34 = vadd.f32 %v5298_v54, %v5297_v27  ;;  %v5308_v4 = vadd.f32 %v5307_v7, %v5306_v44  ;;  %v5316_v17 = vrot.slane %v5315_v23, 1  ;;  %v5325_v35 = vrot.slane %v5324_v33, 1 }
 0x2c3   : > { %v9708_v15 = vadd.f32 %v9697_v29, %v5101_v20  ;;  %v9711_v25 = vadd.f32 %v9697_v29, %v5110_v0  ;;  %v4678_v46 = vrot.slane %v4664_v5, %v9279_v9  ;;  %v4679_v40 = vcombine.high %v4671_v6, %v4671_v6  ;;  %v9737_v20 = vpop.f32.mrb[147].mxu0 }
 0x2c4   : > { %v5317_v1 = vadd.f32 %v5316_v17, %v5315_v23  ;;  %v9714_v10 = vadd.f32 %v5325_v35, %v5324_v33  ;;  %v9717_v22 = vadd.f32 %v9697_v29, %v5299_v34  ;;  %v9720_v51 = vsel %vm4894_vm13, %v4671_v6, 0.0 }
 0x2c5   : > { %v9723_v52 = vadd.f32 %v9697_v29, %v5308_v4  ;;  %v4680_v43 = vcombine.high %v4678_v46, %v4678_v46  ;;  %v9726_v31 = vsel %vm4894_vm13, %v4679_v40, 0.0  ;;  %v5700_v27 = vrot.slane %v10227_v56, 1 }
 0x2c6   : > { %v9730_v44 = vadd.f32 %v9697_v29, %v5317_v1  ;;  %v9733_v30 = vsel %vm4894_vm13, %v4678_v46, 0.0  ;;  %v5701_v12 = vrot.slane %v10227_v56, 2  ;;  %v5702_v14 = vrot.slane %v10227_v56, 3  ;;  %v9757_v46 = vld [vmem:[%s10172_s7] ss:$0 sm:$0xff] }
 0x2c7   : > { %v9740_v13 = vsel %vm4894_vm13, %v4680_v43, 0.0  ;;  %v5703_v5 = vrot.slane %v10227_v56, 4  ;;  %v5704_v54 = vrot.slane %v10227_v56, 5  ;;  %v5705_v7 = vrot.slane %v10227_v56, 6 }
 0x2c8   : > { %v5706_v23 = vrot.slane %v10227_v56, 7  ;;  %v5821_v33 = vadd.f32 %v10227_v56, %v9491_v38  ;;  %v5822_v0 = vadd.f32 %v5700_v27, %v9495_v3  ;;  %v5823_v6 = vadd.f32 %v5701_v12, %v9499_v50 }
 0x2c9   : > { %v5824_v34 = vadd.f32 %v5702_v14, %v9502_v63  ;;  %v5825_v4 = vadd.f32 %v5703_v5, %v9563_v58  ;;  %v5826_v17 = vadd.f32 %v5704_v54, %v9566_v48  ;;  %v5827_v35 = vadd.f32 %v5705_v7, %v9569_v32  ;;  %v10228_v54 = vld [vmem:[#allocation14_spill] sm:$0xff] }
 0x2ca   : > { %v5828_v40 = vadd.f32 %v5706_v23, %v9575_v28  ;;  %v5892_v38 = vadd.f32 %v9757_v46, %v5821_v33  ;;  %v5893_v3 = vadd.f32 %v9757_v46, %v5822_v0  ;;  %v5894_v50 = vadd.f32 %v9757_v46, %v5823_v6 }
 0x2cb   : > { %v5895_v63 = vadd.f32 %v9757_v46, %v5824_v34  ;;  %v5896_v58 = vadd.f32 %v9757_v46, %v5825_v4  ;;  %v5897_v48 = vadd.f32 %v9757_v46, %v5826_v17  ;;  %v5898_v32 = vadd.f32 %v9757_v46, %v5827_v35 }
 0x2cc   : > { %v5899_v1 = vadd.f32 %v9757_v46, %v5828_v40  ;;  %v6033_v28 = vrot.slane %v5893_v3, 7  ;;  %v6035_v43 = vrot.slane %v5894_v50, 6  ;;  %v7348_v7 = vadd.f32 %v10228_v54, %v9431_v36 }
 0x2cd   : > { %v6037_v56 = vrot.slane %v5895_v63, 5  ;;  %v6039_v27 = vrot.slane %v5896_v58, 4  ;;  %v6041_v12 = vrot.slane %v5897_v48, 3  ;;  %v6043_v14 = vrot.slane %v5898_v32, 2 }
 0x2ce   : > { %v6045_v5 = vrot.slane %v5899_v1, 1  ;;  %v6034_v23 = vsel %vm6013_vm14, %v6033_v28, %v5892_v38  ;;  %v5693_v33 = vrot.slane %v9397_v16, 1  ;;  %v5694_v0 = vrot.slane %v9397_v16, 2  ;;  %v10229_v28 = vld [vmem:[#allocation21_spill] sm:$0xff] }
 0x2cf   : > { %v5695_v6 = vrot.slane %v9397_v16, 3  ;;  %v6036_v34 = vsel %vm6016_vm15, %v6035_v43, %v6034_v23  ;;  %v4630_v4 = vcombine.high %v7348_v7, %v7348_v7  ;;  %v4637_v17 = vrot.slane %v7348_v7, %v9279_v9 }
 0x2d0   : > { %v5696_v35 = vrot.slane %v9397_v16, 4  ;;  %v6038_v40 = vsel %vm6019_vm0, %v6037_v56, %v6036_v34  ;;  %v5697_v36 = vrot.slane %v9397_v16, 5  ;;  %v5698_v3 = vrot.slane %v9397_v16, 6  ;;  %v10230_v56 = vld [vmem:[#allocation22_spill] sm:$0xff] }
 0x2d1   : > { %v5699_v38 = vrot.slane %v9397_v16, 7  ;;  %v6040_v50 = vsel %vm6022_vm1, %v6039_v27, %v6038_v40  ;;  %v4644_v63 = vrot.slane %v4630_v4, %v9279_v9  ;;  %v4645_v58 = vcombine.high %v4637_v17, %v4637_v17 }
 0x2d2   : > { %v5327_v48 = vsel %vm4894_vm13, %v4637_v17, 0.0  ;;  %v6042_v32 = vsel %vm6025_vm2, %v6041_v12, %v6040_v50  ;;  %v5813_v43 = vadd.f32 %v10229_v28, %v9397_v16  ;;  %v5814_v54 = vadd.f32 %v5693_v33, %v10230_v56  ;;  %v10232_v33 = vld [vmem:[#allocation25_spill] sm:$0xff] }
 0x2d3   : > { %v5329_v1 = vadd.f32 %v9720_v51, %v5327_v48  ;;  %v6044_v7 = vsel %vm6028_vm3, %v6043_v14, %v6042_v32  ;;  %v4646_v23 = vcombine.high %v4644_v63, %v4644_v63  ;;  %v5336_v34 = vsel %vm4894_vm13, %v4645_v58, 0.0  ;;  %v10231_v51 = vld [vmem:[#allocation23_spill] sm:$0xff]  ;;  %v10233_v28 = vld [vmem:[#allocation29_spill] sm:$0xff] }
 0x2d4   : > { %v5345_v27 = vsel %vm4894_vm13, %v4644_v63, 0.0  ;;  %v6046_v4 = vsel %vm6031_vm4, %v6045_v5, %v6044_v7  ;;  %v5338_v17 = vadd.f32 %v9726_v31, %v5336_v34  ;;  %v5815_v14 = vadd.f32 %v5694_v0, %v10231_v51 }
 0x2d5   : > { %v5330_v40 = vrot.slane %v5329_v1, 4  ;;  %v5347_v12 = vadd.f32 %v9733_v30, %v5345_v27  ;;  %6140 = vst [vmem:[%s9798_s1 + $0x8] sm:$0xff] %v6046_v4  ;;  %v5354_v16 = vsel %vm4894_vm13, %v4646_v23, 0.0  ;;  %v5816_v50 = vadd.f32 %v5695_v6, %v10232_v33 }
 0x2d6   : > { %v5817_v58 = vadd.f32 %v5696_v35, %v9400_v26  ;;  %v5339_v48 = vrot.slane %v5338_v17, 4  ;;  %v5356_v32 = vadd.f32 %v9740_v13, %v5354_v16  ;;  %v5818_v31 = vadd.f32 %v5697_v36, %v9403_v2 }
 0x2d7   : > { %v5331_v63 = vadd.f32 %v5330_v40, %v5329_v1  ;;  %v5348_v5 = vrot.slane %v5347_v12, 4  ;;  %v5819_v30 = vadd.f32 %v5698_v3, %v9406_v61  ;;  %v5820_v56 = vadd.f32 %v5699_v38, %v10233_v28 }
 0x2d8   : > { %v5884_v7 = vadd.f32 %v9757_v46, %v5813_v43  ;;  %v5340_v34 = vadd.f32 %v5339_v48, %v5338_v17  ;;  %v5357_v27 = vrot.slane %v5356_v32, 4  ;;  %v5885_v6 = vadd.f32 %v9757_v46, %v5814_v54 }
 0x2d9   : > { %v5332_v23 = vrot.slane %v5331_v63, 2  ;;  %v5349_v0 = vadd.f32 %v5348_v5, %v5347_v12  ;;  %v5886_v26 = vadd.f32 %v9757_v46, %v5815_v14  ;;  %v5887_v35 = vadd.f32 %v9757_v46, %v5816_v50 }
 0x2da   : > { %v5888_v13 = vadd.f32 %v9757_v46, %v5817_v58  ;;  %v5341_v2 = vrot.slane %v5340_v34, 2  ;;  %v5358_v61 = vadd.f32 %v5357_v27, %v5356_v32  ;;  %v5889_v3 = vadd.f32 %v9757_v46, %v5818_v31  ;;  %v10235_v27 = vld [vmem:[#allocation7_spill] sm:$0xff] }
 0x2db   : > { %v5333_v1 = vadd.f32 %v5332_v23, %v5331_v63  ;;  %v5350_v36 = vrot.slane %v5349_v0, 2  ;;  %v5890_v38 = vadd.f32 %v9757_v46, %v5819_v30  ;;  %v5891_v43 = vadd.f32 %v9757_v46, %v5820_v56 }
 0x2dc   : > { %v6012_v4 = vrot.slane %v5885_v6, 7  ;;  %v5342_v17 = vadd.f32 %v5341_v2, %v5340_v34  ;;  %v5359_v12 = vrot.slane %v5358_v61, 2  ;;  %v9819_v16 = vadd.f32 %v9697_v29, %v9714_v10 }
 0x2dd   : > { %v5334_v40 = vrot.slane %v5333_v1, 1  ;;  %v5351_v54 = vadd.f32 %v5350_v36, %v5349_v0  ;;  %v6015_v14 = vrot.slane %v5886_v26, 6  ;;  %v6018_v33 = vrot.slane %v5887_v35, 5  ;;  %v10234_v0 = vld [vmem:[#allocation15_spill] sm:$0xff]  ;;  %v10236_v26 = vld [vmem:[#allocation13_spill] sm:$0xff]  ;;  %v10237_v35 = vld [vmem:[#allocation6_spill] sm:$0xff] }
 0x2de   : > { %v6014_v51 = vsel %vm6013_vm14, %v6012_v4, %v5884_v7  ;;  %v5343_v58 = vrot.slane %v5342_v17, 1  ;;  %v5360_v48 = vadd.f32 %v5359_v12, %v5358_v61  ;;  %v6021_v32 = vrot.slane %v5888_v13, 4 }
 0x2df   : > { %v5335_v50 = vadd.f32 %v5334_v40, %v5333_v1  ;;  %v5352_v63 = vrot.slane %v5351_v54, 1  ;;  %v6017_v5 = vsel %vm6016_vm15, %v6015_v14, %v6014_v51  ;;  %v6024_v31 = vrot.slane %v5889_v3, 3 }
 0x2e0   : > { %v6027_v30 = vrot.slane %v5890_v38, 2  ;;  %v5344_v28 = vadd.f32 %v5343_v58, %v5342_v17  ;;  %v5361_v23 = vrot.slane %v5360_v48, 1  ;;  %v6030_v34 = vrot.slane %v5891_v43, 1  ;;  %v10238_v43 = vld [vmem:[#allocation31_spill] sm:$0xff] }
 0x2e1   : > { %v5353_v56 = vadd.f32 %v5352_v63, %v5351_v54  ;;  %v9824_v10 = vadd.f32 %v9697_v29, %v5335_v50  ;;  %v6020_v7 = vsel %vm6019_vm0, %v6018_v33, %v6017_v5  ;;  %v7350_v6 = vadd.f32 %v10235_v27, %v10234_v0  ;;  %v10240_v0 = vld [vmem:[#allocation27_spill] sm:$0xff] }
 0x2e2   : > { %v7353_v1 = vadd.f32 %v10237_v35, %v10236_v26  ;;  %v5362_v2 = vadd.f32 %v5361_v23, %v5360_v48  ;;  %v9832_v13 = vadd.f32 %v9697_v29, %v5344_v28  ;;  %v6023_v36 = vsel %vm6022_vm1, %v6021_v32, %v6020_v7 }
 0x2e3   : > { %v5714_v61 = vrot.slane %v9539_v59, 1  ;;  %v9837_v3 = vadd.f32 %v9697_v29, %v5353_v56  ;;  %v6026_v38 = vsel %vm6025_vm2, %v6024_v31, %v6023_v36  ;;  %v7351_v4 = vadd.f32 %v7350_v6, %v10238_v43 }
 0x2e4   : > { %v7354_v40 = vadd.f32 %v7353_v1, %v9485_v19  ;;  %v6029_v17 = vsel %vm6028_vm3, %v6027_v30, %v6026_v38  ;;  %v5715_v54 = vrot.slane %v9539_v59, 2  ;;  %v5716_v12 = vrot.slane %v9539_v59, 3 }
 0x2e5   : > { %v5717_v51 = vrot.slane %v9539_v59, 4  ;;  %v6032_v14 = vsel %vm6031_vm4, %v6030_v34, %v6029_v17  ;;  %v4681_v33 = vcombine.high %v7351_v4, %v7351_v4  ;;  %v4688_v50 = vrot.slane %v7351_v4, %v9279_v9  ;;  %v10239_v34 = vld [vmem:[#allocation26_spill] sm:$0xff]  ;;  %v10241_v4 = vld [vmem:[#allocation28_spill] sm:$0xff] }
 0x2e6   : > { %v4647_v58 = vcombine.high %v7354_v40, %v7354_v40  ;;  %6139 = vst [vmem:[%s9798_s1] sm:$0xff] %v6032_v14  ;;  %v4654_v63 = vrot.slane %v7354_v40, %v9279_v9  ;;  %v5718_v48 = vrot.slane %v9539_v59, 5  ;;  %v5719_v19 = vrot.slane %v9539_v59, 6 }
 0x2e7   : > { %v5720_v5 = vrot.slane %v9539_v59, 7  ;;  %v4695_v32 = vrot.slane %v4681_v33, %v9279_v9  ;;  %v4696_v31 = vcombine.high %v4688_v50, %v4688_v50  ;;  %v5364_v30 = vsel %vm4894_vm13, %v4688_v50, 0.0 }
 0x2e8   : > { %v4661_v28 = vrot.slane %v4647_v58, %v9279_v9  ;;  %v4662_v56 = vcombine.high %v4654_v63, %v4654_v63  ;;  %v5363_v23 = vsel %vm4894_vm13, %v4654_v63, 0.0  ;;  %v5837_v7 = vadd.f32 %v9539_v59, %v10239_v34  ;;  %v10242_v58 = vld [vmem:[#allocation30_spill] sm:$0xff]  ;;  %v10244_v34 = vld [vmem:[#allocation33_spill] sm:$0xff] }
 0x2e9   : > { %v5838_v27 = vadd.f32 %v5714_v61, %v10240_v0  ;;  %v4697_v6 = vcombine.high %v4695_v32, %v4695_v32  ;;  %v5373_v26 = vsel %vm4894_vm13, %v4696_v31, 0.0  ;;  %v5382_v35 = vsel %vm4894_vm13, %v4695_v32, 0.0 }
 0x2ea   : > { %v4663_v1 = vcombine.high %v4661_v28, %v4661_v28  ;;  %v5365_v36 = vadd.f32 %v5364_v30, %v5363_v23  ;;  %v5372_v38 = vsel %vm4894_vm13, %v4662_v56, 0.0  ;;  %v5381_v43 = vsel %vm4894_vm13, %v4661_v28, 0.0  ;;  %v10243_v23 = vld [vmem:[#allocation32_spill] sm:$0xff] }
 0x2eb   : > { %v5839_v40 = vadd.f32 %v5715_v54, %v10241_v4  ;;  %v5391_v17 = vsel %vm4894_vm13, %v4697_v6, 0.0  ;;  %v5374_v14 = vadd.f32 %v5373_v26, %v5372_v38  ;;  %v5383_v33 = vadd.f32 %v5382_v35, %v5381_v43  ;;  %v10245_v26 = vld [vmem:[#allocation34_spill] sm:$0xff] }
 0x2ec   : > { %v5390_v59 = vsel %vm4894_vm13, %v4663_v1, 0.0  ;;  %v5366_v61 = vrot.slane %v5365_v36, 4  ;;  %v5840_v63 = vadd.f32 %v5716_v12, %v10242_v58  ;;  %v5841_v32 = vadd.f32 %v5717_v51, %v9463_v18 }
 0x2ed   : > { %v5392_v50 = vadd.f32 %v5391_v17, %v5390_v59  ;;  %v5375_v31 = vrot.slane %v5374_v14, 4  ;;  %v5384_v30 = vrot.slane %v5383_v33, 4  ;;  %v5842_v56 = vadd.f32 %v5718_v48, %v10243_v23 }
 0x2ee   : > { %v5843_v28 = vadd.f32 %v5719_v19, %v10244_v34  ;;  %v9872_v54 = vadd.f32 %v9697_v29, %v5362_v2  ;;  %v5367_v0 = vadd.f32 %v5366_v61, %v5365_v36  ;;  %v5844_v35 = vadd.f32 %v5720_v5, %v10245_v26 }
 0x2ef   : > { %v5393_v6 = vrot.slane %v5392_v50, 4  ;;  %v5376_v1 = vadd.f32 %v5375_v31, %v5374_v14  ;;  %v5385_v38 = vadd.f32 %v5384_v30, %v5383_v33  ;;  %v5909_v43 = vadd.f32 %v9757_v46, %v5838_v27 }
 0x2f0   : > { %v5910_v12 = vadd.f32 %v9757_v46, %v5839_v40  ;;  %v5368_v18 = vrot.slane %v5367_v0, 2  ;;  %v5908_v4 = vadd.f32 %v9757_v46, %v5837_v7  ;;  %v5911_v48 = vadd.f32 %v9757_v46, %v5840_v63 }
 0x2f1   : > { %v5394_v51 = vadd.f32 %v5393_v6, %v5392_v50  ;;  %v5377_v19 = vrot.slane %v5376_v1, 2  ;;  %v5386_v17 = vrot.slane %v5385_v38, 2  ;;  %v5912_v2 = vadd.f32 %v9757_v46, %v5841_v32 }
 0x2f2   : > { %v5913_v36 = vadd.f32 %v9757_v46, %v5842_v56  ;;  %v5369_v59 = vadd.f32 %v5368_v18, %v5367_v0  ;;  %v5914_v14 = vadd.f32 %v9757_v46, %v5843_v28  ;;  %v6061_v33 = vrot.slane %v5909_v43, 7 }
 0x2f3   : > { %v5395_v5 = vrot.slane %v5394_v51, 2  ;;  %v5378_v27 = vadd.f32 %v5377_v19, %v5376_v1  ;;  %v5387_v61 = vadd.f32 %v5386_v17, %v5385_v38  ;;  %v5915_v40 = vadd.f32 %v9757_v46, %v5844_v35 }
 0x2f4   : > { %v6063_v50 = vrot.slane %v5910_v12, 6  ;;  %v5370_v58 = vrot.slane %v5369_v59, 1  ;;  %v6062_v63 = vsel %vm6013_vm14, %v6061_v33, %v5908_v4  ;;  %v6065_v31 = vrot.slane %v5911_v48, 5 }
 0x2f5   : > { %v5396_v7 = vadd.f32 %v5395_v5, %v5394_v51  ;;  %v5379_v30 = vrot.slane %v5378_v27, 1  ;;  %v5388_v23 = vrot.slane %v5387_v61, 1  ;;  %v6067_v56 = vrot.slane %v5912_v2, 4  ;;  %v10246_v51 = vld [vmem:[#allocation38_spill] sm:$0xff] }
 0x2f6   : > { %v6064_v32 = vsel %vm6016_vm15, %v6063_v50, %v6062_v63  ;;  %v5371_v34 = vadd.f32 %v5370_v58, %v5369_v59  ;;  %v6069_v6 = vrot.slane %v5913_v36, 3  ;;  %v6071_v38 = vrot.slane %v5914_v14, 2 }
 0x2f7   : > { %v5397_v0 = vrot.slane %v5396_v7, 1  ;;  %v6066_v28 = vsel %vm6019_vm0, %v6065_v31, %v6064_v32  ;;  %v5380_v26 = vadd.f32 %v5379_v30, %v5378_v27  ;;  %v5389_v1 = vadd.f32 %v5388_v23, %v5387_v61 }
 0x2f8   : > { %v6068_v35 = vsel %vm6022_vm1, %v6067_v56, %v6066_v28  ;;  %v6073_v18 = vrot.slane %v5915_v40, 1  ;;  %v5707_v4 = vrot.slane %v10246_v51, 1  ;;  %v9892_v48 = vadd.f32 %v9697_v29, %v5371_v34  ;;  %v10247_v34 = vld [vmem:[#allocation19_spill] sm:$0xff] }
 0x2f9   : > { %v9887_v43 = vadd.f32 %v5397_v0, %v5396_v7  ;;  %v6070_v12 = vsel %vm6025_vm2, %v6069_v6, %v6068_v35  ;;  %v9895_v19 = vadd.f32 %v9697_v29, %v5380_v26  ;;  %v5708_v2 = vrot.slane %v10246_v51, 2 }
 0x2fa   : > { %v6072_v17 = vsel %vm6028_vm3, %v6071_v38, %v6070_v12  ;;  %v9900_v36 = vadd.f32 %v9697_v29, %v5389_v1  ;;  %v5709_v5 = vrot.slane %v10246_v51, 3  ;;  %v5710_v14 = vrot.slane %v10246_v51, 4 }
 0x2fb   : > { %v6074_v59 = vsel %vm6031_vm4, %v6073_v18, %v6072_v17  ;;  %v5711_v33 = vrot.slane %v10246_v51, 5  ;;  %v5712_v27 = vrot.slane %v10246_v51, 6  ;;  %v5713_v61 = vrot.slane %v10246_v51, 7 }
 0x2fc   : > { %6142 = vst [vmem:[%s9798_s1 + $0x18] sm:$0xff] %v6074_v59  ;;  %v5829_v40 = vadd.f32 %v9628_v62, %v10246_v51  ;;  %v5830_v50 = vadd.f32 %v5707_v4, %v9631_v11  ;;  %v5831_v58 = vadd.f32 %v5708_v2, %v9638_v60  ;;  %v5832_v7 = vadd.f32 %v5709_v5, %v9641_v24 }
 0x2fd   : > { %v5833_v63 = vadd.f32 %v5710_v14, %v9700_v57  ;;  %v5834_v31 = vadd.f32 %v5711_v33, %v9703_v21  ;;  %v5835_v30 = vadd.f32 %v5712_v27, %v9708_v15  ;;  %v5836_v23 = vadd.f32 %v5713_v61, %v9711_v25  ;;  %v10248_v15 = vld [vmem:[#allocation10_spill] sm:$0xff] }
 0x2fe   : > { %v5900_v32 = vadd.f32 %v9757_v46, %v5829_v40  ;;  %v5901_v56 = vadd.f32 %v9757_v46, %v5830_v50  ;;  %v5902_v62 = vadd.f32 %v9757_v46, %v5831_v58  ;;  %v5903_v11 = vadd.f32 %v9757_v46, %v5832_v7 }
 0x2ff   : > { %v5904_v60 = vadd.f32 %v9757_v46, %v5833_v63  ;;  %v5905_v24 = vadd.f32 %v9757_v46, %v5834_v31  ;;  %v5906_v57 = vadd.f32 %v9757_v46, %v5835_v30  ;;  %v5907_v21 = vadd.f32 %v9757_v46, %v5836_v23 }
 0x300   : > { %v7356_v0 = vadd.f32 %v10248_v15, %v10247_v34  ;;  %v6047_v25 = vrot.slane %v5901_v56, 7  ;;  %v6049_v28 = vrot.slane %v5902_v62, 6  ;;  %v6051_v6 = vrot.slane %v5903_v11, 5 }
 0x301   : > { %v6053_v26 = vrot.slane %v5904_v60, 4  ;;  %v6055_v1 = vrot.slane %v5905_v24, 3  ;;  %v6057_v35 = vrot.slane %v5906_v57, 2  ;;  %v6059_v38 = vrot.slane %v5907_v21, 1 }
 0x302   : > { %v7357_v12 = vadd.f32 %v7356_v0, %v9554_v49  ;;  %v6048_v18 = vsel %vm6013_vm14, %v6047_v25, %v5900_v32  ;;  %v5728_v51 = vrot.slane %v9556_v37, 1  ;;  %v5729_v4 = vrot.slane %v9556_v37, 2 }
 0x303   : > { %v5730_v17 = vrot.slane %v9556_v37, 3  ;;  %v6050_v2 = vsel %vm6016_vm15, %v6049_v28, %v6048_v18  ;;  %v5731_v14 = vrot.slane %v9556_v37, 4  ;;  %v5732_v27 = vrot.slane %v9556_v37, 5  ;;  %v10249_v28 = vld [vmem:[#allocation17_spill] sm:$0xff] }
 0x304   : > { %v4732_v59 = vcombine.high %v7357_v12, %v7357_v12  ;;  %v4739_v5 = vrot.slane %v7357_v12, %v9279_v9  ;;  %v6052_v33 = vsel %vm6019_vm0, %v6051_v6, %v6050_v2  ;;  %v5733_v49 = vrot.slane %v9556_v37, 6 }
 0x305   : > { %v5734_v61 = vrot.slane %v9556_v37, 7  ;;  %v6054_v40 = vsel %vm6022_vm1, %v6053_v26, %v6052_v33  ;;  %v5853_v31 = vadd.f32 %v9556_v37, %v9645_v45  ;;  %v5854_v30 = vadd.f32 %v5728_v51, %v9649_v53 }
 0x306   : > { %v4746_v50 = vrot.slane %v4732_v59, %v9279_v9  ;;  %v4747_v58 = vcombine.high %v4739_v5, %v4739_v5  ;;  %v5400_v7 = vsel %vm4894_vm13, %v4739_v5, 0.0  ;;  %v6056_v63 = vsel %vm6025_vm2, %v6055_v1, %v6054_v40 }
 0x307   : > { %v5855_v23 = vadd.f32 %v5729_v4, %v9655_v55  ;;  %v6058_v32 = vsel %vm6028_vm3, %v6057_v35, %v6056_v63  ;;  %v5856_v24 = vadd.f32 %v5730_v17, %v9663_v8  ;;  %v5857_v57 = vadd.f32 %v5731_v14, %v9717_v22 }
 0x308   : > { %v4748_v56 = vcombine.high %v4746_v50, %v4746_v50  ;;  %v5409_v62 = vsel %vm4894_vm13, %v4747_v58, 0.0  ;;  %v5418_v11 = vsel %vm4894_vm13, %v4746_v50, 0.0  ;;  %v6060_v60 = vsel %vm6031_vm4, %v6059_v38, %v6058_v32  ;;  %v10251_v32 = vld [vmem:[#allocation35_spill] sm:$0xff] }
 0x309   : > { %v5858_v21 = vadd.f32 %v5732_v27, %v9723_v52  ;;  %6141 = vst [vmem:[%s9798_s1 + $0x10] sm:$0xff] %v6060_v60  ;;  %v5859_v45 = vadd.f32 %v5733_v49, %v9730_v44  ;;  %v5860_v53 = vadd.f32 %v5734_v61, %v9819_v16  ;;  %v5924_v55 = vadd.f32 %v9757_v46, %v5853_v31  ;;  %v10250_v44 = vld [vmem:[#allocation8_spill] sm:$0xff] }
 0x30a   : > { %v5427_v37 = vsel %vm4894_vm13, %v4748_v56, 0.0  ;;  %v5925_v34 = vadd.f32 %v9757_v46, %v5854_v30  ;;  %v5926_v15 = vadd.f32 %v9757_v46, %v5855_v23  ;;  %v5927_v0 = vadd.f32 %v9757_v46, %v5856_v24  ;;  %v10252_v60 = vld [vmem:[#allocation36_spill] sm:$0xff] }
 0x30b   : > { %v5928_v8 = vadd.f32 %v9757_v46, %v5857_v57  ;;  %v5929_v22 = vadd.f32 %v9757_v46, %v5858_v21  ;;  %v5930_v52 = vadd.f32 %v9757_v46, %v5859_v45  ;;  %v5931_v25 = vadd.f32 %v9757_v46, %v5860_v53 }
 0x30c   : > { %v7359_v6 = vadd.f32 %v10250_v44, %v10249_v28  ;;  %v6089_v16 = vrot.slane %v5925_v34, 7  ;;  %v6091_v26 = vrot.slane %v5926_v15, 6  ;;  %v6093_v1 = vrot.slane %v5927_v0, 5 }
 0x30d   : > { %v6095_v35 = vrot.slane %v5928_v8, 4  ;;  %v6097_v38 = vrot.slane %v5929_v22, 3  ;;  %v6099_v12 = vrot.slane %v5930_v52, 2  ;;  %v6101_v18 = vrot.slane %v5931_v25, 1  ;;  %v10253_v8 = vld [vmem:[#allocation37_spill] sm:$0xff]  ;;  %v10254_v52 = vld [vmem:[#allocation39_spill] sm:$0xff] }
 0x30e   : > { %v7360_v51 = vadd.f32 %v7359_v6, %v9613_v39  ;;  %v6090_v4 = vsel %vm6013_vm14, %v6089_v16, %v5924_v55  ;;  %v5721_v17 = vrot.slane %v9625_v42, 1  ;;  %v5722_v2 = vrot.slane %v9625_v42, 2 }
 0x30f   : > { %v5723_v59 = vrot.slane %v9625_v42, 3  ;;  %v6092_v5 = vsel %vm6016_vm15, %v6091_v26, %v6090_v4  ;;  %v5724_v27 = vrot.slane %v9625_v42, 4  ;;  %v5725_v61 = vrot.slane %v9625_v42, 5  ;;  %v10255_v26 = vld [vmem:[#allocation40_spill] sm:$0xff] }
 0x310   : > { %v4698_v14 = vcombine.high %v7360_v51, %v7360_v51  ;;  %v4705_v33 = vrot.slane %v7360_v51, %v9279_v9  ;;  %v6094_v49 = vsel %vm6019_vm0, %v6093_v1, %v6092_v5  ;;  %v5726_v39 = vrot.slane %v9625_v42, 6 }
 0x311   : > { %v5727_v40 = vrot.slane %v9625_v42, 7  ;;  %v6096_v50 = vsel %vm6022_vm1, %v6095_v35, %v6094_v49  ;;  %v5845_v56 = vadd.f32 %v10251_v32, %v9625_v42  ;;  %v5846_v24 = vadd.f32 %v5721_v17, %v10252_v60  ;;  %v10256_v35 = vld [vmem:[#allocation41_spill] sm:$0xff] }
 0x312   : > { %v4712_v58 = vrot.slane %v4698_v14, %v9279_v9  ;;  %v4713_v63 = vcombine.high %v4705_v33, %v4705_v33  ;;  %v5399_v31 = vsel %vm4894_vm13, %v4705_v33, 0.0  ;;  %v6098_v30 = vsel %vm6025_vm2, %v6097_v38, %v6096_v50 }
 0x313   : > { %v5401_v23 = vadd.f32 %v5400_v7, %v5399_v31  ;;  %v6100_v57 = vsel %vm6028_vm3, %v6099_v12, %v6098_v30  ;;  %v5847_v22 = vadd.f32 %v5722_v2, %v10253_v8  ;;  %v5848_v42 = vadd.f32 %v5723_v59, %v9560_v47  ;;  %v10257_v12 = vld [vmem:[#allocation42_spill] sm:$0xff] }
 0x314   : > { %v4714_v21 = vcombine.high %v4712_v58, %v4712_v58  ;;  %v5408_v45 = vsel %vm4894_vm13, %v4713_v63, 0.0  ;;  %v5417_v53 = vsel %vm4894_vm13, %v4712_v58, 0.0  ;;  %v6102_v55 = vsel %vm6031_vm4, %v6101_v18, %v6100_v57 }
 0x315   : > { %v5402_v34 = vrot.slane %v5401_v23, 4  ;;  %v5410_v15 = vadd.f32 %v5409_v62, %v5408_v45  ;;  %v5419_v0 = vadd.f32 %v5418_v11, %v5417_v53  ;;  %6144 = vst [vmem:[%s9798_s1 + $0x28] sm:$0xff] %v6102_v55  ;;  %v5849_v25 = vadd.f32 %v5724_v27, %v10254_v52  ;;  %v10259_v52 = vld [vmem:[#allocation11_spill] sm:$0xff] }
 0x316   : > { %v5426_v7 = vsel %vm4894_vm13, %v4714_v21, 0.0  ;;  %v5850_v1 = vadd.f32 %v5725_v61, %v10255_v26  ;;  %v5851_v38 = vadd.f32 %v5726_v39, %v10256_v35  ;;  %v5852_v62 = vadd.f32 %v5727_v40, %v10257_v12 }
 0x317   : > { %v5403_v28 = vadd.f32 %v5402_v34, %v5401_v23  ;;  %v5411_v44 = vrot.slane %v5410_v15, 4  ;;  %v5420_v6 = vrot.slane %v5419_v0, 4  ;;  %v5428_v16 = vadd.f32 %v5427_v37, %v5426_v7 }
 0x318   : > { %v5916_v11 = vadd.f32 %v9757_v46, %v5845_v56  ;;  %v5917_v47 = vadd.f32 %v9757_v46, %v5846_v24  ;;  %v5918_v2 = vadd.f32 %v9757_v46, %v5847_v22  ;;  %v5919_v59 = vadd.f32 %v9757_v46, %v5848_v42  ;;  %v10258_v42 = vld [vmem:[#allocation20_spill] sm:$0xff] }
 0x319   : > { %v5404_v18 = vrot.slane %v5403_v28, 2  ;;  %v5412_v51 = vadd.f32 %v5411_v44, %v5410_v15  ;;  %v5421_v4 = vadd.f32 %v5420_v6, %v5419_v0  ;;  %v5429_v17 = vrot.slane %v5428_v16, 4  ;;  %v10261_v44 = vld [vmem:[#allocation9_spill] sm:$0xff] }
 0x31a   : > { %v5920_v37 = vadd.f32 %v9757_v46, %v5849_v25  ;;  %v5921_v49 = vadd.f32 %v9757_v46, %v5850_v1  ;;  %v5922_v61 = vadd.f32 %v9757_v46, %v5851_v38  ;;  %v5923_v39 = vadd.f32 %v9757_v46, %v5852_v62  ;;  %v10262_v62 = vld [vmem:[#allocation43_spill] sm:$0xff] }
 0x31b   : > { %v5405_v5 = vadd.f32 %v5404_v18, %v5403_v28  ;;  %v5413_v14 = vrot.slane %v5412_v51, 2  ;;  %v5422_v33 = vrot.slane %v5421_v4, 2  ;;  %v5430_v27 = vadd.f32 %v5429_v17, %v5428_v16  ;;  %v10260_v28 = vld [vmem:[#allocation18_spill] sm:$0xff]  ;;  %v10263_v18 = vld [vmem:[#allocation12_spill] sm:$0xff] }
 0x31c   : > { %v6075_v40 = vrot.slane %v5917_v47, 7  ;;  %v10010_v30 = vadd.f32 %v9697_v29, %v9887_v43  ;;  %v6077_v32 = vrot.slane %v5918_v2, 6  ;;  %v6079_v56 = vrot.slane %v5919_v59, 5 }
 0x31d   : > { %v5406_v50 = vrot.slane %v5405_v5, 1  ;;  %v5414_v58 = vadd.f32 %v5413_v14, %v5412_v51  ;;  %v5423_v63 = vadd.f32 %v5422_v33, %v5421_v4  ;;  %v5431_v31 = vrot.slane %v5430_v27, 2 }
 0x31e   : > { %v6076_v23 = vsel %vm6013_vm14, %v6075_v40, %v5916_v11  ;;  %v6081_v53 = vrot.slane %v5920_v37, 4  ;;  %v6083_v55 = vrot.slane %v5921_v49, 3  ;;  %v6085_v34 = vrot.slane %v5922_v61, 2 }
 0x31f   : > { %v5407_v60 = vadd.f32 %v5406_v50, %v5405_v5  ;;  %v5415_v24 = vrot.slane %v5414_v58, 1  ;;  %v5424_v57 = vrot.slane %v5423_v63, 1  ;;  %v5432_v21 = vadd.f32 %v5431_v31, %v5430_v27 }
 0x320   : > { %v6078_v45 = vsel %vm6016_vm15, %v6077_v32, %v6076_v23  ;;  %v6087_v8 = vrot.slane %v5923_v39, 1  ;;  %v7362_v25 = vadd.f32 %v10259_v52, %v10258_v42  ;;  %v7365_v6 = vadd.f32 %v10261_v44, %v10260_v28 }
 0x321   : > { %v5416_v15 = vadd.f32 %v5415_v24, %v5414_v58  ;;  %v5425_v0 = vadd.f32 %v5424_v57, %v5423_v63  ;;  %v5433_v7 = vrot.slane %v5432_v21, 1  ;;  %v5677_v43 = vadd.f32 %v9697_v29, %v5407_v60 }
 0x322   : > { %v6080_v22 = vsel %vm6019_vm0, %v6079_v56, %v6078_v45  ;;  %v5742_v35 = vrot.slane %v9690_v41, 1  ;;  %v7363_v11 = vadd.f32 %v7362_v25, %v10262_v62  ;;  %v7366_v51 = vadd.f32 %v7365_v6, %v10263_v18 }
 0x323   : > { %v5434_v16 = vadd.f32 %v5433_v7, %v5432_v21  ;;  %v5678_v26 = vadd.f32 %v9697_v29, %v5416_v15  ;;  %v6082_v1 = vsel %vm6022_vm1, %v6081_v53, %v6080_v22  ;;  %v5679_v38 = vadd.f32 %v9697_v29, %v5425_v0 }
 0x324   : > { %v6084_v12 = vsel %vm6025_vm2, %v6083_v55, %v6082_v1  ;;  %v5743_v47 = vrot.slane %v9690_v41, 2  ;;  %v5744_v2 = vrot.slane %v9690_v41, 3  ;;  %v4749_v37 = vcombine.high %v7363_v11, %v7363_v11 }
 0x325   : > { %v5680_v4 = vadd.f32 %v9697_v29, %v5434_v16  ;;  %v6086_v17 = vsel %vm6028_vm3, %v6085_v34, %v6084_v12  ;;  %v4756_v5 = vrot.slane %v7363_v11, %v9279_v9  ;;  %v4715_v14 = vcombine.high %v7366_v51, %v7366_v51 }
 0x326   : > { %v6088_v59 = vsel %vm6031_vm4, %v6087_v8, %v6086_v17  ;;  %v4722_v33 = vrot.slane %v7366_v51, %v9279_v9  ;;  %v5745_v27 = vrot.slane %v9690_v41, 4  ;;  %v5746_v49 = vrot.slane %v9690_v41, 5 }
 0x327   : > { %6143 = vst [vmem:[%s9798_s1 + $0x20] sm:$0xff] %v6088_v59  ;;  %v5747_v61 = vrot.slane %v9690_v41, 6  ;;  %v4763_v39 = vrot.slane %v4749_v37, %v9279_v9  ;;  %v4764_v40 = vcombine.high %v4756_v5, %v4756_v5  ;;  %v5436_v50 = vsel %vm4894_vm13, %v4756_v5, 0.0 }
 0x328   : > { %v4729_v58 = vrot.slane %v4715_v14, %v9279_v9  ;;  %v4730_v63 = vcombine.high %v4722_v33, %v4722_v33  ;;  %v5435_v31 = vsel %vm4894_vm13, %v4722_v33, 0.0  ;;  %v5869_v23 = vadd.f32 %v9690_v41, %v5677_v43 }
 0x329   : > { %v5870_v32 = vadd.f32 %v5742_v35, %v5678_v26  ;;  %v4765_v56 = vcombine.high %v4763_v39, %v4763_v39  ;;  %v5445_v60 = vsel %vm4894_vm13, %v4764_v40, 0.0  ;;  %v5454_v24 = vsel %vm4894_vm13, %v4763_v39, 0.0 }
 0x32a   : > { %v4731_v57 = vcombine.high %v4729_v58, %v4729_v58  ;;  %v5437_v21 = vadd.f32 %v5436_v50, %v5435_v31  ;;  %v5444_v45 = vsel %vm4894_vm13, %v4730_v63, 0.0  ;;  %v5453_v53 = vsel %vm4894_vm13, %v4729_v58, 0.0 }
 0x32b   : > { %v5871_v55 = vadd.f32 %v5743_v47, %v5679_v38  ;;  %v5463_v9 = vsel %vm4894_vm13, %v4765_v56, 0.0  ;;  %v5446_v34 = vadd.f32 %v5445_v60, %v5444_v45  ;;  %v5455_v15 = vadd.f32 %v5454_v24, %v5453_v53 }
 0x32c   : > { %v5462_v0 = vsel %vm4894_vm13, %v4731_v57, 0.0  ;;  %v5438_v7 = vrot.slane %v5437_v21, 4  ;;  %v5872_v43 = vadd.f32 %v5744_v2, %v5680_v4  ;;  %v5940_v22 = vadd.f32 %v9757_v46, %v5869_v23 }
 0x32d   : > { %v5464_v8 = vadd.f32 %v5463_v9, %v5462_v0  ;;  %v5447_v42 = vrot.slane %v5446_v34, 4  ;;  %v5456_v52 = vrot.slane %v5455_v15, 4  ;;  %v5941_v25 = vadd.f32 %v9757_v46, %v5870_v32 }
 0x32e   : > { %v5942_v28 = vadd.f32 %v9757_v46, %v5871_v55  ;;  %v5439_v44 = vadd.f32 %v5438_v7, %v5437_v21  ;;  %v5943_v16 = vadd.f32 %v9757_v46, %v5872_v43  ;;  %v5735_v26 = vrot.slane %v9737_v20, 1 }
 0x32f   : > { %v5465_v6 = vrot.slane %v5464_v8, 4  ;;  %v5448_v1 = vadd.f32 %v5447_v42, %v5446_v34  ;;  %v5457_v35 = vadd.f32 %v5456_v52, %v5455_v15  ;;  %v6117_v38 = vrot.slane %v5941_v25, 7 }
 0x330   : > { %v6119_v12 = vrot.slane %v5942_v28, 6  ;;  %v5440_v62 = vrot.slane %v5439_v44, 2  ;;  %v6121_v18 = vrot.slane %v5943_v16, 5  ;;  %v5736_v51 = vrot.slane %v9737_v20, 2 }
 0x331   : > { %v5466_v11 = vadd.f32 %v5465_v6, %v5464_v8  ;;  %v5449_v4 = vrot.slane %v5448_v1, 2  ;;  %v5458_v17 = vrot.slane %v5457_v35, 2  ;;  %v6118_v47 = vsel %vm6013_vm14, %v6117_v38, %v5940_v22 }
 0x332   : > { %v5737_v2 = vrot.slane %v9737_v20, 3  ;;  %v5441_v59 = vadd.f32 %v5440_v62, %v5439_v44  ;;  %v6120_v5 = vsel %vm6016_vm15, %v6119_v12, %v6118_v47  ;;  %v5738_v14 = vrot.slane %v9737_v20, 4 }
 0x333   : > { %v5467_v37 = vrot.slane %v5466_v11, 2  ;;  %v5450_v33 = vadd.f32 %v5449_v4, %v5448_v1  ;;  %v5459_v39 = vadd.f32 %v5458_v17, %v5457_v35  ;;  %v6122_v40 = vsel %vm6019_vm0, %v6121_v18, %v6120_v5 }
 0x334   : > { %v5739_v50 = vrot.slane %v9737_v20, 5  ;;  %v5442_v58 = vrot.slane %v5441_v59, 1  ;;  %v5740_v31 = vrot.slane %v9737_v20, 6  ;;  %v5741_v23 = vrot.slane %v9737_v20, 7 }
 0x335   : > { %v5468_v63 = vadd.f32 %v5467_v37, %v5466_v11  ;;  %v5451_v32 = vrot.slane %v5450_v33, 1  ;;  %v5460_v56 = vrot.slane %v5459_v39, 1  ;;  %v5861_v60 = vadd.f32 %v9824_v10, %v9737_v20 }
 0x336   : > { %v5862_v24 = vadd.f32 %v5735_v26, %v9832_v13  ;;  %v5443_v57 = vadd.f32 %v5442_v58, %v5441_v59  ;;  %v5863_v45 = vadd.f32 %v5736_v51, %v9837_v3  ;;  %v5864_v53 = vadd.f32 %v5737_v2, %v9872_v54 }
 0x337   : > { %v5469_v21 = vrot.slane %v5468_v63, 1  ;;  %v5452_v55 = vadd.f32 %v5451_v32, %v5450_v33  ;;  %v5461_v9 = vadd.f32 %v5460_v56, %v5459_v39  ;;  %v5865_v34 = vadd.f32 %v5738_v14, %v9892_v48 }
 0x338   : > { %v5866_v15 = vadd.f32 %v5739_v50, %v9895_v19  ;;  %v5681_v7 = vadd.f32 %v9697_v29, %v5443_v57  ;;  %v5867_v8 = vadd.f32 %v5740_v31, %v9900_v36  ;;  %v5868_v20 = vadd.f32 %v5741_v23, %v10010_v30 }
 0x339   : > { %v5470_v0 = vadd.f32 %v5469_v21, %v5468_v63  ;;  %v5682_v10 = vadd.f32 %v9697_v29, %v5452_v55  ;;  %v5683_v13 = vadd.f32 %v9697_v29, %v5461_v9  ;;  %v5748_v3 = vrot.slane %v9690_v41, 7 }
 0x33a   : > { %v5933_v54 = vadd.f32 %v9757_v46, %v5862_v24  ;;  %v5873_v48 = vadd.f32 %v5745_v27, %v5681_v7  ;;  %v5934_v19 = vadd.f32 %v9757_v46, %v5863_v45  ;;  %v5935_v22 = vadd.f32 %v9757_v46, %v5864_v53 }
 0x33b   : > { %v5684_v43 = vadd.f32 %v9697_v29, %v5470_v0  ;;  %v5874_v36 = vadd.f32 %v5746_v49, %v5682_v10  ;;  %v5875_v30 = vadd.f32 %v5747_v61, %v5683_v13  ;;  %v5932_v42 = vadd.f32 %v9757_v46, %v5861_v60 }
 0x33c   : > { %v5944_v25 = vadd.f32 %v9757_v46, %v5873_v48  ;;  %v5936_v29 = vadd.f32 %v9757_v46, %v5865_v34  ;;  %v5937_v28 = vadd.f32 %v9757_v46, %v5866_v15  ;;  %v6103_v6 = vrot.slane %v5933_v54, 7 }
 0x33d   : > { %v5876_v52 = vadd.f32 %v5748_v3, %v5684_v43  ;;  %v5945_v27 = vadd.f32 %v9757_v46, %v5874_v36  ;;  %v5946_v44 = vadd.f32 %v9757_v46, %v5875_v30  ;;  %v6105_v49 = vrot.slane %v5934_v19, 6 }
 0x33e   : > { %v6123_v61 = vrot.slane %v5944_v25, 4  ;;  %v5938_v16 = vadd.f32 %v9757_v46, %v5867_v8  ;;  %v6107_v26 = vrot.slane %v5935_v22, 5  ;;  %v5939_v35 = vadd.f32 %v9757_v46, %v5868_v20 }
 0x33f   : > { %v5947_v41 = vadd.f32 %v9757_v46, %v5876_v52  ;;  %v6125_v1 = vrot.slane %v5945_v27, 3  ;;  %v6104_v38 = vsel %vm6013_vm14, %v6103_v6, %v5932_v42  ;;  %v6127_v62 = vrot.slane %v5946_v44, 2 }
 0x340   : > { %v6124_v12 = vsel %vm6022_vm1, %v6123_v61, %v6122_v40  ;;  %v6106_v11 = vsel %vm6016_vm15, %v6105_v49, %v6104_v38  ;;  %v6109_v18 = vrot.slane %v5936_v29, 4  ;;  %v6111_v47 = vrot.slane %v5937_v28, 3 }
 0x341   : > { %v6126_v51 = vsel %vm6025_vm2, %v6125_v1, %v6124_v12  ;;  %v6129_v4 = vrot.slane %v5947_v41, 1  ;;  %v6108_v17 = vsel %vm6019_vm0, %v6107_v26, %v6106_v11  ;;  %v6113_v59 = vrot.slane %v5938_v16, 2 }
 0x342   : > { %v6128_v46 = vsel %vm6028_vm3, %v6127_v62, %v6126_v51  ;;  %v6110_v2 = vsel %vm6022_vm1, %v6109_v18, %v6108_v17  ;;  %v6115_v14 = vrot.slane %v5939_v35, 1 }
 0x343   : > { %v6130_v37 = vsel %vm6031_vm4, %v6129_v4, %v6128_v46  ;;  %v6112_v5 = vsel %vm6025_vm2, %v6111_v47, %v6110_v2 }
 0x344   : > { %6146 = vst [vmem:[%s9798_s1 + $0x38] sm:$0xff] %v6130_v37  ;;  %v6114_v33 = vsel %vm6028_vm3, %v6113_v59, %v6112_v5 }
 0x345   : > { %v6116_v39 = vsel %vm6031_vm4, %v6115_v14, %v6114_v33 }
 0x346   : > { %6145 = vst [vmem:[%s9798_s1 + $0x30] sm:$0xff] %v6116_v39 }
 0x347   : > { %7678 = shalt.err (!%p7675_p5)
}
 0x348   : > { %s7679_s21 = scalar_lea.hbm %s10109_s12, 1024  ;;  %s7683_s25 = scalar_lea.hbm %s10173_s8, 2048 }
 0x349   : > { %p7680_p6 = scmp.ne.s32.totalorder %s10109_s12, %s7679_s21  ;;  %p7684_p10 = scmp.lt.u32.totalorder %s10109_s12, %s10173_s8 }
 0x34a   : > { %p7685_p11 = scmp.lt.u32.totalorder %s7683_s25, %s7679_s21  ;;  %p7687_p13 = scmp.lt.u32.totalorder %s7679_s21, %s10109_s12 }
 0x34b   : > { %p7681_p7 = pnand %p7680_p6, %p7835_p4 }
 0x34c   : > { %p7686_p12 = por %p7685_p11, %p7684_p10 }
 0x34d   : > { %p7682_p9 = pneg %p7681_p7 }
 0x34e   : > { %p7688_p0 = por %p7687_p13, %p7686_p12 }
 0x350   : > { %p7689_p1 = pnand %p7688_p0, %p7682_p9 }
 0x352   : > { %7692 = shalt.err (!%p7689_p1)
}
 0x353   : > { %s7748_s28 = smov 128   ;;  %s7749_s10 = smov 8  }
 0x354   : > { %7419 = dma.vmem_to_hbm [thread:$0]  (%p7835_p4), %s10111_s24, 1024, %s10109_s12, %s10119_s14, %s7748_s28, %s7748_s28, %s7749_s10  }
 0x355 PF: > { %p7425_p2 = scmp.ge.s32.totalorder %s7743_s30, 2  ;;  %s6179_s17 = sand.u32 1, %s7723_s2  }
 0x356   : > { %s6180_s20 = scalar_lea.sflag [#allocation4], %s6179_s17 }
 0x357   : > { %p7422_p3 = pnand %p7425_p2, %p7842_p8 }
 0x359   : > { %7718 = dma.done.wait (!%p7422_p3), %s6180_s20, 1024  }
 0x35a   : > { %7720 = vsyncadd (!%p7422_p3), %s6180_s20, 4294966272  ;;  %s21_s30 = sadd.s32 1, %s7743_s30   ;;  %s10264_s2 = smov %s7727_s26 }
 0x35b   : > { %p18_p5 = scmp.ge.s32.totalorder %s21_s30, 4   ;;  %s10265_s26 = smov %s7731_s27 }
 0x35c   : > { %s10266_s27 = smov %s7848_s16  ;;  %s10267_s28 = smov %s7739_s29 }
 0x35d   : > { %s10268_s29 = smov %s10270_s11  ;;  %20 = sbr.rel (!%p18_p5) target bundleno = 4 (0x4), region = 113 }
 0x364   :  { %6185 = vsyncpa [#allocation4], 1 }
 0x365   :  { %6187 = vsyncpa [#allocation4 + $0x1], 1 }

</bundles_post_ra>
